<compile_context>
chip_gen: v6e
topology: v6e:2x2x1
jax: 0.10.0
libtpu: 0.0.40
codegen_flags: <defaults>
</compile_context>

<pallas_src>
import functools

import numpy as np
import jax
import jax.numpy as jnp
from jax import lax
from jax.experimental import pallas as pl
from jax.experimental.pallas import tpu as pltpu

LANE = 128


def _round_up(x, m):
    return (x + m - 1) // m * m


# ---------------------------------------------------------------------------
# Fused Conv2d (stride 1, symmetric padding) -- "shifted flat window" kernel.
#
# For output pixel (y, x) laid out at row q = y*Wp + x of the (H*Wp)-row output,
# the tap (dy, dx) reads row q + dy*Wp + dx of the flattened padded input, i.e.
# every tap is a contiguous row-slice of one VMEM-resident buffer.  Columns
# x >= W of the output are garbage and are dropped in the wrapper.
# ---------------------------------------------------------------------------
def _conv_shift_kernel(x_ref, w_ref, b_ref, o_ref, *, tap_offsets, apply_relu):
    # x_ref: (1, Lp, Kp)  f32   padded input, spatially flattened
    # w_ref: (T, Kp, Np)  bf16  one (Cin, Cout) slab per kernel tap
    # b_ref: (1, Np)      f32
    # o_ref: (1, M, Np)   f32   M = H * Wp
    m = o_ref.shape[1]
    n = o_ref.shape[2]
    acc = jnp.zeros((m, n), jnp.float32)
    for t, off in enumerate(tap_offsets):                 # static unroll, T = kh*kw
        # f32 load (unaligned sublane offsets), cast to bf16 for the MXU.
        a = x_ref[0, off:off + m, :].astype(jnp.bfloat16)  # (M, Kp)
        acc = acc + jnp.dot(a, w_ref[t], preferred_element_type=jnp.float32)
    out = acc + b_ref[...]                                 # (M, Np) + (1, Np)
    if apply_relu:
        out = jnp.maximum(out, 0.0)
    o_ref[0] = out.astype(o_ref.dtype)


def conv2d_pallas(x_nhwc, w_taps, bias_row, *, kh, kw, pad, apply_relu):
    """Stride-1 Conv2d; weights pre-packed by prepare_params (bf16, lane padded).
    Returns (N, H, W, Np) float32 where Np is the padded output-channel count."""
    N, H, W, Cin = x_nhwc.shape
    T, Kp, Np = w_taps.shape
    assert T == kh * kw and Cin <= Kp
    Hp, Wp = H + 2 * pad, W + 2 * pad
    M = H * Wp                                  # output rows (padded width incl.)
    Lp = _round_up(Hp * Wp + (kw - 1), 8)       # flat input rows (+ tap overrun)

    xp = jnp.pad(x_nhwc, ((0, 0), (pad, pad), (pad, pad), (0, 0)))
    xf = xp.reshape(N, Hp * Wp, Cin)
    xf = jnp.pad(xf, ((0, 0), (0, Lp - Hp * Wp), (0, Kp - Cin))).astype(jnp.float32)

    tap_offsets = tuple(dy * Wp + dx for dy in range(kh) for dx in range(kw))

    out = pl.pallas_call(
        functools.partial(_conv_shift_kernel, tap_offsets=tap_offsets,
                          apply_relu=apply_relu),
        out_shape=jax.ShapeDtypeStruct((N, M, Np), jnp.float32),
        grid_spec=pltpu.PrefetchScalarGridSpec(
            num_scalar_prefetch=0,
            grid=(N,),                                   # one step per image
            in_specs=[
                pl.BlockSpec((1, Lp, Kp), lambda n: (n, 0, 0)),   # whole image resident
                pl.BlockSpec((T, Kp, Np), lambda n: (0, 0, 0)),   # all taps resident
                pl.BlockSpec((1, Np), lambda n: (0, 0)),
            ],
            out_specs=pl.BlockSpec((1, M, Np), lambda n: (n, 0, 0)),  # lane-dense store
        ),
        compiler_params=pltpu.CompilerParams(
            dimension_semantics=("parallel",),           # batch across v7x cores
            vmem_limit_bytes=48 * 1024 * 1024),          # v5e default is 16 MiB
    )(xf, w_taps, bias_row)

    # Drop the padded-width garbage columns.
    return out.reshape(N, H, Wp, Np)[:, :, :W, :]


# ---------------------------------------------------------------------------
# Bilinear resize, PyTorch align_corners=False semantics, as two matmuls.
# ---------------------------------------------------------------------------
def _interp_matrix(out_size, in_size):
    scale = in_size / out_size
    dst = np.arange(out_size, dtype=np.float64)
    src = np.maximum((dst + 0.5) * scale - 0.5, 0.0)
    i0 = np.minimum(np.floor(src).astype(np.int64), in_size - 1)
    i1 = np.minimum(i0 + 1, in_size - 1)
    lam1 = src - i0
    lam0 = 1.0 - lam1
    rows = np.arange(out_size)
    R = np.zeros((out_size, in_size), dtype=np.float32)
    np.add.at(R, (rows, i0), lam0)
    np.add.at(R, (rows, i1), lam1)
    return R


def upsample_bilinear_nhwc(x, out_h, out_w):
    # TODO(synk): resize stays as XLA interpolation-matrix matmuls (MXU), not a
    # Pallas kernel; it could also be folded into the conv kernel's input stage.
    N, H, W, C = x.shape
    Rh = jnp.asarray(_interp_matrix(out_h, H))
    Rw = jnp.asarray(_interp_matrix(out_w, W))
    x = jnp.einsum("oh,nhwc->nowc", Rh, x)
    x = jnp.einsum("pw,nowc->nopc", Rw, x)
    return x


# ---------------------------------------------------------------------------
# Parameters (HWIO, f32) + one-time packing into kernel layout.
# ---------------------------------------------------------------------------
def init_params(key, input_channels, no_labels):
    ks = jax.random.split(key, 6)
    scale = 0.05
    return {
        "w1": jax.random.normal(ks[0], (5, 5, input_channels, 256), jnp.float32) * scale,
        "b1": jax.random.normal(ks[1], (256,), jnp.float32) * scale,
        "w2": jax.random.normal(ks[2], (3, 3, 256, 128), jnp.float32) * scale,
        "b2": jax.random.normal(ks[3], (128,), jnp.float32) * scale,
        "w3": jax.random.normal(ks[4], (1, 1, 128, no_labels), jnp.float32) * scale,
        "b3": jax.random.normal(ks[5], (no_labels,), jnp.float32) * scale,
    }


def prepare_params(params):
    """HWIO f32 -> (kh*kw, Kp, Np) bf16 with Cin/Cout zero-padded to 128 multiples;
    bias -> (1, Np) f32.  Done once, outside the forward pass."""
    def pack(w_hwio, b):
        kh, kw, cin, cout = w_hwio.shape
        kp = _round_up(cin, LANE)
        npad = _round_up(cout, LANE)
        w = jnp.pad(w_hwio, ((0, 0), (0, 0), (0, kp - cin), (0, npad - cout)))
        w = w.reshape(kh * kw, kp, npad).astype(jnp.bfloat16)
        bias = jnp.pad(b, (0, npad - cout)).astype(jnp.float32).reshape(1, npad)
        return w, bias

    w1, b1 = pack(params["w1"], params["b1"])
    w2, b2 = pack(params["w2"], params["b2"])
    w3, b3 = pack(params["w3"], params["b3"])
    return {"w1": w1, "b1": b1, "w2": w2, "b2": b2, "w3": w3, "b3": b3}


# ---------------------------------------------------------------------------
# FlowModule_MultiScale forward
# ---------------------------------------------------------------------------
def flow_module_multiscale(prepared, x_nchw, *, res_size, no_labels):
    rh, rw = res_size
    x = jnp.transpose(x_nchw, (0, 2, 3, 1)).astype(jnp.float32)   # NCHW -> NHWC

    x = upsample_bilinear_nhwc(x, rh // 4, rw // 4)
    x = conv2d_pallas(x, prepared["w1"], prepared["b1"], kh=5, kw=5, pad=2,
                      apply_relu=True)

    x = upsample_bilinear_nhwc(x, rh // 2, rw // 2)
    x = conv2d_pallas(x, prepared["w2"], prepared["b2"], kh=3, kw=3, pad=1,
                      apply_relu=True)

    # 1x1 conv hoisted BEFORE the last upsample: exact, since a 1x1 conv is
    # pointwise-linear and bilinear weights sum to 1 (the bias commutes too).
    x = conv2d_pallas(x, prepared["w3"], prepared["b3"], kh=1, kw=1, pad=0,
                      apply_relu=False)
    x = x[..., :no_labels]                                        # drop lane padding
    x = upsample_bilinear_nhwc(x, rh, rw)                         # only 3 channels now

    return jnp.transpose(x, (0, 3, 1, 2))                         # NHWC -> NCHW


# ---------------------------------------------------------------------------
# Pure-JAX f32 reference in the ORIGINAL op order (validates kernels + reorder)
# ---------------------------------------------------------------------------
def _conv_ref(x, w_hwio, b, pad):
    y = lax.conv_general_dilated(
        x, w_hwio, window_strides=(1, 1), padding=((pad, pad), (pad, pad)),
        dimension_numbers=("NHWC", "HWIO", "NHWC"),
        precision=lax.Precision.HIGHEST)
    return y + b[None, None, None, :]


def reference_forward(params, x_nchw, res_size):
    rh, rw = res_size
    x = jnp.transpose(x_nchw, (0, 2, 3, 1))
    x = upsample_bilinear_nhwc(x, rh // 4, rw // 4)
    x = jax.nn.relu(_conv_ref(x, params["w1"], params["b1"], 2))
    x = upsample_bilinear_nhwc(x, rh // 2, rw // 2)
    x = jax.nn.relu(_conv_ref(x, params["w2"], params["b2"], 1))
    x = upsample_bilinear_nhwc(x, rh, rw)
    x = _conv_ref(x, params["w3"], params["b3"], 0)
    return jnp.transpose(x, (0, 3, 1, 2))


if __name__ == "__main__":
    key = jax.random.PRNGKey(0)
    k_param, k_x = jax.random.split(key)

    input_channels = 4
    no_labels = 3
    batch = 2
    res_size = (32, 32)                                  # output spatial size

    params = init_params(k_param, input_channels, no_labels)
    prepared = prepare_params(params)                    # one-time weight packing
    x = jax.random.normal(k_x, (batch, input_channels, 16, 16), jnp.float32)

    fwd = jax.jit(functools.partial(flow_module_multiscale,
                                    res_size=res_size, no_labels=no_labels))
    out = jax.block_until_ready(fwd(prepared, x))

    assert out.shape == (batch, no_labels, res_size[0], res_size[1]), out.shape
    assert out.dtype == jnp.float32

    # Numerical sanity check vs plain-JAX f32 reference in the original op order
    # (tolerance covers bf16 MXU inputs with f32 accumulation).
    ref = jax.block_until_ready(reference_forward(params, x, res_size))
    err = float(jnp.max(jnp.abs(out - ref)))
    assert err < 5e-2, f"max |diff| vs reference = {err}"

    print("KERNEL_OK")
</pallas_src>

<mosaic_0001>
module attributes {stable_mosaic.version = 11 : i64} {
  func.func @_conv_shift_kernel(%arg0: i32, %arg1: memref<1x152x128xf32, #tpu.memory_space<vmem>>, %arg2: memref<25x128x256xbf16, #tpu.memory_space<vmem>>, %arg3: memref<1x256xf32, #tpu.memory_space<vmem>>, %arg4: memref<1x96x256xf32, #tpu.memory_space<vmem>>) attributes {dimension_semantics = [#tpu.dimension_semantics<parallel>], iteration_bounds = array<i64: 2>, scalar_prefetch = 0 : i64, scratch_operands = 0 : i64, tpu.core_type = #tpu.core_type<tc>, window_params = [{transform_indices = @transform_0, window_bounds = array<i64: 1, 152, 128>}, {pipeline_mode = #tpu.pipeline_mode<synchronous>, transform_indices = @transform_1, window_bounds = array<i64: 25, 128, 256>}, {pipeline_mode = #tpu.pipeline_mode<synchronous>, transform_indices = @transform_2, window_bounds = array<i64: 1, 256>}, {transform_indices = @transform_3, window_bounds = array<i64: 1, 96, 256>}]} {
    %cst = arith.constant 0.000000e+00 : f32
    %0 = vector.broadcast %cst : f32 to vector<96x256xf32>
    %c0 = arith.constant 0 : index
    %c0_0 = arith.constant 0 : index
    %c0_1 = arith.constant 0 : index
    %1 = vector.load %arg1[%c0, %c0_0, %c0_1] : memref<1x152x128xf32, #tpu.memory_space<vmem>>, vector<1x96x128xf32>
    %2 = vector.shape_cast %1 : vector<1x96x128xf32> to vector<96x128xf32>
    %3 = arith.truncf %2 : vector<96x128xf32> to vector<96x128xbf16>
    %c0_2 = arith.constant 0 : index
    %c0_3 = arith.constant 0 : index
    %c0_4 = arith.constant 0 : index
    %4 = vector.load %arg2[%c0_2, %c0_3, %c0_4] : memref<25x128x256xbf16, #tpu.memory_space<vmem>>, vector<1x128x256xbf16>
    %5 = vector.shape_cast %4 : vector<1x128x256xbf16> to vector<128x256xbf16>
    %cst_5 = arith.constant dense<0.000000e+00> : vector<96x256xf32>
    %6 = tpu.matmul %3, %5, %cst_5 {dimension_numbers = #tpu.dot_dimension_numbers<[1], [0], [0], [1], [0, 0, 1, 1], [], []>} : vector<96x128xbf16>, vector<128x256xbf16>, vector<96x256xf32> -> vector<96x256xf32>
    %7 = arith.addf %0, %6 : vector<96x256xf32>
    %c0_6 = arith.constant 0 : index
    %c1 = arith.constant 1 : index
    %c0_7 = arith.constant 0 : index
    %8 = vector.load %arg1[%c0_6, %c1, %c0_7] : memref<1x152x128xf32, #tpu.memory_space<vmem>>, vector<1x96x128xf32>
    %9 = vector.shape_cast %8 : vector<1x96x128xf32> to vector<96x128xf32>
    %10 = arith.truncf %9 : vector<96x128xf32> to vector<96x128xbf16>
    %c1_8 = arith.constant 1 : index
    %c0_9 = arith.constant 0 : index
    %c0_10 = arith.constant 0 : index
    %11 = vector.load %arg2[%c1_8, %c0_9, %c0_10] : memref<25x128x256xbf16, #tpu.memory_space<vmem>>, vector<1x128x256xbf16>
    %12 = vector.shape_cast %11 : vector<1x128x256xbf16> to vector<128x256xbf16>
    %cst_11 = arith.constant dense<0.000000e+00> : vector<96x256xf32>
    %13 = tpu.matmul %10, %12, %cst_11 {dimension_numbers = #tpu.dot_dimension_numbers<[1], [0], [0], [1], [0, 0, 1, 1], [], []>} : vector<96x128xbf16>, vector<128x256xbf16>, vector<96x256xf32> -> vector<96x256xf32>
    %14 = arith.addf %7, %13 : vector<96x256xf32>
    %c0_12 = arith.constant 0 : index
    %c2 = arith.constant 2 : index
    %c0_13 = arith.constant 0 : index
    %15 = vector.load %arg1[%c0_12, %c2, %c0_13] : memref<1x152x128xf32, #tpu.memory_space<vmem>>, vector<1x96x128xf32>
    %16 = vector.shape_cast %15 : vector<1x96x128xf32> to vector<96x128xf32>
    %17 = arith.truncf %16 : vector<96x128xf32> to vector<96x128xbf16>
    %c2_14 = arith.constant 2 : index
    %c0_15 = arith.constant 0 : index
    %c0_16 = arith.constant 0 : index
    %18 = vector.load %arg2[%c2_14, %c0_15, %c0_16] : memref<25x128x256xbf16, #tpu.memory_space<vmem>>, vector<1x128x256xbf16>
    %19 = vector.shape_cast %18 : vector<1x128x256xbf16> to vector<128x256xbf16>
    %cst_17 = arith.constant dense<0.000000e+00> : vector<96x256xf32>
    %20 = tpu.matmul %17, %19, %cst_17 {dimension_numbers = #tpu.dot_dimension_numbers<[1], [0], [0], [1], [0, 0, 1, 1], [], []>} : vector<96x128xbf16>, vector<128x256xbf16>, vector<96x256xf32> -> vector<96x256xf32>
    %21 = arith.addf %14, %20 : vector<96x256xf32>
    %c0_18 = arith.constant 0 : index
    %c3 = arith.constant 3 : index
    %c0_19 = arith.constant 0 : index
    %22 = vector.load %arg1[%c0_18, %c3, %c0_19] : memref<1x152x128xf32, #tpu.memory_space<vmem>>, vector<1x96x128xf32>
    %23 = vector.shape_cast %22 : vector<1x96x128xf32> to vector<96x128xf32>
    %24 = arith.truncf %23 : vector<96x128xf32> to vector<96x128xbf16>
    %c3_20 = arith.constant 3 : index
    %c0_21 = arith.constant 0 : index
    %c0_22 = arith.constant 0 : index
    %25 = vector.load %arg2[%c3_20, %c0_21, %c0_22] : memref<25x128x256xbf16, #tpu.memory_space<vmem>>, vector<1x128x256xbf16>
    %26 = vector.shape_cast %25 : vector<1x128x256xbf16> to vector<128x256xbf16>
    %cst_23 = arith.constant dense<0.000000e+00> : vector<96x256xf32>
    %27 = tpu.matmul %24, %26, %cst_23 {dimension_numbers = #tpu.dot_dimension_numbers<[1], [0], [0], [1], [0, 0, 1, 1], [], []>} : vector<96x128xbf16>, vector<128x256xbf16>, vector<96x256xf32> -> vector<96x256xf32>
    %28 = arith.addf %21, %27 : vector<96x256xf32>
    %c0_24 = arith.constant 0 : index
    %c4 = arith.constant 4 : index
    %c0_25 = arith.constant 0 : index
    %29 = vector.load %arg1[%c0_24, %c4, %c0_25] : memref<1x152x128xf32, #tpu.memory_space<vmem>>, vector<1x96x128xf32>
    %30 = vector.shape_cast %29 : vector<1x96x128xf32> to vector<96x128xf32>
    %31 = arith.truncf %30 : vector<96x128xf32> to vector<96x128xbf16>
    %c4_26 = arith.constant 4 : index
    %c0_27 = arith.constant 0 : index
    %c0_28 = arith.constant 0 : index
    %32 = vector.load %arg2[%c4_26, %c0_27, %c0_28] : memref<25x128x256xbf16, #tpu.memory_space<vmem>>, vector<1x128x256xbf16>
    %33 = vector.shape_cast %32 : vector<1x128x256xbf16> to vector<128x256xbf16>
    %cst_29 = arith.constant dense<0.000000e+00> : vector<96x256xf32>
    %34 = tpu.matmul %31, %33, %cst_29 {dimension_numbers = #tpu.dot_dimension_numbers<[1], [0], [0], [1], [0, 0, 1, 1], [], []>} : vector<96x128xbf16>, vector<128x256xbf16>, vector<96x256xf32> -> vector<96x256xf32>
    %35 = arith.addf %28, %34 : vector<96x256xf32>
    %c0_30 = arith.constant 0 : index
    %c12 = arith.constant 12 : index
    %c0_31 = arith.constant 0 : index
    %36 = vector.load %arg1[%c0_30, %c12, %c0_31] : memref<1x152x128xf32, #tpu.memory_space<vmem>>, vector<1x96x128xf32>
    %37 = vector.shape_cast %36 : vector<1x96x128xf32> to vector<96x128xf32>
    %38 = arith.truncf %37 : vector<96x128xf32> to vector<96x128xbf16>
    %c5 = arith.constant 5 : index
    %c0_32 = arith.constant 0 : index
    %c0_33 = arith.constant 0 : index
    %39 = vector.load %arg2[%c5, %c0_32, %c0_33] : memref<25x128x256xbf16, #tpu.memory_space<vmem>>, vector<1x128x256xbf16>
    %40 = vector.shape_cast %39 : vector<1x128x256xbf16> to vector<128x256xbf16>
    %cst_34 = arith.constant dense<0.000000e+00> : vector<96x256xf32>
    %41 = tpu.matmul %38, %40, %cst_34 {dimension_numbers = #tpu.dot_dimension_numbers<[1], [0], [0], [1], [0, 0, 1, 1], [], []>} : vector<96x128xbf16>, vector<128x256xbf16>, vector<96x256xf32> -> vector<96x256xf32>
    %42 = arith.addf %35, %41 : vector<96x256xf32>
    %c0_35 = arith.constant 0 : index
    %c13 = arith.constant 13 : index
    %c0_36 = arith.constant 0 : index
    %43 = vector.load %arg1[%c0_35, %c13, %c0_36] : memref<1x152x128xf32, #tpu.memory_space<vmem>>, vector<1x96x128xf32>
    %44 = vector.shape_cast %43 : vector<1x96x128xf32> to vector<96x128xf32>
    %45 = arith.truncf %44 : vector<96x128xf32> to vector<96x128xbf16>
    %c6 = arith.constant 6 : index
    %c0_37 = arith.constant 0 : index
    %c0_38 = arith.constant 0 : index
    %46 = vector.load %arg2[%c6, %c0_37, %c0_38] : memref<25x128x256xbf16, #tpu.memory_space<vmem>>, vector<1x128x256xbf16>
    %47 = vector.shape_cast %46 : vector<1x128x256xbf16> to vector<128x256xbf16>
    %cst_39 = arith.constant dense<0.000000e+00> : vector<96x256xf32>
    %48 = tpu.matmul %45, %47, %cst_39 {dimension_numbers = #tpu.dot_dimension_numbers<[1], [0], [0], [1], [0, 0, 1, 1], [], []>} : vector<96x128xbf16>, vector<128x256xbf16>, vector<96x256xf32> -> vector<96x256xf32>
    %49 = arith.addf %42, %48 : vector<96x256xf32>
    %c0_40 = arith.constant 0 : index
    %c14 = arith.constant 14 : index
    %c0_41 = arith.constant 0 : index
    %50 = vector.load %arg1[%c0_40, %c14, %c0_41] : memref<1x152x128xf32, #tpu.memory_space<vmem>>, vector<1x96x128xf32>
    %51 = vector.shape_cast %50 : vector<1x96x128xf32> to vector<96x128xf32>
    %52 = arith.truncf %51 : vector<96x128xf32> to vector<96x128xbf16>
    %c7 = arith.constant 7 : index
    %c0_42 = arith.constant 0 : index
    %c0_43 = arith.constant 0 : index
    %53 = vector.load %arg2[%c7, %c0_42, %c0_43] : memref<25x128x256xbf16, #tpu.memory_space<vmem>>, vector<1x128x256xbf16>
    %54 = vector.shape_cast %53 : vector<1x128x256xbf16> to vector<128x256xbf16>
    %cst_44 = arith.constant dense<0.000000e+00> : vector<96x256xf32>
    %55 = tpu.matmul %52, %54, %cst_44 {dimension_numbers = #tpu.dot_dimension_numbers<[1], [0], [0], [1], [0, 0, 1, 1], [], []>} : vector<96x128xbf16>, vector<128x256xbf16>, vector<96x256xf32> -> vector<96x256xf32>
    %56 = arith.addf %49, %55 : vector<96x256xf32>
    %c0_45 = arith.constant 0 : index
    %c15 = arith.constant 15 : index
    %c0_46 = arith.constant 0 : index
    %57 = vector.load %arg1[%c0_45, %c15, %c0_46] : memref<1x152x128xf32, #tpu.memory_space<vmem>>, vector<1x96x128xf32>
    %58 = vector.shape_cast %57 : vector<1x96x128xf32> to vector<96x128xf32>
    %59 = arith.truncf %58 : vector<96x128xf32> to vector<96x128xbf16>
    %c8 = arith.constant 8 : index
    %c0_47 = arith.constant 0 : index
    %c0_48 = arith.constant 0 : index
    %60 = vector.load %arg2[%c8, %c0_47, %c0_48] : memref<25x128x256xbf16, #tpu.memory_space<vmem>>, vector<1x128x256xbf16>
    %61 = vector.shape_cast %60 : vector<1x128x256xbf16> to vector<128x256xbf16>
    %cst_49 = arith.constant dense<0.000000e+00> : vector<96x256xf32>
    %62 = tpu.matmul %59, %61, %cst_49 {dimension_numbers = #tpu.dot_dimension_numbers<[1], [0], [0], [1], [0, 0, 1, 1], [], []>} : vector<96x128xbf16>, vector<128x256xbf16>, vector<96x256xf32> -> vector<96x256xf32>
    %63 = arith.addf %56, %62 : vector<96x256xf32>
    %c0_50 = arith.constant 0 : index
    %c16 = arith.constant 16 : index
    %c0_51 = arith.constant 0 : index
    %64 = vector.load %arg1[%c0_50, %c16, %c0_51] : memref<1x152x128xf32, #tpu.memory_space<vmem>>, vector<1x96x128xf32>
    %65 = vector.shape_cast %64 : vector<1x96x128xf32> to vector<96x128xf32>
    %66 = arith.truncf %65 : vector<96x128xf32> to vector<96x128xbf16>
    %c9 = arith.constant 9 : index
    %c0_52 = arith.constant 0 : index
    %c0_53 = arith.constant 0 : index
    %67 = vector.load %arg2[%c9, %c0_52, %c0_53] : memref<25x128x256xbf16, #tpu.memory_space<vmem>>, vector<1x128x256xbf16>
    %68 = vector.shape_cast %67 : vector<1x128x256xbf16> to vector<128x256xbf16>
    %cst_54 = arith.constant dense<0.000000e+00> : vector<96x256xf32>
    %69 = tpu.matmul %66, %68, %cst_54 {dimension_numbers = #tpu.dot_dimension_numbers<[1], [0], [0], [1], [0, 0, 1, 1], [], []>} : vector<96x128xbf16>, vector<128x256xbf16>, vector<96x256xf32> -> vector<96x256xf32>
    %70 = arith.addf %63, %69 : vector<96x256xf32>
    %c0_55 = arith.constant 0 : index
    %c24 = arith.constant 24 : index
    %c0_56 = arith.constant 0 : index
    %71 = vector.load %arg1[%c0_55, %c24, %c0_56] : memref<1x152x128xf32, #tpu.memory_space<vmem>>, vector<1x96x128xf32>
    %72 = vector.shape_cast %71 : vector<1x96x128xf32> to vector<96x128xf32>
    %73 = arith.truncf %72 : vector<96x128xf32> to vector<96x128xbf16>
    %c10 = arith.constant 10 : index
    %c0_57 = arith.constant 0 : index
    %c0_58 = arith.constant 0 : index
    %74 = vector.load %arg2[%c10, %c0_57, %c0_58] : memref<25x128x256xbf16, #tpu.memory_space<vmem>>, vector<1x128x256xbf16>
    %75 = vector.shape_cast %74 : vector<1x128x256xbf16> to vector<128x256xbf16>
    %cst_59 = arith.constant dense<0.000000e+00> : vector<96x256xf32>
    %76 = tpu.matmul %73, %75, %cst_59 {dimension_numbers = #tpu.dot_dimension_numbers<[1], [0], [0], [1], [0, 0, 1, 1], [], []>} : vector<96x128xbf16>, vector<128x256xbf16>, vector<96x256xf32> -> vector<96x256xf32>
    %77 = arith.addf %70, %76 : vector<96x256xf32>
    %c0_60 = arith.constant 0 : index
    %c25 = arith.constant 25 : index
    %c0_61 = arith.constant 0 : index
    %78 = vector.load %arg1[%c0_60, %c25, %c0_61] : memref<1x152x128xf32, #tpu.memory_space<vmem>>, vector<1x96x128xf32>
    %79 = vector.shape_cast %78 : vector<1x96x128xf32> to vector<96x128xf32>
    %80 = arith.truncf %79 : vector<96x128xf32> to vector<96x128xbf16>
    %c11 = arith.constant 11 : index
    %c0_62 = arith.constant 0 : index
    %c0_63 = arith.constant 0 : index
    %81 = vector.load %arg2[%c11, %c0_62, %c0_63] : memref<25x128x256xbf16, #tpu.memory_space<vmem>>, vector<1x128x256xbf16>
    %82 = vector.shape_cast %81 : vector<1x128x256xbf16> to vector<128x256xbf16>
    %cst_64 = arith.constant dense<0.000000e+00> : vector<96x256xf32>
    %83 = tpu.matmul %80, %82, %cst_64 {dimension_numbers = #tpu.dot_dimension_numbers<[1], [0], [0], [1], [0, 0, 1, 1], [], []>} : vector<96x128xbf16>, vector<128x256xbf16>, vector<96x256xf32> -> vector<96x256xf32>
    %84 = arith.addf %77, %83 : vector<96x256xf32>
    %c0_65 = arith.constant 0 : index
    %c26 = arith.constant 26 : index
    %c0_66 = arith.constant 0 : index
    %85 = vector.load %arg1[%c0_65, %c26, %c0_66] : memref<1x152x128xf32, #tpu.memory_space<vmem>>, vector<1x96x128xf32>
    %86 = vector.shape_cast %85 : vector<1x96x128xf32> to vector<96x128xf32>
    %87 = arith.truncf %86 : vector<96x128xf32> to vector<96x128xbf16>
    %c12_67 = arith.constant 12 : index
    %c0_68 = arith.constant 0 : index
    %c0_69 = arith.constant 0 : index
    %88 = vector.load %arg2[%c12_67, %c0_68, %c0_69] : memref<25x128x256xbf16, #tpu.memory_space<vmem>>, vector<1x128x256xbf16>
    %89 = vector.shape_cast %88 : vector<1x128x256xbf16> to vector<128x256xbf16>
    %cst_70 = arith.constant dense<0.000000e+00> : vector<96x256xf32>
    %90 = tpu.matmul %87, %89, %cst_70 {dimension_numbers = #tpu.dot_dimension_numbers<[1], [0], [0], [1], [0, 0, 1, 1], [], []>} : vector<96x128xbf16>, vector<128x256xbf16>, vector<96x256xf32> -> vector<96x256xf32>
    %91 = arith.addf %84, %90 : vector<96x256xf32>
    %c0_71 = arith.constant 0 : index
    %c27 = arith.constant 27 : index
    %c0_72 = arith.constant 0 : index
    %92 = vector.load %arg1[%c0_71, %c27, %c0_72] : memref<1x152x128xf32, #tpu.memory_space<vmem>>, vector<1x96x128xf32>
    %93 = vector.shape_cast %92 : vector<1x96x128xf32> to vector<96x128xf32>
    %94 = arith.truncf %93 : vector<96x128xf32> to vector<96x128xbf16>
    %c13_73 = arith.constant 13 : index
    %c0_74 = arith.constant 0 : index
    %c0_75 = arith.constant 0 : index
    %95 = vector.load %arg2[%c13_73, %c0_74, %c0_75] : memref<25x128x256xbf16, #tpu.memory_space<vmem>>, vector<1x128x256xbf16>
    %96 = vector.shape_cast %95 : vector<1x128x256xbf16> to vector<128x256xbf16>
    %cst_76 = arith.constant dense<0.000000e+00> : vector<96x256xf32>
    %97 = tpu.matmul %94, %96, %cst_76 {dimension_numbers = #tpu.dot_dimension_numbers<[1], [0], [0], [1], [0, 0, 1, 1], [], []>} : vector<96x128xbf16>, vector<128x256xbf16>, vector<96x256xf32> -> vector<96x256xf32>
    %98 = arith.addf %91, %97 : vector<96x256xf32>
    %c0_77 = arith.constant 0 : index
    %c28 = arith.constant 28 : index
    %c0_78 = arith.constant 0 : index
    %99 = vector.load %arg1[%c0_77, %c28, %c0_78] : memref<1x152x128xf32, #tpu.memory_space<vmem>>, vector<1x96x128xf32>
    %100 = vector.shape_cast %99 : vector<1x96x128xf32> to vector<96x128xf32>
    %101 = arith.truncf %100 : vector<96x128xf32> to vector<96x128xbf16>
    %c14_79 = arith.constant 14 : index
    %c0_80 = arith.constant 0 : index
    %c0_81 = arith.constant 0 : index
    %102 = vector.load %arg2[%c14_79, %c0_80, %c0_81] : memref<25x128x256xbf16, #tpu.memory_space<vmem>>, vector<1x128x256xbf16>
    %103 = vector.shape_cast %102 : vector<1x128x256xbf16> to vector<128x256xbf16>
    %cst_82 = arith.constant dense<0.000000e+00> : vector<96x256xf32>
    %104 = tpu.matmul %101, %103, %cst_82 {dimension_numbers = #tpu.dot_dimension_numbers<[1], [0], [0], [1], [0, 0, 1, 1], [], []>} : vector<96x128xbf16>, vector<128x256xbf16>, vector<96x256xf32> -> vector<96x256xf32>
    %105 = arith.addf %98, %104 : vector<96x256xf32>
    %c0_83 = arith.constant 0 : index
    %c36 = arith.constant 36 : index
    %c0_84 = arith.constant 0 : index
    %106 = vector.load %arg1[%c0_83, %c36, %c0_84] : memref<1x152x128xf32, #tpu.memory_space<vmem>>, vector<1x96x128xf32>
    %107 = vector.shape_cast %106 : vector<1x96x128xf32> to vector<96x128xf32>
    %108 = arith.truncf %107 : vector<96x128xf32> to vector<96x128xbf16>
    %c15_85 = arith.constant 15 : index
    %c0_86 = arith.constant 0 : index
    %c0_87 = arith.constant 0 : index
    %109 = vector.load %arg2[%c15_85, %c0_86, %c0_87] : memref<25x128x256xbf16, #tpu.memory_space<vmem>>, vector<1x128x256xbf16>
    %110 = vector.shape_cast %109 : vector<1x128x256xbf16> to vector<128x256xbf16>
    %cst_88 = arith.constant dense<0.000000e+00> : vector<96x256xf32>
    %111 = tpu.matmul %108, %110, %cst_88 {dimension_numbers = #tpu.dot_dimension_numbers<[1], [0], [0], [1], [0, 0, 1, 1], [], []>} : vector<96x128xbf16>, vector<128x256xbf16>, vector<96x256xf32> -> vector<96x256xf32>
    %112 = arith.addf %105, %111 : vector<96x256xf32>
    %c0_89 = arith.constant 0 : index
    %c37 = arith.constant 37 : index
    %c0_90 = arith.constant 0 : index
    %113 = vector.load %arg1[%c0_89, %c37, %c0_90] : memref<1x152x128xf32, #tpu.memory_space<vmem>>, vector<1x96x128xf32>
    %114 = vector.shape_cast %113 : vector<1x96x128xf32> to vector<96x128xf32>
    %115 = arith.truncf %114 : vector<96x128xf32> to vector<96x128xbf16>
    %c16_91 = arith.constant 16 : index
    %c0_92 = arith.constant 0 : index
    %c0_93 = arith.constant 0 : index
    %116 = vector.load %arg2[%c16_91, %c0_92, %c0_93] : memref<25x128x256xbf16, #tpu.memory_space<vmem>>, vector<1x128x256xbf16>
    %117 = vector.shape_cast %116 : vector<1x128x256xbf16> to vector<128x256xbf16>
    %cst_94 = arith.constant dense<0.000000e+00> : vector<96x256xf32>
    %118 = tpu.matmul %115, %117, %cst_94 {dimension_numbers = #tpu.dot_dimension_numbers<[1], [0], [0], [1], [0, 0, 1, 1], [], []>} : vector<96x128xbf16>, vector<128x256xbf16>, vector<96x256xf32> -> vector<96x256xf32>
    %119 = arith.addf %112, %118 : vector<96x256xf32>
    %c0_95 = arith.constant 0 : index
    %c38 = arith.constant 38 : index
    %c0_96 = arith.constant 0 : index
    %120 = vector.load %arg1[%c0_95, %c38, %c0_96] : memref<1x152x128xf32, #tpu.memory_space<vmem>>, vector<1x96x128xf32>
    %121 = vector.shape_cast %120 : vector<1x96x128xf32> to vector<96x128xf32>
    %122 = arith.truncf %121 : vector<96x128xf32> to vector<96x128xbf16>
    %c17 = arith.constant 17 : index
    %c0_97 = arith.constant 0 : index
    %c0_98 = arith.constant 0 : index
    %123 = vector.load %arg2[%c17, %c0_97, %c0_98] : memref<25x128x256xbf16, #tpu.memory_space<vmem>>, vector<1x128x256xbf16>
    %124 = vector.shape_cast %123 : vector<1x128x256xbf16> to vector<128x256xbf16>
    %cst_99 = arith.constant dense<0.000000e+00> : vector<96x256xf32>
    %125 = tpu.matmul %122, %124, %cst_99 {dimension_numbers = #tpu.dot_dimension_numbers<[1], [0], [0], [1], [0, 0, 1, 1], [], []>} : vector<96x128xbf16>, vector<128x256xbf16>, vector<96x256xf32> -> vector<96x256xf32>
    %126 = arith.addf %119, %125 : vector<96x256xf32>
    %c0_100 = arith.constant 0 : index
    %c39 = arith.constant 39 : index
    %c0_101 = arith.constant 0 : index
    %127 = vector.load %arg1[%c0_100, %c39, %c0_101] : memref<1x152x128xf32, #tpu.memory_space<vmem>>, vector<1x96x128xf32>
    %128 = vector.shape_cast %127 : vector<1x96x128xf32> to vector<96x128xf32>
    %129 = arith.truncf %128 : vector<96x128xf32> to vector<96x128xbf16>
    %c18 = arith.constant 18 : index
    %c0_102 = arith.constant 0 : index
    %c0_103 = arith.constant 0 : index
    %130 = vector.load %arg2[%c18, %c0_102, %c0_103] : memref<25x128x256xbf16, #tpu.memory_space<vmem>>, vector<1x128x256xbf16>
    %131 = vector.shape_cast %130 : vector<1x128x256xbf16> to vector<128x256xbf16>
    %cst_104 = arith.constant dense<0.000000e+00> : vector<96x256xf32>
    %132 = tpu.matmul %129, %131, %cst_104 {dimension_numbers = #tpu.dot_dimension_numbers<[1], [0], [0], [1], [0, 0, 1, 1], [], []>} : vector<96x128xbf16>, vector<128x256xbf16>, vector<96x256xf32> -> vector<96x256xf32>
    %133 = arith.addf %126, %132 : vector<96x256xf32>
    %c0_105 = arith.constant 0 : index
    %c40 = arith.constant 40 : index
    %c0_106 = arith.constant 0 : index
    %134 = vector.load %arg1[%c0_105, %c40, %c0_106] : memref<1x152x128xf32, #tpu.memory_space<vmem>>, vector<1x96x128xf32>
    %135 = vector.shape_cast %134 : vector<1x96x128xf32> to vector<96x128xf32>
    %136 = arith.truncf %135 : vector<96x128xf32> to vector<96x128xbf16>
    %c19 = arith.constant 19 : index
    %c0_107 = arith.constant 0 : index
    %c0_108 = arith.constant 0 : index
    %137 = vector.load %arg2[%c19, %c0_107, %c0_108] : memref<25x128x256xbf16, #tpu.memory_space<vmem>>, vector<1x128x256xbf16>
    %138 = vector.shape_cast %137 : vector<1x128x256xbf16> to vector<128x256xbf16>
    %cst_109 = arith.constant dense<0.000000e+00> : vector<96x256xf32>
    %139 = tpu.matmul %136, %138, %cst_109 {dimension_numbers = #tpu.dot_dimension_numbers<[1], [0], [0], [1], [0, 0, 1, 1], [], []>} : vector<96x128xbf16>, vector<128x256xbf16>, vector<96x256xf32> -> vector<96x256xf32>
    %140 = arith.addf %133, %139 : vector<96x256xf32>
    %c0_110 = arith.constant 0 : index
    %c48 = arith.constant 48 : index
    %c0_111 = arith.constant 0 : index
    %141 = vector.load %arg1[%c0_110, %c48, %c0_111] : memref<1x152x128xf32, #tpu.memory_space<vmem>>, vector<1x96x128xf32>
    %142 = vector.shape_cast %141 : vector<1x96x128xf32> to vector<96x128xf32>
    %143 = arith.truncf %142 : vector<96x128xf32> to vector<96x128xbf16>
    %c20 = arith.constant 20 : index
    %c0_112 = arith.constant 0 : index
    %c0_113 = arith.constant 0 : index
    %144 = vector.load %arg2[%c20, %c0_112, %c0_113] : memref<25x128x256xbf16, #tpu.memory_space<vmem>>, vector<1x128x256xbf16>
    %145 = vector.shape_cast %144 : vector<1x128x256xbf16> to vector<128x256xbf16>
    %cst_114 = arith.constant dense<0.000000e+00> : vector<96x256xf32>
    %146 = tpu.matmul %143, %145, %cst_114 {dimension_numbers = #tpu.dot_dimension_numbers<[1], [0], [0], [1], [0, 0, 1, 1], [], []>} : vector<96x128xbf16>, vector<128x256xbf16>, vector<96x256xf32> -> vector<96x256xf32>
    %147 = arith.addf %140, %146 : vector<96x256xf32>
    %c0_115 = arith.constant 0 : index
    %c49 = arith.constant 49 : index
    %c0_116 = arith.constant 0 : index
    %148 = vector.load %arg1[%c0_115, %c49, %c0_116] : memref<1x152x128xf32, #tpu.memory_space<vmem>>, vector<1x96x128xf32>
    %149 = vector.shape_cast %148 : vector<1x96x128xf32> to vector<96x128xf32>
    %150 = arith.truncf %149 : vector<96x128xf32> to vector<96x128xbf16>
    %c21 = arith.constant 21 : index
    %c0_117 = arith.constant 0 : index
    %c0_118 = arith.constant 0 : index
    %151 = vector.load %arg2[%c21, %c0_117, %c0_118] : memref<25x128x256xbf16, #tpu.memory_space<vmem>>, vector<1x128x256xbf16>
    %152 = vector.shape_cast %151 : vector<1x128x256xbf16> to vector<128x256xbf16>
    %cst_119 = arith.constant dense<0.000000e+00> : vector<96x256xf32>
    %153 = tpu.matmul %150, %152, %cst_119 {dimension_numbers = #tpu.dot_dimension_numbers<[1], [0], [0], [1], [0, 0, 1, 1], [], []>} : vector<96x128xbf16>, vector<128x256xbf16>, vector<96x256xf32> -> vector<96x256xf32>
    %154 = arith.addf %147, %153 : vector<96x256xf32>
    %c0_120 = arith.constant 0 : index
    %c50 = arith.constant 50 : index
    %c0_121 = arith.constant 0 : index
    %155 = vector.load %arg1[%c0_120, %c50, %c0_121] : memref<1x152x128xf32, #tpu.memory_space<vmem>>, vector<1x96x128xf32>
    %156 = vector.shape_cast %155 : vector<1x96x128xf32> to vector<96x128xf32>
    %157 = arith.truncf %156 : vector<96x128xf32> to vector<96x128xbf16>
    %c22 = arith.constant 22 : index
    %c0_122 = arith.constant 0 : index
    %c0_123 = arith.constant 0 : index
    %158 = vector.load %arg2[%c22, %c0_122, %c0_123] : memref<25x128x256xbf16, #tpu.memory_space<vmem>>, vector<1x128x256xbf16>
    %159 = vector.shape_cast %158 : vector<1x128x256xbf16> to vector<128x256xbf16>
    %cst_124 = arith.constant dense<0.000000e+00> : vector<96x256xf32>
    %160 = tpu.matmul %157, %159, %cst_124 {dimension_numbers = #tpu.dot_dimension_numbers<[1], [0], [0], [1], [0, 0, 1, 1], [], []>} : vector<96x128xbf16>, vector<128x256xbf16>, vector<96x256xf32> -> vector<96x256xf32>
    %161 = arith.addf %154, %160 : vector<96x256xf32>
    %c0_125 = arith.constant 0 : index
    %c51 = arith.constant 51 : index
    %c0_126 = arith.constant 0 : index
    %162 = vector.load %arg1[%c0_125, %c51, %c0_126] : memref<1x152x128xf32, #tpu.memory_space<vmem>>, vector<1x96x128xf32>
    %163 = vector.shape_cast %162 : vector<1x96x128xf32> to vector<96x128xf32>
    %164 = arith.truncf %163 : vector<96x128xf32> to vector<96x128xbf16>
    %c23 = arith.constant 23 : index
    %c0_127 = arith.constant 0 : index
    %c0_128 = arith.constant 0 : index
    %165 = vector.load %arg2[%c23, %c0_127, %c0_128] : memref<25x128x256xbf16, #tpu.memory_space<vmem>>, vector<1x128x256xbf16>
    %166 = vector.shape_cast %165 : vector<1x128x256xbf16> to vector<128x256xbf16>
    %cst_129 = arith.constant dense<0.000000e+00> : vector<96x256xf32>
    %167 = tpu.matmul %164, %166, %cst_129 {dimension_numbers = #tpu.dot_dimension_numbers<[1], [0], [0], [1], [0, 0, 1, 1], [], []>} : vector<96x128xbf16>, vector<128x256xbf16>, vector<96x256xf32> -> vector<96x256xf32>
    %168 = arith.addf %161, %167 : vector<96x256xf32>
    %c0_130 = arith.constant 0 : index
    %c52 = arith.constant 52 : index
    %c0_131 = arith.constant 0 : index
    %169 = vector.load %arg1[%c0_130, %c52, %c0_131] : memref<1x152x128xf32, #tpu.memory_space<vmem>>, vector<1x96x128xf32>
    %170 = vector.shape_cast %169 : vector<1x96x128xf32> to vector<96x128xf32>
    %171 = arith.truncf %170 : vector<96x128xf32> to vector<96x128xbf16>
    %c24_132 = arith.constant 24 : index
    %c0_133 = arith.constant 0 : index
    %c0_134 = arith.constant 0 : index
    %172 = vector.load %arg2[%c24_132, %c0_133, %c0_134] : memref<25x128x256xbf16, #tpu.memory_space<vmem>>, vector<1x128x256xbf16>
    %173 = vector.shape_cast %172 : vector<1x128x256xbf16> to vector<128x256xbf16>
    %cst_135 = arith.constant dense<0.000000e+00> : vector<96x256xf32>
    %174 = tpu.matmul %171, %173, %cst_135 {dimension_numbers = #tpu.dot_dimension_numbers<[1], [0], [0], [1], [0, 0, 1, 1], [], []>} : vector<96x128xbf16>, vector<128x256xbf16>, vector<96x256xf32> -> vector<96x256xf32>
    %175 = arith.addf %168, %174 : vector<96x256xf32>
    %c0_136 = arith.constant 0 : index
    %c0_137 = arith.constant 0 : index
    %176 = vector.load %arg3[%c0_136, %c0_137] : memref<1x256xf32, #tpu.memory_space<vmem>>, vector<1x256xf32>
    %177 = vector.broadcast %176 : vector<1x256xf32> to vector<96x256xf32>
    %178 = arith.addf %175, %177 : vector<96x256xf32>
    %cst_138 = arith.constant 0.000000e+00 : f32
    %179 = vector.broadcast %cst_138 : f32 to vector<96x256xf32>
    %180 = arith.maximumf %178, %179 : vector<96x256xf32>
    %c0_139 = arith.constant 0 : index
    %c0_140 = arith.constant 0 : index
    %c0_141 = arith.constant 0 : index
    %181 = vector.load %arg4[%c0_139, %c0_140, %c0_141] : memref<1x96x256xf32, #tpu.memory_space<vmem>>, vector<1x96x256xf32>
    %182 = vector.shape_cast %181 : vector<1x96x256xf32> to vector<96x256xf32>
    %183 = vector.shape_cast %180 : vector<96x256xf32> to vector<1x96x256xf32>
    tpu.vector_store %arg4[%c0_139, %c0_140, %c0_141], %183 {strides = array<i32>} : memref<1x96x256xf32, #tpu.memory_space<vmem>>, vector<1x96x256xf32>,
    return
  }
  func.func @transform_0(%arg0: i32) -> (i32, i32, i32) {
    %c0_i32 = arith.constant 0 : i32
    %c0_i32_0 = arith.constant 0 : i32
    %c0_i32_1 = arith.constant 0 : i32
    return %arg0, %c0_i32, %c0_i32_0 : i32, i32, i32
  }
  func.func @transform_1(%arg0: i32) -> (i32, i32, i32) {
    %c0_i32 = arith.constant 0 : i32
    %c0_i32_0 = arith.constant 0 : i32
    %c0_i32_1 = arith.constant 0 : i32
    %c0_i32_2 = arith.constant 0 : i32
    return %c0_i32, %c0_i32_0, %c0_i32_1 : i32, i32, i32
  }
  func.func @transform_2(%arg0: i32) -> (i32, i32) {
    %c0_i32 = arith.constant 0 : i32
    %c0_i32_0 = arith.constant 0 : i32
    %c0_i32_1 = arith.constant 0 : i32
    return %c0_i32, %c0_i32_0 : i32, i32
  }
  func.func @transform_3(%arg0: i32) -> (i32, i32, i32) {
    %c0_i32 = arith.constant 0 : i32
    %c0_i32_0 = arith.constant 0 : i32
    %c0_i32_1 = arith.constant 0 : i32
    return %arg0, %c0_i32, %c0_i32_0 : i32, i32, i32
  }
}

module attributes {stable_mosaic.version = 11 : i64} {
  func.func @_conv_shift_kernel(%arg0: i32, %arg1: memref<1x328x256xf32, #tpu.memory_space<vmem>>, %arg2: memref<9x256x128xbf16, #tpu.memory_space<vmem>>, %arg3: memref<1x128xf32, #tpu.memory_space<vmem>>, %arg4: memref<1x288x128xf32, #tpu.memory_space<vmem>>) attributes {dimension_semantics = [#tpu.dimension_semantics<parallel>], iteration_bounds = array<i64: 2>, scalar_prefetch = 0 : i64, scratch_operands = 0 : i64, tpu.core_type = #tpu.core_type<tc>, window_params = [{transform_indices = @transform_0, window_bounds = array<i64: 1, 328, 256>}, {pipeline_mode = #tpu.pipeline_mode<synchronous>, transform_indices = @transform_1, window_bounds = array<i64: 9, 256, 128>}, {pipeline_mode = #tpu.pipeline_mode<synchronous>, transform_indices = @transform_2, window_bounds = array<i64: 1, 128>}, {transform_indices = @transform_3, window_bounds = array<i64: 1, 288, 128>}]} {
    %cst = arith.constant 0.000000e+00 : f32
    %0 = vector.broadcast %cst : f32 to vector<288x128xf32>
    %c0 = arith.constant 0 : index
    %c0_0 = arith.constant 0 : index
    %c0_1 = arith.constant 0 : index
    %1 = vector.load %arg1[%c0, %c0_0, %c0_1] : memref<1x328x256xf32, #tpu.memory_space<vmem>>, vector<1x288x256xf32>
    %2 = vector.shape_cast %1 : vector<1x288x256xf32> to vector<288x256xf32>
    %3 = arith.truncf %2 : vector<288x256xf32> to vector<288x256xbf16>
    %c0_2 = arith.constant 0 : index
    %c0_3 = arith.constant 0 : index
    %c0_4 = arith.constant 0 : index
    %4 = vector.load %arg2[%c0_2, %c0_3, %c0_4] : memref<9x256x128xbf16, #tpu.memory_space<vmem>>, vector<1x256x128xbf16>
    %5 = vector.shape_cast %4 : vector<1x256x128xbf16> to vector<256x128xbf16>
    %cst_5 = arith.constant dense<0.000000e+00> : vector<288x128xf32>
    %6 = tpu.matmul %3, %5, %cst_5 {dimension_numbers = #tpu.dot_dimension_numbers<[1], [0], [0], [1], [0, 0, 1, 1], [], []>} : vector<288x256xbf16>, vector<256x128xbf16>, vector<288x128xf32> -> vector<288x128xf32>
    %7 = arith.addf %0, %6 : vector<288x128xf32>
    %c0_6 = arith.constant 0 : index
    %c1 = arith.constant 1 : index
    %c0_7 = arith.constant 0 : index
    %8 = vector.load %arg1[%c0_6, %c1, %c0_7] : memref<1x328x256xf32, #tpu.memory_space<vmem>>, vector<1x288x256xf32>
    %9 = vector.shape_cast %8 : vector<1x288x256xf32> to vector<288x256xf32>
    %10 = arith.truncf %9 : vector<288x256xf32> to vector<288x256xbf16>
    %c1_8 = arith.constant 1 : index
    %c0_9 = arith.constant 0 : index
    %c0_10 = arith.constant 0 : index
    %11 = vector.load %arg2[%c1_8, %c0_9, %c0_10] : memref<9x256x128xbf16, #tpu.memory_space<vmem>>, vector<1x256x128xbf16>
    %12 = vector.shape_cast %11 : vector<1x256x128xbf16> to vector<256x128xbf16>
    %cst_11 = arith.constant dense<0.000000e+00> : vector<288x128xf32>
    %13 = tpu.matmul %10, %12, %cst_11 {dimension_numbers = #tpu.dot_dimension_numbers<[1], [0], [0], [1], [0, 0, 1, 1], [], []>} : vector<288x256xbf16>, vector<256x128xbf16>, vector<288x128xf32> -> vector<288x128xf32>
    %14 = arith.addf %7, %13 : vector<288x128xf32>
    %c0_12 = arith.constant 0 : index
    %c2 = arith.constant 2 : index
    %c0_13 = arith.constant 0 : index
    %15 = vector.load %arg1[%c0_12, %c2, %c0_13] : memref<1x328x256xf32, #tpu.memory_space<vmem>>, vector<1x288x256xf32>
    %16 = vector.shape_cast %15 : vector<1x288x256xf32> to vector<288x256xf32>
    %17 = arith.truncf %16 : vector<288x256xf32> to vector<288x256xbf16>
    %c2_14 = arith.constant 2 : index
    %c0_15 = arith.constant 0 : index
    %c0_16 = arith.constant 0 : index
    %18 = vector.load %arg2[%c2_14, %c0_15, %c0_16] : memref<9x256x128xbf16, #tpu.memory_space<vmem>>, vector<1x256x128xbf16>
    %19 = vector.shape_cast %18 : vector<1x256x128xbf16> to vector<256x128xbf16>
    %cst_17 = arith.constant dense<0.000000e+00> : vector<288x128xf32>
    %20 = tpu.matmul %17, %19, %cst_17 {dimension_numbers = #tpu.dot_dimension_numbers<[1], [0], [0], [1], [0, 0, 1, 1], [], []>} : vector<288x256xbf16>, vector<256x128xbf16>, vector<288x128xf32> -> vector<288x128xf32>
    %21 = arith.addf %14, %20 : vector<288x128xf32>
    %c0_18 = arith.constant 0 : index
    %c18 = arith.constant 18 : index
    %c0_19 = arith.constant 0 : index
    %22 = vector.load %arg1[%c0_18, %c18, %c0_19] : memref<1x328x256xf32, #tpu.memory_space<vmem>>, vector<1x288x256xf32>
    %23 = vector.shape_cast %22 : vector<1x288x256xf32> to vector<288x256xf32>
    %24 = arith.truncf %23 : vector<288x256xf32> to vector<288x256xbf16>
    %c3 = arith.constant 3 : index
    %c0_20 = arith.constant 0 : index
    %c0_21 = arith.constant 0 : index
    %25 = vector.load %arg2[%c3, %c0_20, %c0_21] : memref<9x256x128xbf16, #tpu.memory_space<vmem>>, vector<1x256x128xbf16>
    %26 = vector.shape_cast %25 : vector<1x256x128xbf16> to vector<256x128xbf16>
    %cst_22 = arith.constant dense<0.000000e+00> : vector<288x128xf32>
    %27 = tpu.matmul %24, %26, %cst_22 {dimension_numbers = #tpu.dot_dimension_numbers<[1], [0], [0], [1], [0, 0, 1, 1], [], []>} : vector<288x256xbf16>, vector<256x128xbf16>, vector<288x128xf32> -> vector<288x128xf32>
    %28 = arith.addf %21, %27 : vector<288x128xf32>
    %c0_23 = arith.constant 0 : index
    %c19 = arith.constant 19 : index
    %c0_24 = arith.constant 0 : index
    %29 = vector.load %arg1[%c0_23, %c19, %c0_24] : memref<1x328x256xf32, #tpu.memory_space<vmem>>, vector<1x288x256xf32>
    %30 = vector.shape_cast %29 : vector<1x288x256xf32> to vector<288x256xf32>
    %31 = arith.truncf %30 : vector<288x256xf32> to vector<288x256xbf16>
    %c4 = arith.constant 4 : index
    %c0_25 = arith.constant 0 : index
    %c0_26 = arith.constant 0 : index
    %32 = vector.load %arg2[%c4, %c0_25, %c0_26] : memref<9x256x128xbf16, #tpu.memory_space<vmem>>, vector<1x256x128xbf16>
    %33 = vector.shape_cast %32 : vector<1x256x128xbf16> to vector<256x128xbf16>
    %cst_27 = arith.constant dense<0.000000e+00> : vector<288x128xf32>
    %34 = tpu.matmul %31, %33, %cst_27 {dimension_numbers = #tpu.dot_dimension_numbers<[1], [0], [0], [1], [0, 0, 1, 1], [], []>} : vector<288x256xbf16>, vector<256x128xbf16>, vector<288x128xf32> -> vector<288x128xf32>
    %35 = arith.addf %28, %34 : vector<288x128xf32>
    %c0_28 = arith.constant 0 : index
    %c20 = arith.constant 20 : index
    %c0_29 = arith.constant 0 : index
    %36 = vector.load %arg1[%c0_28, %c20, %c0_29] : memref<1x328x256xf32, #tpu.memory_space<vmem>>, vector<1x288x256xf32>
    %37 = vector.shape_cast %36 : vector<1x288x256xf32> to vector<288x256xf32>
    %38 = arith.truncf %37 : vector<288x256xf32> to vector<288x256xbf16>
    %c5 = arith.constant 5 : index
    %c0_30 = arith.constant 0 : index
    %c0_31 = arith.constant 0 : index
    %39 = vector.load %arg2[%c5, %c0_30, %c0_31] : memref<9x256x128xbf16, #tpu.memory_space<vmem>>, vector<1x256x128xbf16>
    %40 = vector.shape_cast %39 : vector<1x256x128xbf16> to vector<256x128xbf16>
    %cst_32 = arith.constant dense<0.000000e+00> : vector<288x128xf32>
    %41 = tpu.matmul %38, %40, %cst_32 {dimension_numbers = #tpu.dot_dimension_numbers<[1], [0], [0], [1], [0, 0, 1, 1], [], []>} : vector<288x256xbf16>, vector<256x128xbf16>, vector<288x128xf32> -> vector<288x128xf32>
    %42 = arith.addf %35, %41 : vector<288x128xf32>
    %c0_33 = arith.constant 0 : index
    %c36 = arith.constant 36 : index
    %c0_34 = arith.constant 0 : index
    %43 = vector.load %arg1[%c0_33, %c36, %c0_34] : memref<1x328x256xf32, #tpu.memory_space<vmem>>, vector<1x288x256xf32>
    %44 = vector.shape_cast %43 : vector<1x288x256xf32> to vector<288x256xf32>
    %45 = arith.truncf %44 : vector<288x256xf32> to vector<288x256xbf16>
    %c6 = arith.constant 6 : index
    %c0_35 = arith.constant 0 : index
    %c0_36 = arith.constant 0 : index
    %46 = vector.load %arg2[%c6, %c0_35, %c0_36] : memref<9x256x128xbf16, #tpu.memory_space<vmem>>, vector<1x256x128xbf16>
    %47 = vector.shape_cast %46 : vector<1x256x128xbf16> to vector<256x128xbf16>
    %cst_37 = arith.constant dense<0.000000e+00> : vector<288x128xf32>
    %48 = tpu.matmul %45, %47, %cst_37 {dimension_numbers = #tpu.dot_dimension_numbers<[1], [0], [0], [1], [0, 0, 1, 1], [], []>} : vector<288x256xbf16>, vector<256x128xbf16>, vector<288x128xf32> -> vector<288x128xf32>
    %49 = arith.addf %42, %48 : vector<288x128xf32>
    %c0_38 = arith.constant 0 : index
    %c37 = arith.constant 37 : index
    %c0_39 = arith.constant 0 : index
    %50 = vector.load %arg1[%c0_38, %c37, %c0_39] : memref<1x328x256xf32, #tpu.memory_space<vmem>>, vector<1x288x256xf32>
    %51 = vector.shape_cast %50 : vector<1x288x256xf32> to vector<288x256xf32>
    %52 = arith.truncf %51 : vector<288x256xf32> to vector<288x256xbf16>
    %c7 = arith.constant 7 : index
    %c0_40 = arith.constant 0 : index
    %c0_41 = arith.constant 0 : index
    %53 = vector.load %arg2[%c7, %c0_40, %c0_41] : memref<9x256x128xbf16, #tpu.memory_space<vmem>>, vector<1x256x128xbf16>
    %54 = vector.shape_cast %53 : vector<1x256x128xbf16> to vector<256x128xbf16>
    %cst_42 = arith.constant dense<0.000000e+00> : vector<288x128xf32>
    %55 = tpu.matmul %52, %54, %cst_42 {dimension_numbers = #tpu.dot_dimension_numbers<[1], [0], [0], [1], [0, 0, 1, 1], [], []>} : vector<288x256xbf16>, vector<256x128xbf16>, vector<288x128xf32> -> vector<288x128xf32>
    %56 = arith.addf %49, %55 : vector<288x128xf32>
    %c0_43 = arith.constant 0 : index
    %c38 = arith.constant 38 : index
    %c0_44 = arith.constant 0 : index
    %57 = vector.load %arg1[%c0_43, %c38, %c0_44] : memref<1x328x256xf32, #tpu.memory_space<vmem>>, vector<1x288x256xf32>
    %58 = vector.shape_cast %57 : vector<1x288x256xf32> to vector<288x256xf32>
    %59 = arith.truncf %58 : vector<288x256xf32> to vector<288x256xbf16>
    %c8 = arith.constant 8 : index
    %c0_45 = arith.constant 0 : index
    %c0_46 = arith.constant 0 : index
    %60 = vector.load %arg2[%c8, %c0_45, %c0_46] : memref<9x256x128xbf16, #tpu.memory_space<vmem>>, vector<1x256x128xbf16>
    %61 = vector.shape_cast %60 : vector<1x256x128xbf16> to vector<256x128xbf16>
    %cst_47 = arith.constant dense<0.000000e+00> : vector<288x128xf32>
    %62 = tpu.matmul %59, %61, %cst_47 {dimension_numbers = #tpu.dot_dimension_numbers<[1], [0], [0], [1], [0, 0, 1, 1], [], []>} : vector<288x256xbf16>, vector<256x128xbf16>, vector<288x128xf32> -> vector<288x128xf32>
    %63 = arith.addf %56, %62 : vector<288x128xf32>
    %c0_48 = arith.constant 0 : index
    %c0_49 = arith.constant 0 : index
    %64 = vector.load %arg3[%c0_48, %c0_49] : memref<1x128xf32, #tpu.memory_space<vmem>>, vector<1x128xf32>
    %65 = vector.broadcast %64 : vector<1x128xf32> to vector<288x128xf32>
    %66 = arith.addf %63, %65 : vector<288x128xf32>
    %cst_50 = arith.constant 0.000000e+00 : f32
    %67 = vector.broadcast %cst_50 : f32 to vector<288x128xf32>
    %68 = arith.maximumf %66, %67 : vector<288x128xf32>
    %c0_51 = arith.constant 0 : index
    %c0_52 = arith.constant 0 : index
    %c0_53 = arith.constant 0 : index
    %69 = vector.load %arg4[%c0_51, %c0_52, %c0_53] : memref<1x288x128xf32, #tpu.memory_space<vmem>>, vector<1x288x128xf32>
    %70 = vector.shape_cast %69 : vector<1x288x128xf32> to vector<288x128xf32>
    %71 = vector.shape_cast %68 : vector<288x128xf32> to vector<1x288x128xf32>
    tpu.vector_store %arg4[%c0_51, %c0_52, %c0_53], %71 {strides = array<i32>} : memref<1x288x128xf32, #tpu.memory_space<vmem>>, vector<1x288x128xf32>,
    return
  }
  func.func @transform_0(%arg0: i32) -> (i32, i32, i32) {
    %c0_i32 = arith.constant 0 : i32
    %c0_i32_0 = arith.constant 0 : i32
    %c0_i32_1 = arith.constant 0 : i32
    return %arg0, %c0_i32, %c0_i32_0 : i32, i32, i32
  }
  func.func @transform_1(%arg0: i32) -> (i32, i32, i32) {
    %c0_i32 = arith.constant 0 : i32
    %c0_i32_0 = arith.constant 0 : i32
    %c0_i32_1 = arith.constant 0 : i32
    %c0_i32_2 = arith.constant 0 : i32
    return %c0_i32, %c0_i32_0, %c0_i32_1 : i32, i32, i32
  }
  func.func @transform_2(%arg0: i32) -> (i32, i32) {
    %c0_i32 = arith.constant 0 : i32
    %c0_i32_0 = arith.constant 0 : i32
    %c0_i32_1 = arith.constant 0 : i32
    return %c0_i32, %c0_i32_0 : i32, i32
  }
  func.func @transform_3(%arg0: i32) -> (i32, i32, i32) {
    %c0_i32 = arith.constant 0 : i32
    %c0_i32_0 = arith.constant 0 : i32
    %c0_i32_1 = arith.constant 0 : i32
    return %arg0, %c0_i32, %c0_i32_0 : i32, i32, i32
  }
}

module attributes {stable_mosaic.version = 11 : i64} {
  func.func @_conv_shift_kernel(%arg0: i32, %arg1: memref<1x256x128xf32, #tpu.memory_space<vmem>>, %arg2: memref<1x128x128xbf16, #tpu.memory_space<vmem>>, %arg3: memref<1x128xf32, #tpu.memory_space<vmem>>, %arg4: memref<1x256x128xf32, #tpu.memory_space<vmem>>) attributes {dimension_semantics = [#tpu.dimension_semantics<parallel>], iteration_bounds = array<i64: 2>, scalar_prefetch = 0 : i64, scratch_operands = 0 : i64, tpu.core_type = #tpu.core_type<tc>, window_params = [{transform_indices = @transform_0, window_bounds = array<i64: 1, 256, 128>}, {pipeline_mode = #tpu.pipeline_mode<synchronous>, transform_indices = @transform_1, window_bounds = array<i64: 1, 128, 128>}, {pipeline_mode = #tpu.pipeline_mode<synchronous>, transform_indices = @transform_2, window_bounds = array<i64: 1, 128>}, {transform_indices = @transform_3, window_bounds = array<i64: 1, 256, 128>}]} {
    %cst = arith.constant 0.000000e+00 : f32
    %0 = vector.broadcast %cst : f32 to vector<256x128xf32>
    %c0 = arith.constant 0 : index
    %c0_0 = arith.constant 0 : index
    %c0_1 = arith.constant 0 : index
    %1 = vector.load %arg1[%c0, %c0_0, %c0_1] : memref<1x256x128xf32, #tpu.memory_space<vmem>>, vector<1x256x128xf32>
    %2 = vector.shape_cast %1 : vector<1x256x128xf32> to vector<256x128xf32>
    %3 = arith.truncf %2 : vector<256x128xf32> to vector<256x128xbf16>
    %c0_2 = arith.constant 0 : index
    %c0_3 = arith.constant 0 : index
    %c0_4 = arith.constant 0 : index
    %4 = vector.load %arg2[%c0_2, %c0_3, %c0_4] : memref<1x128x128xbf16, #tpu.memory_space<vmem>>, vector<1x128x128xbf16>
    %5 = vector.shape_cast %4 : vector<1x128x128xbf16> to vector<128x128xbf16>
    %cst_5 = arith.constant dense<0.000000e+00> : vector<256x128xf32>
    %6 = tpu.matmul %3, %5, %cst_5 {dimension_numbers = #tpu.dot_dimension_numbers<[1], [0], [0], [1], [0, 0, 1, 1], [], []>} : vector<256x128xbf16>, vector<128x128xbf16>, vector<256x128xf32> -> vector<256x128xf32>
    %7 = arith.addf %0, %6 : vector<256x128xf32>
    %c0_6 = arith.constant 0 : index
    %c0_7 = arith.constant 0 : index
    %8 = vector.load %arg3[%c0_6, %c0_7] : memref<1x128xf32, #tpu.memory_space<vmem>>, vector<1x128xf32>
    %9 = vector.broadcast %8 : vector<1x128xf32> to vector<256x128xf32>
    %10 = arith.addf %7, %9 : vector<256x128xf32>
    %c0_8 = arith.constant 0 : index
    %c0_9 = arith.constant 0 : index
    %c0_10 = arith.constant 0 : index
    %11 = vector.load %arg4[%c0_8, %c0_9, %c0_10] : memref<1x256x128xf32, #tpu.memory_space<vmem>>, vector<1x256x128xf32>
    %12 = vector.shape_cast %11 : vector<1x256x128xf32> to vector<256x128xf32>
    %13 = vector.shape_cast %10 : vector<256x128xf32> to vector<1x256x128xf32>
    tpu.vector_store %arg4[%c0_8, %c0_9, %c0_10], %13 {strides = array<i32>} : memref<1x256x128xf32, #tpu.memory_space<vmem>>, vector<1x256x128xf32>,
    return
  }
  func.func @transform_0(%arg0: i32) -> (i32, i32, i32) {
    %c0_i32 = arith.constant 0 : i32
    %c0_i32_0 = arith.constant 0 : i32
    %c0_i32_1 = arith.constant 0 : i32
    return %arg0, %c0_i32, %c0_i32_0 : i32, i32, i32
  }
  func.func @transform_1(%arg0: i32) -> (i32, i32, i32) {
    %c0_i32 = arith.constant 0 : i32
    %c0_i32_0 = arith.constant 0 : i32
    %c0_i32_1 = arith.constant 0 : i32
    %c0_i32_2 = arith.constant 0 : i32
    return %c0_i32, %c0_i32_0, %c0_i32_1 : i32, i32, i32
  }
  func.func @transform_2(%arg0: i32) -> (i32, i32) {
    %c0_i32 = arith.constant 0 : i32
    %c0_i32_0 = arith.constant 0 : i32
    %c0_i32_1 = arith.constant 0 : i32
    return %c0_i32, %c0_i32_0 : i32, i32
  }
  func.func @transform_3(%arg0: i32) -> (i32, i32, i32) {
    %c0_i32 = arith.constant 0 : i32
    %c0_i32_0 = arith.constant 0 : i32
    %c0_i32_1 = arith.constant 0 : i32
    return %arg0, %c0_i32, %c0_i32_0 : i32, i32, i32
  }
}

</mosaic_0001>

<bundles_post_ra>
// kernel: flow_module_multiscale.5
= control target key start
LH: loop header
LB: loop body
LE: loop exit
PB: predicated region body
PF: predicated region fallthrough
CT: control target
= control target key end

     0   :  { %s693_s12 = smov 0   ;;  %s846_s0 = inlined_call_operand.vmem [shape: f32[2,256,128], index: 0, kind: input, shape index: {}]   ;;  %s847_s1 = inlined_call_operand.vmem [shape: bf16[1,128,128], index: 1, kind: input, shape index: {}]   ;;  %s848_s2 = inlined_call_operand.vmem [shape: f32[1,128], index: 2, kind: input, shape index: {}]   ;;  %s849_s3 = inlined_call_operand.vmem [shape: f32[2,256,128], index: 3, kind: output, shape index: {}]  }
   0x1 LB: > { %s539_s13 = sadd.s32 4294967295, %s671_s12   ;;  %p543_p0 = scmp.ge.s32.totalorder %s671_s12, 1  ;;  %s671_s12 = sphi %s693_s12, %s13_s12  }
   0x2   : > { %p137_p1 = scmp.lt.s32.totalorder %s671_s12, 3 }
   0x4   : > { %p138_p2 = pnand %p543_p0, %p137_p1 }
   0x5   : > { %p161_p3 = scmp.lt.s32.totalorder (!%p138_p2), %s539_s13, 1 }
   0x6   : > { %141 = sbr.rel (%p138_p2) target bundleno = 270 (0x10e), region = 32 }
   0xb   : > { %v657_v0 = vld [vmem:[%s847_s1 + $0x38] sm:$0xff]   ;;  %v658_v1 = vld [vmem:[%s847_s1 + $0x30] sm:$0xff]   ;;  %s851_s13 = smov (!%p161_p3, %s539_s13), 1  ;;  %v659_v2 = vld [vmem:[%s847_s1 + $0x28] sm:$0xff]  }
   0xc   : > { %585 = vmatprep.subr.bf16.mxu0 %v657_v0  ;;  %633 = vmatprep.subr.bf16.mxu1 %v657_v0  ;;  %s559_s20 = sshll.u32 %s851_s13, 8  ;;  %v660_v3 = vld [vmem:[%s847_s1 + $0x20] sm:$0xff]   ;;  %v661_v10 = vld [vmem:[%s847_s1 + $0x18] sm:$0xff]   ;;  %v662_v11 = vld [vmem:[%s847_s1 + $0x10] sm:$0xff]  }
   0xd   : > { %586 = vmatpush3.bf16.msra.mxu0 %v657_v0  ;;  %641 = vmatpush3.bf16.msra.mxu1 %v657_v0  ;;  %s718_s23 = scalar_lea.vmem %s846_s0, %s559_s20  ;;  %v663_v12 = vld [vmem:[%s847_s1 + $0x8] sm:$0xff]   ;;  %v664_v13 = vld [vmem:[%s847_s1] sm:$0xff]   ;;  %s777_s11 = scalar_lea.vmem %s849_s3, %s559_s20 }
   0xe   : > { %587 = vmatprep.subr.bf16.mxu0 %v658_v1  ;;  %634 = vmatprep.subr.bf16.mxu1 %v658_v1  ;;  %v172_v4 = vld [vmem:[%s718_s23] sm:$0xff]  ;;  %v173_v5 = vld [vmem:[%s718_s23 + $0x8] sm:$0xff]  ;;  %v174_v14 = vld [vmem:[%s718_s23 + $0x10] sm:$0xff] }
   0xf   : > { %v188_v6 = vld [vmem:[%s718_s23 + $0x80] sm:$0xff]  ;;  %v204_v7 = vpack.c.bf16 %v173_v5, %v172_v4  ;;  %v189_v8 = vld [vmem:[%s718_s23 + $0x88] sm:$0xff]  ;;  %v175_v15 = vld [vmem:[%s718_s23 + $0x18] sm:$0xff] }
  0x10   : > { %v212_v9 = vpack.c.bf16 %v189_v8, %v188_v6  ;;  %v190_v16 = vld [vmem:[%s718_s23 + $0x90] sm:$0xff]  ;;  %v191_v17 = vld [vmem:[%s718_s23 + $0x98] sm:$0xff]  ;;  %v176_v18 = vld [vmem:[%s718_s23 + $0x20] sm:$0xff]  ;;  %v205_v22 = vpack.c.bf16 %v175_v15, %v174_v14 }
  0x11   : > { %588 = vmatpush3.bf16.msra.mxu0 %v658_v1  ;;  %642 = vmatpush3.bf16.msra.mxu1 %v658_v1  ;;  %v177_v19 = vld [vmem:[%s718_s23 + $0x28] sm:$0xff]  ;;  %v192_v20 = vld [vmem:[%s718_s23 + $0xa0] sm:$0xff]  ;;  %v213_v23 = vpack.c.bf16 %v191_v17, %v190_v16  ;;  %v178_v26 = vld [vmem:[%s718_s23 + $0x30] sm:$0xff] }
  0x12   : > { %589 = vmatprep.subr.bf16.mxu0 %v659_v2  ;;  %635 = vmatprep.subr.bf16.mxu1 %v659_v2  ;;  %v193_v21 = vld [vmem:[%s718_s23 + $0xa8] sm:$0xff]  ;;  %v206_v24 = vpack.c.bf16 %v177_v19, %v176_v18  ;;  %v179_v27 = vld [vmem:[%s718_s23 + $0x38] sm:$0xff]  ;;  %v194_v28 = vld [vmem:[%s718_s23 + $0xb0] sm:$0xff] }
  0x13   : > { %601 = vmatprep.mubr.bf16.mxu0 %v204_v7  ;;  %617 = vmatprep.mubr.bf16.mxu1 %v212_v9  ;;  %v214_v25 = vpack.c.bf16 %v193_v21, %v192_v20  ;;  %v195_v29 = vld [vmem:[%s718_s23 + $0xb8] sm:$0xff]  ;;  %v180_v30 = vld [vmem:[%s718_s23 + $0x40] sm:$0xff]  ;;  %v181_v31 = vld [vmem:[%s718_s23 + $0x48] sm:$0xff]  ;;  %v207_v34 = vpack.c.bf16 %v179_v27, %v178_v26 }
  0x14   : > { %v196_v32 = vld [vmem:[%s718_s23 + $0xc0] sm:$0xff]  ;;  %v197_v33 = vld [vmem:[%s718_s23 + $0xc8] sm:$0xff]  ;;  %v215_v35 = vpack.c.bf16 %v195_v29, %v194_v28  ;;  %v208_v36 = vpack.c.bf16 %v181_v31, %v180_v30  ;;  %v182_v38 = vld [vmem:[%s718_s23 + $0x50] sm:$0xff] }
  0x15   : > { %590 = vmatpush3.bf16.msra.mxu0 %v659_v2  ;;  %643 = vmatpush3.bf16.msra.mxu1 %v659_v2  ;;  %v216_v37 = vpack.c.bf16 %v197_v33, %v196_v32  ;;  %v183_v39 = vld [vmem:[%s718_s23 + $0x58] sm:$0xff]  ;;  %v198_v40 = vld [vmem:[%s718_s23 + $0xd0] sm:$0xff]  ;;  %v184_v42 = vld [vmem:[%s718_s23 + $0x60] sm:$0xff] }
  0x16   : > { %591 = vmatprep.subr.bf16.mxu0 %v660_v3  ;;  %636 = vmatprep.subr.bf16.mxu1 %v660_v3  ;;  %v199_v41 = vld [vmem:[%s718_s23 + $0xd8] sm:$0xff]  ;;  %v185_v43 = vld [vmem:[%s718_s23 + $0x68] sm:$0xff]  ;;  %v200_v44 = vld [vmem:[%s718_s23 + $0xe0] sm:$0xff]  ;;  %v209_v46 = vpack.c.bf16 %v183_v39, %v182_v38 }
  0x17   : > { %v201_v45 = vld [vmem:[%s718_s23 + $0xe8] sm:$0xff]  ;;  %v217_v47 = vpack.c.bf16 %v199_v41, %v198_v40  ;;  %v210_v48 = vpack.c.bf16 %v185_v43, %v184_v42  ;;  %v186_v50 = vld [vmem:[%s718_s23 + $0x70] sm:$0xff]  ;;  %v187_v51 = vld [vmem:[%s718_s23 + $0x78] sm:$0xff] }
  0x18   : > { %v218_v49 = vpack.c.bf16 %v201_v45, %v200_v44  ;;  %v202_v52 = vld [vmem:[%s718_s23 + $0xf0] sm:$0xff]  ;;  %v203_v53 = vld [vmem:[%s718_s23 + $0xf8] sm:$0xff]  ;;  %v211_v54 = vpack.c.bf16 %v187_v51, %v186_v50  ;;  %v770_v56 = vld [vmem:[%s848_s2] ss:$0 sm:$0xff] }
  0x19   : > { %592 = vmatpush3.bf16.msra.mxu0 %v660_v3  ;;  %644 = vmatpush3.bf16.msra.mxu1 %v660_v3  ;;  %v219_v55 = vpack.c.bf16 %v203_v53, %v202_v52 }
  0x1a   : > { %593 = vmatprep.subr.bf16.mxu0 %v661_v10  ;;  %637 = vmatprep.subr.bf16.mxu1 %v661_v10 }
  0x1d   : > { %594 = vmatpush3.bf16.msra.mxu0 %v661_v10  ;;  %645 = vmatpush3.bf16.msra.mxu1 %v661_v10 }
  0x1e   : > { %595 = vmatprep.subr.bf16.mxu0 %v662_v11  ;;  %638 = vmatprep.subr.bf16.mxu1 %v662_v11 }
  0x21   : > { %596 = vmatpush3.bf16.msra.mxu0 %v662_v11  ;;  %646 = vmatpush3.bf16.msra.mxu1 %v662_v11 }
  0x22   : > { %597 = vmatprep.subr.bf16.mxu0 %v663_v12  ;;  %639 = vmatprep.subr.bf16.mxu1 %v663_v12 }
  0x25   : > { %598 = vmatpush3.bf16.msra.mxu0 %v663_v12  ;;  %647 = vmatpush3.bf16.msra.mxu1 %v663_v12 }
  0x26   : > { %599 = vmatprep.subr.bf16.mxu0 %v664_v13  ;;  %640 = vmatprep.subr.bf16.mxu1 %v664_v13 }
  0x29   : > { %600 = vmatpush3.bf16.msra.mxu0 %v664_v13  ;;  %648 = vmatpush3.bf16.msra.mxu1 %v664_v13 }
  0x2c   : > { %602 = vmatmul.mubr.bf16.vlgmr.msra.gmra.mxu0 %v205_v22  ;;  %618 = vmatmul.mubr.bf16.vlgmr.msra.gmra.mxu1 %v213_v23 }
  0x2d   : > { %605 = vmatprep.mubr.bf16.mxu0 %v206_v24  ;;  %621 = vmatprep.mubr.bf16.mxu1 %v214_v25 }
  0x34   : > { %606 = vmatmul.mubr.bf16.gmra.mxu0 %v207_v34  ;;  %622 = vmatmul.mubr.bf16.gmra.mxu1 %v215_v35 }
  0x35   : > { %609 = vmatprep.mubr.bf16.mxu0 %v208_v36  ;;  %625 = vmatprep.mubr.bf16.mxu1 %v216_v37 }
  0x3c   : > { %610 = vmatmul.mubr.bf16.gmra.mxu0 %v209_v46  ;;  %626 = vmatmul.mubr.bf16.gmra.mxu1 %v217_v47 }
  0x3d   : > { %613 = vmatprep.mubr.bf16.mxu0 %v210_v48  ;;  %629 = vmatprep.mubr.bf16.mxu1 %v218_v49 }
  0x44   : > { %614 = vmatmul.mubr.bf16.gmra.mxu0 %v211_v54  ;;  %630 = vmatmul.mubr.bf16.gmra.mxu1 %v219_v55 }
  0xec   : > { %v603_v57 = vpop.f32.mrf.mxu0  ;;  %v619_v58 = vpop.f32.mrf.mxu1 }
  0xed   : > { %v334_v59 = vadd.f32 %v603_v57, %v770_v56  ;;  %v398_v60 = vadd.f32 %v619_v58, %v770_v56 }
  0xee   : > { %v325_v61 = vpop.f32.mrf.mxu0  ;;  %v389_v62 = vpop.f32.mrf.mxu1 }
  0xef   : > { %454 = vst [vmem:[%s777_s11 + $0x10] sm:$0xff] %v334_v59  ;;  %470 = vst [vmem:[%s777_s11 + $0x90] sm:$0xff] %v398_v60  ;;  %v326_v63 = vadd.f32 %v770_v56, %v325_v61  ;;  %v390_v0 = vadd.f32 %v770_v56, %v389_v62 }
  0xf0   : > { %v604_v1 = vpop.f32.mrf.mxu0  ;;  %v620_v2 = vpop.f32.mrf.mxu1 }
  0xf1   : > { %452 = vst [vmem:[%s777_s11] sm:$0xff] %v326_v63  ;;  %468 = vst [vmem:[%s777_s11 + $0x80] sm:$0xff] %v390_v0  ;;  %v337_v3 = vadd.f32 %v604_v1, %v770_v56  ;;  %v401_v4 = vadd.f32 %v620_v2, %v770_v56 }
  0xf2   : > { %v328_v5 = vpop.f32.mrf.mxu0  ;;  %v392_v6 = vpop.f32.mrf.mxu1 }
  0xf3   : > { %455 = vst [vmem:[%s777_s11 + $0x18] sm:$0xff] %v337_v3  ;;  %471 = vst [vmem:[%s777_s11 + $0x98] sm:$0xff] %v401_v4  ;;  %v329_v7 = vadd.f32 %v770_v56, %v328_v5  ;;  %v393_v8 = vadd.f32 %v770_v56, %v392_v6 }
  0xf4   : > { %v607_v9 = vpop.f32.mrf.mxu0  ;;  %v623_v10 = vpop.f32.mrf.mxu1 }
  0xf5   : > { %453 = vst [vmem:[%s777_s11 + $0x8] sm:$0xff] %v329_v7  ;;  %469 = vst [vmem:[%s777_s11 + $0x88] sm:$0xff] %v393_v8  ;;  %v350_v11 = vadd.f32 %v607_v9, %v770_v56  ;;  %v414_v12 = vadd.f32 %v623_v10, %v770_v56 }
  0xf6   : > { %v341_v13 = vpop.f32.mrf.mxu0  ;;  %v405_v14 = vpop.f32.mrf.mxu1 }
  0xf7   : > { %458 = vst [vmem:[%s777_s11 + $0x30] sm:$0xff] %v350_v11  ;;  %474 = vst [vmem:[%s777_s11 + $0xb0] sm:$0xff] %v414_v12  ;;  %v342_v15 = vadd.f32 %v770_v56, %v341_v13  ;;  %v406_v16 = vadd.f32 %v770_v56, %v405_v14 }
  0xf8   : > { %v608_v17 = vpop.f32.mrf.mxu0  ;;  %v624_v18 = vpop.f32.mrf.mxu1 }
  0xf9   : > { %456 = vst [vmem:[%s777_s11 + $0x20] sm:$0xff] %v342_v15  ;;  %472 = vst [vmem:[%s777_s11 + $0xa0] sm:$0xff] %v406_v16  ;;  %v353_v19 = vadd.f32 %v608_v17, %v770_v56  ;;  %v417_v20 = vadd.f32 %v624_v18, %v770_v56 }
  0xfa   : > { %v344_v21 = vpop.f32.mrf.mxu0  ;;  %v408_v22 = vpop.f32.mrf.mxu1 }
  0xfb   : > { %459 = vst [vmem:[%s777_s11 + $0x38] sm:$0xff] %v353_v19  ;;  %475 = vst [vmem:[%s777_s11 + $0xb8] sm:$0xff] %v417_v20  ;;  %v345_v23 = vadd.f32 %v770_v56, %v344_v21  ;;  %v409_v24 = vadd.f32 %v770_v56, %v408_v22 }
  0xfc   : > { %v611_v25 = vpop.f32.mrf.mxu0  ;;  %v627_v26 = vpop.f32.mrf.mxu1 }
  0xfd   : > { %457 = vst [vmem:[%s777_s11 + $0x28] sm:$0xff] %v345_v23  ;;  %473 = vst [vmem:[%s777_s11 + $0xa8] sm:$0xff] %v409_v24  ;;  %v366_v27 = vadd.f32 %v611_v25, %v770_v56  ;;  %v430_v28 = vadd.f32 %v627_v26, %v770_v56 }
  0xfe   : > { %v357_v29 = vpop.f32.mrf.mxu0  ;;  %v421_v30 = vpop.f32.mrf.mxu1 }
  0xff   : > { %462 = vst [vmem:[%s777_s11 + $0x50] sm:$0xff] %v366_v27  ;;  %478 = vst [vmem:[%s777_s11 + $0xd0] sm:$0xff] %v430_v28  ;;  %v358_v31 = vadd.f32 %v770_v56, %v357_v29  ;;  %v422_v32 = vadd.f32 %v770_v56, %v421_v30 }
 0x100   : > { %v612_v33 = vpop.f32.mrf.mxu0  ;;  %v628_v34 = vpop.f32.mrf.mxu1 }
 0x101   : > { %460 = vst [vmem:[%s777_s11 + $0x40] sm:$0xff] %v358_v31  ;;  %476 = vst [vmem:[%s777_s11 + $0xc0] sm:$0xff] %v422_v32  ;;  %v369_v35 = vadd.f32 %v612_v33, %v770_v56  ;;  %v433_v36 = vadd.f32 %v628_v34, %v770_v56 }
 0x102   : > { %v360_v37 = vpop.f32.mrf.mxu0  ;;  %v424_v38 = vpop.f32.mrf.mxu1 }
 0x103   : > { %463 = vst [vmem:[%s777_s11 + $0x58] sm:$0xff] %v369_v35  ;;  %479 = vst [vmem:[%s777_s11 + $0xd8] sm:$0xff] %v433_v36  ;;  %v361_v39 = vadd.f32 %v770_v56, %v360_v37  ;;  %v425_v40 = vadd.f32 %v770_v56, %v424_v38 }
 0x104   : > { %v615_v41 = vpop.f32.mrf.mxu0  ;;  %v631_v42 = vpop.f32.mrf.mxu1 }
 0x105   : > { %461 = vst [vmem:[%s777_s11 + $0x48] sm:$0xff] %v361_v39  ;;  %477 = vst [vmem:[%s777_s11 + $0xc8] sm:$0xff] %v425_v40  ;;  %v382_v43 = vadd.f32 %v615_v41, %v770_v56  ;;  %v446_v44 = vadd.f32 %v631_v42, %v770_v56 }
 0x106   : > { %v373_v45 = vpop.f32.mrf.mxu0  ;;  %v437_v46 = vpop.f32.mrf.mxu1 }
 0x107   : > { %466 = vst [vmem:[%s777_s11 + $0x70] sm:$0xff] %v382_v43  ;;  %482 = vst [vmem:[%s777_s11 + $0xf0] sm:$0xff] %v446_v44  ;;  %v374_v47 = vadd.f32 %v770_v56, %v373_v45  ;;  %v438_v48 = vadd.f32 %v770_v56, %v437_v46 }
 0x108   : > { %v616_v49 = vpop.f32.mrf.mxu0  ;;  %v632_v50 = vpop.f32.mrf.mxu1 }
 0x109   : > { %464 = vst [vmem:[%s777_s11 + $0x60] sm:$0xff] %v374_v47  ;;  %480 = vst [vmem:[%s777_s11 + $0xe0] sm:$0xff] %v438_v48  ;;  %v385_v51 = vadd.f32 %v616_v49, %v770_v56  ;;  %v449_v52 = vadd.f32 %v632_v50, %v770_v56 }
 0x10a   : > { %v376_v53 = vpop.f32.mrf.mxu0  ;;  %v440_v54 = vpop.f32.mrf.mxu1 }
 0x10b   : > { %467 = vst [vmem:[%s777_s11 + $0x78] sm:$0xff] %v385_v51  ;;  %483 = vst [vmem:[%s777_s11 + $0xf8] sm:$0xff] %v449_v52  ;;  %v377_v55 = vadd.f32 %v770_v56, %v376_v53  ;;  %v441_v57 = vadd.f32 %v770_v56, %v440_v54 }
 0x10d   : > { %465 = vst [vmem:[%s777_s11 + $0x68] sm:$0xff] %v377_v55  ;;  %481 = vst [vmem:[%s777_s11 + $0xe8] sm:$0xff] %v441_v57 }
 0x10e PF: > { %s13_s12 = sadd.s32 1, %s671_s12  }
 0x10f   : > { %p10_p4 = scmp.ge.s32.totalorder %s13_s12, 4  }
 0x111   :  { %12 = sbr.rel (!%p10_p4) target bundleno = 1 (0x1), region = 62 }

// kernel: flow_module_multiscale.3
= control target key start
LH: loop header
LB: loop body
LE: loop exit
PB: predicated region body
PF: predicated region fallthrough
CT: control target
= control target key end

     0   :  { %8 = vsyncpa [#allocation3], 0  ;;  %s8784_s0 = inlined_call_operand.vmem [shape: f32[2,152,128], index: 0, kind: input, shape index: {}]   ;;  %s8785_s1 = inlined_call_operand.hbm [shape: bf16[25,128,256], index: 1, kind: input, shape index: {}]   ;;  %s8786_s2 = inlined_call_operand.hbm [shape: f32[1,256], index: 2, kind: input, shape index: {}]   ;;  %s8787_s3 = inlined_call_operand.vmem [shape: f32[2,96,256], index: 3, kind: output, shape index: {}]  }
   0x1   :  { %9 = vsyncpa [#allocation5], 0  ;;  %s7268_s12 = smov 0  }
   0x2 LB: > { %s7274_s13 = sadd.s32 4294967295, %s7241_s12   ;;  %p6114_p0 = scmp.ge.s32.totalorder %s7241_s12, 1  ;;  %s7241_s12 = sphi %s7268_s12, %s15_s12  }
   0x3   : > { %p114_p1 = scmp.lt.s32.totalorder %s7241_s12, 3  ;;  %s7243_s14 = smov [#allocation2]  }
   0x4   : > { %s126_s15 = sshll.u32 %s7243_s14, 4  ;;  %p6558_p3 = scmp.eq.s32.totalorder %s7274_s13, 0  ;;  %s127_s15 = int_to_ptr.vmem [resolvable:$true] %s126_s15 }
   0x5   : > { %p7278_p2 = pnand %p6114_p0, %p114_p1  ;;  %s7244_s17 = smov [#allocation4]  }
   0x6   : > { %s140_s18 = sshll.u32 %s7244_s17, 4  ;;  %s7186_s20 = scalar_lea.vmem %s127_s15, 51200  ;;  %s141_s18 = int_to_ptr.vmem [resolvable:$true] %s140_s18 }
   0x7   : > { %p6551_p4 = pneg %p7278_p2  ;;  %p7187_p7 = scmp.ne.s32.totalorder %s127_s15, %s7186_s20 }
   0x8   : > { %p7194_p10 = scmp.lt.s32.totalorder %s127_s15, %s127_s15  ;;  %p7195_p11 = scmp.lt.s32.totalorder %s7186_s20, %s7186_s20 }
   0x9   : > { %p7287_p5 = pnand %p6558_p3, %p6551_p4 }
   0xa   : > { %p7196_p12 = por %p7195_p11, %p7194_p10 }
   0xb   : > { %p7177_p6 = pneg %p7287_p5 }
   0xd   : > { %p7189_p8 = pnand %p7187_p7, %p7177_p6 }
   0xf   : > { %p7190_p9 = pneg %p7189_p8 }
  0x11   : > { %p7197_p13 = pnand %p7196_p12, %p7190_p9 }
  0x13   : > { %7200 = shalt.err (!%p7197_p13)
}
  0x14   : > { %s7245_s21 = smov 128   ;;  %s7246_s22 = smov 8  }
  0x15   : > { %6554 = dma.hbm_to_vmem [thread:$0]  (!%p7287_p5), %s8785_s1, 51200, %s127_s15, [#allocation3], %s7245_s21, %s7245_s21, %s7246_s22  }
  0x16   : > { %s7212_s25 = scalar_lea.vmem %s141_s18, 32  ;;  %p7220_p7 = scmp.lt.s32.totalorder %s141_s18, %s141_s18 }
  0x17   : > { %p7213_p0 = scmp.ne.s32.totalorder %s141_s18, %s7212_s25  ;;  %p7221_p8 = scmp.lt.s32.totalorder %s7212_s25, %s7212_s25 }
  0x19   : > { %p7215_p1 = pnand %p7213_p0, %p7177_p6  ;;  %p7222_p10 = por %p7221_p8, %p7220_p7 }
  0x1b   : > { %p7216_p4 = pneg %p7215_p1 }
  0x1d   : > { %p7223_p9 = pnand %p7222_p10, %p7216_p4 }
  0x1f   : > { %7226 = shalt.err (!%p7223_p9)
}
  0x20   : > { %6557 = dma.hbm_to_vmem [thread:$0]  (!%p7287_p5), %s8786_s2, 32, %s141_s18, [#allocation5]  }
  0x21   : > { %161 = sbr.rel (%p7278_p2) target bundleno = 874 (0x36a), region = 32 }
  0x26   : > { %7232 = dma.done.wait (%p6558_p3), [#allocation3], 51200  }
  0x27   : > { %7234 = vsyncadd (%p6558_p3), [#allocation3], 4294916096 }
  0x28   : > { %7236 = dma.done.wait (%p6558_p3), [#allocation5], 32  }
  0x29   : > { %7238 = vsyncadd (%p6558_p3), [#allocation5], 4294967264  ;;  %v7247_v0 = vmov 0   ;;  %v6575_v1 = vld [vmem:[#allocation2 + $0xf4] ss:$8 sps:$4 sm:$0xff]   ;;  %p189_p2 = scmp.lt.s32.totalorder %s7274_s13, 1 }
  0x2a   : > { %381 = vmatprep.mubr.bf16.mxu0 %v7247_v0  ;;  %554 = vmatprep.mubr.bf16.mxu1 %v7247_v0  ;;  %v6577_v2 = vld [vmem:[#allocation2 + $0x74] ss:$8 sps:$4 sm:$0xff]   ;;  %v6579_v3 = vld [vmem:[#allocation2 + $0xf0] ss:$8 sps:$4 sm:$0xff]   ;;  %v6581_v5 = vld [vmem:[#allocation2 + $0xe4] ss:$8 sps:$4 sm:$0xff]  }
  0x2b   : > { %349 = vmatprep.subr.bf16.mxu0 %v6575_v1  ;;  %v6580_v4 = vld [vmem:[#allocation2 + $0x70] ss:$8 sps:$4 sm:$0xff]   ;;  %522 = vmatprep.subr.bf16.mxu1 %v6577_v2  ;;  %v6583_v6 = vld [vmem:[#allocation2 + $0x64] ss:$8 sps:$4 sm:$0xff]   ;;  %v6585_v7 = vld [vmem:[#allocation2 + $0xe0] ss:$8 sps:$4 sm:$0xff]  }
  0x2c   : > { %350 = vmatpush1.bf16.msra.mxu0 %v6579_v3  ;;  %523 = vmatpush1.bf16.msra.mxu1 %v6580_v4  ;;  %v6586_v8 = vld [vmem:[#allocation2 + $0x60] ss:$8 sps:$4 sm:$0xff]   ;;  %v6587_v9 = vld [vmem:[#allocation2 + $0xd4] ss:$8 sps:$4 sm:$0xff]   ;;  %v6591_v11 = vld [vmem:[#allocation2 + $0xd0] ss:$8 sps:$4 sm:$0xff]  }
  0x2d   : > { %351 = vmatprep.subr.bf16.mxu0 %v6581_v5  ;;  %524 = vmatprep.subr.bf16.mxu1 %v6583_v6  ;;  %v6589_v10 = vld [vmem:[#allocation2 + $0x54] ss:$8 sps:$4 sm:$0xff]   ;;  %v6592_v12 = vld [vmem:[#allocation2 + $0x50] ss:$8 sps:$4 sm:$0xff]   ;;  %v6593_v13 = vld [vmem:[#allocation2 + $0xc4] ss:$8 sps:$4 sm:$0xff]  }
  0x2e   : > { %v6595_v14 = vld [vmem:[#allocation2 + $0x44] ss:$8 sps:$4 sm:$0xff]   ;;  %v6597_v15 = vld [vmem:[#allocation2 + $0xc0] ss:$8 sps:$4 sm:$0xff]   ;;  %v6599_v17 = vld [vmem:[#allocation2 + $0xb4] ss:$8 sps:$4 sm:$0xff]  }
  0x2f   : > { %v6598_v16 = vld [vmem:[#allocation2 + $0x40] ss:$8 sps:$4 sm:$0xff]   ;;  %v6601_v18 = vld [vmem:[#allocation2 + $0x34] ss:$8 sps:$4 sm:$0xff]   ;;  %v6603_v19 = vld [vmem:[#allocation2 + $0xb0] ss:$8 sps:$4 sm:$0xff]  }
  0x30   : > { %352 = vmatpush1.bf16.msra.mxu0 %v6585_v7  ;;  %525 = vmatpush1.bf16.msra.mxu1 %v6586_v8  ;;  %v6604_v20 = vld [vmem:[#allocation2 + $0x30] ss:$8 sps:$4 sm:$0xff]   ;;  %v6605_v21 = vld [vmem:[#allocation2 + $0xa4] ss:$8 sps:$4 sm:$0xff]   ;;  %s8823_s13 = smov (!%p189_p2, %s7274_s13), 1 }
  0x31   : > { %353 = vmatprep.subr.bf16.mxu0 %v6587_v9  ;;  %526 = vmatprep.subr.bf16.mxu1 %v6589_v10  ;;  %v6607_v22 = vld [vmem:[#allocation2 + $0x24] ss:$8 sps:$4 sm:$0xff]   ;;  %v6609_v23 = vld [vmem:[#allocation2 + $0xa0] ss:$8 sps:$4 sm:$0xff]   ;;  %s6541_s28 = smul.u32 152, %s8823_s13 }
  0x32   : > { %v6610_v24 = vld [vmem:[#allocation2 + $0x20] ss:$8 sps:$4 sm:$0xff]   ;;  %v6611_v25 = vld [vmem:[#allocation2 + $0x94] ss:$8 sps:$4 sm:$0xff]   ;;  %v6615_v27 = vld [vmem:[#allocation2 + $0x90] ss:$8 sps:$4 sm:$0xff]  }
  0x33   : > { %v6613_v26 = vld [vmem:[#allocation2 + $0x14] ss:$8 sps:$4 sm:$0xff]   ;;  %v6616_v28 = vld [vmem:[#allocation2 + $0x10] ss:$8 sps:$4 sm:$0xff]   ;;  %v6617_v29 = vld [vmem:[#allocation2 + $0x84] ss:$8 sps:$4 sm:$0xff]   ;;  %s7329_s4 = scalar_lea.vmem %s8784_s0, %s6541_s28 }
  0x34   : > { %354 = vmatpush1.bf16.msra.mxu0 %v6591_v11  ;;  %527 = vmatpush1.bf16.msra.mxu1 %v6592_v12  ;;  %v6619_v30 = vld [vmem:[#allocation2 + $0x4] ss:$8 sps:$4 sm:$0xff]   ;;  %v6621_v31 = vld [vmem:[#allocation2 + $0x80] ss:$8 sps:$4 sm:$0xff]   ;;  %v6625_v37 = vld [vmem:[#allocation2 + $0x174] ss:$8 sps:$4 sm:$0xff]  }
  0x35   : > { %355 = vmatprep.subr.bf16.mxu0 %v6593_v13  ;;  %528 = vmatprep.subr.bf16.mxu1 %v6595_v14  ;;  %v6622_v32 = vld [vmem:[#allocation2] ss:$8 sps:$4 sm:$0xff]   ;;  %v6628_v38 = vld [vmem:[#allocation2 + $0x1f4] ss:$8 sps:$4 sm:$0xff]   ;;  %v6623_v41 = vld [vmem:[#allocation2 + $0x170] ss:$8 sps:$4 sm:$0xff]  }
  0x36   : > { %v234_v33 = vld [vmem:[%s7329_s4 + $0x1] sm:$0xff]  ;;  %v235_v34 = vld [vmem:[%s7329_s4 + $0x9] sm:$0xff]  ;;  %v236_v47 = vld [vmem:[%s7329_s4 + $0x11] sm:$0xff]  ;;  %s6542_s5 = smul.u32 192, %s8823_s13 }
  0x37   : > { %v200_v35 = vld [vmem:[%s7329_s4] sm:$0xff]  ;;  %v201_v36 = vld [vmem:[%s7329_s4 + $0x8] sm:$0xff]  ;;  %v246_v39 = vpack.c.bf16 %v235_v34, %v234_v33  ;;  %v6626_v42 = vld [vmem:[#allocation2 + $0x1f0] ss:$8 sps:$4 sm:$0xff]  }
  0x38   : > { %356 = vmatpush1.bf16.msra.mxu0 %v6597_v15  ;;  %529 = vmatpush1.bf16.msra.mxu1 %v6598_v16  ;;  %v212_v40 = vpack.c.bf16 %v201_v36, %v200_v35  ;;  %v6631_v43 = vld [vmem:[#allocation2 + $0x164] ss:$8 sps:$4 sm:$0xff]   ;;  %v6629_v45 = vld [vmem:[#allocation2 + $0x160] ss:$8 sps:$4 sm:$0xff]   ;;  %v202_v49 = vld [vmem:[%s7329_s4 + $0x10] sm:$0xff]  ;;  %s8702_s8 = scalar_lea.vmem %s8787_s3, %s6542_s5 }
  0x39   : > { %357 = vmatprep.subr.bf16.mxu0 %v6599_v17  ;;  %530 = vmatprep.subr.bf16.mxu1 %v6601_v18  ;;  %v6634_v44 = vld [vmem:[#allocation2 + $0x1e4] ss:$8 sps:$4 sm:$0xff]   ;;  %v6632_v46 = vld [vmem:[#allocation2 + $0x1e0] ss:$8 sps:$4 sm:$0xff]   ;;  %v203_v50 = vld [vmem:[%s7329_s4 + $0x18] sm:$0xff] }
  0x3a   : > { %v237_v48 = vld [vmem:[%s7329_s4 + $0x19] sm:$0xff]  ;;  %v213_v54 = vpack.c.bf16 %v203_v50, %v202_v49  ;;  %v238_v57 = vld [vmem:[%s7329_s4 + $0x21] sm:$0xff]  ;;  %v239_v58 = vld [vmem:[%s7329_s4 + $0x29] sm:$0xff] }
  0x3b   : > { %v6637_v51 = vld [vmem:[#allocation2 + $0x154] ss:$8 sps:$4 sm:$0xff]   ;;  %v247_v53 = vpack.c.bf16 %v237_v48, %v236_v47  ;;  %v6635_v55 = vld [vmem:[#allocation2 + $0x150] ss:$8 sps:$4 sm:$0xff]   ;;  %v204_v59 = vld [vmem:[%s7329_s4 + $0x20] sm:$0xff]  ;;  %v248_v4 = vpack.c.bf16 %v239_v58, %v238_v57 }
  0x3c   : > { %358 = vmatpush1.bf16.msra.mxu0 %v6603_v19  ;;  %531 = vmatpush1.bf16.msra.mxu1 %v6604_v20  ;;  %v6640_v52 = vld [vmem:[#allocation2 + $0x1d4] ss:$8 sps:$4 sm:$0xff]   ;;  %v6638_v56 = vld [vmem:[#allocation2 + $0x1d0] ss:$8 sps:$4 sm:$0xff]   ;;  %v6643_v60 = vld [vmem:[#allocation2 + $0x144] ss:$8 sps:$4 sm:$0xff]  }
  0x3d   : > { %359 = vmatprep.subr.bf16.mxu0 %v6605_v21  ;;  %532 = vmatprep.subr.bf16.mxu1 %v6607_v22  ;;  %v6646_v61 = vld [vmem:[#allocation2 + $0x1c4] ss:$8 sps:$4 sm:$0xff]   ;;  %v6641_v63 = vld [vmem:[#allocation2 + $0x140] ss:$8 sps:$4 sm:$0xff]   ;;  %v6649_v2 = vld [vmem:[#allocation2 + $0x134] ss:$8 sps:$4 sm:$0xff]  }
  0x3e   : > { %v205_v62 = vld [vmem:[%s7329_s4 + $0x28] sm:$0xff]  ;;  %v6652_v3 = vld [vmem:[#allocation2 + $0x1b4] ss:$8 sps:$4 sm:$0xff]   ;;  %v6647_v6 = vld [vmem:[#allocation2 + $0x130] ss:$8 sps:$4 sm:$0xff]  }
  0x3f   : > { %v6644_v1 = vld [vmem:[#allocation2 + $0x1c0] ss:$8 sps:$4 sm:$0xff]   ;;  %v214_v5 = vpack.c.bf16 %v205_v62, %v204_v59  ;;  %v6650_v7 = vld [vmem:[#allocation2 + $0x1b0] ss:$8 sps:$4 sm:$0xff]   ;;  %v6655_v9 = vld [vmem:[#allocation2 + $0x124] ss:$8 sps:$4 sm:$0xff]  }
  0x40   : > { %360 = vmatpush1.bf16.msra.mxu0 %v6609_v23  ;;  %533 = vmatpush1.bf16.msra.mxu1 %v6610_v24  ;;  %v240_v8 = vld [vmem:[%s7329_s4 + $0x31] sm:$0xff]  ;;  %v6658_v10 = vld [vmem:[#allocation2 + $0x1a4] ss:$8 sps:$4 sm:$0xff]   ;;  %v241_v11 = vld [vmem:[%s7329_s4 + $0x39] sm:$0xff] }
  0x41   : > { %361 = vmatprep.subr.bf16.mxu0 %v6611_v25  ;;  %534 = vmatprep.subr.bf16.mxu1 %v6613_v26  ;;  %v206_v12 = vld [vmem:[%s7329_s4 + $0x30] sm:$0xff]  ;;  %v207_v13 = vld [vmem:[%s7329_s4 + $0x38] sm:$0xff]  ;;  %v6653_v14 = vld [vmem:[#allocation2 + $0x120] ss:$8 sps:$4 sm:$0xff]   ;;  %v249_v18 = vpack.c.bf16 %v241_v11, %v240_v8 }
  0x42   : > { %v6656_v15 = vld [vmem:[#allocation2 + $0x1a0] ss:$8 sps:$4 sm:$0xff]   ;;  %v6661_v16 = vld [vmem:[#allocation2 + $0x114] ss:$8 sps:$4 sm:$0xff]   ;;  %v215_v19 = vpack.c.bf16 %v207_v13, %v206_v12  ;;  %v6659_v20 = vld [vmem:[#allocation2 + $0x110] ss:$8 sps:$4 sm:$0xff]  }
  0x43   : > { %v6664_v17 = vld [vmem:[#allocation2 + $0x194] ss:$8 sps:$4 sm:$0xff]   ;;  %v6662_v21 = vld [vmem:[#allocation2 + $0x190] ss:$8 sps:$4 sm:$0xff]   ;;  %v242_v22 = vld [vmem:[%s7329_s4 + $0x41] sm:$0xff] }
  0x44   : > { %362 = vmatpush1.bf16.msra.mxu0 %v6615_v27  ;;  %535 = vmatpush1.bf16.msra.mxu1 %v6616_v28  ;;  %v6667_v23 = vld [vmem:[#allocation2 + $0x104] ss:$8 sps:$4 sm:$0xff]   ;;  %v6665_v28 = vld [vmem:[#allocation2 + $0x100] ss:$8 sps:$4 sm:$0xff]   ;;  %v244_v34 = vld [vmem:[%s7329_s4 + $0x51] sm:$0xff] }
  0x45   : > { %363 = vmatprep.subr.bf16.mxu0 %v6617_v29  ;;  %536 = vmatprep.subr.bf16.mxu1 %v6619_v30  ;;  %v6670_v24 = vld [vmem:[#allocation2 + $0x184] ss:$8 sps:$4 sm:$0xff]   ;;  %v6668_v29 = vld [vmem:[#allocation2 + $0x180] ss:$8 sps:$4 sm:$0xff]   ;;  %v6673_v30 = vld [vmem:[#allocation2 + $0x274] ss:$8 sps:$4 sm:$0xff]  }
  0x46   : > { %v243_v25 = vld [vmem:[%s7329_s4 + $0x49] sm:$0xff]  ;;  %v208_v26 = vld [vmem:[%s7329_s4 + $0x40] sm:$0xff]  ;;  %v6688_v57 = vld [vmem:[#allocation2 + $0x2d4] ss:$8 sps:$4 sm:$0xff]  }
  0x47   : > { %v209_v27 = vld [vmem:[%s7329_s4 + $0x48] sm:$0xff]  ;;  %v245_v35 = vld [vmem:[%s7329_s4 + $0x59] sm:$0xff]  ;;  %v210_v36 = vld [vmem:[%s7329_s4 + $0x50] sm:$0xff] }
  0x48   : > { %364 = vmatpush1.bf16.msra.mxu0 %v6621_v31  ;;  %537 = vmatpush1.bf16.msra.mxu1 %v6622_v32  ;;  %v6676_v31 = vld [vmem:[#allocation2 + $0x2f4] ss:$8 sps:$4 sm:$0xff]   ;;  %v250_v32 = vpack.c.bf16 %v243_v25, %v242_v22  ;;  %v216_v33 = vpack.c.bf16 %v209_v27, %v208_v26  ;;  %v6674_v47 = vld [vmem:[#allocation2 + $0x2f0] ss:$8 sps:$4 sm:$0xff]   ;;  %v6679_v48 = vld [vmem:[#allocation2 + $0x264] ss:$8 sps:$4 sm:$0xff]  }
  0x49   : > { %730 = vmatprep.subr.bf16.mxu0 %v6625_v37  ;;  %962 = vmatprep.subr.bf16.mxu1 %v6628_v38  ;;  %v211_v37 = vld [vmem:[%s7329_s4 + $0x58] sm:$0xff]  ;;  %v251_v38 = vpack.c.bf16 %v245_v35, %v244_v34  ;;  %v6682_v49 = vld [vmem:[#allocation2 + $0x2e4] ss:$8 sps:$4 sm:$0xff]   ;;  %v6677_v50 = vld [vmem:[#allocation2 + $0x260] ss:$8 sps:$4 sm:$0xff]  }
  0x4a   : > { %v6691_v62 = vld [vmem:[#allocation2 + $0x244] ss:$8 sps:$4 sm:$0xff]   ;;  %v6700_v8 = vld [vmem:[#allocation2 + $0x2b4] ss:$8 sps:$4 sm:$0xff]   ;;  %v6695_v11 = vld [vmem:[#allocation2 + $0x230] ss:$8 sps:$4 sm:$0xff]  }
  0x4b   : > { %382 = vmatmul.mubr.bf16.vlgmr.msra.gmra.mxu0 %v246_v39  ;;  %555 = vmatmul.mubr.bf16.vlgmr.msra.gmra.mxu1 %v212_v40  ;;  %v217_v39 = vpack.c.bf16 %v211_v37, %v210_v36  ;;  %v615_v40 = vld [vmem:[%s7329_s4 + $0x2] sm:$0xff]  ;;  %v6698_v12 = vld [vmem:[#allocation2 + $0x2b0] ss:$8 sps:$4 sm:$0xff]   ;;  %v6712_v22 = vld [vmem:[#allocation2 + $0x294] ss:$8 sps:$4 sm:$0xff]  }
  0x4c   : > { %731 = vmatpush1.bf16.msra.mxu0 %v6623_v41  ;;  %963 = vmatpush1.bf16.msra.mxu1 %v6626_v42  ;;  %v616_v41 = vld [vmem:[%s7329_s4 + $0xa] sm:$0xff]  ;;  %v621_v13 = vld [vmem:[%s7329_s4 + $0x32] sm:$0xff]  ;;  %v623_v27 = vld [vmem:[%s7329_s4 + $0x42] sm:$0xff] }
  0x4d   : > { %732 = vmatprep.subr.bf16.mxu0 %v6631_v43  ;;  %964 = vmatprep.subr.bf16.mxu1 %v6634_v44  ;;  %v847_v42 = vld [vmem:[%s7329_s4 + $0x3] sm:$0xff]  ;;  %v848_v43 = vld [vmem:[%s7329_s4 + $0xb] sm:$0xff]  ;;  %v627_v44 = vpack.c.bf16 %v616_v41, %v615_v40  ;;  %v6721_v35 = vld [vmem:[#allocation2 + $0x374] ss:$8 sps:$4 sm:$0xff]  }
  0x4e   : > { %391 = vmatprep.mubr.bf16.mxu0 %v7247_v0  ;;  %564 = vmatprep.mubr.bf16.mxu1 %v7247_v0  ;;  %v6707_v25 = vld [vmem:[#allocation2 + $0x210] ss:$8 sps:$4 sm:$0xff]   ;;  %v6716_v34 = vld [vmem:[#allocation2 + $0x280] ss:$8 sps:$4 sm:$0xff]   ;;  %v6724_v36 = vld [vmem:[#allocation2 + $0x3f4] ss:$8 sps:$4 sm:$0xff]  }
  0x4f   : > { %v6710_v26 = vld [vmem:[#allocation2 + $0x290] ss:$8 sps:$4 sm:$0xff]  }
  0x50   : > { %733 = vmatpush1.bf16.msra.mxu0 %v6629_v45  ;;  %965 = vmatpush1.bf16.msra.mxu1 %v6632_v46  ;;  %v859_v45 = vpack.c.bf16 %v848_v43, %v847_v42  ;;  %v6671_v46 = vld [vmem:[#allocation2 + $0x270] ss:$8 sps:$4 sm:$0xff]  }
  0x51   : > { %734 = vmatprep.subr.bf16.mxu0 %v6637_v51  ;;  %966 = vmatprep.subr.bf16.mxu1 %v6640_v52  ;;  %v6680_v51 = vld [vmem:[#allocation2 + $0x2e0] ss:$8 sps:$4 sm:$0xff]   ;;  %v617_v52 = vld [vmem:[%s7329_s4 + $0x12] sm:$0xff] }
  0x52   : > { %v626_v40 = vld [vmem:[%s7329_s4 + $0x5a] sm:$0xff] }
  0x53   : > { %392 = vmatmul.mubr.bf16.gmra.mxu0 %v247_v53  ;;  %565 = vmatmul.mubr.bf16.gmra.mxu1 %v213_v54  ;;  %v618_v53 = vld [vmem:[%s7329_s4 + $0x1a] sm:$0xff] }
  0x54   : > { %735 = vmatpush1.bf16.msra.mxu0 %v6635_v55  ;;  %967 = vmatpush1.bf16.msra.mxu1 %v6638_v56  ;;  %v849_v54 = vld [vmem:[%s7329_s4 + $0x13] sm:$0xff]  ;;  %v850_v55 = vld [vmem:[%s7329_s4 + $0x1b] sm:$0xff]  ;;  %v628_v58 = vpack.c.bf16 %v618_v53, %v617_v52  ;;  %v6727_v52 = vld [vmem:[#allocation2 + $0x364] ss:$8 sps:$4 sm:$0xff]  }
  0x55   : > { %401 = vmatprep.mubr.bf16.mxu0 %v7247_v0  ;;  %574 = vmatprep.mubr.bf16.mxu1 %v7247_v0  ;;  %v6685_v56 = vld [vmem:[#allocation2 + $0x254] ss:$8 sps:$4 sm:$0xff]   ;;  %v860_v59 = vpack.c.bf16 %v850_v55, %v849_v54  ;;  %v6730_v53 = vld [vmem:[#allocation2 + $0x3e4] ss:$8 sps:$4 sm:$0xff]   ;;  %v6725_v54 = vld [vmem:[#allocation2 + $0x360] ss:$8 sps:$4 sm:$0xff]  }
  0x56   : > { %736 = vmatprep.subr.bf16.mxu0 %v6643_v60  ;;  %968 = vmatprep.subr.bf16.mxu1 %v6646_v61  ;;  %v6683_v60 = vld [vmem:[#allocation2 + $0x250] ss:$8 sps:$4 sm:$0xff]   ;;  %v6728_v55 = vld [vmem:[#allocation2 + $0x3e0] ss:$8 sps:$4 sm:$0xff]  }
  0x57   : > { %v6686_v61 = vld [vmem:[#allocation2 + $0x2d0] ss:$8 sps:$4 sm:$0xff]  }
  0x58   : > { %737 = vmatpush1.bf16.msra.mxu0 %v6641_v63  ;;  %969 = vmatpush1.bf16.msra.mxu1 %v6644_v1  ;;  %v619_v63 = vld [vmem:[%s7329_s4 + $0x22] sm:$0xff]  ;;  %v620_v1 = vld [vmem:[%s7329_s4 + $0x2a] sm:$0xff]  ;;  %v857_v41 = vld [vmem:[%s7329_s4 + $0x53] sm:$0xff] }
  0x59   : > { %738 = vmatprep.subr.bf16.mxu0 %v6649_v2  ;;  %970 = vmatprep.subr.bf16.mxu1 %v6652_v3  ;;  %v6694_v2 = vld [vmem:[#allocation2 + $0x2c4] ss:$8 sps:$4 sm:$0xff]   ;;  %v858_v42 = vld [vmem:[%s7329_s4 + $0x5b] sm:$0xff] }
  0x5a   : > { %v851_v3 = vld [vmem:[%s7329_s4 + $0x23] sm:$0xff] }
  0x5b   : > { %402 = vmatmul.mubr.bf16.gmra.mxu0 %v248_v4  ;;  %575 = vmatmul.mubr.bf16.gmra.mxu1 %v214_v5  ;;  %v852_v4 = vld [vmem:[%s7329_s4 + $0x2b] sm:$0xff] }
  0x5c   : > { %411 = vmatprep.mubr.bf16.mxu0 %v7247_v0  ;;  %584 = vmatprep.mubr.bf16.mxu1 %v7247_v0  ;;  %v6689_v5 = vld [vmem:[#allocation2 + $0x240] ss:$8 sps:$4 sm:$0xff]  }
  0x5d   : > { %739 = vmatpush1.bf16.msra.mxu0 %v6647_v6  ;;  %971 = vmatpush1.bf16.msra.mxu1 %v6650_v7  ;;  %v6692_v6 = vld [vmem:[#allocation2 + $0x2c0] ss:$8 sps:$4 sm:$0xff]   ;;  %v6697_v7 = vld [vmem:[#allocation2 + $0x234] ss:$8 sps:$4 sm:$0xff]  }
  0x5e   : > { %740 = vmatprep.subr.bf16.mxu0 %v6655_v9  ;;  %972 = vmatprep.subr.bf16.mxu1 %v6658_v10  ;;  %v629_v9 = vpack.c.bf16 %v620_v1, %v619_v63  ;;  %v861_v10 = vpack.c.bf16 %v852_v4, %v851_v3  ;;  %v6734_v63 = vld [vmem:[#allocation2 + $0x3d0] ss:$8 sps:$4 sm:$0xff]   ;;  %v6739_v3 = vld [vmem:[#allocation2 + $0x344] ss:$8 sps:$4 sm:$0xff]  }
  0x5f   : > { %v1084_v1 = vld [vmem:[%s7329_s4 + $0x2c] sm:$0xff] }
  0x60   : > { %v6742_v4 = vld [vmem:[#allocation2 + $0x3c4] ss:$8 sps:$4 sm:$0xff]  }
  0x61   : > { %741 = vmatpush1.bf16.msra.mxu0 %v6653_v14  ;;  %973 = vmatpush1.bf16.msra.mxu1 %v6656_v15  ;;  %v6703_v14 = vld [vmem:[#allocation2 + $0x224] ss:$8 sps:$4 sm:$0xff]  }
  0x62   : > { %742 = vmatprep.subr.bf16.mxu0 %v6661_v16  ;;  %974 = vmatprep.subr.bf16.mxu1 %v6664_v17  ;;  %v6706_v15 = vld [vmem:[#allocation2 + $0x2a4] ss:$8 sps:$4 sm:$0xff]   ;;  %v622_v16 = vld [vmem:[%s7329_s4 + $0x3a] sm:$0xff] }
  0x63   : > { %412 = vmatmul.mubr.bf16.gmra.mxu0 %v249_v18  ;;  %585 = vmatmul.mubr.bf16.gmra.mxu1 %v215_v19  ;;  %v853_v17 = vld [vmem:[%s7329_s4 + $0x33] sm:$0xff]  ;;  %v854_v18 = vld [vmem:[%s7329_s4 + $0x3b] sm:$0xff] }
  0x64   : > { %421 = vmatprep.mubr.bf16.mxu0 %v7247_v0  ;;  %594 = vmatprep.mubr.bf16.mxu1 %v7247_v0  ;;  %v6701_v19 = vld [vmem:[#allocation2 + $0x220] ss:$8 sps:$4 sm:$0xff]  }
  0x65   : > { %743 = vmatpush1.bf16.msra.mxu0 %v6659_v20  ;;  %975 = vmatpush1.bf16.msra.mxu1 %v6662_v21  ;;  %v6704_v20 = vld [vmem:[#allocation2 + $0x2a0] ss:$8 sps:$4 sm:$0xff]   ;;  %v6709_v21 = vld [vmem:[#allocation2 + $0x214] ss:$8 sps:$4 sm:$0xff]  }
  0x66   : > { %744 = vmatprep.subr.bf16.mxu0 %v6667_v23  ;;  %976 = vmatprep.subr.bf16.mxu1 %v6670_v24  ;;  %v630_v23 = vpack.c.bf16 %v622_v16, %v621_v13  ;;  %v862_v24 = vpack.c.bf16 %v854_v18, %v853_v17  ;;  %v6751_v13 = vld [vmem:[#allocation2 + $0x324] ss:$8 sps:$4 sm:$0xff]   ;;  %v6749_v17 = vld [vmem:[#allocation2 + $0x320] ss:$8 sps:$4 sm:$0xff]  }
  0x67   : > { %v1318_v16 = vld [vmem:[%s7329_s4 + $0x44] sm:$0xff] }
  0x68   : > { %v6752_v18 = vld [vmem:[#allocation2 + $0x3a0] ss:$8 sps:$4 sm:$0xff]  }
  0x69   : > { %745 = vmatpush1.bf16.msra.mxu0 %v6665_v28  ;;  %977 = vmatpush1.bf16.msra.mxu1 %v6668_v29  ;;  %v624_v28 = vld [vmem:[%s7329_s4 + $0x4a] sm:$0xff] }
  0x6a   : > { %1194 = vmatprep.subr.bf16.mxu0 %v6673_v30  ;;  %1426 = vmatprep.subr.bf16.mxu1 %v6676_v31  ;;  %v6715_v29 = vld [vmem:[#allocation2 + $0x204] ss:$8 sps:$4 sm:$0xff]   ;;  %v631_v37 = vpack.c.bf16 %v624_v28, %v623_v27  ;;  %v1320_v28 = vld [vmem:[%s7329_s4 + $0x54] sm:$0xff] }
  0x6b   : > { %422 = vmatmul.mubr.bf16.gmra.mxu0 %v250_v32  ;;  %595 = vmatmul.mubr.bf16.gmra.mxu1 %v216_v33  ;;  %v6718_v30 = vld [vmem:[#allocation2 + $0x284] ss:$8 sps:$4 sm:$0xff]   ;;  %v6713_v33 = vld [vmem:[#allocation2 + $0x200] ss:$8 sps:$4 sm:$0xff]  }
  0x6c   : > { %431 = vmatprep.mubr.bf16.mxu0 %v7247_v0  ;;  %604 = vmatprep.mubr.bf16.mxu1 %v7247_v0  ;;  %v855_v31 = vld [vmem:[%s7329_s4 + $0x43] sm:$0xff]  ;;  %v856_v32 = vld [vmem:[%s7329_s4 + $0x4b] sm:$0xff] }
  0x6d   : > { %v1088_v27 = vld [vmem:[%s7329_s4 + $0x4c] sm:$0xff] }
  0x73   : > { %432 = vmatmul.mubr.bf16.gmra.mxu0 %v251_v38  ;;  %605 = vmatmul.mubr.bf16.gmra.mxu1 %v217_v39  ;;  %v863_v38 = vpack.c.bf16 %v856_v32, %v855_v31  ;;  %v625_v39 = vld [vmem:[%s7329_s4 + $0x52] sm:$0xff] }
  0x74   : > { %762 = vmatprep.mubr.bf16.mxu0 %v7247_v0  ;;  %994 = vmatprep.mubr.bf16.mxu1 %v7247_v0  ;;  %v632_v43 = vpack.c.bf16 %v626_v40, %v625_v39  ;;  %v6769_v31 = vld [vmem:[#allocation2 + $0x474] ss:$8 sps:$4 sm:$0xff]  }
  0x75   : > { %v6772_v32 = vld [vmem:[#allocation2 + $0x4f4] ss:$8 sps:$4 sm:$0xff]  }
  0x76   : > { %v1543_v39 = vld [vmem:[%s7329_s4 + $0xd] sm:$0xff]  ;;  %v1544_v40 = vld [vmem:[%s7329_s4 + $0x15] sm:$0xff] }
  0x7b   : > { %763 = vmatmul.mubr.bf16.vlgmr.msra.gmra.mxu0 %v627_v44  ;;  %995 = vmatmul.mubr.bf16.vlgmr.msra.gmra.mxu1 %v859_v45  ;;  %v864_v44 = vpack.c.bf16 %v858_v42, %v857_v41  ;;  %v1079_v45 = vld [vmem:[%s7329_s4 + $0x4] sm:$0xff]  ;;  %v1775_v41 = vld [vmem:[%s7329_s4 + $0xe] sm:$0xff]  ;;  %v1776_v42 = vld [vmem:[%s7329_s4 + $0x16] sm:$0xff] }
  0x7c   : > { %1195 = vmatpush1.bf16.msra.mxu0 %v6671_v46  ;;  %1427 = vmatpush1.bf16.msra.mxu1 %v6674_v47  ;;  %v1080_v46 = vld [vmem:[%s7329_s4 + $0xc] sm:$0xff]  ;;  %v1312_v47 = vld [vmem:[%s7329_s4 + $0x14] sm:$0xff] }
  0x7d   : > { %1196 = vmatprep.subr.bf16.mxu0 %v6679_v48  ;;  %1428 = vmatprep.subr.bf16.mxu1 %v6682_v49  ;;  %v1091_v48 = vpack.c.bf16 %v1080_v46, %v1079_v45  ;;  %v1323_v49 = vpack.c.bf16 %v1312_v47, %v1080_v46  ;;  %v6767_v45 = vld [vmem:[#allocation2 + $0x470] ss:$8 sps:$4 sm:$0xff]  }
  0x7e   : > { %772 = vmatprep.mubr.bf16.mxu0 %v7247_v0  ;;  %1004 = vmatprep.mubr.bf16.mxu1 %v7247_v0  ;;  %v6770_v46 = vld [vmem:[#allocation2 + $0x4f0] ss:$8 sps:$4 sm:$0xff]  }
  0x80   : > { %1197 = vmatpush1.bf16.msra.mxu0 %v6677_v50  ;;  %1429 = vmatpush1.bf16.msra.mxu1 %v6680_v51  ;;  %v6719_v50 = vld [vmem:[#allocation2 + $0x370] ss:$8 sps:$4 sm:$0xff]  }
  0x81   : > { %1198 = vmatprep.subr.bf16.mxu0 %v6685_v56  ;;  %1430 = vmatprep.subr.bf16.mxu1 %v6688_v57  ;;  %v6722_v51 = vld [vmem:[#allocation2 + $0x3f0] ss:$8 sps:$4 sm:$0xff]   ;;  %v1082_v56 = vld [vmem:[%s7329_s4 + $0x1c] sm:$0xff]  ;;  %v1314_v57 = vld [vmem:[%s7329_s4 + $0x24] sm:$0xff] }
  0x83   : > { %773 = vmatmul.mubr.bf16.gmra.mxu0 %v628_v58  ;;  %1005 = vmatmul.mubr.bf16.gmra.mxu1 %v860_v59  ;;  %v6733_v58 = vld [vmem:[#allocation2 + $0x354] ss:$8 sps:$4 sm:$0xff]  }
  0x84   : > { %1199 = vmatpush1.bf16.msra.mxu0 %v6683_v60  ;;  %1431 = vmatpush1.bf16.msra.mxu1 %v6686_v61  ;;  %v6736_v59 = vld [vmem:[#allocation2 + $0x3d4] ss:$8 sps:$4 sm:$0xff]   ;;  %v1092_v60 = vpack.c.bf16 %v1082_v56, %v1312_v47  ;;  %v1324_v61 = vpack.c.bf16 %v1314_v57, %v1082_v56  ;;  %v6775_v47 = vld [vmem:[#allocation2 + $0x464] ss:$8 sps:$4 sm:$0xff]  }
  0x85   : > { %782 = vmatprep.mubr.bf16.mxu0 %v7247_v0  ;;  %1014 = vmatprep.mubr.bf16.mxu1 %v7247_v0  ;;  %v6784_v56 = vld [vmem:[#allocation2 + $0x4d4] ss:$8 sps:$4 sm:$0xff]  }
  0x86   : > { %1200 = vmatprep.subr.bf16.mxu0 %v6691_v62  ;;  %1432 = vmatprep.subr.bf16.mxu1 %v6694_v2  ;;  %v6731_v62 = vld [vmem:[#allocation2 + $0x350] ss:$8 sps:$4 sm:$0xff]  }
  0x87   : > { %v1316_v2 = vld [vmem:[%s7329_s4 + $0x34] sm:$0xff] }
  0x88   : > { %1201 = vmatpush1.bf16.msra.mxu0 %v6689_v5  ;;  %1433 = vmatpush1.bf16.msra.mxu1 %v6692_v6  ;;  %v6737_v5 = vld [vmem:[#allocation2 + $0x340] ss:$8 sps:$4 sm:$0xff]  }
  0x89   : > { %1202 = vmatprep.subr.bf16.mxu0 %v6697_v7  ;;  %1434 = vmatprep.subr.bf16.mxu1 %v6700_v8  ;;  %v6740_v6 = vld [vmem:[#allocation2 + $0x3c0] ss:$8 sps:$4 sm:$0xff]   ;;  %v6745_v7 = vld [vmem:[#allocation2 + $0x334] ss:$8 sps:$4 sm:$0xff]  }
  0x8a   : > { %v6748_v8 = vld [vmem:[#allocation2 + $0x3b4] ss:$8 sps:$4 sm:$0xff]  }
  0x8b   : > { %783 = vmatmul.mubr.bf16.gmra.mxu0 %v629_v9  ;;  %1015 = vmatmul.mubr.bf16.gmra.mxu1 %v861_v10  ;;  %v1093_v9 = vpack.c.bf16 %v1084_v1, %v1314_v57  ;;  %v1325_v10 = vpack.c.bf16 %v1316_v2, %v1084_v1  ;;  %v1780_v1 = vld [vmem:[%s7329_s4 + $0x36] sm:$0xff] }
  0x8c   : > { %792 = vmatprep.mubr.bf16.mxu0 %v7247_v0  ;;  %1024 = vmatprep.mubr.bf16.mxu1 %v7247_v0 }
  0x8d   : > { %1203 = vmatpush1.bf16.msra.mxu0 %v6695_v11  ;;  %1435 = vmatpush1.bf16.msra.mxu1 %v6698_v12  ;;  %v6743_v11 = vld [vmem:[#allocation2 + $0x330] ss:$8 sps:$4 sm:$0xff]  }
  0x8e   : > { %1204 = vmatprep.subr.bf16.mxu0 %v6703_v14  ;;  %1436 = vmatprep.subr.bf16.mxu1 %v6706_v15  ;;  %v6746_v12 = vld [vmem:[#allocation2 + $0x3b0] ss:$8 sps:$4 sm:$0xff]   ;;  %v6754_v14 = vld [vmem:[#allocation2 + $0x3a4] ss:$8 sps:$4 sm:$0xff]   ;;  %v1086_v15 = vld [vmem:[%s7329_s4 + $0x3c] sm:$0xff] }
  0x91   : > { %1205 = vmatpush1.bf16.msra.mxu0 %v6701_v19  ;;  %1437 = vmatpush1.bf16.msra.mxu1 %v6704_v20  ;;  %v6757_v19 = vld [vmem:[#allocation2 + $0x314] ss:$8 sps:$4 sm:$0xff]  }
  0x92   : > { %1206 = vmatprep.subr.bf16.mxu0 %v6709_v21  ;;  %1438 = vmatprep.subr.bf16.mxu1 %v6712_v22  ;;  %v6760_v20 = vld [vmem:[#allocation2 + $0x394] ss:$8 sps:$4 sm:$0xff]   ;;  %v1094_v21 = vpack.c.bf16 %v1086_v15, %v1316_v2  ;;  %v1326_v22 = vpack.c.bf16 %v1318_v16, %v1086_v15  ;;  %v6785_v2 = vld [vmem:[#allocation2 + $0x440] ss:$8 sps:$4 sm:$0xff]  }
  0x93   : > { %793 = vmatmul.mubr.bf16.gmra.mxu0 %v630_v23  ;;  %1025 = vmatmul.mubr.bf16.gmra.mxu1 %v862_v24  ;;  %v6755_v23 = vld [vmem:[#allocation2 + $0x310] ss:$8 sps:$4 sm:$0xff]   ;;  %v1550_v15 = vld [vmem:[%s7329_s4 + $0x45] sm:$0xff] }
  0x94   : > { %802 = vmatprep.mubr.bf16.mxu0 %v7247_v0  ;;  %1034 = vmatprep.mubr.bf16.mxu1 %v7247_v0  ;;  %v6758_v24 = vld [vmem:[#allocation2 + $0x390] ss:$8 sps:$4 sm:$0xff]  }
  0x95   : > { %1207 = vmatpush1.bf16.msra.mxu0 %v6707_v25  ;;  %1439 = vmatpush1.bf16.msra.mxu1 %v6710_v26  ;;  %v6763_v25 = vld [vmem:[#allocation2 + $0x304] ss:$8 sps:$4 sm:$0xff]  }
  0x96   : > { %1208 = vmatprep.subr.bf16.mxu0 %v6715_v29  ;;  %1440 = vmatprep.subr.bf16.mxu1 %v6718_v30  ;;  %v6766_v26 = vld [vmem:[#allocation2 + $0x384] ss:$8 sps:$4 sm:$0xff]   ;;  %v6761_v29 = vld [vmem:[#allocation2 + $0x300] ss:$8 sps:$4 sm:$0xff]  }
  0x97   : > { %v6764_v30 = vld [vmem:[#allocation2 + $0x380] ss:$8 sps:$4 sm:$0xff]  }
  0x99   : > { %1209 = vmatpush1.bf16.msra.mxu0 %v6713_v33  ;;  %1441 = vmatpush1.bf16.msra.mxu1 %v6716_v34  ;;  %v1095_v33 = vpack.c.bf16 %v1088_v27, %v1318_v16  ;;  %v1327_v34 = vpack.c.bf16 %v1320_v28, %v1088_v27  ;;  %v1781_v16 = vld [vmem:[%s7329_s4 + $0x3e] sm:$0xff] }
  0x9a   : > { %1658 = vmatprep.subr.bf16.mxu0 %v6721_v35  ;;  %1890 = vmatprep.subr.bf16.mxu1 %v6724_v36  ;;  %v1090_v35 = vld [vmem:[%s7329_s4 + $0x5c] sm:$0xff]  ;;  %v1322_v36 = vld [vmem:[%s7329_s4 + $0x64] sm:$0xff] }
  0x9b   : > { %803 = vmatmul.mubr.bf16.gmra.mxu0 %v631_v37  ;;  %1035 = vmatmul.mubr.bf16.gmra.mxu1 %v863_v38  ;;  %v1096_v37 = vpack.c.bf16 %v1090_v35, %v1320_v28  ;;  %v1328_v38 = vpack.c.bf16 %v1322_v36, %v1090_v35  ;;  %v6814_v27 = vld [vmem:[#allocation2 + $0x484] ss:$8 sps:$4 sm:$0xff]   ;;  %v6820_v35 = vld [vmem:[#allocation2 + $0x5f4] ss:$8 sps:$4 sm:$0xff]  }
  0x9c   : > { %812 = vmatprep.mubr.bf16.mxu0 %v7247_v0  ;;  %1044 = vmatprep.mubr.bf16.mxu1 %v7247_v0  ;;  %v1551_v28 = vld [vmem:[%s7329_s4 + $0x4d] sm:$0xff] }
  0xa3   : > { %813 = vmatmul.mubr.bf16.gmra.mxu0 %v632_v43  ;;  %1045 = vmatmul.mubr.bf16.gmra.mxu1 %v864_v44  ;;  %v1555_v43 = vpack.c.bf16 %v1544_v40, %v1543_v39  ;;  %v1787_v44 = vpack.c.bf16 %v1776_v42, %v1775_v41  ;;  %v1554_v39 = vld [vmem:[%s7329_s4 + $0x65] sm:$0xff] }
  0xa4   : > { %1226 = vmatprep.mubr.bf16.mxu0 %v7247_v0  ;;  %1458 = vmatprep.mubr.bf16.mxu1 %v7247_v0  ;;  %v1785_v40 = vld [vmem:[%s7329_s4 + $0x5e] sm:$0xff]  ;;  %v1786_v41 = vld [vmem:[%s7329_s4 + $0x66] sm:$0xff] }
  0xab   : > { %1227 = vmatmul.mubr.bf16.vlgmr.msra.gmra.mxu0 %v1091_v48  ;;  %1459 = vmatmul.mubr.bf16.vlgmr.msra.gmra.mxu1 %v1323_v49  ;;  %v6778_v48 = vld [vmem:[#allocation2 + $0x4e4] ss:$8 sps:$4 sm:$0xff]   ;;  %v6773_v49 = vld [vmem:[#allocation2 + $0x460] ss:$8 sps:$4 sm:$0xff]  }
  0xac   : > { %1659 = vmatpush1.bf16.msra.mxu0 %v6719_v50  ;;  %1891 = vmatpush1.bf16.msra.mxu1 %v6722_v51  ;;  %v6776_v50 = vld [vmem:[#allocation2 + $0x4e0] ss:$8 sps:$4 sm:$0xff]  }
  0xad   : > { %1660 = vmatprep.subr.bf16.mxu0 %v6727_v52  ;;  %1892 = vmatprep.subr.bf16.mxu1 %v6730_v53  ;;  %v1545_v51 = vld [vmem:[%s7329_s4 + $0x1d] sm:$0xff]  ;;  %v1546_v52 = vld [vmem:[%s7329_s4 + $0x25] sm:$0xff] }
  0xae   : > { %1236 = vmatprep.mubr.bf16.mxu0 %v7247_v0  ;;  %1468 = vmatprep.mubr.bf16.mxu1 %v7247_v0  ;;  %v1777_v53 = vld [vmem:[%s7329_s4 + $0x1e] sm:$0xff]  ;;  %v1556_v57 = vpack.c.bf16 %v1546_v52, %v1545_v51  ;;  %v6818_v51 = vld [vmem:[#allocation2 + $0x5f0] ss:$8 sps:$4 sm:$0xff]  }
  0xaf   : > { %v6823_v52 = vld [vmem:[#allocation2 + $0x564] ss:$8 sps:$4 sm:$0xff]  }
  0xb0   : > { %1661 = vmatpush1.bf16.msra.mxu0 %v6725_v54  ;;  %1893 = vmatpush1.bf16.msra.mxu1 %v6728_v55  ;;  %v1778_v54 = vld [vmem:[%s7329_s4 + $0x26] sm:$0xff]  ;;  %v6781_v55 = vld [vmem:[#allocation2 + $0x454] ss:$8 sps:$4 sm:$0xff]  }
  0xb1   : > { %1662 = vmatprep.subr.bf16.mxu0 %v6733_v58  ;;  %1894 = vmatprep.subr.bf16.mxu1 %v6736_v59  ;;  %v1788_v58 = vpack.c.bf16 %v1778_v54, %v1777_v53  ;;  %v6779_v59 = vld [vmem:[#allocation2 + $0x450] ss:$8 sps:$4 sm:$0xff]   ;;  %v6826_v53 = vld [vmem:[#allocation2 + $0x5e4] ss:$8 sps:$4 sm:$0xff]   ;;  %v6821_v54 = vld [vmem:[#allocation2 + $0x560] ss:$8 sps:$4 sm:$0xff]  }
  0xb3   : > { %1237 = vmatmul.mubr.bf16.gmra.mxu0 %v1092_v60  ;;  %1469 = vmatmul.mubr.bf16.gmra.mxu1 %v1324_v61  ;;  %v6782_v60 = vld [vmem:[#allocation2 + $0x4d0] ss:$8 sps:$4 sm:$0xff]  }
  0xb4   : > { %1663 = vmatpush1.bf16.msra.mxu0 %v6731_v62  ;;  %1895 = vmatpush1.bf16.msra.mxu1 %v6734_v63  ;;  %v1547_v61 = vld [vmem:[%s7329_s4 + $0x2d] sm:$0xff]  ;;  %v1548_v62 = vld [vmem:[%s7329_s4 + $0x35] sm:$0xff] }
  0xb5   : > { %1246 = vmatprep.mubr.bf16.mxu0 %v7247_v0  ;;  %1478 = vmatprep.mubr.bf16.mxu1 %v7247_v0  ;;  %v1779_v63 = vld [vmem:[%s7329_s4 + $0x2e] sm:$0xff] }
  0xb6   : > { %1664 = vmatprep.subr.bf16.mxu0 %v6739_v3  ;;  %1896 = vmatprep.subr.bf16.mxu1 %v6742_v4  ;;  %v6787_v3 = vld [vmem:[#allocation2 + $0x444] ss:$8 sps:$4 sm:$0xff]  }
  0xb7   : > { %v6790_v4 = vld [vmem:[#allocation2 + $0x4c4] ss:$8 sps:$4 sm:$0xff]  }
  0xb8   : > { %1665 = vmatpush1.bf16.msra.mxu0 %v6737_v5  ;;  %1897 = vmatpush1.bf16.msra.mxu1 %v6740_v6  ;;  %v6788_v5 = vld [vmem:[#allocation2 + $0x4c0] ss:$8 sps:$4 sm:$0xff]   ;;  %v6793_v6 = vld [vmem:[#allocation2 + $0x434] ss:$8 sps:$4 sm:$0xff]  }
  0xb9   : > { %1666 = vmatprep.subr.bf16.mxu0 %v6745_v7  ;;  %1898 = vmatprep.subr.bf16.mxu1 %v6748_v8  ;;  %v6796_v7 = vld [vmem:[#allocation2 + $0x4b4] ss:$8 sps:$4 sm:$0xff]   ;;  %v1557_v8 = vpack.c.bf16 %v1548_v62, %v1547_v61  ;;  %v7476_v61 = vld [vmem:[%s7329_s4 + $0x20] sm:$0xff]  ;;  %v7479_v62 = vld [vmem:[%s7329_s4 + $0x28] sm:$0xff] }
  0xbb   : > { %1247 = vmatmul.mubr.bf16.gmra.mxu0 %v1093_v9  ;;  %1479 = vmatmul.mubr.bf16.gmra.mxu1 %v1325_v10  ;;  %v1789_v9 = vpack.c.bf16 %v1780_v1, %v1779_v63  ;;  %v6791_v10 = vld [vmem:[#allocation2 + $0x430] ss:$8 sps:$4 sm:$0xff]   ;;  %v6829_v63 = vld [vmem:[#allocation2 + $0x554] ss:$8 sps:$4 sm:$0xff]  }
  0xbc   : > { %1256 = vmatprep.mubr.bf16.mxu0 %v7247_v0  ;;  %1488 = vmatprep.mubr.bf16.mxu1 %v7247_v0 }
  0xbd   : > { %1667 = vmatpush1.bf16.msra.mxu0 %v6743_v11  ;;  %1899 = vmatpush1.bf16.msra.mxu1 %v6746_v12  ;;  %v6794_v11 = vld [vmem:[#allocation2 + $0x4b0] ss:$8 sps:$4 sm:$0xff]   ;;  %v6799_v12 = vld [vmem:[#allocation2 + $0x424] ss:$8 sps:$4 sm:$0xff]  }
  0xbe   : > { %1668 = vmatprep.subr.bf16.mxu0 %v6751_v13  ;;  %1900 = vmatprep.subr.bf16.mxu1 %v6754_v14  ;;  %v6802_v13 = vld [vmem:[#allocation2 + $0x4a4] ss:$8 sps:$4 sm:$0xff]  }
  0xbf   : > { %v1549_v14 = vld [vmem:[%s7329_s4 + $0x3d] sm:$0xff] }
  0xc1   : > { %1669 = vmatpush1.bf16.msra.mxu0 %v6749_v17  ;;  %1901 = vmatpush1.bf16.msra.mxu1 %v6752_v18  ;;  %v1782_v17 = vld [vmem:[%s7329_s4 + $0x46] sm:$0xff] }
  0xc2   : > { %1670 = vmatprep.subr.bf16.mxu0 %v6757_v19  ;;  %1902 = vmatprep.subr.bf16.mxu1 %v6760_v20  ;;  %v6797_v18 = vld [vmem:[#allocation2 + $0x420] ss:$8 sps:$4 sm:$0xff]   ;;  %v6805_v20 = vld [vmem:[#allocation2 + $0x414] ss:$8 sps:$4 sm:$0xff]  }
  0xc3   : > { %1257 = vmatmul.mubr.bf16.gmra.mxu0 %v1094_v21  ;;  %1489 = vmatmul.mubr.bf16.gmra.mxu1 %v1326_v22  ;;  %v6800_v19 = vld [vmem:[#allocation2 + $0x4a0] ss:$8 sps:$4 sm:$0xff]   ;;  %v6808_v21 = vld [vmem:[#allocation2 + $0x494] ss:$8 sps:$4 sm:$0xff]   ;;  %v1558_v22 = vpack.c.bf16 %v1550_v15, %v1549_v14  ;;  %v6835_v14 = vld [vmem:[#allocation2 + $0x544] ss:$8 sps:$4 sm:$0xff]  }
  0xc4   : > { %1266 = vmatprep.mubr.bf16.mxu0 %v7247_v0  ;;  %1498 = vmatprep.mubr.bf16.mxu1 %v7247_v0 }
  0xc5   : > { %1671 = vmatpush1.bf16.msra.mxu0 %v6755_v23  ;;  %1903 = vmatpush1.bf16.msra.mxu1 %v6758_v24  ;;  %v1790_v23 = vpack.c.bf16 %v1782_v17, %v1781_v16  ;;  %v6803_v24 = vld [vmem:[#allocation2 + $0x410] ss:$8 sps:$4 sm:$0xff]  }
  0xc6   : > { %1672 = vmatprep.subr.bf16.mxu0 %v6763_v25  ;;  %1904 = vmatprep.subr.bf16.mxu1 %v6766_v26  ;;  %v6806_v25 = vld [vmem:[#allocation2 + $0x490] ss:$8 sps:$4 sm:$0xff]   ;;  %v6811_v26 = vld [vmem:[#allocation2 + $0x404] ss:$8 sps:$4 sm:$0xff]  }
  0xc7   : > { %v2011_v16 = vld [vmem:[%s7329_s4 + $0x2f] sm:$0xff]  ;;  %v2012_v17 = vld [vmem:[%s7329_s4 + $0x37] sm:$0xff] }
  0xc9   : > { %1673 = vmatpush1.bf16.msra.mxu0 %v6761_v29  ;;  %1905 = vmatpush1.bf16.msra.mxu1 %v6764_v30  ;;  %v1552_v29 = vld [vmem:[%s7329_s4 + $0x55] sm:$0xff] }
  0xca   : > { %2122 = vmatprep.subr.bf16.mxu0 %v6769_v31  ;;  %2354 = vmatprep.subr.bf16.mxu1 %v6772_v32  ;;  %v1783_v30 = vld [vmem:[%s7329_s4 + $0x4e] sm:$0xff]  ;;  %v1784_v31 = vld [vmem:[%s7329_s4 + $0x56] sm:$0xff]  ;;  %v6809_v32 = vld [vmem:[#allocation2 + $0x400] ss:$8 sps:$4 sm:$0xff]   ;;  %v1559_v36 = vpack.c.bf16 %v1552_v29, %v1551_v28 }
  0xcb   : > { %1267 = vmatmul.mubr.bf16.gmra.mxu0 %v1095_v33  ;;  %1499 = vmatmul.mubr.bf16.gmra.mxu1 %v1327_v34  ;;  %v6812_v33 = vld [vmem:[#allocation2 + $0x480] ss:$8 sps:$4 sm:$0xff]   ;;  %v6817_v34 = vld [vmem:[#allocation2 + $0x574] ss:$8 sps:$4 sm:$0xff]  }
  0xcc   : > { %1276 = vmatprep.mubr.bf16.mxu0 %v7247_v0  ;;  %1508 = vmatprep.mubr.bf16.mxu1 %v7247_v0  ;;  %v6841_v28 = vld [vmem:[#allocation2 + $0x534] ss:$8 sps:$4 sm:$0xff]  }
  0xcd   : > { %v6844_v29 = vld [vmem:[#allocation2 + $0x5b4] ss:$8 sps:$4 sm:$0xff]  }
  0xd3   : > { %1277 = vmatmul.mubr.bf16.gmra.mxu0 %v1096_v37  ;;  %1509 = vmatmul.mubr.bf16.gmra.mxu1 %v1328_v38  ;;  %v1791_v37 = vpack.c.bf16 %v1784_v31, %v1783_v30  ;;  %v1553_v38 = vld [vmem:[%s7329_s4 + $0x5d] sm:$0xff] }
  0xd4   : > { %1690 = vmatprep.mubr.bf16.mxu0 %v7247_v0  ;;  %1922 = vmatprep.mubr.bf16.mxu1 %v7247_v0  ;;  %v1560_v42 = vpack.c.bf16 %v1554_v39, %v1553_v38  ;;  %v6847_v38 = vld [vmem:[#allocation2 + $0x524] ss:$8 sps:$4 sm:$0xff]  }
  0xd5   : > { %v6850_v39 = vld [vmem:[#allocation2 + $0x5a4] ss:$8 sps:$4 sm:$0xff]  }
  0xdb   : > { %1691 = vmatmul.mubr.bf16.vlgmr.msra.gmra.mxu0 %v1555_v43  ;;  %1923 = vmatmul.mubr.bf16.vlgmr.msra.gmra.mxu1 %v1787_v44  ;;  %v1792_v43 = vpack.c.bf16 %v1786_v41, %v1785_v40  ;;  %v2007_v44 = vld [vmem:[%s7329_s4 + $0xf] sm:$0xff] }
  0xdc   : > { %2123 = vmatpush1.bf16.msra.mxu0 %v6767_v45  ;;  %2355 = vmatpush1.bf16.msra.mxu1 %v6770_v46  ;;  %v2008_v45 = vld [vmem:[%s7329_s4 + $0x17] sm:$0xff] }
  0xdd   : > { %2124 = vmatprep.subr.bf16.mxu0 %v6775_v47  ;;  %2356 = vmatprep.subr.bf16.mxu1 %v6778_v48  ;;  %v2239_v46 = vld [vmem:[%s7329_s4 + $0x10] sm:$0xff]  ;;  %v7466_v47 = vld [vmem:[%s7329_s4 + $0x18] sm:$0xff]  ;;  %v2019_v48 = vpack.c.bf16 %v2008_v45, %v2007_v44  ;;  %v2014_v44 = vld [vmem:[%s7329_s4 + $0x47] sm:$0xff] }
  0xde   : > { %1700 = vmatprep.mubr.bf16.mxu0 %v7247_v0  ;;  %1932 = vmatprep.mubr.bf16.mxu1 %v7247_v0  ;;  %v7514_v45 = vld [vmem:[%s7329_s4 + $0x40] sm:$0xff] }
  0xe0   : > { %2125 = vmatpush1.bf16.msra.mxu0 %v6773_v49  ;;  %2357 = vmatpush1.bf16.msra.mxu1 %v6776_v50  ;;  %v2251_v49 = vpack.c.bf16 %v7466_v47, %v2239_v46  ;;  %v6815_v50 = vld [vmem:[#allocation2 + $0x570] ss:$8 sps:$4 sm:$0xff]   ;;  %v7517_v46 = vld [vmem:[%s7329_s4 + $0x48] sm:$0xff] }
  0xe1   : > { %2126 = vmatprep.subr.bf16.mxu0 %v6781_v55  ;;  %2358 = vmatprep.subr.bf16.mxu1 %v6784_v56  ;;  %v6824_v55 = vld [vmem:[#allocation2 + $0x5e0] ss:$8 sps:$4 sm:$0xff]  }
  0xe2   : > { %v2009_v56 = vld [vmem:[%s7329_s4 + $0x1f] sm:$0xff] }
  0xe3   : > { %1701 = vmatmul.mubr.bf16.gmra.mxu0 %v1556_v57  ;;  %1933 = vmatmul.mubr.bf16.gmra.mxu1 %v1788_v58  ;;  %v2010_v57 = vld [vmem:[%s7329_s4 + $0x27] sm:$0xff] }
  0xe4   : > { %2127 = vmatpush1.bf16.msra.mxu0 %v6779_v59  ;;  %2359 = vmatpush1.bf16.msra.mxu1 %v6782_v60 }
  0xe5   : > { %1710 = vmatprep.mubr.bf16.mxu0 %v7247_v0  ;;  %1942 = vmatprep.mubr.bf16.mxu1 %v7247_v0 }
  0xe6   : > { %2128 = vmatprep.subr.bf16.mxu0 %v6787_v3  ;;  %2360 = vmatprep.subr.bf16.mxu1 %v6790_v4  ;;  %v6832_v3 = vld [vmem:[#allocation2 + $0x5d4] ss:$8 sps:$4 sm:$0xff]  }
  0xe8   : > { %2129 = vmatpush1.bf16.msra.mxu0 %v6785_v2  ;;  %2361 = vmatpush1.bf16.msra.mxu1 %v6788_v5 }
  0xe9   : > { %2130 = vmatprep.subr.bf16.mxu0 %v6793_v6  ;;  %2362 = vmatprep.subr.bf16.mxu1 %v6796_v7  ;;  %v2020_v7 = vpack.c.bf16 %v2010_v57, %v2009_v56  ;;  %v6853_v56 = vld [vmem:[#allocation2 + $0x514] ss:$8 sps:$4 sm:$0xff]  }
  0xea   : > { %v6856_v57 = vld [vmem:[#allocation2 + $0x594] ss:$8 sps:$4 sm:$0xff]  }
  0xeb   : > { %1711 = vmatmul.mubr.bf16.gmra.mxu0 %v1557_v8  ;;  %1943 = vmatmul.mubr.bf16.gmra.mxu1 %v1789_v9  ;;  %v2252_v8 = vpack.c.bf16 %v7479_v62, %v7476_v61 }
  0xec   : > { %1720 = vmatprep.mubr.bf16.mxu0 %v7247_v0  ;;  %1952 = vmatprep.mubr.bf16.mxu1 %v7247_v0 }
  0xed   : > { %2131 = vmatpush1.bf16.msra.mxu0 %v6791_v10  ;;  %2363 = vmatpush1.bf16.msra.mxu1 %v6794_v11  ;;  %v6827_v10 = vld [vmem:[#allocation2 + $0x550] ss:$8 sps:$4 sm:$0xff]  }
  0xee   : > { %2132 = vmatprep.subr.bf16.mxu0 %v6799_v12  ;;  %2364 = vmatprep.subr.bf16.mxu1 %v6802_v13  ;;  %v6830_v11 = vld [vmem:[#allocation2 + $0x5d0] ss:$8 sps:$4 sm:$0xff]  }
  0xf1   : > { %2133 = vmatpush1.bf16.msra.mxu0 %v6797_v18  ;;  %2365 = vmatpush1.bf16.msra.mxu1 %v6800_v19  ;;  %v7494_v18 = vld [vmem:[%s7329_s4 + $0x30] sm:$0xff]  ;;  %v7497_v19 = vld [vmem:[%s7329_s4 + $0x38] sm:$0xff] }
  0xf2   : > { %2134 = vmatprep.subr.bf16.mxu0 %v6805_v20  ;;  %2366 = vmatprep.subr.bf16.mxu1 %v6808_v21  ;;  %v6833_v20 = vld [vmem:[#allocation2 + $0x540] ss:$8 sps:$4 sm:$0xff]  }
  0xf3   : > { %1721 = vmatmul.mubr.bf16.gmra.mxu0 %v1558_v22  ;;  %1953 = vmatmul.mubr.bf16.gmra.mxu1 %v1790_v23  ;;  %v6836_v21 = vld [vmem:[#allocation2 + $0x5c0] ss:$8 sps:$4 sm:$0xff]   ;;  %v6838_v22 = vld [vmem:[#allocation2 + $0x5c4] ss:$8 sps:$4 sm:$0xff]  }
  0xf4   : > { %1730 = vmatprep.mubr.bf16.mxu0 %v7247_v0  ;;  %1962 = vmatprep.mubr.bf16.mxu1 %v7247_v0 }
  0xf5   : > { %2135 = vmatpush1.bf16.msra.mxu0 %v6803_v24  ;;  %2367 = vmatpush1.bf16.msra.mxu1 %v6806_v25 }
  0xf6   : > { %2136 = vmatprep.subr.bf16.mxu0 %v6811_v26  ;;  %2368 = vmatprep.subr.bf16.mxu1 %v6814_v27 }
  0xf9   : > { %2137 = vmatpush1.bf16.msra.mxu0 %v6809_v32  ;;  %2369 = vmatpush1.bf16.msra.mxu1 %v6812_v33  ;;  %v2021_v33 = vpack.c.bf16 %v2012_v17, %v2011_v16  ;;  %v7537_v16 = vld [vmem:[%s7329_s4 + $0x58] sm:$0xff] }
  0xfa   : > { %2586 = vmatprep.subr.bf16.mxu0 %v6817_v34  ;;  %2818 = vmatprep.subr.bf16.mxu1 %v6820_v35  ;;  %v2253_v34 = vpack.c.bf16 %v7497_v19, %v7494_v18  ;;  %v6839_v35 = vld [vmem:[#allocation2 + $0x530] ss:$8 sps:$4 sm:$0xff]  }
  0xfb   : > { %1731 = vmatmul.mubr.bf16.gmra.mxu0 %v1559_v36  ;;  %1963 = vmatmul.mubr.bf16.gmra.mxu1 %v1791_v37  ;;  %v6842_v37 = vld [vmem:[#allocation2 + $0x5b0] ss:$8 sps:$4 sm:$0xff]  }
  0xfc   : > { %1740 = vmatprep.mubr.bf16.mxu0 %v7247_v0  ;;  %1972 = vmatprep.mubr.bf16.mxu1 %v7247_v0 }
 0x103   : > { %1741 = vmatmul.mubr.bf16.gmra.mxu0 %v1560_v42  ;;  %1973 = vmatmul.mubr.bf16.gmra.mxu1 %v1792_v43  ;;  %v2013_v43 = vld [vmem:[%s7329_s4 + $0x3f] sm:$0xff] }
 0x104   : > { %2154 = vmatprep.mubr.bf16.mxu0 %v7247_v0  ;;  %2386 = vmatprep.mubr.bf16.mxu1 %v7247_v0 }
 0x10b   : > { %v383_v58 = vpop.f32.mrf.mxu0  ;;  %v556_v59 = vpop.f32.mrf.mxu1  ;;  %2155 = vmatmul.mubr.bf16.vlgmr.msra.gmra.mxu0 %v2019_v48  ;;  %2387 = vmatmul.mubr.bf16.vlgmr.msra.gmra.mxu1 %v2251_v49 }
 0x10c   : > { %v7473_v60 = vadd.f32 %v556_v59, %v383_v58  ;;  %2587 = vmatpush1.bf16.msra.mxu0 %v6815_v50  ;;  %2819 = vmatpush1.bf16.msra.mxu1 %v6818_v51  ;;  %v6845_v50 = vld [vmem:[#allocation2 + $0x520] ss:$8 sps:$4 sm:$0xff]  }
 0x10d   : > { %v385_v1 = vpop.f32.mrf.mxu0  ;;  %v558_v2 = vpop.f32.mrf.mxu1  ;;  %2588 = vmatprep.subr.bf16.mxu0 %v6823_v52  ;;  %2820 = vmatprep.subr.bf16.mxu1 %v6826_v53  ;;  %v6848_v51 = vld [vmem:[#allocation2 + $0x5a0] ss:$8 sps:$4 sm:$0xff]  }
 0x10e   : > { %v7481_v4 = vadd.f32 %v558_v2, %v385_v1  ;;  %2164 = vmatprep.mubr.bf16.mxu0 %v7247_v0  ;;  %2396 = vmatprep.mubr.bf16.mxu1 %v7247_v0  ;;  %v2254_v1 = vpack.c.bf16 %v7517_v46, %v7514_v45  ;;  %v6851_v2 = vld [vmem:[#allocation2 + $0x510] ss:$8 sps:$4 sm:$0xff]  }
 0x10f   : > { %v387_v5 = vpop.f32.mrf.mxu0  ;;  %v560_v6 = vpop.f32.mrf.mxu1 }
 0x110   : > { %v7487_v9 = vadd.f32 %v560_v6, %v387_v5  ;;  %2589 = vmatpush1.bf16.msra.mxu0 %v6821_v54  ;;  %2821 = vmatpush1.bf16.msra.mxu1 %v6824_v55  ;;  %v6859_v6 = vld [vmem:[#allocation2 + $0x504] ss:$8 sps:$4 sm:$0xff]  }
 0x111   : > { %v389_v12 = vpop.f32.mrf.mxu0  ;;  %v562_v13 = vpop.f32.mrf.mxu1  ;;  %2590 = vmatprep.subr.bf16.mxu0 %v6829_v63  ;;  %2822 = vmatprep.subr.bf16.mxu1 %v6832_v3  ;;  %v2022_v63 = vpack.c.bf16 %v2014_v44, %v2013_v43  ;;  %v6854_v3 = vld [vmem:[#allocation2 + $0x590] ss:$8 sps:$4 sm:$0xff]   ;;  %v7554_v43 = vld [vmem:[%s7329_s4 + $0x60] sm:$0xff] }
 0x112   : > { %v7489_v15 = vadd.f32 %v562_v13, %v389_v12  ;;  %v2015_v12 = vld [vmem:[%s7329_s4 + $0x4f] sm:$0xff]  ;;  %v2016_v13 = vld [vmem:[%s7329_s4 + $0x57] sm:$0xff] }
 0x113   : > { %v393_v23 = vpop.f32.mrf.mxu0  ;;  %v566_v24 = vpop.f32.mrf.mxu1  ;;  %2165 = vmatmul.mubr.bf16.gmra.mxu0 %v2020_v7  ;;  %2397 = vmatmul.mubr.bf16.gmra.mxu1 %v2252_v8  ;;  %v6862_v7 = vld [vmem:[#allocation2 + $0x584] ss:$8 sps:$4 sm:$0xff]  }
 0x114   : > { %v7499_v25 = vadd.f32 %v566_v24, %v393_v23  ;;  %2591 = vmatpush1.bf16.msra.mxu0 %v6827_v10  ;;  %2823 = vmatpush1.bf16.msra.mxu1 %v6830_v11  ;;  %v6860_v23 = vld [vmem:[#allocation2 + $0x580] ss:$8 sps:$4 sm:$0xff]   ;;  %v6865_v24 = vld [vmem:[#allocation2 + $0x674] ss:$8 sps:$4 sm:$0xff]  }
 0x115   : > { %v395_v26 = vpop.f32.mrf.mxu0  ;;  %v568_v27 = vpop.f32.mrf.mxu1  ;;  %2174 = vmatprep.mubr.bf16.mxu0 %v7247_v0  ;;  %2406 = vmatprep.mubr.bf16.mxu1 %v7247_v0 }
 0x116   : > { %v7503_v30 = vadd.f32 %v568_v27, %v395_v26  ;;  %2592 = vmatprep.subr.bf16.mxu0 %v6835_v14  ;;  %2824 = vmatprep.subr.bf16.mxu1 %v6838_v22  ;;  %v7534_v14 = vld [vmem:[%s7329_s4 + $0x50] sm:$0xff]  ;;  %v6857_v22 = vld [vmem:[#allocation2 + $0x500] ss:$8 sps:$4 sm:$0xff]  }
 0x117   : > { %v397_v31 = vpop.f32.mrf.mxu0  ;;  %v570_v32 = vpop.f32.mrf.mxu1 }
 0x118   : > { %v7507_v36 = vadd.f32 %v570_v32, %v397_v31  ;;  %2593 = vmatpush1.bf16.msra.mxu0 %v6833_v20  ;;  %2825 = vmatpush1.bf16.msra.mxu1 %v6836_v21 }
 0x119   : > { %v399_v40 = vpop.f32.mrf.mxu0  ;;  %v572_v41 = vpop.f32.mrf.mxu1  ;;  %2594 = vmatprep.subr.bf16.mxu0 %v6841_v28  ;;  %2826 = vmatprep.subr.bf16.mxu1 %v6844_v29  ;;  %v6868_v28 = vld [vmem:[#allocation2 + $0x6f4] ss:$8 sps:$4 sm:$0xff]  }
 0x11a   : > { %v7509_v42 = vadd.f32 %v572_v41, %v399_v40  ;;  %v2017_v40 = vld [vmem:[%s7329_s4 + $0x5f] sm:$0xff]  ;;  %v2018_v41 = vld [vmem:[%s7329_s4 + $0x67] sm:$0xff] }
 0x11b   : > { %v403_v48 = vpop.f32.mrf.mxu0  ;;  %v576_v49 = vpop.f32.mrf.mxu1  ;;  %2175 = vmatmul.mubr.bf16.gmra.mxu0 %v2021_v33  ;;  %2407 = vmatmul.mubr.bf16.gmra.mxu1 %v2253_v34  ;;  %v2023_v33 = vpack.c.bf16 %v2016_v13, %v2015_v12  ;;  %v2255_v34 = vpack.c.bf16 %v7537_v16, %v7534_v14 }
 0x11c   : > { %v7519_v52 = vadd.f32 %v576_v49, %v403_v48  ;;  %2184 = vmatprep.mubr.bf16.mxu0 %v7247_v0  ;;  %2416 = vmatprep.mubr.bf16.mxu1 %v7247_v0  ;;  %v7557_v49 = vld [vmem:[%s7329_s4 + $0x68] sm:$0xff] }
 0x11d   : > { %v405_v53 = vpop.f32.mrf.mxu0  ;;  %v578_v54 = vpop.f32.mrf.mxu1  ;;  %2595 = vmatpush1.bf16.msra.mxu0 %v6839_v35  ;;  %2827 = vmatpush1.bf16.msra.mxu1 %v6842_v37 }
 0x11e   : > { %v7523_v55 = vadd.f32 %v578_v54, %v405_v53  ;;  %2596 = vmatprep.subr.bf16.mxu0 %v6847_v38  ;;  %2828 = vmatprep.subr.bf16.mxu1 %v6850_v39 }
 0x11f   : > { %v407_v58 = vpop.f32.mrf.mxu0  ;;  %v580_v59 = vpop.f32.mrf.mxu1 }
 0x120   : > { %v7527_v5 = vadd.f32 %v580_v59, %v407_v58  ;;  %v2024_v58 = vpack.c.bf16 %v2018_v41, %v2017_v40  ;;  %v2256_v59 = vpack.c.bf16 %v7557_v49, %v7554_v43  ;;  %v6869_v40 = vld [vmem:[#allocation2 + $0x660] ss:$8 sps:$4 sm:$0xff]  }
 0x121   : > { %v409_v8 = vpop.f32.mrf.mxu0  ;;  %v582_v10 = vpop.f32.mrf.mxu1  ;;  %2597 = vmatpush1.bf16.msra.mxu0 %v6845_v50  ;;  %2829 = vmatpush1.bf16.msra.mxu1 %v6848_v51  ;;  %v6872_v41 = vld [vmem:[#allocation2 + $0x6e0] ss:$8 sps:$4 sm:$0xff]  }
 0x122   : > { %v7529_v11 = vadd.f32 %v582_v10, %v409_v8  ;;  %2598 = vmatprep.subr.bf16.mxu0 %v6853_v56  ;;  %2830 = vmatprep.subr.bf16.mxu1 %v6856_v57 }
 0x123   : > { %v413_v17 = vpop.f32.mrf.mxu0  ;;  %v586_v20 = vpop.f32.mrf.mxu1  ;;  %2185 = vmatmul.mubr.bf16.gmra.mxu0 %v2022_v63  ;;  %2417 = vmatmul.mubr.bf16.gmra.mxu1 %v2254_v1 }
 0x124   : > { %v7539_v21 = vadd.f32 %v586_v20, %v413_v17  ;;  %2194 = vmatprep.mubr.bf16.mxu0 %v7247_v0  ;;  %2426 = vmatprep.mubr.bf16.mxu1 %v7247_v0 }
 0x125   : > { %v415_v26 = vpop.f32.mrf.mxu0  ;;  %v588_v27 = vpop.f32.mrf.mxu1  ;;  %2599 = vmatpush1.bf16.msra.mxu0 %v6851_v2  ;;  %2831 = vmatpush1.bf16.msra.mxu1 %v6854_v3 }
 0x126   : > { %v7543_v29 = vadd.f32 %v588_v27, %v415_v26  ;;  %2600 = vmatprep.subr.bf16.mxu0 %v6859_v6  ;;  %2832 = vmatprep.subr.bf16.mxu1 %v6862_v7  ;;  %v2703_v6 = vld [vmem:[%s7329_s4 + $0x19] sm:$0xff]  ;;  %v2704_v7 = vld [vmem:[%s7329_s4 + $0x21] sm:$0xff]  ;;  %v2483_v26 = vpack.c.bf16 %v7476_v61, %v7466_v47  ;;  %v2705_v61 = vld [vmem:[%s7329_s4 + $0x29] sm:$0xff] }
 0x127   : > { %v417_v31 = vpop.f32.mrf.mxu0  ;;  %v590_v32 = vpop.f32.mrf.mxu1  ;;  %v2715_v27 = vpack.c.bf16 %v2704_v7, %v2703_v6  ;;  %v2484_v6 = vpack.c.bf16 %v7494_v18, %v7479_v62  ;;  %v6883_v62 = vld [vmem:[#allocation2 + $0x644] ss:$8 sps:$4 sm:$0xff]  }
 0x128   : > { %v7547_v35 = vadd.f32 %v590_v32, %v417_v31  ;;  %v6871_v32 = vld [vmem:[#allocation2 + $0x664] ss:$8 sps:$4 sm:$0xff]  }
 0x129   : > { %v419_v37 = vpop.f32.mrf.mxu0  ;;  %v592_v38 = vpop.f32.mrf.mxu1  ;;  %2601 = vmatpush1.bf16.msra.mxu0 %v6857_v22  ;;  %2833 = vmatpush1.bf16.msra.mxu1 %v6860_v23  ;;  %v6863_v22 = vld [vmem:[#allocation2 + $0x670] ss:$8 sps:$4 sm:$0xff]   ;;  %v6886_v18 = vld [vmem:[#allocation2 + $0x6c4] ss:$8 sps:$4 sm:$0xff]  }
 0x12a   : > { %v7549_v39 = vadd.f32 %v592_v38, %v419_v37  ;;  %3050 = vmatprep.subr.bf16.mxu0 %v6865_v24  ;;  %3282 = vmatprep.subr.bf16.mxu1 %v6868_v28  ;;  %v6866_v28 = vld [vmem:[#allocation2 + $0x6f0] ss:$8 sps:$4 sm:$0xff]  }
 0x12b   : > { %v423_v44 = vpop.f32.mrf.mxu0  ;;  %v596_v48 = vpop.f32.mrf.mxu1  ;;  %2195 = vmatmul.mubr.bf16.gmra.mxu0 %v2023_v33  ;;  %2427 = vmatmul.mubr.bf16.gmra.mxu1 %v2255_v34  ;;  %v6874_v33 = vld [vmem:[#allocation2 + $0x6e4] ss:$8 sps:$4 sm:$0xff]  }
 0x12c   : > { %v7559_v50 = vadd.f32 %v596_v48, %v423_v44  ;;  %2204 = vmatprep.mubr.bf16.mxu0 %v7247_v0  ;;  %2436 = vmatprep.mubr.bf16.mxu1 %v7247_v0 }
 0x12d   : > { %v425_v51 = vpop.f32.mrf.mxu0  ;;  %v598_v53 = vpop.f32.mrf.mxu1 }
 0x12e   : > { %v7563_v54 = vadd.f32 %v598_v53, %v425_v51  ;;  %v2706_v51 = vld [vmem:[%s7329_s4 + $0x31] sm:$0xff] }
 0x12f   : > { %v427_v56 = vpop.f32.mrf.mxu0  ;;  %v600_v57 = vpop.f32.mrf.mxu1  ;;  %v6877_v53 = vld [vmem:[#allocation2 + $0x654] ss:$8 sps:$4 sm:$0xff]   ;;  %v2716_v7 = vpack.c.bf16 %v2706_v51, %v2705_v61  ;;  %v2485_v51 = vpack.c.bf16 %v7514_v45, %v7497_v19  ;;  %v6895_v19 = vld [vmem:[#allocation2 + $0x624] ss:$8 sps:$4 sm:$0xff]  }
 0x130   : > { %v7567_v63 = vadd.f32 %v600_v57, %v427_v56  ;;  %v6898_v45 = vld [vmem:[#allocation2 + $0x6a4] ss:$8 sps:$4 sm:$0xff]  }
 0x131   : > { %v429_v1 = vpop.f32.mrf.mxu0  ;;  %v602_v2 = vpop.f32.mrf.mxu1 }
 0x132   : > { %v7569_v3 = vadd.f32 %v602_v2, %v429_v1 }
 0x133   : > { %v433_v8 = vpop.f32.mrf.mxu0  ;;  %v606_v10 = vpop.f32.mrf.mxu1  ;;  %2205 = vmatmul.mubr.bf16.gmra.mxu0 %v2024_v58  ;;  %2437 = vmatmul.mubr.bf16.gmra.mxu1 %v2256_v59  ;;  %v6880_v58 = vld [vmem:[#allocation2 + $0x6d4] ss:$8 sps:$4 sm:$0xff]  }
 0x134   : > { %v7573_v12 = vadd.f32 %v606_v10, %v433_v8  ;;  %2618 = vmatprep.mubr.bf16.mxu0 %v7247_v0  ;;  %2850 = vmatprep.mubr.bf16.mxu1 %v7247_v0 }
 0x135   : > { %v435_v13 = vpop.f32.mrf.mxu0  ;;  %v608_v17 = vpop.f32.mrf.mxu1 }
 0x136   : > { %v7577_v20 = vadd.f32 %v608_v17, %v435_v13  ;;  %v6875_v13 = vld [vmem:[#allocation2 + $0x650] ss:$8 sps:$4 sm:$0xff]  }
 0x137   : > { %v437_v23 = vpop.f32.mrf.mxu0  ;;  %v610_v24 = vpop.f32.mrf.mxu1  ;;  %v6878_v17 = vld [vmem:[#allocation2 + $0x6d0] ss:$8 sps:$4 sm:$0xff]  }
 0x138   : > { %v7581_v31 = vadd.f32 %v610_v24, %v437_v23 }
 0x139   : > { %v439_v34 = vpop.f32.mrf.mxu0  ;;  %v612_v37 = vpop.f32.mrf.mxu1 }
 0x13a   : > { %v7583_v38 = vadd.f32 %v612_v37, %v439_v34  ;;  %v6881_v34 = vld [vmem:[#allocation2 + $0x640] ss:$8 sps:$4 sm:$0xff]  }
 0x13b   : > { %v764_v44 = vpop.f32.mrf.mxu0  ;;  %v996_v48 = vpop.f32.mrf.mxu1  ;;  %2619 = vmatmul.mubr.bf16.vlgmr.msra.gmra.mxu0 %v2483_v26  ;;  %2851 = vmatmul.mubr.bf16.vlgmr.msra.gmra.mxu1 %v2715_v27  ;;  %v6884_v37 = vld [vmem:[#allocation2 + $0x6c0] ss:$8 sps:$4 sm:$0xff]  }
 0x13c   : > { %v823_v47 = vadd.f32 %v764_v44, %v7473_v60  ;;  %3051 = vmatpush1.bf16.msra.mxu0 %v6863_v22  ;;  %3283 = vmatpush1.bf16.msra.mxu1 %v6866_v28  ;;  %v6892_v44 = vld [vmem:[#allocation2 + $0x6b4] ss:$8 sps:$4 sm:$0xff]  }
 0x13d   : > { %v766_v56 = vpop.f32.mrf.mxu0  ;;  %v998_v57 = vpop.f32.mrf.mxu1  ;;  %3052 = vmatprep.subr.bf16.mxu0 %v6871_v32  ;;  %3284 = vmatprep.subr.bf16.mxu1 %v6874_v33  ;;  %v2708_v33 = vld [vmem:[%s7329_s4 + $0x41] sm:$0xff] }
 0x13e   : > { %v7588_v59 = vadd.f32 %v996_v48, %v823_v47  ;;  %v824_v1 = vadd.f32 %v766_v56, %v7481_v4  ;;  %2628 = vmatprep.mubr.bf16.mxu0 %v7247_v0  ;;  %2860 = vmatprep.mubr.bf16.mxu1 %v7247_v0 }
 0x13f   : > { %v768_v2 = vpop.f32.mrf.mxu0  ;;  %v1000_v60 = vpop.f32.mrf.mxu1 }
 0x140   : > { %v7595_v8 = vadd.f32 %v998_v57, %v824_v1  ;;  %v825_v10 = vadd.f32 %v768_v2, %v7487_v9  ;;  %3053 = vmatpush1.bf16.msra.mxu0 %v6869_v40  ;;  %3285 = vmatpush1.bf16.msra.mxu1 %v6872_v41  ;;  %v2707_v9 = vld [vmem:[%s7329_s4 + $0x39] sm:$0xff] }
 0x141   : > { %v770_v4 = vpop.f32.mrf.mxu0  ;;  %v1002_v22 = vpop.f32.mrf.mxu1  ;;  %3054 = vmatprep.subr.bf16.mxu0 %v6877_v53  ;;  %3286 = vmatprep.subr.bf16.mxu1 %v6880_v58  ;;  %v2717_v53 = vpack.c.bf16 %v2708_v33, %v2707_v9  ;;  %v6887_v2 = vld [vmem:[#allocation2 + $0x630] ss:$8 sps:$4 sm:$0xff]   ;;  %v2486_v33 = vpack.c.bf16 %v7534_v14, %v7517_v46  ;;  %v6907_v46 = vld [vmem:[#allocation2 + $0x604] ss:$8 sps:$4 sm:$0xff]  }
 0x142   : > { %v7598_v23 = vadd.f32 %v1000_v60, %v825_v10  ;;  %v826_v24 = vadd.f32 %v770_v4, %v7489_v15  ;;  %v6889_v15 = vld [vmem:[#allocation2 + $0x634] ss:$8 sps:$4 sm:$0xff]   ;;  %v6910_v14 = vld [vmem:[#allocation2 + $0x684] ss:$8 sps:$4 sm:$0xff]  }
 0x143   : > { %v774_v26 = vpop.f32.mrf.mxu0  ;;  %v1006_v27 = vpop.f32.mrf.mxu1  ;;  %2629 = vmatmul.mubr.bf16.gmra.mxu0 %v2484_v6  ;;  %2861 = vmatmul.mubr.bf16.gmra.mxu1 %v2716_v7  ;;  %v2710_v4 = vld [vmem:[%s7329_s4 + $0x51] sm:$0xff] }
 0x144   : > { %v7602_v28 = vadd.f32 %v1002_v22, %v826_v24  ;;  %v827_v32 = vadd.f32 %v774_v26, %v7499_v25  ;;  %3055 = vmatpush1.bf16.msra.mxu0 %v6875_v13  ;;  %3287 = vmatpush1.bf16.msra.mxu1 %v6878_v17  ;;  %v2709_v17 = vld [vmem:[%s7329_s4 + $0x49] sm:$0xff] }
 0x145   : > { %v776_v40 = vpop.f32.mrf.mxu0  ;;  %v1008_v41 = vpop.f32.mrf.mxu1  ;;  %2638 = vmatprep.mubr.bf16.mxu0 %v7247_v0  ;;  %2870 = vmatprep.mubr.bf16.mxu1 %v7247_v0 }
 0x146   : > { %v7608_v48 = vadd.f32 %v1006_v27, %v827_v32  ;;  %v828_v47 = vadd.f32 %v776_v40, %v7503_v30  ;;  %3056 = vmatprep.subr.bf16.mxu0 %v6883_v62  ;;  %3288 = vmatprep.subr.bf16.mxu1 %v6886_v18  ;;  %v6890_v30 = vld [vmem:[#allocation2 + $0x6b0] ss:$8 sps:$4 sm:$0xff]   ;;  %v6896_v62 = vld [vmem:[#allocation2 + $0x6a0] ss:$8 sps:$4 sm:$0xff]   ;;  %v6901_v27 = vld [vmem:[#allocation2 + $0x614] ss:$8 sps:$4 sm:$0xff]  }
 0x147   : > { %v778_v25 = vpop.f32.mrf.mxu0  ;;  %v1010_v61 = vpop.f32.mrf.mxu1 }
 0x148   : > { %v7613_v56 = vadd.f32 %v1008_v41, %v828_v47  ;;  %v829_v57 = vadd.f32 %v778_v25, %v7507_v36  ;;  %3057 = vmatpush1.bf16.msra.mxu0 %v6881_v34  ;;  %3289 = vmatpush1.bf16.msra.mxu1 %v6884_v37  ;;  %v2718_v34 = vpack.c.bf16 %v2710_v4, %v2709_v17 }
 0x149   : > { %v780_v58 = vpop.f32.mrf.mxu0  ;;  %v1012_v1 = vpop.f32.mrf.mxu1  ;;  %3058 = vmatprep.subr.bf16.mxu0 %v6889_v15  ;;  %3290 = vmatprep.subr.bf16.mxu1 %v6892_v44  ;;  %v6899_v44 = vld [vmem:[#allocation2 + $0x610] ss:$8 sps:$4 sm:$0xff]  }
 0x14a   : > { %v7616_v60 = vadd.f32 %v1010_v61, %v829_v57  ;;  %v830_v6 = vadd.f32 %v780_v58, %v7509_v42  ;;  %v6893_v42 = vld [vmem:[#allocation2 + $0x620] ss:$8 sps:$4 sm:$0xff]  }
 0x14b   : > { %v784_v7 = vpop.f32.mrf.mxu0  ;;  %v1016_v10 = vpop.f32.mrf.mxu1  ;;  %2639 = vmatmul.mubr.bf16.gmra.mxu0 %v2485_v51  ;;  %2871 = vmatmul.mubr.bf16.gmra.mxu1 %v2717_v53  ;;  %v2711_v57 = vld [vmem:[%s7329_s4 + $0x59] sm:$0xff]  ;;  %v2712_v58 = vld [vmem:[%s7329_s4 + $0x61] sm:$0xff] }
 0x14c   : > { %v7619_v36 = vadd.f32 %v1012_v1, %v830_v6  ;;  %v831_v13 = vadd.f32 %v784_v7, %v7519_v52  ;;  %2648 = vmatprep.mubr.bf16.mxu0 %v7247_v0  ;;  %2880 = vmatprep.mubr.bf16.mxu1 %v7247_v0  ;;  %v6904_v52 = vld [vmem:[#allocation2 + $0x694] ss:$8 sps:$4 sm:$0xff]   ;;  %v2719_v17 = vpack.c.bf16 %v2712_v58, %v2711_v57 }
 0x14d   : > { %v786_v22 = vpop.f32.mrf.mxu0  ;;  %v1018_v24 = vpop.f32.mrf.mxu1  ;;  %3059 = vmatpush1.bf16.msra.mxu0 %v6887_v2  ;;  %3291 = vmatpush1.bf16.msra.mxu1 %v6890_v30  ;;  %v6905_v2 = vld [vmem:[#allocation2 + $0x600] ss:$8 sps:$4 sm:$0xff]  }
 0x14e   : > { %v7626_v18 = vadd.f32 %v1016_v10, %v831_v13  ;;  %v832_v26 = vadd.f32 %v786_v22, %v7523_v55  ;;  %3060 = vmatprep.subr.bf16.mxu0 %v6895_v19  ;;  %3292 = vmatprep.subr.bf16.mxu1 %v6898_v45  ;;  %v6902_v55 = vld [vmem:[#allocation2 + $0x690] ss:$8 sps:$4 sm:$0xff]   ;;  %v6908_v30 = vld [vmem:[#allocation2 + $0x680] ss:$8 sps:$4 sm:$0xff]   ;;  %v6913_v45 = vld [vmem:[#allocation2 + $0x774] ss:$8 sps:$4 sm:$0xff]   ;;  %v2487_v13 = vpack.c.bf16 %v7554_v43, %v7537_v16 }
 0x14f   : > { %v788_v9 = vpop.f32.mrf.mxu0  ;;  %v1020_v32 = vpop.f32.mrf.mxu1  ;;  %v3167_v58 = vld [vmem:[%s7329_s4 + $0x1b] sm:$0xff] }
 0x150   : > { %v7631_v37 = vadd.f32 %v1018_v24, %v832_v26  ;;  %v833_v40 = vadd.f32 %v788_v9, %v7527_v5  ;;  %v2714_v9 = vld [vmem:[%s7329_s4 + $0x71] sm:$0xff] }
 0x151   : > { %v790_v41 = vpop.f32.mrf.mxu0  ;;  %v1022_v15 = vpop.f32.mrf.mxu1  ;;  %3061 = vmatpush1.bf16.msra.mxu0 %v6893_v42  ;;  %3293 = vmatpush1.bf16.msra.mxu1 %v6896_v62 }
 0x152   : > { %v7634_v47 = vadd.f32 %v1020_v32, %v833_v40  ;;  %v834_v25 = vadd.f32 %v790_v41, %v7529_v11  ;;  %3062 = vmatprep.subr.bf16.mxu0 %v6901_v27  ;;  %3294 = vmatprep.subr.bf16.mxu1 %v6904_v52  ;;  %v2482_v27 = vld [vmem:[%s7329_s4 + $0x70] sm:$0xff] }
 0x153   : > { %v794_v61 = vpop.f32.mrf.mxu0  ;;  %v1026_v51 = vpop.f32.mrf.mxu1  ;;  %2649 = vmatmul.mubr.bf16.gmra.mxu0 %v2486_v33  ;;  %2881 = vmatmul.mubr.bf16.gmra.mxu1 %v2718_v34  ;;  %v2713_v52 = vld [vmem:[%s7329_s4 + $0x69] sm:$0xff] }
 0x154   : > { %v7637_v5 = vadd.f32 %v1022_v15, %v834_v25  ;;  %v835_v53 = vadd.f32 %v794_v61, %v7539_v21  ;;  %2658 = vmatprep.mubr.bf16.mxu0 %v7247_v0  ;;  %2890 = vmatprep.mubr.bf16.mxu1 %v7247_v0  ;;  %v6916_v21 = vld [vmem:[#allocation2 + $0x7f4] ss:$8 sps:$4 sm:$0xff]   ;;  %v2488_v15 = vpack.c.bf16 %v2482_v27, %v7557_v49  ;;  %v2937_v27 = vld [vmem:[%s7329_s4 + $0x2a] sm:$0xff] }
 0x155   : > { %v796_v1 = vpop.f32.mrf.mxu0  ;;  %v1028_v11 = vpop.f32.mrf.mxu1  ;;  %3063 = vmatpush1.bf16.msra.mxu0 %v6899_v44  ;;  %3295 = vmatpush1.bf16.msra.mxu1 %v6902_v55  ;;  %v2720_v44 = vpack.c.bf16 %v2714_v9, %v2713_v52  ;;  %v2938_v52 = vld [vmem:[%s7329_s4 + $0x32] sm:$0xff] }
 0x156   : > { %v7644_v6 = vadd.f32 %v1026_v51, %v835_v53  ;;  %v836_v19 = vadd.f32 %v796_v1, %v7543_v29  ;;  %3064 = vmatprep.subr.bf16.mxu0 %v6907_v46  ;;  %3296 = vmatprep.subr.bf16.mxu1 %v6910_v14  ;;  %v2935_v53 = vld [vmem:[%s7329_s4 + $0x1a] sm:$0xff]  ;;  %v3168_v1 = vld [vmem:[%s7329_s4 + $0x23] sm:$0xff]  ;;  %v3169_v9 = vld [vmem:[%s7329_s4 + $0x2b] sm:$0xff] }
 0x157   : > { %v798_v7 = vpop.f32.mrf.mxu0  ;;  %v1030_v10 = vpop.f32.mrf.mxu1 }
 0x158   : > { %v7649_v4 = vadd.f32 %v1028_v11, %v836_v19  ;;  %v837_v22 = vadd.f32 %v798_v7, %v7547_v35  ;;  %v3179_v7 = vpack.c.bf16 %v3168_v1, %v3167_v58 }
 0x159   : > { %v800_v24 = vpop.f32.mrf.mxu0  ;;  %v1032_v42 = vpop.f32.mrf.mxu1  ;;  %3065 = vmatpush1.bf16.msra.mxu0 %v6905_v2  ;;  %3297 = vmatpush1.bf16.msra.mxu1 %v6908_v30 }
 0x15a   : > { %v7652_v29 = vadd.f32 %v1030_v10, %v837_v22  ;;  %v838_v62 = vadd.f32 %v800_v24, %v7549_v39  ;;  %3514 = vmatprep.subr.bf16.mxu0 %v6913_v45  ;;  %3746 = vmatprep.subr.bf16.mxu1 %v6916_v21 }
 0x15b   : > { %v804_v26 = vpop.f32.mrf.mxu0  ;;  %v1036_v16 = vpop.f32.mrf.mxu1  ;;  %2659 = vmatmul.mubr.bf16.gmra.mxu0 %v2487_v13  ;;  %2891 = vmatmul.mubr.bf16.gmra.mxu1 %v2719_v17  ;;  %v6911_v13 = vld [vmem:[#allocation2 + $0x770] ss:$8 sps:$4 sm:$0xff]  }
 0x15c   : > { %v7655_v43 = vadd.f32 %v1032_v42, %v838_v62  ;;  %v839_v35 = vadd.f32 %v804_v26, %v7559_v50  ;;  %2668 = vmatprep.mubr.bf16.mxu0 %v7247_v0  ;;  %2900 = vmatprep.mubr.bf16.mxu1 %v7247_v0  ;;  %v6914_v17 = vld [vmem:[#allocation2 + $0x7f0] ss:$8 sps:$4 sm:$0xff]   ;;  %v6919_v42 = vld [vmem:[#allocation2 + $0x764] ss:$8 sps:$4 sm:$0xff]  }
 0x15d   : > { %v806_v32 = vpop.f32.mrf.mxu0  ;;  %v1038_v33 = vpop.f32.mrf.mxu1  ;;  %v6922_v62 = vld [vmem:[#allocation2 + $0x7e4] ss:$8 sps:$4 sm:$0xff]  }
 0x15e   : > { %v7663_v39 = vadd.f32 %v1036_v16, %v839_v35  ;;  %v840_v34 = vadd.f32 %v806_v32, %v7563_v54 }
 0x15f   : > { %v808_v40 = vpop.f32.mrf.mxu0  ;;  %v1040_v41 = vpop.f32.mrf.mxu1 }
 0x160   : > { %v7667_v50 = vadd.f32 %v1038_v33, %v840_v34  ;;  %v841_v55 = vadd.f32 %v808_v40, %v7567_v63  ;;  %v2936_v63 = vld [vmem:[%s7329_s4 + $0x22] sm:$0xff]  ;;  %v3170_v40 = vld [vmem:[%s7329_s4 + $0x33] sm:$0xff] }
 0x161   : > { %v810_v25 = vpop.f32.mrf.mxu0  ;;  %v1042_v46 = vpop.f32.mrf.mxu1  ;;  %v2947_v21 = vpack.c.bf16 %v2936_v63, %v2935_v53  ;;  %v6917_v33 = vld [vmem:[#allocation2 + $0x760] ss:$8 sps:$4 sm:$0xff]   ;;  %v6926_v63 = vld [vmem:[#allocation2 + $0x7d0] ss:$8 sps:$4 sm:$0xff]  }
 0x162   : > { %v7670_v14 = vadd.f32 %v1040_v41, %v841_v55  ;;  %v842_v61 = vadd.f32 %v810_v25, %v7569_v3  ;;  %v6920_v34 = vld [vmem:[#allocation2 + $0x7e0] ss:$8 sps:$4 sm:$0xff]  }
 0x163   : > { %v814_v51 = vpop.f32.mrf.mxu0  ;;  %v1046_v54 = vpop.f32.mrf.mxu1  ;;  %2669 = vmatmul.mubr.bf16.gmra.mxu0 %v2488_v15  ;;  %2901 = vmatmul.mubr.bf16.gmra.mxu1 %v2720_v44  ;;  %v6928_v44 = vld [vmem:[#allocation2 + $0x7d4] ss:$8 sps:$4 sm:$0xff]  }
 0x164   : > { %v7674_v49 = vadd.f32 %v1042_v46, %v842_v61  ;;  %v843_v57 = vadd.f32 %v814_v51, %v7573_v12  ;;  %3082 = vmatprep.mubr.bf16.mxu0 %v7247_v0  ;;  %3314 = vmatprep.mubr.bf16.mxu1 %v7247_v0  ;;  %v2948_v61 = vpack.c.bf16 %v2938_v52, %v2937_v27 }
 0x165   : > { %v816_v11 = vpop.f32.mrf.mxu0  ;;  %v1048_v2 = vpop.f32.mrf.mxu1  ;;  %v3180_v51 = vpack.c.bf16 %v3170_v40, %v3169_v9 }
 0x166   : > { %v7682_v30 = vadd.f32 %v1046_v54, %v843_v57  ;;  %v844_v3 = vadd.f32 %v816_v11, %v7577_v20  ;;  %v6923_v57 = vld [vmem:[#allocation2 + $0x750] ss:$8 sps:$4 sm:$0xff]  }
 0x167   : > { %v818_v19 = vpop.f32.mrf.mxu0  ;;  %v1050_v45 = vpop.f32.mrf.mxu1 }
 0x168   : > { %v7685_v12 = vadd.f32 %v1048_v2, %v844_v3  ;;  %v845_v10 = vadd.f32 %v818_v19, %v7581_v31  ;;  %v6931_v2 = vld [vmem:[#allocation2 + $0x744] ss:$8 sps:$4 sm:$0xff]  }
 0x169   : > { %v820_v22 = vpop.f32.mrf.mxu0  ;;  %v1052_v24 = vpop.f32.mrf.mxu1  ;;  %v6934_v3 = vld [vmem:[#allocation2 + $0x7c4] ss:$8 sps:$4 sm:$0xff]  }
 0x16a   : > { %v7688_v26 = vadd.f32 %v1050_v45, %v845_v10  ;;  %v846_v20 = vadd.f32 %v820_v22, %v7583_v38  ;;  %v6925_v38 = vld [vmem:[#allocation2 + $0x754] ss:$8 sps:$4 sm:$0xff]   ;;  %v6929_v22 = vld [vmem:[#allocation2 + $0x740] ss:$8 sps:$4 sm:$0xff]  }
 0x16b   : > { %v1228_v16 = vpop.f32.mrf.mxu0  ;;  %v1460_v35 = vpop.f32.mrf.mxu1  ;;  %3083 = vmatmul.mubr.bf16.vlgmr.msra.gmra.mxu0 %v2947_v21  ;;  %3315 = vmatmul.mubr.bf16.vlgmr.msra.gmra.mxu1 %v3179_v7  ;;  %v2939_v45 = vld [vmem:[%s7329_s4 + $0x3a] sm:$0xff]  ;;  %v2940_v21 = vld [vmem:[%s7329_s4 + $0x42] sm:$0xff] }
 0x16c   : > { %v7694_v32 = vadd.f32 %v1052_v24, %v846_v20  ;;  %v1287_v31 = vadd.f32 %v1228_v16, %v7588_v59  ;;  %3515 = vmatpush1.bf16.msra.mxu0 %v6911_v13  ;;  %3747 = vmatpush1.bf16.msra.mxu1 %v6914_v17  ;;  %v3171_v7 = vld [vmem:[%s7329_s4 + $0x3b] sm:$0xff]  ;;  %v3172_v17 = vld [vmem:[%s7329_s4 + $0x43] sm:$0xff]  ;;  %v2949_v52 = vpack.c.bf16 %v2940_v21, %v2939_v45 }
 0x16d   : > { %v1230_v41 = vpop.f32.mrf.mxu0  ;;  %v1462_v15 = vpop.f32.mrf.mxu1  ;;  %3516 = vmatprep.subr.bf16.mxu0 %v6919_v42  ;;  %3748 = vmatprep.subr.bf16.mxu1 %v6922_v62  ;;  %v6932_v24 = vld [vmem:[#allocation2 + $0x7c0] ss:$8 sps:$4 sm:$0xff]   ;;  %v6937_v62 = vld [vmem:[#allocation2 + $0x734] ss:$8 sps:$4 sm:$0xff]   ;;  %v3181_v9 = vpack.c.bf16 %v3172_v17, %v3171_v7 }
 0x16e   : > { %v7698_v55 = vadd.f32 %v1460_v35, %v1287_v31  ;;  %v1288_v25 = vadd.f32 %v1230_v41, %v7595_v8  ;;  %3092 = vmatprep.mubr.bf16.mxu0 %v7247_v0  ;;  %3324 = vmatprep.mubr.bf16.mxu1 %v7247_v0  ;;  %v6940_v20 = vld [vmem:[#allocation2 + $0x7b4] ss:$8 sps:$4 sm:$0xff]   ;;  %v6935_v41 = vld [vmem:[#allocation2 + $0x730] ss:$8 sps:$4 sm:$0xff]  }
 0x16f   : > { %v1232_v59 = vpop.f32.mrf.mxu0  ;;  %v1464_v46 = vpop.f32.mrf.mxu1 }
 0x170   : > { %v7703_v54 = vadd.f32 %v1462_v15, %v1288_v25  ;;  %v1289_v53 = vadd.f32 %v1232_v59, %v7598_v23  ;;  %3517 = vmatpush1.bf16.msra.mxu0 %v6917_v33  ;;  %3749 = vmatpush1.bf16.msra.mxu1 %v6920_v34  ;;  %v6938_v15 = vld [vmem:[#allocation2 + $0x7b0] ss:$8 sps:$4 sm:$0xff]   ;;  %v6946_v25 = vld [vmem:[#allocation2 + $0x7a4] ss:$8 sps:$4 sm:$0xff]  }
 0x171   : > { %v1234_v8 = vpop.f32.mrf.mxu0  ;;  %v1466_v58 = vpop.f32.mrf.mxu1  ;;  %3518 = vmatprep.subr.bf16.mxu0 %v6925_v38  ;;  %3750 = vmatprep.subr.bf16.mxu1 %v6928_v44  ;;  %v6943_v44 = vld [vmem:[#allocation2 + $0x724] ss:$8 sps:$4 sm:$0xff]  }
 0x172   : > { %v7706_v1 = vadd.f32 %v1464_v46, %v1289_v53  ;;  %v1290_v11 = vadd.f32 %v1234_v8, %v7602_v28  ;;  %v2941_v46 = vld [vmem:[%s7329_s4 + $0x4a] sm:$0xff]  ;;  %v2942_v53 = vld [vmem:[%s7329_s4 + $0x52] sm:$0xff] }
 0x173   : > { %v1238_v19 = vpop.f32.mrf.mxu0  ;;  %v1470_v23 = vpop.f32.mrf.mxu1  ;;  %3093 = vmatmul.mubr.bf16.gmra.mxu0 %v2948_v61  ;;  %3325 = vmatmul.mubr.bf16.gmra.mxu1 %v3180_v51  ;;  %v2950_v21 = vpack.c.bf16 %v2942_v53, %v2941_v46 }
 0x174   : > { %v7712_v10 = vadd.f32 %v1466_v58, %v1290_v11  ;;  %v1291_v13 = vadd.f32 %v1238_v19, %v7608_v48  ;;  %3519 = vmatpush1.bf16.msra.mxu0 %v6923_v57  ;;  %3751 = vmatpush1.bf16.msra.mxu1 %v6926_v63  ;;  %v3173_v57 = vld [vmem:[%s7329_s4 + $0x4b] sm:$0xff]  ;;  %v3174_v63 = vld [vmem:[%s7329_s4 + $0x53] sm:$0xff] }
 0x175   : > { %v1240_v42 = vpop.f32.mrf.mxu0  ;;  %v1472_v28 = vpop.f32.mrf.mxu1  ;;  %3102 = vmatprep.mubr.bf16.mxu0 %v7247_v0  ;;  %3334 = vmatprep.mubr.bf16.mxu1 %v7247_v0  ;;  %v6941_v58 = vld [vmem:[#allocation2 + $0x720] ss:$8 sps:$4 sm:$0xff]   ;;  %v6952_v19 = vld [vmem:[#allocation2 + $0x794] ss:$8 sps:$4 sm:$0xff]   ;;  %v3182_v7 = vpack.c.bf16 %v3174_v63, %v3173_v57 }
 0x176   : > { %v7718_v16 = vadd.f32 %v1470_v23, %v1291_v13  ;;  %v1292_v35 = vadd.f32 %v1240_v42, %v7613_v56  ;;  %3520 = vmatprep.subr.bf16.mxu0 %v6931_v2  ;;  %3752 = vmatprep.subr.bf16.mxu1 %v6934_v3  ;;  %v6944_v11 = vld [vmem:[#allocation2 + $0x7a0] ss:$8 sps:$4 sm:$0xff]   ;;  %v6947_v42 = vld [vmem:[#allocation2 + $0x710] ss:$8 sps:$4 sm:$0xff]  }
 0x177   : > { %v1242_v48 = vpop.f32.mrf.mxu0  ;;  %v1474_v27 = vpop.f32.mrf.mxu1 }
 0x178   : > { %v7721_v31 = vadd.f32 %v1472_v28, %v1292_v35  ;;  %v1293_v33 = vadd.f32 %v1242_v48, %v7616_v60  ;;  %3521 = vmatpush1.bf16.msra.mxu0 %v6929_v22  ;;  %3753 = vmatpush1.bf16.msra.mxu1 %v6932_v24  ;;  %v6950_v28 = vld [vmem:[#allocation2 + $0x790] ss:$8 sps:$4 sm:$0xff]   ;;  %v6958_v35 = vld [vmem:[#allocation2 + $0x784] ss:$8 sps:$4 sm:$0xff]  }
 0x179   : > { %v1244_v34 = vpop.f32.mrf.mxu0  ;;  %v1476_v40 = vpop.f32.mrf.mxu1  ;;  %3522 = vmatprep.subr.bf16.mxu0 %v6937_v62  ;;  %3754 = vmatprep.subr.bf16.mxu1 %v6940_v20  ;;  %v6955_v20 = vld [vmem:[#allocation2 + $0x704] ss:$8 sps:$4 sm:$0xff]  }
 0x17a   : > { %v7724_v56 = vadd.f32 %v1474_v27, %v1293_v33  ;;  %v1294_v38 = vadd.f32 %v1244_v34, %v7619_v36  ;;  %v2943_v27 = vld [vmem:[%s7329_s4 + $0x5a] sm:$0xff]  ;;  %v2944_v33 = vld [vmem:[%s7329_s4 + $0x62] sm:$0xff] }
 0x17b   : > { %v1248_v59 = vpop.f32.mrf.mxu0  ;;  %v1480_v60 = vpop.f32.mrf.mxu1  ;;  %3103 = vmatmul.mubr.bf16.gmra.mxu0 %v2949_v52  ;;  %3335 = vmatmul.mubr.bf16.gmra.mxu1 %v3181_v9  ;;  %v3176_v34 = vld [vmem:[%s7329_s4 + $0x63] sm:$0xff] }
 0x17c   : > { %v7728_v61 = vadd.f32 %v1476_v40, %v1294_v38  ;;  %v1295_v51 = vadd.f32 %v1248_v59, %v7626_v18  ;;  %3112 = vmatprep.mubr.bf16.mxu0 %v7247_v0  ;;  %3344 = vmatprep.mubr.bf16.mxu1 %v7247_v0  ;;  %v6949_v18 = vld [vmem:[#allocation2 + $0x714] ss:$8 sps:$4 sm:$0xff]   ;;  %v6956_v38 = vld [vmem:[#allocation2 + $0x780] ss:$8 sps:$4 sm:$0xff]  }
 0x17d   : > { %v1250_v8 = vpop.f32.mrf.mxu0  ;;  %v1482_v36 = vpop.f32.mrf.mxu1  ;;  %3523 = vmatpush1.bf16.msra.mxu0 %v6935_v41  ;;  %3755 = vmatpush1.bf16.msra.mxu1 %v6938_v15  ;;  %v6953_v15 = vld [vmem:[#allocation2 + $0x700] ss:$8 sps:$4 sm:$0xff]   ;;  %v6964_v59 = vld [vmem:[#allocation2 + $0x8f4] ss:$8 sps:$4 sm:$0xff]  }
 0x17e   : > { %v7736_v2 = vadd.f32 %v1480_v60, %v1295_v51  ;;  %v1296_v3 = vadd.f32 %v1250_v8, %v7631_v37  ;;  %3524 = vmatprep.subr.bf16.mxu0 %v6943_v44  ;;  %3756 = vmatprep.subr.bf16.mxu1 %v6946_v25  ;;  %v2951_v51 = vpack.c.bf16 %v2944_v33, %v2943_v27 }
 0x17f   : > { %v1252_v23 = vpop.f32.mrf.mxu0  ;;  %v1484_v45 = vpop.f32.mrf.mxu1 }
 0x180   : > { %v7739_v13 = vadd.f32 %v1482_v36, %v1296_v3  ;;  %v1297_v17 = vadd.f32 %v1252_v23, %v7634_v47  ;;  %v2946_v23 = vld [vmem:[%s7329_s4 + $0x72] sm:$0xff] }
 0x181   : > { %v1254_v22 = vpop.f32.mrf.mxu0  ;;  %v1486_v24 = vpop.f32.mrf.mxu1  ;;  %3525 = vmatpush1.bf16.msra.mxu0 %v6941_v58  ;;  %3757 = vmatpush1.bf16.msra.mxu1 %v6944_v11 }
 0x182   : > { %v7742_v37 = vadd.f32 %v1484_v45, %v1297_v17  ;;  %v1298_v62 = vadd.f32 %v1254_v22, %v7637_v5  ;;  %3526 = vmatprep.subr.bf16.mxu0 %v6949_v18  ;;  %3758 = vmatprep.subr.bf16.mxu1 %v6952_v19  ;;  %v3175_v5 = vld [vmem:[%s7329_s4 + $0x5b] sm:$0xff]  ;;  %v2945_v18 = vld [vmem:[%s7329_s4 + $0x6a] sm:$0xff] }
 0x183   : > { %v1258_v48 = vpop.f32.mrf.mxu0  ;;  %v1490_v47 = vpop.f32.mrf.mxu1  ;;  %3113 = vmatmul.mubr.bf16.gmra.mxu0 %v2950_v21  ;;  %3345 = vmatmul.mubr.bf16.gmra.mxu1 %v3182_v7  ;;  %v3183_v53 = vpack.c.bf16 %v3176_v34, %v3175_v5  ;;  %v3177_v45 = vld [vmem:[%s7329_s4 + $0x6b] sm:$0xff]  ;;  %v3178_v21 = vld [vmem:[%s7329_s4 + $0x73] sm:$0xff]  ;;  %v3399_v34 = vld [vmem:[%s7329_s4 + $0x1c] sm:$0xff] }
 0x184   : > { %v7746_v52 = vadd.f32 %v1486_v24, %v1298_v62  ;;  %v1299_v9 = vadd.f32 %v1258_v48, %v7644_v6  ;;  %3122 = vmatprep.mubr.bf16.mxu0 %v7247_v0  ;;  %3354 = vmatprep.mubr.bf16.mxu1 %v7247_v0  ;;  %v6961_v6 = vld [vmem:[#allocation2 + $0x874] ss:$8 sps:$4 sm:$0xff]   ;;  %v3184_v62 = vpack.c.bf16 %v3178_v21, %v3177_v45  ;;  %v6965_v45 = vld [vmem:[#allocation2 + $0x860] ss:$8 sps:$4 sm:$0xff]  }
 0x185   : > { %v1260_v40 = vpop.f32.mrf.mxu0  ;;  %v1492_v41 = vpop.f32.mrf.mxu1  ;;  %3527 = vmatpush1.bf16.msra.mxu0 %v6947_v42  ;;  %3759 = vmatpush1.bf16.msra.mxu1 %v6950_v28  ;;  %v2952_v28 = vpack.c.bf16 %v2946_v23, %v2945_v18  ;;  %v6968_v21 = vld [vmem:[#allocation2 + $0x8e0] ss:$8 sps:$4 sm:$0xff]  }
 0x186   : > { %v7754_v44 = vadd.f32 %v1490_v47, %v1299_v9  ;;  %v1300_v25 = vadd.f32 %v1260_v40, %v7649_v4  ;;  %3528 = vmatprep.subr.bf16.mxu0 %v6955_v20  ;;  %3760 = vmatprep.subr.bf16.mxu1 %v6958_v35  ;;  %v3632_v40 = vld [vmem:[%s7329_s4 + $0x2c] sm:$0xff] }
 0x187   : > { %v1262_v60 = vpop.f32.mrf.mxu0  ;;  %v1494_v46 = vpop.f32.mrf.mxu1 }
 0x188   : > { %v7757_v57 = vadd.f32 %v1492_v41, %v1300_v25  ;;  %v1301_v63 = vadd.f32 %v1262_v60, %v7652_v29 }
 0x189   : > { %v1264_v8 = vpop.f32.mrf.mxu0  ;;  %v1496_v36 = vpop.f32.mrf.mxu1  ;;  %3529 = vmatpush1.bf16.msra.mxu0 %v6953_v15  ;;  %3761 = vmatpush1.bf16.msra.mxu1 %v6956_v38 }
 0x18a   : > { %v7760_v4 = vadd.f32 %v1494_v46, %v1301_v63  ;;  %v1302_v58 = vadd.f32 %v1264_v8, %v7655_v43  ;;  %3978 = vmatprep.subr.bf16.mxu0 %v6961_v6  ;;  %4210 = vmatprep.subr.bf16.mxu1 %v6964_v59 }
 0x18b   : > { %v1268_v11 = vpop.f32.mrf.mxu0  ;;  %v1500_v3 = vpop.f32.mrf.mxu1  ;;  %3123 = vmatmul.mubr.bf16.gmra.mxu0 %v2951_v51  ;;  %3355 = vmatmul.mubr.bf16.gmra.mxu1 %v3183_v53  ;;  %v6959_v51 = vld [vmem:[#allocation2 + $0x870] ss:$8 sps:$4 sm:$0xff]  }
 0x18c   : > { %v7764_v19 = vadd.f32 %v1496_v36, %v1302_v58  ;;  %v1303_v29 = vadd.f32 %v1268_v11, %v7663_v39  ;;  %3132 = vmatprep.mubr.bf16.mxu0 %v7247_v0  ;;  %3364 = vmatprep.mubr.bf16.mxu1 %v7247_v0  ;;  %v6962_v53 = vld [vmem:[#allocation2 + $0x8f0] ss:$8 sps:$4 sm:$0xff]   ;;  %v6967_v36 = vld [vmem:[#allocation2 + $0x864] ss:$8 sps:$4 sm:$0xff]  }
 0x18d   : > { %v1270_v7 = vpop.f32.mrf.mxu0  ;;  %v1502_v43 = vpop.f32.mrf.mxu1  ;;  %v6970_v58 = vld [vmem:[#allocation2 + $0x8e4] ss:$8 sps:$4 sm:$0xff]  }
 0x18e   : > { %v7772_v17 = vadd.f32 %v1500_v3, %v1303_v29  ;;  %v1304_v22 = vadd.f32 %v1270_v7, %v7667_v50  ;;  %v3402_v29 = vld [vmem:[%s7329_s4 + $0x34] sm:$0xff]  ;;  %v7803_v7 = vld [vmem:[%s7329_s4 + $0x3c] sm:$0xff] }
 0x18f   : > { %v1272_v24 = vpop.f32.mrf.mxu0  ;;  %v1504_v42 = vpop.f32.mrf.mxu1 }
 0x190   : > { %v7775_v39 = vadd.f32 %v1502_v43, %v1304_v22  ;;  %v1305_v20 = vadd.f32 %v1272_v24, %v7670_v14  ;;  %v3400_v14 = vld [vmem:[%s7329_s4 + $0x24] sm:$0xff]  ;;  %v6976_v24 = vld [vmem:[#allocation2 + $0x8d4] ss:$8 sps:$4 sm:$0xff]  }
 0x191   : > { %v1274_v35 = vpop.f32.mrf.mxu0  ;;  %v1506_v48 = vpop.f32.mrf.mxu1  ;;  %v3411_v59 = vpack.c.bf16 %v3400_v14, %v3399_v34  ;;  %v3643_v60 = vpack.c.bf16 %v3632_v40, %v3400_v14 }
 0x192   : > { %v7778_v47 = vadd.f32 %v1504_v42, %v1305_v20  ;;  %v1306_v27 = vadd.f32 %v1274_v35, %v7674_v49  ;;  %v3412_v20 = vpack.c.bf16 %v3402_v29, %v3632_v40  ;;  %v3644_v35 = vpack.c.bf16 %v7803_v7, %v3402_v29  ;;  %v6979_v40 = vld [vmem:[#allocation2 + $0x844] ss:$8 sps:$4 sm:$0xff]  }
 0x193   : > { %v1278_v9 = vpop.f32.mrf.mxu0  ;;  %v1510_v33 = vpop.f32.mrf.mxu1  ;;  %3133 = vmatmul.mubr.bf16.gmra.mxu0 %v2952_v28  ;;  %3365 = vmatmul.mubr.bf16.gmra.mxu1 %v3184_v62 }
 0x194   : > { %v7781_v50 = vadd.f32 %v1506_v48, %v1306_v27  ;;  %v1307_v5 = vadd.f32 %v1278_v9, %v7682_v30  ;;  %3546 = vmatprep.mubr.bf16.mxu0 %v7247_v0  ;;  %3778 = vmatprep.mubr.bf16.mxu1 %v7247_v0  ;;  %v6971_v9 = vld [vmem:[#allocation2 + $0x850] ss:$8 sps:$4 sm:$0xff]  }
 0x195   : > { %v1280_v41 = vpop.f32.mrf.mxu0  ;;  %v1512_v15 = vpop.f32.mrf.mxu1 }
 0x196   : > { %v7789_v38 = vadd.f32 %v1510_v33, %v1307_v5  ;;  %v1308_v49 = vadd.f32 %v1280_v41, %v7685_v12  ;;  %v6974_v33 = vld [vmem:[#allocation2 + $0x8d0] ss:$8 sps:$4 sm:$0xff]   ;;  %v6982_v41 = vld [vmem:[#allocation2 + $0x8c4] ss:$8 sps:$4 sm:$0xff]  }
 0x197   : > { %v1282_v25 = vpop.f32.mrf.mxu0  ;;  %v1514_v6 = vpop.f32.mrf.mxu1 }
 0x198   : > { %v7792_v46 = vadd.f32 %v1512_v15, %v1308_v49  ;;  %v1309_v30 = vadd.f32 %v1282_v25, %v7688_v26 }
 0x199   : > { %v1284_v63 = vpop.f32.mrf.mxu0  ;;  %v1516_v8 = vpop.f32.mrf.mxu1 }
 0x19a   : > { %v7795_v11 = vadd.f32 %v1514_v6, %v1309_v30  ;;  %v1310_v12 = vadd.f32 %v1284_v63, %v7694_v32  ;;  %v6973_v32 = vld [vmem:[#allocation2 + $0x854] ss:$8 sps:$4 sm:$0xff]   ;;  %v6980_v30 = vld [vmem:[#allocation2 + $0x8c0] ss:$8 sps:$4 sm:$0xff]  }
 0x19b   : > { %v1692_v3 = vpop.f32.mrf.mxu0  ;;  %v1924_v18 = vpop.f32.mrf.mxu1  ;;  %3547 = vmatmul.mubr.bf16.vlgmr.msra.gmra.mxu0 %v3411_v59  ;;  %3779 = vmatmul.mubr.bf16.vlgmr.msra.gmra.mxu1 %v3643_v60  ;;  %v7822_v59 = vld [vmem:[%s7329_s4 + $0x4c] sm:$0xff]  ;;  %v6977_v60 = vld [vmem:[#allocation2 + $0x840] ss:$8 sps:$4 sm:$0xff]   ;;  %v6988_v63 = vld [vmem:[#allocation2 + $0x8b4] ss:$8 sps:$4 sm:$0xff]  }
 0x19c   : > { %v7799_v23 = vadd.f32 %v1516_v8, %v1310_v12  ;;  %v1751_v26 = vadd.f32 %v1692_v3, %v7698_v55  ;;  %3979 = vmatpush1.bf16.msra.mxu0 %v6959_v51  ;;  %4211 = vmatpush1.bf16.msra.mxu1 %v6962_v53 }
 0x19d   : > { %v1694_v43 = vpop.f32.mrf.mxu0  ;;  %v1926_v22 = vpop.f32.mrf.mxu1  ;;  %3980 = vmatprep.subr.bf16.mxu0 %v6967_v36  ;;  %4212 = vmatprep.subr.bf16.mxu1 %v6970_v58 }
 0x19e   : > { %v7805_v42 = vadd.f32 %v1924_v18, %v1751_v26  ;;  %v1752_v28 = vadd.f32 %v1694_v43, %v7703_v54  ;;  %3556 = vmatprep.mubr.bf16.mxu0 %v7247_v0  ;;  %3788 = vmatprep.mubr.bf16.mxu1 %v7247_v0 }
 0x19f   : > { %v1696_v55 = vpop.f32.mrf.mxu0  ;;  %v1928_v62 = vpop.f32.mrf.mxu1 }
 0x1a0   : > { %v7811_v48 = vadd.f32 %v1926_v22, %v1752_v28  ;;  %v1753_v27 = vadd.f32 %v1696_v55, %v7706_v1  ;;  %3981 = vmatpush1.bf16.msra.mxu0 %v6965_v45  ;;  %4213 = vmatpush1.bf16.msra.mxu1 %v6968_v21  ;;  %v3404_v1 = vld [vmem:[%s7329_s4 + $0x44] sm:$0xff]  ;;  %v6983_v21 = vld [vmem:[#allocation2 + $0x830] ss:$8 sps:$4 sm:$0xff]  }
 0x1a1   : > { %v1698_v5 = vpop.f32.mrf.mxu0  ;;  %v1930_v54 = vpop.f32.mrf.mxu1  ;;  %3982 = vmatprep.subr.bf16.mxu0 %v6973_v32  ;;  %4214 = vmatprep.subr.bf16.mxu1 %v6976_v24  ;;  %v3413_v12 = vpack.c.bf16 %v3404_v1, %v7803_v7  ;;  %v3645_v3 = vpack.c.bf16 %v7822_v59, %v3404_v1  ;;  %v6991_v22 = vld [vmem:[#allocation2 + $0x824] ss:$8 sps:$4 sm:$0xff]  }
 0x1a2   : > { %v7814_v34 = vadd.f32 %v1928_v62, %v1753_v27  ;;  %v1754_v14 = vadd.f32 %v1698_v5, %v7712_v10  ;;  %v6985_v10 = vld [vmem:[#allocation2 + $0x834] ss:$8 sps:$4 sm:$0xff]   ;;  %v6994_v32 = vld [vmem:[#allocation2 + $0x8a4] ss:$8 sps:$4 sm:$0xff]  }
 0x1a3   : > { %v1702_v15 = vpop.f32.mrf.mxu0  ;;  %v1934_v49 = vpop.f32.mrf.mxu1  ;;  %3557 = vmatmul.mubr.bf16.gmra.mxu0 %v3412_v20  ;;  %3789 = vmatmul.mubr.bf16.gmra.mxu1 %v3644_v35  ;;  %v3406_v62 = vld [vmem:[%s7329_s4 + $0x54] sm:$0xff]  ;;  %v7844_v20 = vld [vmem:[%s7329_s4 + $0x5c] sm:$0xff] }
 0x1a4   : > { %v7818_v25 = vadd.f32 %v1930_v54, %v1754_v14  ;;  %v1755_v6 = vadd.f32 %v1702_v15, %v7718_v16  ;;  %3983 = vmatpush1.bf16.msra.mxu0 %v6971_v9  ;;  %4215 = vmatpush1.bf16.msra.mxu1 %v6974_v33  ;;  %v6992_v9 = vld [vmem:[#allocation2 + $0x8a0] ss:$8 sps:$4 sm:$0xff]   ;;  %v7000_v54 = vld [vmem:[#allocation2 + $0x894] ss:$8 sps:$4 sm:$0xff]   ;;  %v3646_v15 = vpack.c.bf16 %v7844_v20, %v3406_v62 }
 0x1a5   : > { %v1704_v51 = vpop.f32.mrf.mxu0  ;;  %v1936_v53 = vpop.f32.mrf.mxu1  ;;  %3566 = vmatprep.mubr.bf16.mxu0 %v7247_v0  ;;  %3798 = vmatprep.mubr.bf16.mxu1 %v7247_v0 }
 0x1a6   : > { %v7826_v8 = vadd.f32 %v1934_v49, %v1755_v6  ;;  %v1756_v36 = vadd.f32 %v1704_v51, %v7721_v31  ;;  %3984 = vmatprep.subr.bf16.mxu0 %v6979_v40  ;;  %4216 = vmatprep.subr.bf16.mxu1 %v6982_v41  ;;  %v6986_v31 = vld [vmem:[#allocation2 + $0x8b0] ss:$8 sps:$4 sm:$0xff]   ;;  %v3414_v41 = vpack.c.bf16 %v3406_v62, %v7822_v59  ;;  %v7003_v59 = vld [vmem:[#allocation2 + $0x804] ss:$8 sps:$4 sm:$0xff]  }
 0x1a7   : > { %v1706_v16 = vpop.f32.mrf.mxu0  ;;  %v1938_v58 = vpop.f32.mrf.mxu1 }
 0x1a8   : > { %v7831_v18 = vadd.f32 %v1936_v53, %v1756_v36  ;;  %v1757_v29 = vadd.f32 %v1706_v16, %v7724_v56  ;;  %3985 = vmatpush1.bf16.msra.mxu0 %v6977_v60  ;;  %4217 = vmatpush1.bf16.msra.mxu1 %v6980_v30  ;;  %v6995_v30 = vld [vmem:[#allocation2 + $0x810] ss:$8 sps:$4 sm:$0xff]  }
 0x1a9   : > { %v1708_v26 = vpop.f32.mrf.mxu0  ;;  %v1940_v45 = vpop.f32.mrf.mxu1  ;;  %3986 = vmatprep.subr.bf16.mxu0 %v6985_v10  ;;  %4218 = vmatprep.subr.bf16.mxu1 %v6988_v63  ;;  %v7006_v10 = vld [vmem:[#allocation2 + $0x884] ss:$8 sps:$4 sm:$0xff]  }
 0x1aa   : > { %v7834_v43 = vadd.f32 %v1938_v58, %v1757_v29  ;;  %v1758_v7 = vadd.f32 %v1708_v26, %v7728_v61  ;;  %v6989_v61 = vld [vmem:[#allocation2 + $0x820] ss:$8 sps:$4 sm:$0xff]  }
 0x1ab   : > { %v1712_v24 = vpop.f32.mrf.mxu0  ;;  %v1944_v28 = vpop.f32.mrf.mxu1  ;;  %3567 = vmatmul.mubr.bf16.gmra.mxu0 %v3413_v12  ;;  %3799 = vmatmul.mubr.bf16.gmra.mxu1 %v3645_v3  ;;  %v3408_v58 = vld [vmem:[%s7329_s4 + $0x64] sm:$0xff]  ;;  %v3640_v12 = vld [vmem:[%s7329_s4 + $0x6c] sm:$0xff] }
 0x1ac   : > { %v7837_v56 = vadd.f32 %v1940_v45, %v1758_v7  ;;  %v1759_v55 = vadd.f32 %v1712_v24, %v7736_v2  ;;  %3576 = vmatprep.mubr.bf16.mxu0 %v7247_v0  ;;  %3808 = vmatprep.mubr.bf16.mxu1 %v7247_v0  ;;  %v6997_v2 = vld [vmem:[#allocation2 + $0x814] ss:$8 sps:$4 sm:$0xff]   ;;  %v7001_v29 = vld [vmem:[#allocation2 + $0x800] ss:$8 sps:$4 sm:$0xff]   ;;  %v3647_v24 = vpack.c.bf16 %v3640_v12, %v3408_v58 }
 0x1ad   : > { %v1714_v35 = vpop.f32.mrf.mxu0  ;;  %v1946_v27 = vpop.f32.mrf.mxu1  ;;  %3987 = vmatpush1.bf16.msra.mxu0 %v6983_v21  ;;  %4219 = vmatpush1.bf16.msra.mxu1 %v6986_v31  ;;  %v7004_v26 = vld [vmem:[#allocation2 + $0x880] ss:$8 sps:$4 sm:$0xff]   ;;  %v7009_v31 = vld [vmem:[#allocation2 + $0x974] ss:$8 sps:$4 sm:$0xff]  }
 0x1ae   : > { %v7846_v33 = vadd.f32 %v1944_v28, %v1759_v55  ;;  %v1760_v5 = vadd.f32 %v1714_v35, %v7739_v13  ;;  %3988 = vmatprep.subr.bf16.mxu0 %v6991_v22  ;;  %4220 = vmatprep.subr.bf16.mxu1 %v6994_v32  ;;  %v6998_v13 = vld [vmem:[#allocation2 + $0x890] ss:$8 sps:$4 sm:$0xff]   ;;  %v3415_v32 = vpack.c.bf16 %v3408_v58, %v7844_v20  ;;  %v4095_v58 = vld [vmem:[%s7329_s4 + $0x26] sm:$0xff] }
 0x1af   : > { %v1716_v14 = vpop.f32.mrf.mxu0  ;;  %v1948_v40 = vpop.f32.mrf.mxu1 }
 0x1b0   : > { %v7851_v49 = vadd.f32 %v1946_v27, %v1760_v5  ;;  %v1761_v1 = vadd.f32 %v1716_v14, %v7742_v37  ;;  %v3410_v5 = vld [vmem:[%s7329_s4 + $0x74] sm:$0xff] }
 0x1b1   : > { %v1718_v6 = vpop.f32.mrf.mxu0  ;;  %v1950_v60 = vpop.f32.mrf.mxu1  ;;  %3989 = vmatpush1.bf16.msra.mxu0 %v6989_v61  ;;  %4221 = vmatpush1.bf16.msra.mxu1 %v6992_v9 }
 0x1b2   : > { %v7854_v51 = vadd.f32 %v1948_v40, %v1761_v1  ;;  %v1762_v53 = vadd.f32 %v1718_v6, %v7746_v52  ;;  %3990 = vmatprep.subr.bf16.mxu0 %v6997_v2  ;;  %4222 = vmatprep.subr.bf16.mxu1 %v7000_v54  ;;  %v3642_v2 = vld [vmem:[%s7329_s4 + $0x7c] sm:$0xff]  ;;  %v3416_v1 = vpack.c.bf16 %v3410_v5, %v3640_v12  ;;  %v4096_v12 = vld [vmem:[%s7329_s4 + $0x2e] sm:$0xff] }
 0x1b3   : > { %v1722_v63 = vpop.f32.mrf.mxu0  ;;  %v1954_v36 = vpop.f32.mrf.mxu1  ;;  %3577 = vmatmul.mubr.bf16.gmra.mxu0 %v3414_v41  ;;  %3809 = vmatmul.mubr.bf16.gmra.mxu1 %v3646_v15  ;;  %v3648_v6 = vpack.c.bf16 %v3642_v2, %v3410_v5  ;;  %v3866_v5 = vld [vmem:[%s7329_s4 + $0x3d] sm:$0xff] }
 0x1b4   : > { %v7857_v37 = vadd.f32 %v1950_v60, %v1762_v53  ;;  %v1763_v16 = vadd.f32 %v1722_v63, %v7754_v44  ;;  %3586 = vmatprep.mubr.bf16.mxu0 %v7247_v0  ;;  %3818 = vmatprep.mubr.bf16.mxu1 %v7247_v0  ;;  %v7012_v44 = vld [vmem:[#allocation2 + $0x9f4] ss:$8 sps:$4 sm:$0xff]  }
 0x1b5   : > { %v1724_v3 = vpop.f32.mrf.mxu0  ;;  %v1956_v52 = vpop.f32.mrf.mxu1  ;;  %3991 = vmatpush1.bf16.msra.mxu0 %v6995_v30  ;;  %4223 = vmatpush1.bf16.msra.mxu1 %v6998_v13  ;;  %v4097_v2 = vld [vmem:[%s7329_s4 + $0x36] sm:$0xff] }
 0x1b6   : > { %v7864_v45 = vadd.f32 %v1954_v36, %v1763_v16  ;;  %v1764_v21 = vadd.f32 %v1724_v3, %v7757_v57  ;;  %3992 = vmatprep.subr.bf16.mxu0 %v7003_v59  ;;  %4224 = vmatprep.subr.bf16.mxu1 %v7006_v10 }
 0x1b7   : > { %v1726_v7 = vpop.f32.mrf.mxu0  ;;  %v1958_v22 = vpop.f32.mrf.mxu1 }
 0x1b8   : > { %v7868_v28 = vadd.f32 %v1956_v52, %v1764_v21  ;;  %v1765_v55 = vadd.f32 %v1726_v7, %v7760_v4 }
 0x1b9   : > { %v1728_v62 = vpop.f32.mrf.mxu0  ;;  %v1960_v35 = vpop.f32.mrf.mxu1  ;;  %3993 = vmatpush1.bf16.msra.mxu0 %v7001_v29  ;;  %4225 = vmatpush1.bf16.msra.mxu1 %v7004_v26 }
 0x1ba   : > { %v7871_v57 = vadd.f32 %v1958_v22, %v1765_v55  ;;  %v1766_v27 = vadd.f32 %v1728_v62, %v7764_v19  ;;  %4442 = vmatprep.subr.bf16.mxu0 %v7009_v31  ;;  %4674 = vmatprep.subr.bf16.mxu1 %v7012_v44  ;;  %v4107_v44 = vpack.c.bf16 %v4096_v12, %v4095_v58  ;;  %v7007_v22 = vld [vmem:[#allocation2 + $0x970] ss:$8 sps:$4 sm:$0xff]   ;;  %v7015_v62 = vld [vmem:[#allocation2 + $0x964] ss:$8 sps:$4 sm:$0xff]  }
 0x1bb   : > { %v1732_v61 = vpop.f32.mrf.mxu0  ;;  %v1964_v9 = vpop.f32.mrf.mxu1  ;;  %3587 = vmatmul.mubr.bf16.gmra.mxu0 %v3415_v32  ;;  %3819 = vmatmul.mubr.bf16.gmra.mxu1 %v3647_v24  ;;  %v7010_v32 = vld [vmem:[#allocation2 + $0x9f0] ss:$8 sps:$4 sm:$0xff]  }
 0x1bc   : > { %v7874_v20 = vadd.f32 %v1960_v35, %v1766_v27  ;;  %v1767_v4 = vadd.f32 %v1732_v61, %v7772_v17  ;;  %3596 = vmatprep.mubr.bf16.mxu0 %v7247_v0  ;;  %3828 = vmatprep.mubr.bf16.mxu1 %v7247_v0  ;;  %v7018_v35 = vld [vmem:[#allocation2 + $0x9e4] ss:$8 sps:$4 sm:$0xff]  }
 0x1bd   : > { %v1734_v54 = vpop.f32.mrf.mxu0  ;;  %v1966_v14 = vpop.f32.mrf.mxu1 }
 0x1be   : > { %v7881_v40 = vadd.f32 %v1964_v9, %v1767_v4  ;;  %v1768_v19 = vadd.f32 %v1734_v54, %v7775_v39  ;;  %v3863_v39 = vld [vmem:[%s7329_s4 + $0x25] sm:$0xff]  ;;  %v3865_v4 = vld [vmem:[%s7329_s4 + $0x35] sm:$0xff] }
 0x1bf   : > { %v1736_v41 = vpop.f32.mrf.mxu0  ;;  %v1968_v15 = vpop.f32.mrf.mxu1 }
 0x1c0   : > { %v7884_v60 = vadd.f32 %v1966_v14, %v1768_v19  ;;  %v1769_v17 = vadd.f32 %v1736_v41, %v7778_v47  ;;  %v3864_v47 = vld [vmem:[%s7329_s4 + $0x2d] sm:$0xff]  ;;  %v7013_v14 = vld [vmem:[#allocation2 + $0x960] ss:$8 sps:$4 sm:$0xff]  }
 0x1c1   : > { %v1738_v30 = vpop.f32.mrf.mxu0  ;;  %v1970_v13 = vpop.f32.mrf.mxu1  ;;  %v3875_v31 = vpack.c.bf16 %v3864_v47, %v3863_v39  ;;  %v7016_v19 = vld [vmem:[#allocation2 + $0x9e0] ss:$8 sps:$4 sm:$0xff]   ;;  %v7022_v47 = vld [vmem:[#allocation2 + $0x9d0] ss:$8 sps:$4 sm:$0xff]  }
 0x1c2   : > { %v7887_v53 = vadd.f32 %v1968_v15, %v1769_v17  ;;  %v1770_v59 = vadd.f32 %v1738_v30, %v7781_v50  ;;  %v4098_v41 = vld [vmem:[%s7329_s4 + $0x3e] sm:$0xff] }
 0x1c3   : > { %v1742_v10 = vpop.f32.mrf.mxu0  ;;  %v1974_v63 = vpop.f32.mrf.mxu1  ;;  %3597 = vmatmul.mubr.bf16.gmra.mxu0 %v3416_v1  ;;  %3829 = vmatmul.mubr.bf16.gmra.mxu1 %v3648_v6  ;;  %v7024_v6 = vld [vmem:[#allocation2 + $0x9d4] ss:$8 sps:$4 sm:$0xff]  }
 0x1c4   : > { %v7891_v36 = vadd.f32 %v1970_v13, %v1770_v59  ;;  %v1771_v16 = vadd.f32 %v1742_v10, %v7789_v38  ;;  %4010 = vmatprep.mubr.bf16.mxu0 %v7247_v0  ;;  %4242 = vmatprep.mubr.bf16.mxu1 %v7247_v0  ;;  %v3876_v59 = vpack.c.bf16 %v3866_v5, %v3865_v4 }
 0x1c5   : > { %v1744_v3 = vpop.f32.mrf.mxu0  ;;  %v1976_v52 = vpop.f32.mrf.mxu1  ;;  %v4108_v10 = vpack.c.bf16 %v4098_v41, %v4097_v2 }
 0x1c6   : > { %v7899_v29 = vadd.f32 %v1974_v63, %v1771_v16  ;;  %v1772_v50 = vadd.f32 %v1744_v3, %v7792_v46  ;;  %v7019_v16 = vld [vmem:[#allocation2 + $0x950] ss:$8 sps:$4 sm:$0xff]  }
 0x1c7   : > { %v1746_v26 = vpop.f32.mrf.mxu0  ;;  %v1978_v21 = vpop.f32.mrf.mxu1 }
 0x1c8   : > { %v7902_v38 = vadd.f32 %v1976_v52, %v1772_v50  ;;  %v1773_v7 = vadd.f32 %v1746_v26, %v7795_v11  ;;  %v7027_v52 = vld [vmem:[#allocation2 + $0x944] ss:$8 sps:$4 sm:$0xff]  }
 0x1c9   : > { %v1748_v24 = vpop.f32.mrf.mxu0  ;;  %v1980_v55 = vpop.f32.mrf.mxu1  ;;  %v7030_v50 = vld [vmem:[#allocation2 + $0x9c4] ss:$8 sps:$4 sm:$0xff]  }
 0x1ca   : > { %v7905_v27 = vadd.f32 %v1978_v21, %v1773_v7  ;;  %v1774_v46 = vadd.f32 %v1748_v24, %v7799_v23  ;;  %v7021_v23 = vld [vmem:[#allocation2 + $0x954] ss:$8 sps:$4 sm:$0xff]   ;;  %v3867_v21 = vld [vmem:[%s7329_s4 + $0x45] sm:$0xff] }
 0x1cb   : > { %v2156_v61 = vpop.f32.mrf.mxu0  ;;  %v2388_v9 = vpop.f32.mrf.mxu1  ;;  %4011 = vmatmul.mubr.bf16.vlgmr.msra.gmra.mxu0 %v3875_v31  ;;  %4243 = vmatmul.mubr.bf16.vlgmr.msra.gmra.mxu1 %v4107_v44  ;;  %v3868_v31 = vld [vmem:[%s7329_s4 + $0x4d] sm:$0xff]  ;;  %v7025_v24 = vld [vmem:[#allocation2 + $0x940] ss:$8 sps:$4 sm:$0xff]  }
 0x1cc   : > { %v7911_v54 = vadd.f32 %v1980_v55, %v1774_v46  ;;  %v2215_v11 = vadd.f32 %v2156_v61, %v7805_v42  ;;  %4443 = vmatpush1.bf16.msra.mxu0 %v7007_v22  ;;  %4675 = vmatpush1.bf16.msra.mxu1 %v7010_v32  ;;  %v4099_v44 = vld [vmem:[%s7329_s4 + $0x46] sm:$0xff]  ;;  %v4100_v32 = vld [vmem:[%s7329_s4 + $0x4e] sm:$0xff]  ;;  %v3877_v5 = vpack.c.bf16 %v3868_v31, %v3867_v21 }
 0x1cd   : > { %v2158_v15 = vpop.f32.mrf.mxu0  ;;  %v2390_v1 = vpop.f32.mrf.mxu1  ;;  %4444 = vmatprep.subr.bf16.mxu0 %v7015_v62  ;;  %4676 = vmatprep.subr.bf16.mxu1 %v7018_v35  ;;  %v7028_v55 = vld [vmem:[#allocation2 + $0x9c0] ss:$8 sps:$4 sm:$0xff]   ;;  %v7033_v35 = vld [vmem:[#allocation2 + $0x934] ss:$8 sps:$4 sm:$0xff]   ;;  %v4109_v2 = vpack.c.bf16 %v4100_v32, %v4099_v44 }
 0x1ce   : > { %v7915_v17 = vadd.f32 %v2388_v9, %v2215_v11  ;;  %v2216_v30 = vadd.f32 %v2158_v15, %v7811_v48  ;;  %4020 = vmatprep.mubr.bf16.mxu0 %v7247_v0  ;;  %4252 = vmatprep.mubr.bf16.mxu1 %v7247_v0  ;;  %v7036_v46 = vld [vmem:[#allocation2 + $0x9b4] ss:$8 sps:$4 sm:$0xff]   ;;  %v7031_v15 = vld [vmem:[#allocation2 + $0x930] ss:$8 sps:$4 sm:$0xff]  }
 0x1cf   : > { %v2160_v42 = vpop.f32.mrf.mxu0  ;;  %v2392_v13 = vpop.f32.mrf.mxu1 }
 0x1d0   : > { %v7920_v63 = vadd.f32 %v2390_v1, %v2216_v30  ;;  %v2217_v39 = vadd.f32 %v2160_v42, %v7814_v34  ;;  %4445 = vmatpush1.bf16.msra.mxu0 %v7013_v14  ;;  %4677 = vmatpush1.bf16.msra.mxu1 %v7016_v19  ;;  %v7034_v1 = vld [vmem:[#allocation2 + $0x9b0] ss:$8 sps:$4 sm:$0xff]   ;;  %v7042_v30 = vld [vmem:[#allocation2 + $0x9a4] ss:$8 sps:$4 sm:$0xff]  }
 0x1d1   : > { %v2162_v48 = vpop.f32.mrf.mxu0  ;;  %v2394_v58 = vpop.f32.mrf.mxu1  ;;  %4446 = vmatprep.subr.bf16.mxu0 %v7021_v23  ;;  %4678 = vmatprep.subr.bf16.mxu1 %v7024_v6  ;;  %v7039_v6 = vld [vmem:[#allocation2 + $0x924] ss:$8 sps:$4 sm:$0xff]  }
 0x1d2   : > { %v7923_v12 = vadd.f32 %v2392_v13, %v2217_v39  ;;  %v2218_v3 = vadd.f32 %v2162_v48, %v7818_v25  ;;  %v3869_v13 = vld [vmem:[%s7329_s4 + $0x55] sm:$0xff]  ;;  %v3870_v39 = vld [vmem:[%s7329_s4 + $0x5d] sm:$0xff] }
 0x1d3   : > { %v2166_v26 = vpop.f32.mrf.mxu0  ;;  %v2398_v34 = vpop.f32.mrf.mxu1  ;;  %4021 = vmatmul.mubr.bf16.gmra.mxu0 %v3876_v59  ;;  %4253 = vmatmul.mubr.bf16.gmra.mxu1 %v4108_v10  ;;  %v3878_v31 = vpack.c.bf16 %v3870_v39, %v3869_v13 }
 0x1d4   : > { %v7929_v7 = vadd.f32 %v2394_v58, %v2218_v3  ;;  %v2219_v22 = vadd.f32 %v2166_v26, %v7826_v8  ;;  %4447 = vmatpush1.bf16.msra.mxu0 %v7019_v16  ;;  %4679 = vmatpush1.bf16.msra.mxu1 %v7022_v47  ;;  %v4101_v16 = vld [vmem:[%s7329_s4 + $0x56] sm:$0xff]  ;;  %v4102_v47 = vld [vmem:[%s7329_s4 + $0x5e] sm:$0xff] }
 0x1d5   : > { %v2168_v62 = vpop.f32.mrf.mxu0  ;;  %v2400_v25 = vpop.f32.mrf.mxu1  ;;  %4030 = vmatprep.mubr.bf16.mxu0 %v7247_v0  ;;  %4262 = vmatprep.mubr.bf16.mxu1 %v7247_v0  ;;  %v7037_v58 = vld [vmem:[#allocation2 + $0x920] ss:$8 sps:$4 sm:$0xff]   ;;  %v7048_v26 = vld [vmem:[#allocation2 + $0x994] ss:$8 sps:$4 sm:$0xff]   ;;  %v4110_v44 = vpack.c.bf16 %v4102_v47, %v4101_v16 }
 0x1d6   : > { %v7935_v61 = vadd.f32 %v2398_v34, %v2219_v22  ;;  %v2220_v9 = vadd.f32 %v2168_v62, %v7831_v18  ;;  %4448 = vmatprep.subr.bf16.mxu0 %v7027_v52  ;;  %4680 = vmatprep.subr.bf16.mxu1 %v7030_v50  ;;  %v7040_v3 = vld [vmem:[#allocation2 + $0x9a0] ss:$8 sps:$4 sm:$0xff]   ;;  %v7043_v62 = vld [vmem:[#allocation2 + $0x910] ss:$8 sps:$4 sm:$0xff]  }
 0x1d7   : > { %v2170_v8 = vpop.f32.mrf.mxu0  ;;  %v2402_v4 = vpop.f32.mrf.mxu1 }
 0x1d8   : > { %v7938_v11 = vadd.f32 %v2400_v25, %v2220_v9  ;;  %v2221_v14 = vadd.f32 %v2170_v8, %v7834_v43  ;;  %4449 = vmatpush1.bf16.msra.mxu0 %v7025_v24  ;;  %4681 = vmatpush1.bf16.msra.mxu1 %v7028_v55  ;;  %v7046_v25 = vld [vmem:[#allocation2 + $0x990] ss:$8 sps:$4 sm:$0xff]   ;;  %v7054_v9 = vld [vmem:[#allocation2 + $0x984] ss:$8 sps:$4 sm:$0xff]  }
 0x1d9   : > { %v2172_v19 = vpop.f32.mrf.mxu0  ;;  %v2404_v41 = vpop.f32.mrf.mxu1  ;;  %4450 = vmatprep.subr.bf16.mxu0 %v7033_v35  ;;  %4682 = vmatprep.subr.bf16.mxu1 %v7036_v46  ;;  %v7051_v46 = vld [vmem:[#allocation2 + $0x904] ss:$8 sps:$4 sm:$0xff]  }
 0x1da   : > { %v7941_v18 = vadd.f32 %v2402_v4, %v2221_v14  ;;  %v2222_v23 = vadd.f32 %v2172_v19, %v7837_v56  ;;  %v3871_v4 = vld [vmem:[%s7329_s4 + $0x65] sm:$0xff]  ;;  %v3872_v14 = vld [vmem:[%s7329_s4 + $0x6d] sm:$0xff] }
 0x1db   : > { %v2176_v42 = vpop.f32.mrf.mxu0  ;;  %v2408_v43 = vpop.f32.mrf.mxu1  ;;  %4031 = vmatmul.mubr.bf16.gmra.mxu0 %v3877_v5  ;;  %4263 = vmatmul.mubr.bf16.gmra.mxu1 %v4109_v2  ;;  %v4104_v19 = vld [vmem:[%s7329_s4 + $0x6e] sm:$0xff] }
 0x1dc   : > { %v7945_v59 = vadd.f32 %v2404_v41, %v2222_v23  ;;  %v2223_v10 = vadd.f32 %v2176_v42, %v7846_v33  ;;  %4040 = vmatprep.mubr.bf16.mxu0 %v7247_v0  ;;  %4272 = vmatprep.mubr.bf16.mxu1 %v7247_v0  ;;  %v7045_v33 = vld [vmem:[#allocation2 + $0x914] ss:$8 sps:$4 sm:$0xff]   ;;  %v7052_v23 = vld [vmem:[#allocation2 + $0x980] ss:$8 sps:$4 sm:$0xff]  }
 0x1dd   : > { %v2178_v48 = vpop.f32.mrf.mxu0  ;;  %v2410_v56 = vpop.f32.mrf.mxu1  ;;  %4451 = vmatpush1.bf16.msra.mxu0 %v7031_v15  ;;  %4683 = vmatpush1.bf16.msra.mxu1 %v7034_v1  ;;  %v7049_v1 = vld [vmem:[#allocation2 + $0x900] ss:$8 sps:$4 sm:$0xff]   ;;  %v7060_v42 = vld [vmem:[#allocation2 + $0xaf4] ss:$8 sps:$4 sm:$0xff]  }
 0x1de   : > { %v7953_v52 = vadd.f32 %v2408_v43, %v2223_v10  ;;  %v2224_v50 = vadd.f32 %v2178_v48, %v7851_v49  ;;  %4452 = vmatprep.subr.bf16.mxu0 %v7039_v6  ;;  %4684 = vmatprep.subr.bf16.mxu1 %v7042_v30  ;;  %v3879_v10 = vpack.c.bf16 %v3872_v14, %v3871_v4 }
 0x1df   : > { %v2180_v34 = vpop.f32.mrf.mxu0  ;;  %v2412_v21 = vpop.f32.mrf.mxu1 }
 0x1e0   : > { %v7956_v22 = vadd.f32 %v2410_v56, %v2224_v50  ;;  %v2225_v32 = vadd.f32 %v2180_v34, %v7854_v51  ;;  %v3874_v34 = vld [vmem:[%s7329_s4 + $0x7d] sm:$0xff] }
 0x1e1   : > { %v2182_v24 = vpop.f32.mrf.mxu0  ;;  %v2414_v55 = vpop.f32.mrf.mxu1  ;;  %4453 = vmatpush1.bf16.msra.mxu0 %v7037_v58  ;;  %4685 = vmatpush1.bf16.msra.mxu1 %v7040_v3 }
 0x1e2   : > { %v7959_v49 = vadd.f32 %v2412_v21, %v2225_v32  ;;  %v2226_v35 = vadd.f32 %v2182_v24, %v7857_v37  ;;  %4454 = vmatprep.subr.bf16.mxu0 %v7045_v33  ;;  %4686 = vmatprep.subr.bf16.mxu1 %v7048_v26  ;;  %v4103_v37 = vld [vmem:[%s7329_s4 + $0x66] sm:$0xff]  ;;  %v3873_v33 = vld [vmem:[%s7329_s4 + $0x75] sm:$0xff] }
 0x1e3   : > { %v2186_v8 = vpop.f32.mrf.mxu0  ;;  %v2418_v51 = vpop.f32.mrf.mxu1  ;;  %4041 = vmatmul.mubr.bf16.gmra.mxu0 %v3878_v31  ;;  %4273 = vmatmul.mubr.bf16.gmra.mxu1 %v4110_v44  ;;  %v4111_v39 = vpack.c.bf16 %v4104_v19, %v4103_v37  ;;  %v4105_v21 = vld [vmem:[%s7329_s4 + $0x76] sm:$0xff]  ;;  %v4106_v31 = vld [vmem:[%s7329_s4 + $0x7e] sm:$0xff] }
 0x1e4   : > { %v7963_v5 = vadd.f32 %v2414_v55, %v2226_v35  ;;  %v2227_v2 = vadd.f32 %v2186_v8, %v7864_v45  ;;  %4050 = vmatprep.mubr.bf16.mxu0 %v7247_v0  ;;  %4282 = vmatprep.mubr.bf16.mxu1 %v7247_v0  ;;  %v7057_v45 = vld [vmem:[#allocation2 + $0xa74] ss:$8 sps:$4 sm:$0xff]   ;;  %v4112_v35 = vpack.c.bf16 %v4106_v31, %v4105_v21 }
 0x1e5   : > { %v2188_v41 = vpop.f32.mrf.mxu0  ;;  %v2420_v15 = vpop.f32.mrf.mxu1  ;;  %4455 = vmatpush1.bf16.msra.mxu0 %v7043_v62  ;;  %4687 = vmatpush1.bf16.msra.mxu1 %v7046_v25  ;;  %v3880_v25 = vpack.c.bf16 %v3874_v34, %v3873_v33  ;;  %v4329_v34 = vld [vmem:[%s7329_s4 + $0x37] sm:$0xff]  ;;  %v4330_v21 = vld [vmem:[%s7329_s4 + $0x3f] sm:$0xff] }
 0x1e6   : > { %v7971_v6 = vadd.f32 %v2418_v51, %v2227_v2  ;;  %v2228_v30 = vadd.f32 %v2188_v41, %v7868_v28  ;;  %4456 = vmatprep.subr.bf16.mxu0 %v7051_v46  ;;  %4688 = vmatprep.subr.bf16.mxu1 %v7054_v9  ;;  %v4559_v41 = vld [vmem:[%s7329_s4 + $0x28] sm:$0xff]  ;;  %v8022_v31 = vld [vmem:[%s7329_s4 + $0x38] sm:$0xff] }
 0x1e7   : > { %v2190_v43 = vpop.f32.mrf.mxu0  ;;  %v2422_v13 = vpop.f32.mrf.mxu1 }
 0x1e8   : > { %v7974_v16 = vadd.f32 %v2420_v15, %v2228_v30  ;;  %v2229_v47 = vadd.f32 %v2190_v43, %v7871_v57  ;;  %v8007_v15 = vld [vmem:[%s7329_s4 + $0x30] sm:$0xff] }
 0x1e9   : > { %v2192_v48 = vpop.f32.mrf.mxu0  ;;  %v2424_v56 = vpop.f32.mrf.mxu1  ;;  %4457 = vmatpush1.bf16.msra.mxu0 %v7049_v1  ;;  %4689 = vmatpush1.bf16.msra.mxu1 %v7052_v23 }
 0x1ea   : > { %v7977_v28 = vadd.f32 %v2422_v13, %v2229_v47  ;;  %v2230_v58 = vadd.f32 %v2192_v48, %v7874_v20  ;;  %4906 = vmatprep.subr.bf16.mxu0 %v7057_v45  ;;  %5138 = vmatprep.subr.bf16.mxu1 %v7060_v42  ;;  %v7058_v47 = vld [vmem:[#allocation2 + $0xaf0] ss:$8 sps:$4 sm:$0xff]  }
 0x1eb   : > { %v2196_v3 = vpop.f32.mrf.mxu0  ;;  %v2428_v50 = vpop.f32.mrf.mxu1  ;;  %4051 = vmatmul.mubr.bf16.gmra.mxu0 %v3879_v10  ;;  %4283 = vmatmul.mubr.bf16.gmra.mxu1 %v4111_v39  ;;  %v7055_v39 = vld [vmem:[#allocation2 + $0xa70] ss:$8 sps:$4 sm:$0xff]  }
 0x1ec   : > { %v7981_v26 = vadd.f32 %v2424_v56, %v2230_v58  ;;  %v2231_v57 = vadd.f32 %v2196_v3, %v7881_v40  ;;  %4060 = vmatprep.mubr.bf16.mxu0 %v7247_v0  ;;  %4292 = vmatprep.mubr.bf16.mxu1 %v7247_v0  ;;  %v7063_v58 = vld [vmem:[#allocation2 + $0xa64] ss:$8 sps:$4 sm:$0xff]  }
 0x1ed   : > { %v2198_v44 = vpop.f32.mrf.mxu0  ;;  %v2430_v20 = vpop.f32.mrf.mxu1  ;;  %v7066_v3 = vld [vmem:[#allocation2 + $0xae4] ss:$8 sps:$4 sm:$0xff]  }
 0x1ee   : > { %v7989_v32 = vadd.f32 %v2428_v50, %v2231_v57  ;;  %v2232_v24 = vadd.f32 %v2198_v44, %v7884_v60  ;;  %v4327_v60 = vld [vmem:[%s7329_s4 + $0x27] sm:$0xff] }
 0x1ef   : > { %v2200_v55 = vpop.f32.mrf.mxu0  ;;  %v2432_v62 = vpop.f32.mrf.mxu1 }
 0x1f0   : > { %v7992_v40 = vadd.f32 %v2430_v20, %v2232_v24  ;;  %v2233_v46 = vadd.f32 %v2200_v55, %v7887_v53  ;;  %v4328_v53 = vld [vmem:[%s7329_s4 + $0x2f] sm:$0xff]  ;;  %v7061_v20 = vld [vmem:[#allocation2 + $0xa60] ss:$8 sps:$4 sm:$0xff]  }
 0x1f1   : > { %v2202_v9 = vpop.f32.mrf.mxu0  ;;  %v2434_v8 = vpop.f32.mrf.mxu1  ;;  %v4339_v43 = vpack.c.bf16 %v4328_v53, %v4327_v60  ;;  %v7064_v24 = vld [vmem:[#allocation2 + $0xae0] ss:$8 sps:$4 sm:$0xff]  }
 0x1f2   : > { %v7995_v51 = vadd.f32 %v2432_v62, %v2233_v46  ;;  %v2234_v4 = vadd.f32 %v2202_v9, %v7891_v36  ;;  %v8028_v55 = vld [vmem:[%s7329_s4 + $0x40] sm:$0xff] }
 0x1f3   : > { %v2206_v2 = vpop.f32.mrf.mxu0  ;;  %v2438_v14 = vpop.f32.mrf.mxu1  ;;  %4061 = vmatmul.mubr.bf16.gmra.mxu0 %v3880_v25  ;;  %4293 = vmatmul.mubr.bf16.gmra.mxu1 %v4112_v35  ;;  %v7069_v25 = vld [vmem:[#allocation2 + $0xa54] ss:$8 sps:$4 sm:$0xff]  }
 0x1f4   : > { %v7999_v37 = vadd.f32 %v2434_v8, %v2234_v4  ;;  %v2235_v19 = vadd.f32 %v2206_v2, %v7899_v29  ;;  %4474 = vmatprep.mubr.bf16.mxu0 %v7247_v0  ;;  %4706 = vmatprep.mubr.bf16.mxu1 %v7247_v0  ;;  %v4571_v29 = vpack.c.bf16 %v8007_v15, %v4559_v41  ;;  %v7072_v35 = vld [vmem:[#allocation2 + $0xad4] ss:$8 sps:$4 sm:$0xff]  }
 0x1f5   : > { %v2208_v1 = vpop.f32.mrf.mxu0  ;;  %v2440_v23 = vpop.f32.mrf.mxu1  ;;  %v4340_v4 = vpack.c.bf16 %v4330_v21, %v4329_v34  ;;  %v4572_v2 = vpack.c.bf16 %v8028_v55, %v8022_v31 }
 0x1f6   : > { %v8009_v36 = vadd.f32 %v2438_v14, %v2235_v19  ;;  %v2236_v30 = vadd.f32 %v2208_v1, %v7902_v38  ;;  %v7067_v19 = vld [vmem:[#allocation2 + $0xa50] ss:$8 sps:$4 sm:$0xff]  }
 0x1f7   : > { %v2210_v45 = vpop.f32.mrf.mxu0  ;;  %v2442_v42 = vpop.f32.mrf.mxu1 }
 0x1f8   : > { %v8013_v13 = vadd.f32 %v2440_v23, %v2236_v30  ;;  %v2237_v10 = vadd.f32 %v2210_v45, %v7905_v27  ;;  %v7075_v30 = vld [vmem:[#allocation2 + $0xa44] ss:$8 sps:$4 sm:$0xff]  }
 0x1f9   : > { %v2212_v48 = vpop.f32.mrf.mxu0  ;;  %v2444_v56 = vpop.f32.mrf.mxu1  ;;  %v7078_v45 = vld [vmem:[#allocation2 + $0xac4] ss:$8 sps:$4 sm:$0xff]  }
 0x1fa   : > { %v8016_v38 = vadd.f32 %v2442_v42, %v2237_v10  ;;  %v2238_v50 = vadd.f32 %v2212_v48, %v7911_v54  ;;  %v8046_v10 = vld [vmem:[%s7329_s4 + $0x48] sm:$0xff]  ;;  %v8052_v48 = vld [vmem:[%s7329_s4 + $0x50] sm:$0xff] }
 0x1fb   : > { %v2620_v33 = vpop.f32.mrf.mxu0  ;;  %v2852_v57 = vpop.f32.mrf.mxu1  ;;  %4475 = vmatmul.mubr.bf16.vlgmr.msra.gmra.mxu0 %v4339_v43  ;;  %4707 = vmatmul.mubr.bf16.vlgmr.msra.gmra.mxu1 %v4571_v29  ;;  %v4331_v43 = vld [vmem:[%s7329_s4 + $0x47] sm:$0xff]  ;;  %v4332_v29 = vld [vmem:[%s7329_s4 + $0x4f] sm:$0xff] }
 0x1fc   : > { %v8024_v27 = vadd.f32 %v2444_v56, %v2238_v50  ;;  %v2679_v44 = vadd.f32 %v2620_v33, %v7915_v17  ;;  %4907 = vmatpush1.bf16.msra.mxu0 %v7055_v39  ;;  %5139 = vmatpush1.bf16.msra.mxu1 %v7058_v47  ;;  %v7073_v56 = vld [vmem:[#allocation2 + $0xa40] ss:$8 sps:$4 sm:$0xff]   ;;  %v7081_v50 = vld [vmem:[#allocation2 + $0xa34] ss:$8 sps:$4 sm:$0xff]  }
 0x1fd   : > { %v2622_v62 = vpop.f32.mrf.mxu0  ;;  %v2854_v54 = vpop.f32.mrf.mxu1  ;;  %4908 = vmatprep.subr.bf16.mxu0 %v7063_v58  ;;  %5140 = vmatprep.subr.bf16.mxu1 %v7066_v3  ;;  %v7084_v33 = vld [vmem:[#allocation2 + $0xab4] ss:$8 sps:$4 sm:$0xff]  }
 0x1fe   : > { %v8030_v46 = vadd.f32 %v2852_v57, %v2679_v44  ;;  %v2680_v9 = vadd.f32 %v2622_v62, %v7920_v63  ;;  %4484 = vmatprep.mubr.bf16.mxu0 %v7247_v0  ;;  %4716 = vmatprep.mubr.bf16.mxu1 %v7247_v0  ;;  %v7070_v63 = vld [vmem:[#allocation2 + $0xad0] ss:$8 sps:$4 sm:$0xff]   ;;  %v4341_v44 = vpack.c.bf16 %v4332_v29, %v4331_v43  ;;  %v7096_v29 = vld [vmem:[#allocation2 + $0xa94] ss:$8 sps:$4 sm:$0xff]  }
 0x1ff   : > { %v2624_v17 = vpop.f32.mrf.mxu0  ;;  %v2856_v8 = vpop.f32.mrf.mxu1 }
 0x200   : > { %v8037_v14 = vadd.f32 %v2854_v54, %v2680_v9  ;;  %v2681_v60 = vadd.f32 %v2624_v17, %v7923_v12  ;;  %4909 = vmatpush1.bf16.msra.mxu0 %v7061_v20  ;;  %5141 = vmatpush1.bf16.msra.mxu1 %v7064_v24  ;;  %v4573_v20 = vpack.c.bf16 %v8052_v48, %v8046_v10 }
 0x201   : > { %v2626_v53 = vpop.f32.mrf.mxu0  ;;  %v2858_v41 = vpop.f32.mrf.mxu1  ;;  %4910 = vmatprep.subr.bf16.mxu0 %v7069_v25  ;;  %5142 = vmatprep.subr.bf16.mxu1 %v7072_v35  ;;  %v7079_v35 = vld [vmem:[#allocation2 + $0xa30] ss:$8 sps:$4 sm:$0xff]  }
 0x202   : > { %v8040_v1 = vadd.f32 %v2856_v8, %v2681_v60  ;;  %v2682_v23 = vadd.f32 %v2626_v53, %v7929_v7  ;;  %v7076_v7 = vld [vmem:[#allocation2 + $0xac0] ss:$8 sps:$4 sm:$0xff]   ;;  %v7087_v8 = vld [vmem:[#allocation2 + $0xa24] ss:$8 sps:$4 sm:$0xff]   ;;  %v4333_v60 = vld [vmem:[%s7329_s4 + $0x57] sm:$0xff] }
 0x203   : > { %v2630_v42 = vpop.f32.mrf.mxu0  ;;  %v2862_v12 = vpop.f32.mrf.mxu1  ;;  %4485 = vmatmul.mubr.bf16.gmra.mxu0 %v4340_v4  ;;  %4717 = vmatmul.mubr.bf16.gmra.mxu1 %v4572_v2  ;;  %v7090_v4 = vld [vmem:[#allocation2 + $0xaa4] ss:$8 sps:$4 sm:$0xff]  }
 0x204   : > { %v8048_v39 = vadd.f32 %v2858_v41, %v2682_v23  ;;  %v2683_v47 = vadd.f32 %v2630_v42, %v7935_v61  ;;  %4911 = vmatpush1.bf16.msra.mxu0 %v7067_v19  ;;  %5143 = vmatpush1.bf16.msra.mxu1 %v7070_v63  ;;  %v4334_v53 = vld [vmem:[%s7329_s4 + $0x5f] sm:$0xff] }
 0x205   : > { %v2632_v58 = vpop.f32.mrf.mxu0  ;;  %v2864_v3 = vpop.f32.mrf.mxu1  ;;  %4494 = vmatprep.mubr.bf16.mxu0 %v7247_v0  ;;  %4726 = vmatprep.mubr.bf16.mxu1 %v7247_v0  ;;  %v8075_v41 = vld [vmem:[%s7329_s4 + $0x58] sm:$0xff]  ;;  %v8078_v23 = vld [vmem:[%s7329_s4 + $0x60] sm:$0xff] }
 0x206   : > { %v8056_v57 = vadd.f32 %v2862_v12, %v2683_v47  ;;  %v2684_v34 = vadd.f32 %v2632_v58, %v7938_v11  ;;  %4912 = vmatprep.subr.bf16.mxu0 %v7075_v30  ;;  %5144 = vmatprep.subr.bf16.mxu1 %v7078_v45  ;;  %v7082_v11 = vld [vmem:[#allocation2 + $0xab0] ss:$8 sps:$4 sm:$0xff]   ;;  %v7085_v45 = vld [vmem:[#allocation2 + $0xa20] ss:$8 sps:$4 sm:$0xff]   ;;  %v4574_v58 = vpack.c.bf16 %v8078_v23, %v8075_v41 }
 0x207   : > { %v2634_v61 = vpop.f32.mrf.mxu0  ;;  %v2866_v21 = vpop.f32.mrf.mxu1  ;;  %v7088_v42 = vld [vmem:[#allocation2 + $0xaa0] ss:$8 sps:$4 sm:$0xff]  }
 0x208   : > { %v8061_v24 = vadd.f32 %v2864_v3, %v2684_v34  ;;  %v2685_v62 = vadd.f32 %v2634_v61, %v7941_v18  ;;  %4913 = vmatpush1.bf16.msra.mxu0 %v7073_v56  ;;  %5145 = vmatpush1.bf16.msra.mxu1 %v7076_v7  ;;  %v4342_v7 = vpack.c.bf16 %v4334_v53, %v4333_v60  ;;  %v7094_v61 = vld [vmem:[#allocation2 + $0xa90] ss:$8 sps:$4 sm:$0xff]   ;;  %v7100_v60 = vld [vmem:[#allocation2 + $0xa80] ss:$8 sps:$4 sm:$0xff]  }
 0x209   : > { %v2636_v54 = vpop.f32.mrf.mxu0  ;;  %v2868_v25 = vpop.f32.mrf.mxu1  ;;  %4914 = vmatprep.subr.bf16.mxu0 %v7081_v50  ;;  %5146 = vmatprep.subr.bf16.mxu1 %v7084_v33 }
 0x20a   : > { %v8064_v9 = vadd.f32 %v2866_v21, %v2685_v62  ;;  %v2686_v17 = vadd.f32 %v2636_v54, %v7945_v59  ;;  %v7102_v62 = vld [vmem:[#allocation2 + $0xa84] ss:$8 sps:$4 sm:$0xff]  }
 0x20b   : > { %v2640_v2 = vpop.f32.mrf.mxu0  ;;  %v2872_v18 = vpop.f32.mrf.mxu1  ;;  %4495 = vmatmul.mubr.bf16.gmra.mxu0 %v4341_v44  ;;  %4727 = vmatmul.mubr.bf16.gmra.mxu1 %v4573_v20  ;;  %v7099_v20 = vld [vmem:[#allocation2 + $0xa04] ss:$8 sps:$4 sm:$0xff]  }
 0x20c   : > { %v8068_v19 = vadd.f32 %v2868_v25, %v2686_v17  ;;  %v2687_v63 = vadd.f32 %v2640_v2, %v7953_v52  ;;  %4504 = vmatprep.mubr.bf16.mxu0 %v7247_v0  ;;  %4736 = vmatprep.mubr.bf16.mxu1 %v7247_v0  ;;  %v7093_v52 = vld [vmem:[#allocation2 + $0xa14] ss:$8 sps:$4 sm:$0xff]   ;;  %v4335_v25 = vld [vmem:[%s7329_s4 + $0x67] sm:$0xff] }
 0x20d   : > { %v2642_v59 = vpop.f32.mrf.mxu0  ;;  %v2874_v30 = vpop.f32.mrf.mxu1  ;;  %4915 = vmatpush1.bf16.msra.mxu0 %v7079_v35  ;;  %5147 = vmatpush1.bf16.msra.mxu1 %v7082_v11  ;;  %v4336_v17 = vld [vmem:[%s7329_s4 + $0x6f] sm:$0xff] }
 0x20e   : > { %v8080_v12 = vadd.f32 %v2872_v18, %v2687_v63  ;;  %v2688_v43 = vadd.f32 %v2642_v59, %v7956_v22  ;;  %4916 = vmatprep.subr.bf16.mxu0 %v7087_v8  ;;  %5148 = vmatprep.subr.bf16.mxu1 %v7090_v4  ;;  %v7091_v22 = vld [vmem:[#allocation2 + $0xa10] ss:$8 sps:$4 sm:$0xff]   ;;  %v7097_v18 = vld [vmem:[#allocation2 + $0xa00] ss:$8 sps:$4 sm:$0xff]   ;;  %v7108_v59 = vld [vmem:[#allocation2 + $0xbf4] ss:$8 sps:$4 sm:$0xff]  }
 0x20f   : > { %v2644_v47 = vpop.f32.mrf.mxu0  ;;  %v2876_v56 = vpop.f32.mrf.mxu1  ;;  %v8102_v8 = vld [vmem:[%s7329_s4 + $0x70] sm:$0xff] }
 0x210   : > { %v8085_v3 = vadd.f32 %v2874_v30, %v2688_v43  ;;  %v2689_v50 = vadd.f32 %v2644_v47, %v7959_v49 }
 0x211   : > { %v2646_v33 = vpop.f32.mrf.mxu0  ;;  %v2878_v34 = vpop.f32.mrf.mxu1  ;;  %4917 = vmatpush1.bf16.msra.mxu0 %v7085_v45  ;;  %5149 = vmatpush1.bf16.msra.mxu1 %v7088_v42  ;;  %v4343_v42 = vpack.c.bf16 %v4336_v17, %v4335_v25 }
 0x212   : > { %v8088_v21 = vadd.f32 %v2876_v56, %v2689_v50  ;;  %v2690_v44 = vadd.f32 %v2646_v33, %v7963_v5  ;;  %4918 = vmatprep.subr.bf16.mxu0 %v7093_v52  ;;  %5150 = vmatprep.subr.bf16.mxu1 %v7096_v29  ;;  %v8099_v5 = vld [vmem:[%s7329_s4 + $0x68] sm:$0xff]  ;;  %v4337_v33 = vld [vmem:[%s7329_s4 + $0x77] sm:$0xff] }
 0x213   : > { %v2650_v54 = vpop.f32.mrf.mxu0  ;;  %v2882_v49 = vpop.f32.mrf.mxu1  ;;  %4505 = vmatmul.mubr.bf16.gmra.mxu0 %v4342_v7  ;;  %4737 = vmatmul.mubr.bf16.gmra.mxu1 %v4574_v58  ;;  %v4575_v43 = vpack.c.bf16 %v8102_v8, %v8099_v5 }
 0x214   : > { %v8092_v35 = vadd.f32 %v2878_v34, %v2690_v44  ;;  %v2691_v11 = vadd.f32 %v2650_v54, %v7971_v6  ;;  %4514 = vmatprep.mubr.bf16.mxu0 %v7247_v0  ;;  %4746 = vmatprep.mubr.bf16.mxu1 %v7247_v0  ;;  %v7105_v6 = vld [vmem:[#allocation2 + $0xb74] ss:$8 sps:$4 sm:$0xff]   ;;  %v8126_v44 = vld [vmem:[%s7329_s4 + $0x80] sm:$0xff] }
 0x215   : > { %v2652_v4 = vpop.f32.mrf.mxu0  ;;  %v2884_v2 = vpop.f32.mrf.mxu1  ;;  %4919 = vmatpush1.bf16.msra.mxu0 %v7091_v22  ;;  %5151 = vmatpush1.bf16.msra.mxu1 %v7094_v61  ;;  %v4338_v22 = vld [vmem:[%s7329_s4 + $0x7f] sm:$0xff] }
 0x216   : > { %v8104_v63 = vadd.f32 %v2882_v49, %v2691_v11  ;;  %v2692_v53 = vadd.f32 %v2652_v4, %v7974_v16  ;;  %4920 = vmatprep.subr.bf16.mxu0 %v7099_v20  ;;  %5152 = vmatprep.subr.bf16.mxu1 %v7102_v62  ;;  %v8123_v61 = vld [vmem:[%s7329_s4 + $0x78] sm:$0xff]  ;;  %v4344_v11 = vpack.c.bf16 %v4338_v22, %v4337_v33 }
 0x217   : > { %v2654_v30 = vpop.f32.mrf.mxu0  ;;  %v2886_v45 = vpop.f32.mrf.mxu1  ;;  %v7103_v33 = vld [vmem:[#allocation2 + $0xb70] ss:$8 sps:$4 sm:$0xff]  }
 0x218   : > { %v8109_v52 = vadd.f32 %v2884_v2, %v2692_v53  ;;  %v2693_v29 = vadd.f32 %v2654_v30, %v7977_v28 }
 0x219   : > { %v2656_v47 = vpop.f32.mrf.mxu0  ;;  %v2888_v56 = vpop.f32.mrf.mxu1  ;;  %4921 = vmatpush1.bf16.msra.mxu0 %v7097_v18  ;;  %5153 = vmatpush1.bf16.msra.mxu1 %v7100_v60 }
 0x21a   : > { %v8112_v16 = vadd.f32 %v2886_v45, %v2693_v29  ;;  %v2694_v7 = vadd.f32 %v2656_v47, %v7981_v26  ;;  %5370 = vmatprep.subr.bf16.mxu0 %v7105_v6  ;;  %5602 = vmatprep.subr.bf16.mxu1 %v7108_v59  ;;  %v5023_v45 = vld [vmem:[%s7329_s4 + $0x31] sm:$0xff] }
 0x21b   : > { %v2660_v58 = vpop.f32.mrf.mxu0  ;;  %v2892_v50 = vpop.f32.mrf.mxu1  ;;  %4515 = vmatmul.mubr.bf16.gmra.mxu0 %v4343_v42  ;;  %4747 = vmatmul.mubr.bf16.gmra.mxu1 %v4575_v43 }
 0x21c   : > { %v8116_v34 = vadd.f32 %v2888_v56, %v2694_v7  ;;  %v2695_v28 = vadd.f32 %v2660_v58, %v7989_v32  ;;  %4524 = vmatprep.mubr.bf16.mxu0 %v7247_v0  ;;  %4756 = vmatprep.mubr.bf16.mxu1 %v7247_v0  ;;  %v4576_v32 = vpack.c.bf16 %v8126_v44, %v8123_v61 }
 0x21d   : > { %v2662_v26 = vpop.f32.mrf.mxu0  ;;  %v2894_v20 = vpop.f32.mrf.mxu1  ;;  %v4803_v7 = vpack.c.bf16 %v8022_v31, %v8007_v15  ;;  %v5025_v15 = vld [vmem:[%s7329_s4 + $0x41] sm:$0xff] }
 0x21e   : > { %v8128_v62 = vadd.f32 %v2892_v50, %v2695_v28  ;;  %v2696_v54 = vadd.f32 %v2662_v26, %v7992_v40  ;;  %v7106_v28 = vld [vmem:[#allocation2 + $0xbf0] ss:$8 sps:$4 sm:$0xff]  }
 0x21f   : > { %v2664_v49 = vpop.f32.mrf.mxu0  ;;  %v2896_v25 = vpop.f32.mrf.mxu1 }
 0x220   : > { %v8133_v17 = vadd.f32 %v2894_v20, %v2696_v54  ;;  %v2697_v4 = vadd.f32 %v2664_v49, %v7995_v51  ;;  %v5024_v51 = vld [vmem:[%s7329_s4 + $0x39] sm:$0xff]  ;;  %v7111_v20 = vld [vmem:[#allocation2 + $0xb64] ss:$8 sps:$4 sm:$0xff]  }
 0x221   : > { %v2666_v2 = vpop.f32.mrf.mxu0  ;;  %v2898_v18 = vpop.f32.mrf.mxu1  ;;  %v5035_v58 = vpack.c.bf16 %v5024_v51, %v5023_v45  ;;  %v7114_v54 = vld [vmem:[#allocation2 + $0xbe4] ss:$8 sps:$4 sm:$0xff]   ;;  %v4804_v51 = vpack.c.bf16 %v8046_v10, %v8028_v55 }
 0x222   : > { %v8136_v60 = vadd.f32 %v2896_v25, %v2697_v4  ;;  %v2698_v53 = vadd.f32 %v2666_v2, %v7999_v37  ;;  %v7112_v4 = vld [vmem:[#allocation2 + $0xbe0] ss:$8 sps:$4 sm:$0xff]   ;;  %v7123_v55 = vld [vmem:[#allocation2 + $0xb44] ss:$8 sps:$4 sm:$0xff]  }
 0x223   : > { %v2670_v6 = vpop.f32.mrf.mxu0  ;;  %v2902_v40 = vpop.f32.mrf.mxu1  ;;  %4525 = vmatmul.mubr.bf16.gmra.mxu0 %v4344_v11  ;;  %4757 = vmatmul.mubr.bf16.gmra.mxu1 %v4576_v32  ;;  %v7109_v32 = vld [vmem:[#allocation2 + $0xb60] ss:$8 sps:$4 sm:$0xff]   ;;  %v7126_v10 = vld [vmem:[#allocation2 + $0xbc4] ss:$8 sps:$4 sm:$0xff]  }
 0x224   : > { %v8139_v59 = vadd.f32 %v2898_v18, %v2698_v53  ;;  %v2699_v30 = vadd.f32 %v2670_v6, %v8009_v36  ;;  %4938 = vmatprep.mubr.bf16.mxu0 %v7247_v0  ;;  %5170 = vmatprep.mubr.bf16.mxu1 %v7247_v0  ;;  %v5026_v2 = vld [vmem:[%s7329_s4 + $0x49] sm:$0xff]  ;;  %v7117_v6 = vld [vmem:[#allocation2 + $0xb54] ss:$8 sps:$4 sm:$0xff]  }
 0x225   : > { %v2672_v42 = vpop.f32.mrf.mxu0  ;;  %v2904_v43 = vpop.f32.mrf.mxu1 }
 0x226   : > { %v8146_v29 = vadd.f32 %v2902_v40, %v2699_v30  ;;  %v2700_v37 = vadd.f32 %v2672_v42, %v8013_v13  ;;  %v5036_v42 = vpack.c.bf16 %v5026_v2, %v5025_v15  ;;  %v7132_v15 = vld [vmem:[#allocation2 + $0xbb4] ss:$8 sps:$4 sm:$0xff]   ;;  %v4805_v2 = vpack.c.bf16 %v8075_v41, %v8052_v48  ;;  %v7135_v48 = vld [vmem:[#allocation2 + $0xb24] ss:$8 sps:$4 sm:$0xff]  }
 0x227   : > { %v2674_v47 = vpop.f32.mrf.mxu0  ;;  %v2906_v56 = vpop.f32.mrf.mxu1  ;;  %v7138_v41 = vld [vmem:[#allocation2 + $0xba4] ss:$8 sps:$4 sm:$0xff]  }
 0x228   : > { %v8151_v36 = vadd.f32 %v2904_v43, %v2700_v37  ;;  %v2701_v50 = vadd.f32 %v2674_v47, %v8016_v38  ;;  %v7115_v47 = vld [vmem:[#allocation2 + $0xb50] ss:$8 sps:$4 sm:$0xff]  }
 0x229   : > { %v2676_v22 = vpop.f32.mrf.mxu0  ;;  %v2908_v26 = vpop.f32.mrf.mxu1 }
 0x22a   : > { %v8154_v49 = vadd.f32 %v2906_v56, %v2701_v50  ;;  %v2702_v13 = vadd.f32 %v2676_v22, %v8024_v27  ;;  %v7120_v27 = vld [vmem:[#allocation2 + $0xbd4] ss:$8 sps:$4 sm:$0xff]   ;;  %v7118_v56 = vld [vmem:[#allocation2 + $0xbd0] ss:$8 sps:$4 sm:$0xff]  }
 0x22b   : > { %v3084_v25 = vpop.f32.mrf.mxu0  ;;  %v3316_v11 = vpop.f32.mrf.mxu1  ;;  %4939 = vmatmul.mubr.bf16.vlgmr.msra.gmra.mxu0 %v4803_v7  ;;  %5171 = vmatmul.mubr.bf16.vlgmr.msra.gmra.mxu1 %v5035_v58 }
 0x22c   : > { %v8158_v31 = vadd.f32 %v2908_v26, %v2702_v13  ;;  %v3143_v38 = vadd.f32 %v3084_v25, %v8030_v46  ;;  %5371 = vmatpush1.bf16.msra.mxu0 %v7103_v33  ;;  %5603 = vmatpush1.bf16.msra.mxu1 %v7106_v28  ;;  %v7124_v13 = vld [vmem:[#allocation2 + $0xbc0] ss:$8 sps:$4 sm:$0xff]  }
 0x22d   : > { %v3086_v18 = vpop.f32.mrf.mxu0  ;;  %v3318_v53 = vpop.f32.mrf.mxu1  ;;  %5372 = vmatprep.subr.bf16.mxu0 %v7111_v20  ;;  %5604 = vmatprep.subr.bf16.mxu1 %v7114_v54  ;;  %v5028_v20 = vld [vmem:[%s7329_s4 + $0x59] sm:$0xff] }
 0x22e   : > { %v8162_v40 = vadd.f32 %v3316_v11, %v3143_v38  ;;  %v3144_v30 = vadd.f32 %v3086_v18, %v8037_v14  ;;  %4948 = vmatprep.mubr.bf16.mxu0 %v7247_v0  ;;  %5180 = vmatprep.mubr.bf16.mxu1 %v7247_v0  ;;  %v7121_v54 = vld [vmem:[#allocation2 + $0xb40] ss:$8 sps:$4 sm:$0xff]  }
 0x22f   : > { %v3088_v46 = vpop.f32.mrf.mxu0  ;;  %v3320_v45 = vpop.f32.mrf.mxu1 }
 0x230   : > { %v8169_v43 = vadd.f32 %v3318_v53, %v3144_v30  ;;  %v3145_v37 = vadd.f32 %v3088_v46, %v8040_v1  ;;  %5373 = vmatpush1.bf16.msra.mxu0 %v7109_v32  ;;  %5605 = vmatpush1.bf16.msra.mxu1 %v7112_v4  ;;  %v5027_v1 = vld [vmem:[%s7329_s4 + $0x51] sm:$0xff] }
 0x231   : > { %v3090_v14 = vpop.f32.mrf.mxu0  ;;  %v3322_v7 = vpop.f32.mrf.mxu1  ;;  %5374 = vmatprep.subr.bf16.mxu0 %v7117_v6  ;;  %5606 = vmatprep.subr.bf16.mxu1 %v7120_v27  ;;  %v5037_v18 = vpack.c.bf16 %v5028_v20, %v5027_v1  ;;  %v7127_v46 = vld [vmem:[#allocation2 + $0xb30] ss:$8 sps:$4 sm:$0xff]   ;;  %v4806_v20 = vpack.c.bf16 %v8099_v5, %v8078_v23  ;;  %v7147_v23 = vld [vmem:[#allocation2 + $0xb04] ss:$8 sps:$4 sm:$0xff]  }
 0x232   : > { %v8172_v58 = vadd.f32 %v3320_v45, %v3145_v37  ;;  %v3146_v50 = vadd.f32 %v3090_v14, %v8048_v39  ;;  %v7129_v39 = vld [vmem:[#allocation2 + $0xb34] ss:$8 sps:$4 sm:$0xff]   ;;  %v5030_v14 = vld [vmem:[%s7329_s4 + $0x69] sm:$0xff] }
 0x233   : > { %v3094_v33 = vpop.f32.mrf.mxu0  ;;  %v3326_v28 = vpop.f32.mrf.mxu1  ;;  %4949 = vmatmul.mubr.bf16.gmra.mxu0 %v4804_v51  ;;  %5181 = vmatmul.mubr.bf16.gmra.mxu1 %v5036_v42  ;;  %v7150_v5 = vld [vmem:[#allocation2 + $0xb84] ss:$8 sps:$4 sm:$0xff]  }
 0x234   : > { %v8176_v22 = vadd.f32 %v3322_v7, %v3146_v50  ;;  %v3147_v26 = vadd.f32 %v3094_v33, %v8056_v57  ;;  %5375 = vmatpush1.bf16.msra.mxu0 %v7115_v47  ;;  %5607 = vmatpush1.bf16.msra.mxu1 %v7118_v56  ;;  %v5029_v56 = vld [vmem:[%s7329_s4 + $0x61] sm:$0xff] }
 0x235   : > { %v3096_v25 = vpop.f32.mrf.mxu0  ;;  %v3328_v11 = vpop.f32.mrf.mxu1  ;;  %4958 = vmatprep.mubr.bf16.mxu0 %v7247_v0  ;;  %5190 = vmatprep.mubr.bf16.mxu1 %v7247_v0 }
 0x236   : > { %v8182_v38 = vadd.f32 %v3326_v28, %v3147_v26  ;;  %v3148_v32 = vadd.f32 %v3096_v25, %v8061_v24  ;;  %5376 = vmatprep.subr.bf16.mxu0 %v7123_v55  ;;  %5608 = vmatprep.subr.bf16.mxu1 %v7126_v10  ;;  %v7130_v24 = vld [vmem:[#allocation2 + $0xbb0] ss:$8 sps:$4 sm:$0xff]   ;;  %v7136_v55 = vld [vmem:[#allocation2 + $0xba0] ss:$8 sps:$4 sm:$0xff]   ;;  %v7141_v28 = vld [vmem:[#allocation2 + $0xb14] ss:$8 sps:$4 sm:$0xff]  }
 0x237   : > { %v3098_v57 = vpop.f32.mrf.mxu0  ;;  %v3330_v4 = vpop.f32.mrf.mxu1 }
 0x238   : > { %v8187_v53 = vadd.f32 %v3328_v11, %v3148_v32  ;;  %v3149_v6 = vadd.f32 %v3098_v57, %v8064_v9  ;;  %5377 = vmatpush1.bf16.msra.mxu0 %v7121_v54  ;;  %5609 = vmatpush1.bf16.msra.mxu1 %v7124_v13  ;;  %v5038_v54 = vpack.c.bf16 %v5030_v14, %v5029_v56 }
 0x239   : > { %v3100_v27 = vpop.f32.mrf.mxu0  ;;  %v3332_v30 = vpop.f32.mrf.mxu1  ;;  %5378 = vmatprep.subr.bf16.mxu0 %v7129_v39  ;;  %5610 = vmatprep.subr.bf16.mxu1 %v7132_v15  ;;  %v7139_v15 = vld [vmem:[#allocation2 + $0xb10] ss:$8 sps:$4 sm:$0xff]  }
 0x23a   : > { %v8190_v45 = vadd.f32 %v3330_v4, %v3149_v6  ;;  %v3150_v51 = vadd.f32 %v3100_v27, %v8068_v19  ;;  %v7133_v19 = vld [vmem:[#allocation2 + $0xb20] ss:$8 sps:$4 sm:$0xff]   ;;  %v5031_v6 = vld [vmem:[%s7329_s4 + $0x71] sm:$0xff] }
 0x23b   : > { %v3104_v42 = vpop.f32.mrf.mxu0  ;;  %v3336_v37 = vpop.f32.mrf.mxu1  ;;  %4959 = vmatmul.mubr.bf16.gmra.mxu0 %v4805_v2  ;;  %5191 = vmatmul.mubr.bf16.gmra.mxu1 %v5037_v18  ;;  %v5032_v27 = vld [vmem:[%s7329_s4 + $0x79] sm:$0xff] }
 0x23c   : > { %v8193_v9 = vadd.f32 %v3332_v30, %v3150_v51  ;;  %v3151_v47 = vadd.f32 %v3104_v42, %v8080_v12  ;;  %4968 = vmatprep.mubr.bf16.mxu0 %v7247_v0  ;;  %5200 = vmatprep.mubr.bf16.mxu1 %v7247_v0  ;;  %v7144_v12 = vld [vmem:[#allocation2 + $0xb94] ss:$8 sps:$4 sm:$0xff]  }
 0x23d   : > { %v3106_v7 = vpop.f32.mrf.mxu0  ;;  %v3338_v50 = vpop.f32.mrf.mxu1  ;;  %5379 = vmatpush1.bf16.msra.mxu0 %v7127_v46  ;;  %5611 = vmatpush1.bf16.msra.mxu1 %v7130_v24  ;;  %v7145_v46 = vld [vmem:[#allocation2 + $0xb00] ss:$8 sps:$4 sm:$0xff]  }
 0x23e   : > { %v8200_v10 = vadd.f32 %v3336_v37, %v3151_v47  ;;  %v3152_v33 = vadd.f32 %v3106_v7, %v8085_v3  ;;  %5380 = vmatprep.subr.bf16.mxu0 %v7135_v48  ;;  %5612 = vmatprep.subr.bf16.mxu1 %v7138_v41  ;;  %v7142_v3 = vld [vmem:[#allocation2 + $0xb90] ss:$8 sps:$4 sm:$0xff]   ;;  %v7148_v24 = vld [vmem:[#allocation2 + $0xb80] ss:$8 sps:$4 sm:$0xff]   ;;  %v7153_v41 = vld [vmem:[#allocation2 + $0xc74] ss:$8 sps:$4 sm:$0xff]   ;;  %v4807_v37 = vpack.c.bf16 %v8123_v61, %v8102_v8 }
 0x23f   : > { %v3108_v1 = vpop.f32.mrf.mxu0  ;;  %v3340_v26 = vpop.f32.mrf.mxu1  ;;  %v5039_v47 = vpack.c.bf16 %v5032_v27, %v5031_v6  ;;  %v5487_v6 = vld [vmem:[%s7329_s4 + $0x33] sm:$0xff]  ;;  %v5488_v27 = vld [vmem:[%s7329_s4 + $0x3b] sm:$0xff] }
 0x240   : > { %v8205_v13 = vadd.f32 %v3338_v50, %v3152_v33  ;;  %v3153_v25 = vadd.f32 %v3108_v1, %v8088_v21  ;;  %v4802_v33 = vld [vmem:[%s7329_s4 + $0x88] sm:$0xff] }
 0x241   : > { %v3110_v11 = vpop.f32.mrf.mxu0  ;;  %v3342_v39 = vpop.f32.mrf.mxu1  ;;  %5381 = vmatpush1.bf16.msra.mxu0 %v7133_v19  ;;  %5613 = vmatpush1.bf16.msra.mxu1 %v7136_v55 }
 0x242   : > { %v8208_v32 = vadd.f32 %v3340_v26, %v3153_v25  ;;  %v3154_v57 = vadd.f32 %v3110_v11, %v8092_v35  ;;  %5382 = vmatprep.subr.bf16.mxu0 %v7141_v28  ;;  %5614 = vmatprep.subr.bf16.mxu1 %v7144_v12  ;;  %v5033_v28 = vld [vmem:[%s7329_s4 + $0x81] sm:$0xff]  ;;  %v5034_v12 = vld [vmem:[%s7329_s4 + $0x89] sm:$0xff]  ;;  %v4808_v11 = vpack.c.bf16 %v4802_v33, %v8126_v44 }
 0x243   : > { %v3114_v4 = vpop.f32.mrf.mxu0  ;;  %v3346_v2 = vpop.f32.mrf.mxu1  ;;  %4969 = vmatmul.mubr.bf16.gmra.mxu0 %v4806_v20  ;;  %5201 = vmatmul.mubr.bf16.gmra.mxu1 %v5038_v54 }
 0x244   : > { %v8211_v21 = vadd.f32 %v3342_v39, %v3154_v57  ;;  %v3155_v18 = vadd.f32 %v3114_v4, %v8104_v63  ;;  %4978 = vmatprep.mubr.bf16.mxu0 %v7247_v0  ;;  %5210 = vmatprep.mubr.bf16.mxu1 %v7247_v0  ;;  %v5040_v39 = vpack.c.bf16 %v5034_v12, %v5033_v28  ;;  %v7154_v28 = vld [vmem:[#allocation2 + $0xc60] ss:$8 sps:$4 sm:$0xff]  }
 0x245   : > { %v3116_v30 = vpop.f32.mrf.mxu0  ;;  %v3348_v35 = vpop.f32.mrf.mxu1  ;;  %5383 = vmatpush1.bf16.msra.mxu0 %v7139_v15  ;;  %5615 = vmatpush1.bf16.msra.mxu1 %v7142_v3  ;;  %v5489_v12 = vld [vmem:[%s7329_s4 + $0x43] sm:$0xff] }
 0x246   : > { %v8218_v51 = vadd.f32 %v3346_v2, %v3155_v18  ;;  %v3156_v48 = vadd.f32 %v3116_v30, %v8109_v52  ;;  %5384 = vmatprep.subr.bf16.mxu0 %v7147_v23  ;;  %5616 = vmatprep.subr.bf16.mxu1 %v7150_v5  ;;  %v5255_v2 = vld [vmem:[%s7329_s4 + $0x32] sm:$0xff] }
 0x247   : > { %v3118_v63 = vpop.f32.mrf.mxu0  ;;  %v3350_v42 = vpop.f32.mrf.mxu1 }
 0x248   : > { %v8223_v56 = vadd.f32 %v3348_v35, %v3156_v48  ;;  %v3157_v14 = vadd.f32 %v3118_v63, %v8112_v16  ;;  %v5499_v63 = vpack.c.bf16 %v5488_v27, %v5487_v6  ;;  %v5260_v27 = vld [vmem:[%s7329_s4 + $0x5a] sm:$0xff] }
 0x249   : > { %v3120_v7 = vpop.f32.mrf.mxu0  ;;  %v3352_v50 = vpop.f32.mrf.mxu1  ;;  %5385 = vmatpush1.bf16.msra.mxu0 %v7145_v46  ;;  %5617 = vmatpush1.bf16.msra.mxu1 %v7148_v24 }
 0x24a   : > { %v8226_v52 = vadd.f32 %v3350_v42, %v3157_v14  ;;  %v3158_v19 = vadd.f32 %v3120_v7, %v8116_v34  ;;  %5834 = vmatprep.subr.bf16.mxu0 %v7153_v41  ;;  %6525 = vmatprep.subr.bf16.mxu1 %v7153_v41  ;;  %v7156_v7 = vld [vmem:[#allocation2 + $0xc64] ss:$8 sps:$4 sm:$0xff]  }
 0x24b   : > { %v3124_v55 = vpop.f32.mrf.mxu0  ;;  %v3356_v8 = vpop.f32.mrf.mxu1  ;;  %4979 = vmatmul.mubr.bf16.gmra.mxu0 %v4807_v37  ;;  %5211 = vmatmul.mubr.bf16.gmra.mxu1 %v5039_v47  ;;  %v7151_v37 = vld [vmem:[#allocation2 + $0xc70] ss:$8 sps:$4 sm:$0xff]  }
 0x24c   : > { %v8229_v61 = vadd.f32 %v3352_v50, %v3158_v19  ;;  %v3159_v16 = vadd.f32 %v3124_v55, %v8128_v62  ;;  %4988 = vmatprep.mubr.bf16.mxu0 %v7247_v0  ;;  %5220 = vmatprep.mubr.bf16.mxu1 %v7247_v0 }
 0x24d   : > { %v3126_v1 = vpop.f32.mrf.mxu0  ;;  %v3358_v26 = vpop.f32.mrf.mxu1 }
 0x24e   : > { %v8237_v34 = vadd.f32 %v3356_v8, %v3159_v16  ;;  %v3160_v20 = vadd.f32 %v3126_v1, %v8133_v17  ;;  %v5257_v8 = vld [vmem:[%s7329_s4 + $0x42] sm:$0xff]  ;;  %v5258_v16 = vld [vmem:[%s7329_s4 + $0x4a] sm:$0xff] }
 0x24f   : > { %v3128_v54 = vpop.f32.mrf.mxu0  ;;  %v3360_v25 = vpop.f32.mrf.mxu1  ;;  %v5490_v1 = vld [vmem:[%s7329_s4 + $0x4b] sm:$0xff] }
 0x250   : > { %v8241_v62 = vadd.f32 %v3358_v26, %v3160_v20  ;;  %v3161_v15 = vadd.f32 %v3128_v54, %v8136_v60  ;;  %v5256_v60 = vld [vmem:[%s7329_s4 + $0x3a] sm:$0xff] }
 0x251   : > { %v3130_v3 = vpop.f32.mrf.mxu0  ;;  %v3362_v57 = vpop.f32.mrf.mxu1  ;;  %v5267_v41 = vpack.c.bf16 %v5256_v60, %v5255_v2 }
 0x252   : > { %v8244_v23 = vadd.f32 %v3360_v25, %v3161_v15  ;;  %v3162_v5 = vadd.f32 %v3130_v3, %v8139_v59  ;;  %v5500_v15 = vpack.c.bf16 %v5490_v1, %v5489_v12 }
 0x253   : > { %v3134_v4 = vpop.f32.mrf.mxu0  ;;  %v3366_v17 = vpop.f32.mrf.mxu1  ;;  %4989 = vmatmul.mubr.bf16.gmra.mxu0 %v4808_v11  ;;  %5221 = vmatmul.mubr.bf16.gmra.mxu1 %v5040_v39  ;;  %v5268_v39 = vpack.c.bf16 %v5258_v16, %v5257_v8  ;;  %v7163_v16 = vld [vmem:[#allocation2 + $0xc30] ss:$8 sps:$4 sm:$0xff]  }
 0x254   : > { %v8248_v44 = vadd.f32 %v3362_v57, %v3162_v5  ;;  %v3163_v18 = vadd.f32 %v3134_v4, %v8146_v29  ;;  %5402 = vmatprep.mubr.bf16.mxu0 %v7247_v0  ;;  %5634 = vmatprep.mubr.bf16.mxu1 %v7247_v0  ;;  %v7157_v5 = vld [vmem:[#allocation2 + $0xc50] ss:$8 sps:$4 sm:$0xff]  }
 0x255   : > { %v3136_v30 = vpop.f32.mrf.mxu0  ;;  %v3368_v35 = vpop.f32.mrf.mxu1 }
 0x256   : > { %v8256_v46 = vadd.f32 %v3366_v17, %v3163_v18  ;;  %v3164_v59 = vadd.f32 %v3136_v30, %v8151_v36  ;;  %v7162_v18 = vld [vmem:[#allocation2 + $0xc44] ss:$8 sps:$4 sm:$0xff]  }
 0x257   : > { %v3138_v24 = vpop.f32.mrf.mxu0  ;;  %v3370_v48 = vpop.f32.mrf.mxu1 }
 0x258   : > { %v8259_v29 = vadd.f32 %v3368_v35, %v3164_v59  ;;  %v3165_v42 = vadd.f32 %v3138_v24, %v8154_v49  ;;  %v5491_v59 = vld [vmem:[%s7329_s4 + $0x53] sm:$0xff]  ;;  %v5492_v24 = vld [vmem:[%s7329_s4 + $0x5b] sm:$0xff] }
 0x259   : > { %v3140_v47 = vpop.f32.mrf.mxu0  ;;  %v3372_v14 = vpop.f32.mrf.mxu1 }
 0x25a   : > { %v8262_v50 = vadd.f32 %v3370_v48, %v3165_v42  ;;  %v3166_v36 = vadd.f32 %v3140_v47, %v8158_v31  ;;  %v7159_v31 = vld [vmem:[#allocation2 + $0xc54] ss:$8 sps:$4 sm:$0xff]   ;;  %v7160_v48 = vld [vmem:[#allocation2 + $0xc40] ss:$8 sps:$4 sm:$0xff]  }
 0x25b   : > { %v3548_v19 = vpop.f32.mrf.mxu0  ;;  %v3780_v55 = vpop.f32.mrf.mxu1  ;;  %5403 = vmatmul.mubr.bf16.vlgmr.msra.gmra.mxu0 %v5267_v41  ;;  %5635 = vmatmul.mubr.bf16.vlgmr.msra.gmra.mxu1 %v5499_v63 }
 0x25c   : > { %v8267_v33 = vadd.f32 %v3372_v14, %v3166_v36  ;;  %v3607_v49 = vadd.f32 %v3548_v19, %v8162_v40  ;;  %5835 = vmatpush1.bf16.msra.mxu0 %v7151_v37  ;;  %6533 = vmatpush1.bf16.msra.mxu1 %v7151_v37 }
 0x25d   : > { %v3550_v26 = vpop.f32.mrf.mxu0  ;;  %v3782_v20 = vpop.f32.mrf.mxu1  ;;  %5836 = vmatprep.subr.bf16.mxu0 %v7156_v7  ;;  %6526 = vmatprep.subr.bf16.mxu1 %v7156_v7  ;;  %v5501_v7 = vpack.c.bf16 %v5492_v24, %v5491_v59  ;;  %v7174_v59 = vld [vmem:[#allocation2 + $0xc04] ss:$8 sps:$4 sm:$0xff]  }
 0x25e   : > { %v8272_v54 = vadd.f32 %v3780_v55, %v3607_v49  ;;  %v3608_v25 = vadd.f32 %v3550_v26, %v8169_v43  ;;  %5412 = vmatprep.mubr.bf16.mxu0 %v7247_v0  ;;  %5644 = vmatprep.mubr.bf16.mxu1 %v7247_v0 }
 0x25f   : > { %v3552_v11 = vpop.f32.mrf.mxu0  ;;  %v3784_v40 = vpop.f32.mrf.mxu1 }
 0x260   : > { %v8277_v3 = vadd.f32 %v3782_v20, %v3608_v25  ;;  %v3609_v57 = vadd.f32 %v3552_v11, %v8172_v58  ;;  %5837 = vmatpush1.bf16.msra.mxu0 %v7154_v28  ;;  %6534 = vmatpush1.bf16.msra.mxu1 %v7154_v28  ;;  %v5259_v58 = vld [vmem:[%s7329_s4 + $0x52] sm:$0xff]  ;;  %v7168_v28 = vld [vmem:[#allocation2 + $0xc24] ss:$8 sps:$4 sm:$0xff]  }
 0x261   : > { %v3554_v4 = vpop.f32.mrf.mxu0  ;;  %v3786_v17 = vpop.f32.mrf.mxu1  ;;  %5838 = vmatprep.subr.bf16.mxu0 %v7159_v31  ;;  %6527 = vmatprep.subr.bf16.mxu1 %v7159_v31  ;;  %v5269_v14 = vpack.c.bf16 %v5260_v27, %v5259_v58  ;;  %v5262_v31 = vld [vmem:[%s7329_s4 + $0x6a] sm:$0xff] }
 0x262   : > { %v8280_v43 = vadd.f32 %v3784_v40, %v3609_v57  ;;  %v3610_v2 = vadd.f32 %v3554_v4, %v8176_v22  ;;  %v7165_v22 = vld [vmem:[#allocation2 + $0xc34] ss:$8 sps:$4 sm:$0xff]   ;;  %v5493_v25 = vld [vmem:[%s7329_s4 + $0x63] sm:$0xff]  ;;  %v5494_v11 = vld [vmem:[%s7329_s4 + $0x6b] sm:$0xff] }
 0x263   : > { %v3558_v60 = vpop.f32.mrf.mxu0  ;;  %v3790_v6 = vpop.f32.mrf.mxu1  ;;  %5413 = vmatmul.mubr.bf16.gmra.mxu0 %v5268_v39  ;;  %5645 = vmatmul.mubr.bf16.gmra.mxu1 %v5500_v15  ;;  %v7169_v27 = vld [vmem:[#allocation2 + $0xc10] ss:$8 sps:$4 sm:$0xff]  }
 0x264   : > { %v8285_v30 = vadd.f32 %v3786_v17, %v3610_v2  ;;  %v3611_v35 = vadd.f32 %v3558_v60, %v8182_v38  ;;  %5839 = vmatpush1.bf16.msra.mxu0 %v7157_v5  ;;  %6535 = vmatpush1.bf16.msra.mxu1 %v7157_v5  ;;  %v7171_v5 = vld [vmem:[#allocation2 + $0xc14] ss:$8 sps:$4 sm:$0xff]   ;;  %v5502_v2 = vpack.c.bf16 %v5494_v11, %v5493_v25  ;;  %v5265_v25 = vld [vmem:[%s7329_s4 + $0x82] sm:$0xff] }
 0x265   : > { %v3560_v41 = vpop.f32.mrf.mxu0  ;;  %v3792_v63 = vpop.f32.mrf.mxu1  ;;  %5422 = vmatprep.mubr.bf16.mxu0 %v7247_v0  ;;  %5654 = vmatprep.mubr.bf16.mxu1 %v7247_v0 }
 0x266   : > { %v8292_v42 = vadd.f32 %v3790_v6, %v3611_v35  ;;  %v3612_v37 = vadd.f32 %v3560_v41, %v8187_v53  ;;  %5840 = vmatprep.subr.bf16.mxu0 %v7162_v18  ;;  %6528 = vmatprep.subr.bf16.mxu1 %v7162_v18 }
 0x267   : > { %v3562_v47 = vpop.f32.mrf.mxu0  ;;  %v3794_v38 = vpop.f32.mrf.mxu1 }
 0x268   : > { %v8295_v36 = vadd.f32 %v3792_v63, %v3612_v37  ;;  %v3613_v19 = vadd.f32 %v3562_v47, %v8190_v45  ;;  %5841 = vmatpush1.bf16.msra.mxu0 %v7160_v48  ;;  %6536 = vmatpush1.bf16.msra.mxu1 %v7160_v48  ;;  %v5261_v45 = vld [vmem:[%s7329_s4 + $0x62] sm:$0xff]  ;;  %v5495_v37 = vld [vmem:[%s7329_s4 + $0x73] sm:$0xff] }
 0x269   : > { %v3564_v55 = vpop.f32.mrf.mxu0  ;;  %v3796_v8 = vpop.f32.mrf.mxu1  ;;  %5842 = vmatprep.subr.bf16.mxu0 %v7165_v22  ;;  %6529 = vmatprep.subr.bf16.mxu1 %v7165_v22  ;;  %v5270_v17 = vpack.c.bf16 %v5262_v31, %v5261_v45  ;;  %v5264_v22 = vld [vmem:[%s7329_s4 + $0x7a] sm:$0xff] }
 0x26a   : > { %v8298_v53 = vadd.f32 %v3794_v38, %v3613_v19  ;;  %v3614_v49 = vadd.f32 %v3564_v55, %v8193_v9  ;;  %v7166_v9 = vld [vmem:[#allocation2 + $0xc20] ss:$8 sps:$4 sm:$0xff]  }
 0x26b   : > { %v3568_v12 = vpop.f32.mrf.mxu0  ;;  %v3800_v1 = vpop.f32.mrf.mxu1  ;;  %5423 = vmatmul.mubr.bf16.gmra.mxu0 %v5269_v14  ;;  %5655 = vmatmul.mubr.bf16.gmra.mxu1 %v5501_v7  ;;  %v5496_v47 = vld [vmem:[%s7329_s4 + $0x7b] sm:$0xff] }
 0x26c   : > { %v8302_v26 = vadd.f32 %v3796_v8, %v3614_v49  ;;  %v3615_v20 = vadd.f32 %v3568_v12, %v8200_v10  ;;  %5432 = vmatprep.mubr.bf16.mxu0 %v7247_v0  ;;  %5664 = vmatprep.mubr.bf16.mxu1 %v7247_v0  ;;  %v7172_v14 = vld [vmem:[#allocation2 + $0xc00] ss:$8 sps:$4 sm:$0xff]  }
 0x26d   : > { %v3570_v40 = vpop.f32.mrf.mxu0  ;;  %v3802_v39 = vpop.f32.mrf.mxu1  ;;  %5843 = vmatpush1.bf16.msra.mxu0 %v7163_v16  ;;  %6537 = vmatpush1.bf16.msra.mxu1 %v7163_v16  ;;  %v5503_v16 = vpack.c.bf16 %v5496_v47, %v5495_v37  ;;  %v5726_v37 = vld [vmem:[%s7329_s4 + $0x6c] sm:$0xff] }
 0x26e   : > { %v8310_v15 = vadd.f32 %v3800_v1, %v3615_v20  ;;  %v3616_v57 = vadd.f32 %v3570_v40, %v8205_v13  ;;  %5844 = vmatprep.subr.bf16.mxu0 %v7168_v28  ;;  %6530 = vmatprep.subr.bf16.mxu1 %v7168_v28  ;;  %v5266_v40 = vld [vmem:[%s7329_s4 + $0x8a] sm:$0xff] }
 0x26f   : > { %v3572_v10 = vpop.f32.mrf.mxu0  ;;  %v3804_v4 = vpop.f32.mrf.mxu1 }
 0x270   : > { %v8313_v18 = vadd.f32 %v3802_v39, %v3616_v57  ;;  %v3617_v60 = vadd.f32 %v3572_v10, %v8208_v32  ;;  %v5263_v32 = vld [vmem:[%s7329_s4 + $0x72] sm:$0xff]  ;;  %v5497_v39 = vld [vmem:[%s7329_s4 + $0x83] sm:$0xff] }
 0x271   : > { %v3574_v6 = vpop.f32.mrf.mxu0  ;;  %v3806_v58 = vpop.f32.mrf.mxu1  ;;  %5845 = vmatpush1.bf16.msra.mxu0 %v7166_v9  ;;  %6538 = vmatpush1.bf16.msra.mxu1 %v7166_v9  ;;  %v5271_v8 = vpack.c.bf16 %v5264_v22, %v5263_v32  ;;  %v5498_v9 = vld [vmem:[%s7329_s4 + $0x8b] sm:$0xff] }
 0x272   : > { %v8316_v13 = vadd.f32 %v3804_v4, %v3617_v60  ;;  %v3618_v35 = vadd.f32 %v3574_v6, %v8211_v21  ;;  %5846 = vmatprep.subr.bf16.mxu0 %v7171_v5  ;;  %6531 = vmatprep.subr.bf16.mxu1 %v7171_v5  ;;  %v5504_v60 = vpack.c.bf16 %v5498_v9, %v5497_v39  ;;  %v5725_v22 = vld [vmem:[%s7329_s4 + $0x64] sm:$0xff] }
 0x273   : > { %v3578_v24 = vpop.f32.mrf.mxu0  ;;  %v3810_v48 = vpop.f32.mrf.mxu1  ;;  %5433 = vmatmul.mubr.bf16.gmra.mxu0 %v5270_v17  ;;  %5665 = vmatmul.mubr.bf16.gmra.mxu1 %v5502_v2  ;;  %v5272_v2 = vpack.c.bf16 %v5266_v40, %v5265_v25  ;;  %v5728_v40 = vld [vmem:[%s7329_s4 + $0x7c] sm:$0xff] }
 0x274   : > { %v8320_v41 = vadd.f32 %v3806_v58, %v3618_v35  ;;  %v3619_v63 = vadd.f32 %v3578_v24, %v8218_v51  ;;  %5442 = vmatprep.mubr.bf16.mxu0 %v7247_v0  ;;  %5674 = vmatprep.mubr.bf16.mxu1 %v7247_v0 }
 0x275   : > { %v3580_v21 = vpop.f32.mrf.mxu0  ;;  %v3812_v38 = vpop.f32.mrf.mxu1  ;;  %5847 = vmatpush1.bf16.msra.mxu0 %v7169_v27  ;;  %6539 = vmatpush1.bf16.msra.mxu1 %v7169_v27 }
 0x276   : > { %v8328_v7 = vadd.f32 %v3810_v48, %v3619_v63  ;;  %v3620_v19 = vadd.f32 %v3580_v21, %v8223_v56  ;;  %5848 = vmatprep.subr.bf16.mxu0 %v7174_v59  ;;  %6532 = vmatprep.subr.bf16.mxu1 %v7174_v59 }
 0x277   : > { %v3582_v55 = vpop.f32.mrf.mxu0  ;;  %v3814_v51 = vpop.f32.mrf.mxu1 }
 0x278   : > { %v8331_v49 = vadd.f32 %v3812_v38, %v3620_v19  ;;  %v3621_v28 = vadd.f32 %v3582_v55, %v8226_v52 }
 0x279   : > { %v3584_v12 = vpop.f32.mrf.mxu0  ;;  %v3816_v1 = vpop.f32.mrf.mxu1  ;;  %5849 = vmatpush1.bf16.msra.mxu0 %v7172_v14  ;;  %6540 = vmatpush1.bf16.msra.mxu1 %v7172_v14 }
 0x27a   : > { %v8334_v45 = vadd.f32 %v3814_v51, %v3621_v28  ;;  %v3622_v56 = vadd.f32 %v3584_v12, %v8229_v61  ;;  %v5734_v51 = vpack.c.bf16 %v5726_v37, %v5725_v22 }
 0x27b   : > { %v3588_v20 = vpop.f32.mrf.mxu0  ;;  %v3820_v31 = vpop.f32.mrf.mxu1  ;;  %5443 = vmatmul.mubr.bf16.gmra.mxu0 %v5271_v8  ;;  %5675 = vmatmul.mubr.bf16.gmra.mxu1 %v5503_v16 }
 0x27c   : > { %v8338_v11 = vadd.f32 %v3816_v1, %v3622_v56  ;;  %v3623_v52 = vadd.f32 %v3588_v20, %v8237_v34  ;;  %5452 = vmatprep.mubr.bf16.mxu0 %v7247_v0  ;;  %5684 = vmatprep.mubr.bf16.mxu1 %v7247_v0 }
 0x27d   : > { %v3590_v57 = vpop.f32.mrf.mxu0  ;;  %v3822_v5 = vpop.f32.mrf.mxu1 }
 0x27e   : > { %v8346_v10 = vadd.f32 %v3820_v31, %v3623_v52  ;;  %v3624_v61 = vadd.f32 %v3590_v57, %v8241_v62  ;;  %v5719_v62 = vld [vmem:[%s7329_s4 + $0x34] sm:$0xff] }
 0x27f   : > { %v3592_v4 = vpop.f32.mrf.mxu0  ;;  %v3824_v17 = vpop.f32.mrf.mxu1  ;;  %v5727_v52 = vld [vmem:[%s7329_s4 + $0x74] sm:$0xff] }
 0x280   : > { %v8349_v34 = vadd.f32 %v3822_v5, %v3624_v61  ;;  %v3625_v6 = vadd.f32 %v3592_v4, %v8244_v23  ;;  %v5720_v23 = vld [vmem:[%s7329_s4 + $0x3c] sm:$0xff] }
 0x281   : > { %v3594_v58 = vpop.f32.mrf.mxu0  ;;  %v3826_v27 = vpop.f32.mrf.mxu1  ;;  %v5731_v55 = vpack.c.bf16 %v5720_v23, %v5719_v62  ;;  %v5730_v23 = vld [vmem:[%s7329_s4 + $0x8c] sm:$0xff] }
 0x282   : > { %v8352_v35 = vadd.f32 %v3824_v17, %v3625_v6  ;;  %v3626_v59 = vadd.f32 %v3594_v58, %v8248_v44  ;;  %v5735_v17 = vpack.c.bf16 %v5728_v40, %v5727_v52 }
 0x283   : > { %v3598_v24 = vpop.f32.mrf.mxu0  ;;  %v3830_v48 = vpop.f32.mrf.mxu1  ;;  %5453 = vmatmul.mubr.bf16.gmra.mxu0 %v5272_v2  ;;  %5685 = vmatmul.mubr.bf16.gmra.mxu1 %v5504_v60 }
 0x284   : > { %v8356_v32 = vadd.f32 %v3826_v27, %v3626_v59  ;;  %v3627_v63 = vadd.f32 %v3598_v24, %v8256_v46  ;;  %5866 = vmatprep.mubr.bf16.mxu0 %v7247_v0  ;;  %5896 = vmatprep.mubr.bf16.mxu1 %v7247_v0 }
 0x285   : > { %v3600_v47 = vpop.f32.mrf.mxu0  ;;  %v3832_v21 = vpop.f32.mrf.mxu1 }
 0x286   : > { %v8364_v38 = vadd.f32 %v3830_v48, %v3627_v63  ;;  %v3628_v44 = vadd.f32 %v3600_v47, %v8259_v29  ;;  %v5721_v29 = vld [vmem:[%s7329_s4 + $0x44] sm:$0xff] }
 0x287   : > { %v3602_v14 = vpop.f32.mrf.mxu0  ;;  %v3834_v19 = vpop.f32.mrf.mxu1  ;;  %v5729_v63 = vld [vmem:[%s7329_s4 + $0x84] sm:$0xff] }
 0x288   : > { %v8367_v46 = vadd.f32 %v3832_v21, %v3628_v44  ;;  %v3629_v8 = vadd.f32 %v3602_v14, %v8262_v50  ;;  %v5722_v50 = vld [vmem:[%s7329_s4 + $0x4c] sm:$0xff] }
 0x289   : > { %v3604_v16 = vpop.f32.mrf.mxu0  ;;  %v3836_v28 = vpop.f32.mrf.mxu1  ;;  %v5732_v4 = vpack.c.bf16 %v5722_v50, %v5721_v29 }
 0x28a   : > { %v8370_v12 = vadd.f32 %v3834_v19, %v3629_v8  ;;  %v3630_v1 = vadd.f32 %v3604_v16, %v8267_v33  ;;  %v5736_v19 = vpack.c.bf16 %v5730_v23, %v5729_v63 }
 0x28b   : > { %v4012_v56 = vpop.f32.mrf.mxu0  ;;  %v4244_v20 = vpop.f32.mrf.mxu1  ;;  %5867 = vmatmul.mubr.bf16.vlgmr.msra.gmra.mxu0 %v5731_v55  ;;  %5897 = vmatmul.mubr.bf16.vlgmr.msra.gmra.mxu1 %v5734_v51 }
 0x28c   : > { %v8374_v31 = vadd.f32 %v3836_v28, %v3630_v1  ;;  %v4071_v25 = vadd.f32 %v4012_v56, %v8272_v54  ;;  %5876 = vmatprep.mubr.bf16.mxu0 %v7247_v0  ;;  %5906 = vmatprep.mubr.bf16.mxu1 %v7247_v0 }
 0x28d   : > { %v4014_v39 = vpop.f32.mrf.mxu0  ;;  %v4246_v9 = vpop.f32.mrf.mxu1 }
 0x28e   : > { %v8382_v57 = vadd.f32 %v4244_v20, %v4071_v25  ;;  %v4072_v33 = vadd.f32 %v4014_v39, %v8277_v3  ;;  %v5723_v3 = vld [vmem:[%s7329_s4 + $0x54] sm:$0xff] }
 0x28f   : > { %v4016_v5 = vpop.f32.mrf.mxu0  ;;  %v4248_v61 = vpop.f32.mrf.mxu1 }
 0x290   : > { %v8385_v54 = vadd.f32 %v4246_v9, %v4072_v33  ;;  %v4073_v2 = vadd.f32 %v4016_v5, %v8280_v43  ;;  %v5724_v43 = vld [vmem:[%s7329_s4 + $0x5c] sm:$0xff] }
 0x291   : > { %v4018_v60 = vpop.f32.mrf.mxu0  ;;  %v4250_v6 = vpop.f32.mrf.mxu1  ;;  %v5733_v14 = vpack.c.bf16 %v5724_v43, %v5723_v3 }
 0x292   : > { %v8388_v58 = vadd.f32 %v4248_v61, %v4073_v2  ;;  %v4074_v27 = vadd.f32 %v4018_v60, %v8285_v30 }
 0x293   : > { %v4022_v59 = vpop.f32.mrf.mxu0  ;;  %v4254_v24 = vpop.f32.mrf.mxu1  ;;  %5877 = vmatmul.mubr.bf16.gmra.mxu0 %v5732_v4  ;;  %5907 = vmatmul.mubr.bf16.gmra.mxu1 %v5735_v17 }
 0x294   : > { %v8392_v48 = vadd.f32 %v4250_v6, %v4074_v27  ;;  %v4075_v62 = vadd.f32 %v4022_v59, %v8292_v42  ;;  %5886 = vmatprep.mubr.bf16.mxu0 %v7247_v0  ;;  %5916 = vmatprep.mubr.bf16.mxu1 %v7247_v0 }
 0x295   : > { %v4024_v22 = vpop.f32.mrf.mxu0  ;;  %v4256_v37 = vpop.f32.mrf.mxu1 }
 0x296   : > { %v8400_v47 = vadd.f32 %v4254_v24, %v4075_v62  ;;  %v4076_v30 = vadd.f32 %v4024_v22, %v8295_v36 }
 0x297   : > { %v4026_v21 = vpop.f32.mrf.mxu0  ;;  %v4258_v44 = vpop.f32.mrf.mxu1 }
 0x298   : > { %v8403_v55 = vadd.f32 %v4256_v37, %v4076_v30  ;;  %v4077_v42 = vadd.f32 %v4026_v21, %v8298_v53 }
 0x299   : > { %v4028_v51 = vpop.f32.mrf.mxu0  ;;  %v4260_v8 = vpop.f32.mrf.mxu1 }
 0x29a   : > { %v8406_v0 = vadd.f32 %v4258_v44, %v4077_v42  ;;  %v4078_v16 = vadd.f32 %v4028_v51, %v8302_v26 }
 0x29b   : > { %v4032_v28 = vpop.f32.mrf.mxu0  ;;  %v4264_v1 = vpop.f32.mrf.mxu1  ;;  %5887 = vmatmul.mubr.bf16.gmra.mxu0 %v5733_v14  ;;  %5917 = vmatmul.mubr.bf16.gmra.mxu1 %v5736_v19 }
 0x29c   : > { %v8409_v56 = vadd.f32 %v4260_v8, %v4078_v16  ;;  %v4079_v36 = vadd.f32 %v4032_v28, %v8310_v15 }
 0x29d   : > { %v4034_v20 = vpop.f32.mrf.mxu0  ;;  %v4266_v29 = vpop.f32.mrf.mxu1 }
 0x29e   : > { %v8412_v25 = vadd.f32 %v4264_v1, %v4079_v36  ;;  %v4080_v53 = vadd.f32 %v4034_v20, %v8313_v18 }
 0x29f   : > { %v4036_v50 = vpop.f32.mrf.mxu0  ;;  %v4268_v52 = vpop.f32.mrf.mxu1 }
 0x2a0   : > { %v8415_v40 = vadd.f32 %v4266_v29, %v4080_v53  ;;  %v4081_v26 = vadd.f32 %v4036_v50, %v8316_v13 }
 0x2a1   : > { %v4038_v39 = vpop.f32.mrf.mxu0  ;;  %v4270_v9 = vpop.f32.mrf.mxu1 }
 0x2a2   : > { %v8418_v33 = vadd.f32 %v4268_v52, %v4081_v26  ;;  %v4082_v5 = vadd.f32 %v4038_v39, %v8320_v41 }
 0x2a3   : > { %v4042_v61 = vpop.f32.mrf.mxu0  ;;  %v4274_v15 = vpop.f32.mrf.mxu1 }
 0x2a4   : > { %v8421_v4 = vadd.f32 %v4270_v9, %v4082_v5  ;;  %v4083_v17 = vadd.f32 %v4042_v61, %v8328_v7 }
 0x2a5   : > { %v4044_v2 = vpop.f32.mrf.mxu0  ;;  %v4276_v18 = vpop.f32.mrf.mxu1 }
 0x2a6   : > { %v8424_v60 = vadd.f32 %v4274_v15, %v4083_v17  ;;  %v4084_v6 = vadd.f32 %v4044_v2, %v8331_v49 }
 0x2a7   : > { %v4046_v27 = vpop.f32.mrf.mxu0  ;;  %v4278_v13 = vpop.f32.mrf.mxu1 }
 0x2a8   : > { %v8427_v59 = vadd.f32 %v4276_v18, %v4084_v6  ;;  %v4085_v24 = vadd.f32 %v4046_v27, %v8334_v45 }
 0x2a9   : > { %v4048_v3 = vpop.f32.mrf.mxu0  ;;  %v4280_v41 = vpop.f32.mrf.mxu1 }
 0x2aa   : > { %v8430_v62 = vadd.f32 %v4278_v13, %v4085_v24  ;;  %v4086_v43 = vadd.f32 %v4048_v3, %v8338_v11 }
 0x2ab   : > { %v4052_v63 = vpop.f32.mrf.mxu0  ;;  %v4284_v7 = vpop.f32.mrf.mxu1 }
 0x2ac   : > { %v8433_v23 = vadd.f32 %v4280_v41, %v4086_v43  ;;  %v4087_v22 = vadd.f32 %v4052_v63, %v8346_v10 }
 0x2ad   : > { %v4054_v37 = vpop.f32.mrf.mxu0  ;;  %v4286_v49 = vpop.f32.mrf.mxu1 }
 0x2ae   : > { %v8436_v30 = vadd.f32 %v4284_v7, %v4087_v22  ;;  %v4088_v21 = vadd.f32 %v4054_v37, %v8349_v34 }
 0x2af   : > { %v4056_v44 = vpop.f32.mrf.mxu0  ;;  %v4288_v45 = vpop.f32.mrf.mxu1 }
 0x2b0   : > { %v8439_v14 = vadd.f32 %v4286_v49, %v4088_v21  ;;  %v4089_v19 = vadd.f32 %v4056_v44, %v8352_v35 }
 0x2b1   : > { %v4058_v42 = vpop.f32.mrf.mxu0  ;;  %v4290_v11 = vpop.f32.mrf.mxu1 }
 0x2b2   : > { %v8442_v51 = vadd.f32 %v4288_v45, %v4089_v19  ;;  %v4090_v8 = vadd.f32 %v4058_v42, %v8356_v32 }
 0x2b3   : > { %v4062_v16 = vpop.f32.mrf.mxu0  ;;  %v4294_v10 = vpop.f32.mrf.mxu1 }
 0x2b4   : > { %v8445_v28 = vadd.f32 %v4290_v11, %v4090_v8  ;;  %v4091_v1 = vadd.f32 %v4062_v16, %v8364_v38 }
 0x2b5   : > { %v4064_v36 = vpop.f32.mrf.mxu0  ;;  %v4296_v34 = vpop.f32.mrf.mxu1 }
 0x2b6   : > { %v8448_v20 = vadd.f32 %v4294_v10, %v4091_v1  ;;  %v4092_v29 = vadd.f32 %v4064_v36, %v8367_v46 }
 0x2b7   : > { %v4066_v53 = vpop.f32.mrf.mxu0  ;;  %v4298_v35 = vpop.f32.mrf.mxu1 }
 0x2b8   : > { %v8451_v50 = vadd.f32 %v4296_v34, %v4092_v29  ;;  %v4093_v52 = vadd.f32 %v4066_v53, %v8370_v12 }
 0x2b9   : > { %v4068_v26 = vpop.f32.mrf.mxu0  ;;  %v4300_v32 = vpop.f32.mrf.mxu1 }
 0x2ba   : > { %v8454_v39 = vadd.f32 %v4298_v35, %v4093_v52  ;;  %v4094_v9 = vadd.f32 %v4068_v26, %v8374_v31 }
 0x2bb   : > { %v4476_v5 = vpop.f32.mrf.mxu0  ;;  %v4708_v38 = vpop.f32.mrf.mxu1 }
 0x2bc   : > { %v8457_v61 = vadd.f32 %v4300_v32, %v4094_v9  ;;  %v4535_v15 = vadd.f32 %v4476_v5, %v8382_v57 }
 0x2bd   : > { %v4478_v17 = vpop.f32.mrf.mxu0  ;;  %v4710_v46 = vpop.f32.mrf.mxu1 }
 0x2be   : > { %v8460_v2 = vadd.f32 %v4708_v38, %v4535_v15  ;;  %v4536_v18 = vadd.f32 %v4478_v17, %v8385_v54 }
 0x2bf   : > { %v4480_v6 = vpop.f32.mrf.mxu0  ;;  %v4712_v12 = vpop.f32.mrf.mxu1 }
 0x2c0   : > { %v8463_v27 = vadd.f32 %v4710_v46, %v4536_v18  ;;  %v4537_v13 = vadd.f32 %v4480_v6, %v8388_v58 }
 0x2c1   : > { %v4482_v24 = vpop.f32.mrf.mxu0  ;;  %v4714_v31 = vpop.f32.mrf.mxu1 }
 0x2c2   : > { %v8466_v3 = vadd.f32 %v4712_v12, %v4537_v13  ;;  %v4538_v41 = vadd.f32 %v4482_v24, %v8392_v48 }
 0x2c3   : > { %v4486_v43 = vpop.f32.mrf.mxu0  ;;  %v4718_v57 = vpop.f32.mrf.mxu1 }
 0x2c4   : > { %v8469_v63 = vadd.f32 %v4714_v31, %v4538_v41  ;;  %v4539_v7 = vadd.f32 %v4486_v43, %v8400_v47 }
 0x2c5   : > { %v4488_v22 = vpop.f32.mrf.mxu0  ;;  %v4720_v54 = vpop.f32.mrf.mxu1 }
 0x2c6   : > { %v8472_v37 = vadd.f32 %v4718_v57, %v4539_v7  ;;  %v4540_v49 = vadd.f32 %v4488_v22, %v8403_v55 }
 0x2c7   : > { %v4490_v21 = vpop.f32.mrf.mxu0  ;;  %v4722_v58 = vpop.f32.mrf.mxu1 }
 0x2c8   : > { %v8475_v44 = vadd.f32 %v4720_v54, %v4540_v49  ;;  %v4541_v45 = vadd.f32 %v4490_v21, %v8406_v0 }
 0x2c9   : > { %v4492_v19 = vpop.f32.mrf.mxu0  ;;  %v4724_v48 = vpop.f32.mrf.mxu1 }
 0x2ca   : > { %v8478_v42 = vadd.f32 %v4722_v58, %v4541_v45  ;;  %v4542_v11 = vadd.f32 %v4492_v19, %v8409_v56 }
 0x2cb   : > { %v4496_v8 = vpop.f32.mrf.mxu0  ;;  %v4728_v47 = vpop.f32.mrf.mxu1 }
 0x2cc   : > { %v8481_v16 = vadd.f32 %v4724_v48, %v4542_v11  ;;  %v4543_v10 = vadd.f32 %v4496_v8, %v8412_v25 }
 0x2cd   : > { %v4498_v1 = vpop.f32.mrf.mxu0  ;;  %v4730_v55 = vpop.f32.mrf.mxu1 }
 0x2ce   : > { %v8484_v36 = vadd.f32 %v4728_v47, %v4543_v10  ;;  %v4544_v34 = vadd.f32 %v4498_v1, %v8415_v40 }
 0x2cf   : > { %v4500_v29 = vpop.f32.mrf.mxu0  ;;  %v4732_v0 = vpop.f32.mrf.mxu1 }
 0x2d0   : > { %v8487_v53 = vadd.f32 %v4730_v55, %v4544_v34  ;;  %v4545_v35 = vadd.f32 %v4500_v29, %v8418_v33 }
 0x2d1   : > { %v4502_v52 = vpop.f32.mrf.mxu0  ;;  %v4734_v56 = vpop.f32.mrf.mxu1 }
 0x2d2   : > { %v8490_v26 = vadd.f32 %v4732_v0, %v4545_v35  ;;  %v4546_v32 = vadd.f32 %v4502_v52, %v8421_v4 }
 0x2d3   : > { %v4506_v9 = vpop.f32.mrf.mxu0  ;;  %v4738_v25 = vpop.f32.mrf.mxu1 }
 0x2d4   : > { %v8493_v5 = vadd.f32 %v4734_v56, %v4546_v32  ;;  %v4547_v38 = vadd.f32 %v4506_v9, %v8424_v60 }
 0x2d5   : > { %v4508_v15 = vpop.f32.mrf.mxu0  ;;  %v4740_v40 = vpop.f32.mrf.mxu1 }
 0x2d6   : > { %v8496_v17 = vadd.f32 %v4738_v25, %v4547_v38  ;;  %v4548_v46 = vadd.f32 %v4508_v15, %v8427_v59 }
 0x2d7   : > { %v4510_v18 = vpop.f32.mrf.mxu0  ;;  %v4742_v33 = vpop.f32.mrf.mxu1 }
 0x2d8   : > { %v8499_v6 = vadd.f32 %v4740_v40, %v4548_v46  ;;  %v4549_v12 = vadd.f32 %v4510_v18, %v8430_v62 }
 0x2d9   : > { %v4512_v13 = vpop.f32.mrf.mxu0  ;;  %v4744_v4 = vpop.f32.mrf.mxu1 }
 0x2da   : > { %v8502_v24 = vadd.f32 %v4742_v33, %v4549_v12  ;;  %v4550_v31 = vadd.f32 %v4512_v13, %v8433_v23 }
 0x2db   : > { %v4516_v41 = vpop.f32.mrf.mxu0  ;;  %v4748_v60 = vpop.f32.mrf.mxu1 }
 0x2dc   : > { %v8505_v43 = vadd.f32 %v4744_v4, %v4550_v31  ;;  %v4551_v57 = vadd.f32 %v4516_v41, %v8436_v30 }
 0x2dd   : > { %v4518_v7 = vpop.f32.mrf.mxu0  ;;  %v4750_v59 = vpop.f32.mrf.mxu1 }
 0x2de   : > { %v8508_v22 = vadd.f32 %v4748_v60, %v4551_v57  ;;  %v4552_v54 = vadd.f32 %v4518_v7, %v8439_v14 }
 0x2df   : > { %v4520_v49 = vpop.f32.mrf.mxu0  ;;  %v4752_v62 = vpop.f32.mrf.mxu1 }
 0x2e0   : > { %v8511_v21 = vadd.f32 %v4750_v59, %v4552_v54  ;;  %v4553_v58 = vadd.f32 %v4520_v49, %v8442_v51 }
 0x2e1   : > { %v4522_v45 = vpop.f32.mrf.mxu0  ;;  %v4754_v23 = vpop.f32.mrf.mxu1 }
 0x2e2   : > { %v8514_v19 = vadd.f32 %v4752_v62, %v4553_v58  ;;  %v4554_v48 = vadd.f32 %v4522_v45, %v8445_v28 }
 0x2e3   : > { %v4526_v11 = vpop.f32.mrf.mxu0  ;;  %v4758_v30 = vpop.f32.mrf.mxu1 }
 0x2e4   : > { %v8517_v8 = vadd.f32 %v4754_v23, %v4554_v48  ;;  %v4555_v47 = vadd.f32 %v4526_v11, %v8448_v20 }
 0x2e5   : > { %v4528_v10 = vpop.f32.mrf.mxu0  ;;  %v4760_v14 = vpop.f32.mrf.mxu1 }
 0x2e6   : > { %v8520_v1 = vadd.f32 %v4758_v30, %v4555_v47  ;;  %v4556_v55 = vadd.f32 %v4528_v10, %v8451_v50 }
 0x2e7   : > { %v4530_v34 = vpop.f32.mrf.mxu0  ;;  %v4762_v51 = vpop.f32.mrf.mxu1 }
 0x2e8   : > { %v8523_v29 = vadd.f32 %v4760_v14, %v4556_v55  ;;  %v4557_v0 = vadd.f32 %v4530_v34, %v8454_v39 }
 0x2e9   : > { %v4532_v35 = vpop.f32.mrf.mxu0  ;;  %v4764_v28 = vpop.f32.mrf.mxu1 }
 0x2ea   : > { %v8526_v52 = vadd.f32 %v4762_v51, %v4557_v0  ;;  %v4558_v56 = vadd.f32 %v4532_v35, %v8457_v61 }
 0x2eb   : > { %v4940_v32 = vpop.f32.mrf.mxu0  ;;  %v5172_v20 = vpop.f32.mrf.mxu1 }
 0x2ec   : > { %v8529_v9 = vadd.f32 %v4764_v28, %v4558_v56  ;;  %v4999_v25 = vadd.f32 %v4940_v32, %v8460_v2 }
 0x2ed   : > { %v4942_v38 = vpop.f32.mrf.mxu0  ;;  %v5174_v50 = vpop.f32.mrf.mxu1 }
 0x2ee   : > { %v8532_v15 = vadd.f32 %v5172_v20, %v4999_v25  ;;  %v5000_v40 = vadd.f32 %v4942_v38, %v8463_v27 }
 0x2ef   : > { %v4944_v46 = vpop.f32.mrf.mxu0  ;;  %v5176_v39 = vpop.f32.mrf.mxu1 }
 0x2f0   : > { %v8535_v18 = vadd.f32 %v5174_v50, %v5000_v40  ;;  %v5001_v33 = vadd.f32 %v4944_v46, %v8466_v3 }
 0x2f1   : > { %v4946_v12 = vpop.f32.mrf.mxu0  ;;  %v5178_v61 = vpop.f32.mrf.mxu1 }
 0x2f2   : > { %v8538_v13 = vadd.f32 %v5176_v39, %v5001_v33  ;;  %v5002_v4 = vadd.f32 %v4946_v12, %v8469_v63 }
 0x2f3   : > { %v4950_v31 = vpop.f32.mrf.mxu0  ;;  %v5182_v2 = vpop.f32.mrf.mxu1 }
 0x2f4   : > { %v8541_v41 = vadd.f32 %v5178_v61, %v5002_v4  ;;  %v5003_v60 = vadd.f32 %v4950_v31, %v8472_v37 }
 0x2f5   : > { %v4952_v57 = vpop.f32.mrf.mxu0  ;;  %v5184_v27 = vpop.f32.mrf.mxu1 }
 0x2f6   : > { %v8544_v7 = vadd.f32 %v5182_v2, %v5003_v60  ;;  %v5004_v59 = vadd.f32 %v4952_v57, %v8475_v44 }
 0x2f7   : > { %v4954_v54 = vpop.f32.mrf.mxu0  ;;  %v5186_v3 = vpop.f32.mrf.mxu1 }
 0x2f8   : > { %v8547_v49 = vadd.f32 %v5184_v27, %v5004_v59  ;;  %v5005_v62 = vadd.f32 %v4954_v54, %v8478_v42 }
 0x2f9   : > { %v4956_v58 = vpop.f32.mrf.mxu0  ;;  %v5188_v63 = vpop.f32.mrf.mxu1 }
 0x2fa   : > { %v8550_v45 = vadd.f32 %v5186_v3, %v5005_v62  ;;  %v5006_v23 = vadd.f32 %v4956_v58, %v8481_v16 }
 0x2fb   : > { %v4960_v48 = vpop.f32.mrf.mxu0  ;;  %v5192_v37 = vpop.f32.mrf.mxu1 }
 0x2fc   : > { %v8553_v11 = vadd.f32 %v5188_v63, %v5006_v23  ;;  %v5007_v30 = vadd.f32 %v4960_v48, %v8484_v36 }
 0x2fd   : > { %v4962_v47 = vpop.f32.mrf.mxu0  ;;  %v5194_v44 = vpop.f32.mrf.mxu1 }
 0x2fe   : > { %v8556_v10 = vadd.f32 %v5192_v37, %v5007_v30  ;;  %v5008_v14 = vadd.f32 %v4962_v47, %v8487_v53 }
 0x2ff   : > { %v4964_v55 = vpop.f32.mrf.mxu0  ;;  %v5196_v42 = vpop.f32.mrf.mxu1 }
 0x300   : > { %v8559_v34 = vadd.f32 %v5194_v44, %v5008_v14  ;;  %v5009_v51 = vadd.f32 %v4964_v55, %v8490_v26 }
 0x301   : > { %v4966_v0 = vpop.f32.mrf.mxu0  ;;  %v5198_v16 = vpop.f32.mrf.mxu1 }
 0x302   : > { %v8562_v35 = vadd.f32 %v5196_v42, %v5009_v51  ;;  %v5010_v28 = vadd.f32 %v4966_v0, %v8493_v5 }
 0x303   : > { %v4970_v56 = vpop.f32.mrf.mxu0  ;;  %v5202_v36 = vpop.f32.mrf.mxu1 }
 0x304   : > { %v8565_v32 = vadd.f32 %v5198_v16, %v5010_v28  ;;  %v5011_v20 = vadd.f32 %v4970_v56, %v8496_v17 }
 0x305   : > { %v4972_v25 = vpop.f32.mrf.mxu0  ;;  %v5204_v53 = vpop.f32.mrf.mxu1 }
 0x306   : > { %8790 = vst [vmem:[#allocation8_spill] sm:$0xff] %v8565_v32  ;;  %v8568_v38 = vadd.f32 %v5202_v36, %v5011_v20  ;;  %v5012_v50 = vadd.f32 %v4972_v25, %v8499_v6 }
 0x307   : > { %v4974_v40 = vpop.f32.mrf.mxu0  ;;  %v5206_v26 = vpop.f32.mrf.mxu1 }
 0x308   : > { %v8571_v46 = vadd.f32 %v5204_v53, %v5012_v50  ;;  %v5013_v39 = vadd.f32 %v4974_v40, %v8502_v24 }
 0x309   : > { %v4976_v33 = vpop.f32.mrf.mxu0  ;;  %v5208_v5 = vpop.f32.mrf.mxu1 }
 0x30a   : > { %v8574_v12 = vadd.f32 %v5206_v26, %v5013_v39  ;;  %v5014_v61 = vadd.f32 %v4976_v33, %v8505_v43 }
 0x30b   : > { %v4980_v4 = vpop.f32.mrf.mxu0  ;;  %v5212_v17 = vpop.f32.mrf.mxu1 }
 0x30c   : > { %v8577_v31 = vadd.f32 %v5208_v5, %v5014_v61  ;;  %v5015_v2 = vadd.f32 %v4980_v4, %v8508_v22 }
 0x30d   : > { %v4982_v60 = vpop.f32.mrf.mxu0  ;;  %v5214_v6 = vpop.f32.mrf.mxu1 }
 0x30e   : > { %v8580_v57 = vadd.f32 %v5212_v17, %v5015_v2  ;;  %v5016_v27 = vadd.f32 %v4982_v60, %v8511_v21 }
 0x30f   : > { %v4984_v59 = vpop.f32.mrf.mxu0  ;;  %v5216_v24 = vpop.f32.mrf.mxu1 }
 0x310   : > { %v8583_v54 = vadd.f32 %v5214_v6, %v5016_v27  ;;  %v5017_v3 = vadd.f32 %v4984_v59, %v8514_v19 }
 0x311   : > { %v4986_v62 = vpop.f32.mrf.mxu0  ;;  %v5218_v43 = vpop.f32.mrf.mxu1 }
 0x312   : > { %v8586_v58 = vadd.f32 %v5216_v24, %v5017_v3  ;;  %v5018_v63 = vadd.f32 %v4986_v62, %v8517_v8 }
 0x313   : > { %v4990_v23 = vpop.f32.mrf.mxu0  ;;  %v5222_v22 = vpop.f32.mrf.mxu1 }
 0x314   : > { %v8589_v48 = vadd.f32 %v5218_v43, %v5018_v63  ;;  %v5019_v37 = vadd.f32 %v4990_v23, %v8520_v1 }
 0x315   : > { %v4992_v30 = vpop.f32.mrf.mxu0  ;;  %v5224_v21 = vpop.f32.mrf.mxu1 }
 0x316   : > { %8791 = vst [vmem:[#allocation9_spill] sm:$0xff] %v8589_v48  ;;  %v8592_v47 = vadd.f32 %v5222_v22, %v5019_v37  ;;  %v5020_v44 = vadd.f32 %v4992_v30, %v8523_v29 }
 0x317   : > { %v4994_v14 = vpop.f32.mrf.mxu0  ;;  %v5226_v19 = vpop.f32.mrf.mxu1 }
 0x318   : > { %8792 = vst [vmem:[#allocation10_spill] sm:$0xff] %v8592_v47  ;;  %v8595_v55 = vadd.f32 %v5224_v21, %v5020_v44  ;;  %v5021_v42 = vadd.f32 %v4994_v14, %v8526_v52  ;;  %v5953_v14 = vlaneseq  ;;  %v5951_v47 = vld [vmem:[#allocation4] sm:$0x3] }
 0x319   : > { %v4996_v51 = vpop.f32.mrf.mxu0  ;;  %v5228_v8 = vpop.f32.mrf.mxu1 }
 0x31a   : > { %8793 = vst [vmem:[#allocation11_spill] sm:$0xff] %v8595_v55  ;;  %v8598_v0 = vadd.f32 %v5226_v19, %v5021_v42  ;;  %v5022_v16 = vadd.f32 %v4996_v51, %v8529_v9 }
 0x31b   : > { %v5404_v28 = vpop.f32.mrf.mxu0  ;;  %v5636_v1 = vpop.f32.mrf.mxu1 }
 0x31c   : > { %8794 = vst [vmem:[#allocation12_spill] sm:$0xff] %v8598_v0  ;;  %v8601_v56 = vadd.f32 %v5228_v8, %v5022_v16  ;;  %v5954_v16 = vshrl.u32 %v5953_v14, 7  ;;  %v5463_v55 = vadd.f32 %v5404_v28, %v8532_v15 }
 0x31d   : > { %v5406_v36 = vpop.f32.mrf.mxu0  ;;  %v5638_v20 = vpop.f32.mrf.mxu1 }
 0x31e   : > { %8795 = vst [vmem:[#allocation13_spill] sm:$0xff] %v8601_v56  ;;  %v5955_v32 = vsub.s32 0, %v5954_v16 }
 0x31f   : > { %v5408_v25 = vpop.f32.mrf.mxu0  ;;  %v8603_v29 = vpop.f32.mrf.mxu1 }
 0x320   : > { %v5465_v14 = vadd.f32 %v5408_v25, %v8538_v13  ;;  %v8658_v28 = vrot.slane %v5951_v47, %v5955_v32 }
 0x321   : > { %v5410_v53 = vpop.f32.mrf.mxu0  ;;  %v8605_v50 = vpop.f32.mrf.mxu1 }
 0x322   : > { %v5697_v32 = vadd.f32 %v8603_v29, %v5465_v14 }
 0x323   : > { %v5414_v40 = vpop.f32.mrf.mxu0  ;;  %v5646_v52 = vpop.f32.mrf.mxu1 }
 0x325   : > { %v5416_v26 = vpop.f32.mrf.mxu0  ;;  %v5648_v39 = vpop.f32.mrf.mxu1 }
 0x327   : > { %v5418_v33 = vpop.f32.mrf.mxu0  ;;  %v8607_v5 = vpop.f32.mrf.mxu1 }
 0x329   : > { %v5420_v9 = vpop.f32.mrf.mxu0  ;;  %v8609_v61 = vpop.f32.mrf.mxu1 }
 0x32b   : > { %v5424_v4 = vpop.f32.mrf.mxu0  ;;  %v8611_v17 = vpop.f32.mrf.mxu1 }
 0x32d   : > { %v5426_v2 = vpop.f32.mrf.mxu0  ;;  %v8613_v60 = vpop.f32.mrf.mxu1 }
 0x32f   : > { %v8615_v6 = vpop.f32.mrf.mxu0  ;;  %v8617_v27 = vpop.f32.mrf.mxu1 }
 0x330   : > { %8796 = vst [vmem:[#allocation14_spill] sm:$0xff] %v8617_v27  ;;  %v5959_v27 = vsub.s32 1, %v5954_v16 }
 0x331   : > { %v8619_v59 = vpop.f32.mrf.mxu0  ;;  %v8621_v24 = vpop.f32.mrf.mxu1 }
 0x332   : > { %8797 = vst [vmem:[#allocation15_spill] sm:$0xff] %v8619_v59  ;;  %8798 = vst [vmem:[#allocation16_spill] sm:$0xff] %v8621_v24  ;;  %v8662_v13 = vrot.slane %v5951_v47, %v5959_v27 }
 0x333   : > { %v5434_v3 = vpop.f32.mrf.mxu0  ;;  %v5666_v62 = vpop.f32.mrf.mxu1 }
 0x335   : > { %v5436_v43 = vpop.f32.mrf.mxu0  ;;  %v5668_v63 = vpop.f32.mrf.mxu1 }
 0x336   : > { %v5476_v16 = vadd.f32 %v5436_v43, %v8571_v46 }
 0x337   : > { %v5438_v23 = vpop.f32.mrf.mxu0  ;;  %v8623_v22 = vpop.f32.mrf.mxu1  ;;  %v8809_v14 = vld [vmem:[#allocation14_spill] sm:$0xff] }
 0x338   : > { %v5477_v47 = vadd.f32 %v5438_v23, %v8574_v12 }
 0x339   : > { %v5440_v37 = vpop.f32.mrf.mxu0  ;;  %v8625_v30 = vpop.f32.mrf.mxu1 }
 0x33b   : > { %v5444_v21 = vpop.f32.mrf.mxu0  ;;  %v8627_v44 = vpop.f32.mrf.mxu1 }
 0x33d   : > { %v5446_v19 = vpop.f32.mrf.mxu0  ;;  %v8629_v42 = vpop.f32.mrf.mxu1 }
 0x33e   : > { %8799 = vst [vmem:[#allocation17_spill] sm:$0xff] %v8629_v42  ;;  %v5464_v42 = vadd.f32 %v5406_v36, %v8535_v18  ;;  %v5695_v18 = vadd.f32 %v5636_v1, %v5463_v55  ;;  %v5469_v36 = vadd.f32 %v5418_v33, %v8550_v45 }
 0x33f   : > { %v8631_v51 = vpop.f32.mrf.mxu0  ;;  %v8633_v8 = vpop.f32.mrf.mxu1 }
 0x340   : > { %8800 = vst [vmem:[#allocation18_spill] sm:$0xff] %v8631_v51  ;;  %8801 = vst [vmem:[#allocation19_spill] sm:$0xff] %v8633_v8  ;;  %v5466_v8 = vadd.f32 %v5410_v53, %v8541_v41  ;;  %v5696_v41 = vadd.f32 %v5638_v20, %v5464_v42 }
 0x341   : > { %v8635_v24 = vpop.f32.mrf.mxu0  ;;  %v8637_v56 = vpop.f32.mrf.mxu1 }
 0x342   : > { %8802 = vst [vmem:[#allocation20_spill] sm:$0xff] %v8635_v24  ;;  %8803 = vst [vmem:[#allocation21_spill] sm:$0xff] %v8637_v56  ;;  %v5467_v56 = vadd.f32 %v5414_v40, %v8544_v7  ;;  %v5470_v7 = vadd.f32 %v5420_v9, %v8553_v11  ;;  %v5698_v45 = vadd.f32 %v8605_v50, %v5466_v8 }
 0x343   : > { %v8639_v0 = vpop.f32.mrf.mxu0  ;;  %v8641_v59 = vpop.f32.mrf.mxu1  ;;  %v5478_v11 = vadd.f32 %v5440_v37, %v8577_v31  ;;  %v8680_v40 = vadd.f32 %v8607_v5, %v5469_v36  ;;  %v5473_v31 = vadd.f32 %v8615_v6, %v8562_v35 }
 0x344   : > { %8804 = vst [vmem:[#allocation22_spill] sm:$0xff] %v8639_v0  ;;  %8805 = vst [vmem:[#allocation23_spill] sm:$0xff] %v8641_v59  ;;  %v5475_v0 = vadd.f32 %v5434_v3, %v8568_v38  ;;  %v5468_v59 = vadd.f32 %v5416_v26, %v8547_v49  ;;  %v5471_v38 = vadd.f32 %v5424_v4, %v8556_v10 }
 0x345   : > { %v8645_v48 = vpop.f32.mrf.mxu0  ;;  %v8647_v51 = vpop.f32.mrf.mxu1  ;;  %v5472_v49 = vadd.f32 %v5426_v2, %v8559_v34  ;;  %v5699_v55 = vadd.f32 %v5646_v52, %v5467_v56  ;;  %v5479_v10 = vadd.f32 %v5444_v21, %v8580_v57  ;;  %v5708_v26 = vadd.f32 %v5668_v63, %v5476_v16  ;;  %v8807_v63 = vld [vmem:[#allocation9_spill] sm:$0xff] }
 0x346   : > { %v5707_v46 = vadd.f32 %v5666_v62, %v5475_v0  ;;  %v8673_v1 = vadd.f32 %v5648_v39, %v5468_v59  ;;  %v8683_v56 = vadd.f32 %v8609_v61, %v5470_v7  ;;  %v8686_v0 = vadd.f32 %v8611_v17, %v5471_v38  ;;  %v8810_v36 = vld [vmem:[#allocation17_spill] sm:$0xff] }
 0x347   : > { %v8654_v24 = vpop.f32.mrf.mxu0  ;;  %v8656_v15 = vpop.f32.mrf.mxu1  ;;  %v8689_v12 = vadd.f32 %v8613_v60, %v5472_v49  ;;  %v5709_v61 = vadd.f32 %v8623_v22, %v5477_v47  ;;  %v5710_v4 = vadd.f32 %v8625_v30, %v5478_v11  ;;  %v5711_v17 = vadd.f32 %v8627_v44, %v5479_v10  ;;  %v8806_v62 = vld [vmem:[#allocation18_spill] sm:$0xff]  ;;  %v8811_v47 = vld [vmem:[#allocation19_spill] sm:$0xff] }
 0x348   : > { %v5480_v2 = vadd.f32 %v5446_v19, %v8583_v54  ;;  %v5481_v43 = vadd.f32 %v8806_v62, %v8586_v58  ;;  %v8817_v62 = vld [vmem:[#allocation15_spill] sm:$0xff] }
 0x349   : > { %v8667_v25 = vpop.f32.mrf.mxu0  ;;  %v8669_v53 = vpop.f32.mrf.mxu1  ;;  %v8808_v54 = vld [vmem:[#allocation20_spill] sm:$0xff]  ;;  %v8812_v10 = vld [vmem:[#allocation21_spill] sm:$0xff] }
 0x34a   : > { %v5482_v23 = vadd.f32 %v8808_v54, %v8807_v63  ;;  %v5712_v58 = vadd.f32 %v8810_v36, %v5480_v2  ;;  %v5713_v11 = vadd.f32 %v8811_v47, %v5481_v43 }
 0x34b   : > { %v5868_v34 = vpop.f32.mrf.mxu0  ;;  %v5898_v20 = vpop.f32.mrf.mxu1 }
 0x34c   : > { %v5927_v29 = vadd.f32 %v5868_v34, %v5695_v18  ;;  %v5939_v33 = vadd.f32 %v5898_v20, %v5707_v46  ;;  %v8713_v18 = vadd.f32 %v8809_v14, %v5473_v31  ;;  %v5714_v34 = vadd.f32 %v8812_v10, %v5482_v23 }
 0x34d   : > { %v5870_v57 = vpop.f32.mrf.mxu0  ;;  %v5900_v50 = vpop.f32.mrf.mxu1 }
 0x34e   : > { %v5963_v52 = vadd.f32 %v8658_v28, %v5927_v29  ;;  %v5975_v39 = vadd.f32 %v8658_v28, %v5939_v33  ;;  %v5928_v5 = vadd.f32 %v5870_v57, %v5696_v41  ;;  %v5940_v9 = vadd.f32 %v5900_v50, %v5708_v26 }
 0x34f   : > { %v5872_v35 = vpop.f32.mrf.mxu0  ;;  %v5902_v60 = vpop.f32.mrf.mxu1 }
 0x350   : > { %v5987_v6 = vmax.f32 %v5963_v52, 0.0  ;;  %v5999_v27 = vmax.f32 %v5975_v39, 0.0  ;;  %v5964_v59 = vadd.f32 %v8662_v13, %v5928_v5  ;;  %v5976_v3 = vadd.f32 %v8662_v13, %v5940_v9  ;;  %v8813_v39 = vld [vmem:[#allocation10_spill] sm:$0xff]  ;;  %v8815_v9 = vld [vmem:[#allocation11_spill] sm:$0xff] }
 0x351   : > { %v5929_v22 = vadd.f32 %v5872_v35, %v5697_v32  ;;  %v5941_v37 = vadd.f32 %v5902_v60, %v5709_v61  ;;  %v5874_v30 = vpop.f32.mrf.mxu0  ;;  %v5904_v21 = vpop.f32.mrf.mxu1  ;;  %v8814_v5 = vld [vmem:[#allocation22_spill] sm:$0xff]  ;;  %v5484_v61 = vadd.f32 %v8645_v48, %v8815_v9  ;;  %v8818_v48 = vld [vmem:[#allocation12_spill] sm:$0xff] }
 0x352   : > { %6011 = vst [vmem:[%s8702_s8] sm:$0xff] %v5987_v6  ;;  %6023 = vst [vmem:[%s8702_s8 + $0x60] sm:$0xff] %v5999_v27  ;;  %v5988_v44 = vmax.f32 %v5964_v59, 0.0  ;;  %v6000_v19 = vmax.f32 %v5976_v3, 0.0  ;;  %v5930_v42 = vadd.f32 %v5874_v30, %v5698_v45  ;;  %v5942_v8 = vadd.f32 %v5904_v21, %v5710_v4  ;;  %v8816_v3 = vld [vmem:[#allocation8_spill] sm:$0xff] }
 0x353   : > { %v5965_v16 = vadd.f32 %v8658_v28, %v5929_v22  ;;  %v5977_v41 = vadd.f32 %v8658_v28, %v5941_v37  ;;  %v5878_v7 = vpop.f32.mrf.mxu0  ;;  %v5908_v38 = vpop.f32.mrf.mxu1  ;;  %v5474_v43 = vadd.f32 %v8817_v62, %v8816_v3  ;;  %v5485_v63 = vadd.f32 %v8654_v24, %v8818_v48 }
 0x354   : > { %6012 = vst [vmem:[%s8702_s8 + $0x8] sm:$0xff] %v5988_v44  ;;  %6024 = vst [vmem:[%s8702_s8 + $0x68] sm:$0xff] %v6000_v19  ;;  %v5966_v49 = vadd.f32 %v8662_v13, %v5930_v42  ;;  %v5978_v32 = vadd.f32 %v8662_v13, %v5942_v8  ;;  %v5931_v45 = vadd.f32 %v5878_v7, %v5699_v55  ;;  %v8819_v44 = vld [vmem:[#allocation23_spill] sm:$0xff] }
 0x355   : > { %v5943_v46 = vadd.f32 %v5908_v38, %v5711_v17  ;;  %v5989_v20 = vmax.f32 %v5965_v16, 0.0  ;;  %v6001_v26 = vmax.f32 %v5977_v41, 0.0  ;;  %v5880_v29 = vpop.f32.mrf.mxu0  ;;  %v5910_v33 = vpop.f32.mrf.mxu1  ;;  %v5483_v55 = vadd.f32 %v8814_v5, %v8813_v39 }
 0x356   : > { %v5990_v31 = vmax.f32 %v5966_v49, 0.0  ;;  %v6002_v57 = vmax.f32 %v5978_v32, 0.0  ;;  %v5967_v50 = vadd.f32 %v8658_v28, %v5931_v45  ;;  %v5932_v4 = vadd.f32 %v5880_v29, %v8673_v1 }
 0x357   : > { %v5979_v52 = vadd.f32 %v8658_v28, %v5943_v46  ;;  %6013 = vst [vmem:[%s8702_s8 + $0x10] sm:$0xff] %v5989_v20  ;;  %6025 = vst [vmem:[%s8702_s8 + $0x70] sm:$0xff] %v6001_v26  ;;  %v5944_v17 = vadd.f32 %v5910_v33, %v5712_v58  ;;  %v5882_v2 = vpop.f32.mrf.mxu0  ;;  %v5912_v35 = vpop.f32.mrf.mxu1  ;;  %v5715_v19 = vadd.f32 %v8819_v44, %v5483_v55 }
 0x358   : > { %6014 = vst [vmem:[%s8702_s8 + $0x18] sm:$0xff] %v5990_v31  ;;  %6026 = vst [vmem:[%s8702_s8 + $0x78] sm:$0xff] %v6002_v57  ;;  %v5991_v60 = vmax.f32 %v5967_v50, 0.0  ;;  %v5933_v27 = vadd.f32 %v5882_v2, %v8680_v40  ;;  %v5945_v59 = vadd.f32 %v5912_v35, %v5713_v11  ;;  %v5968_v1 = vadd.f32 %v8662_v13, %v5932_v4 }
 0x359   : > { %v6003_v6 = vmax.f32 %v5979_v52, 0.0  ;;  %v5980_v54 = vadd.f32 %v8662_v13, %v5944_v17  ;;  %v5884_v23 = vpop.f32.mrf.mxu0  ;;  %v5914_v22 = vpop.f32.mrf.mxu1  ;;  %v5716_v24 = vadd.f32 %v8647_v51, %v5484_v61  ;;  %v5717_v38 = vadd.f32 %v8656_v15, %v5485_v63 }
 0x35a   : > { %6015 = vst [vmem:[%s8702_s8 + $0x20] sm:$0xff] %v5991_v60  ;;  %v5969_v37 = vadd.f32 %v8658_v28, %v5933_v27  ;;  %v5981_v40 = vadd.f32 %v8658_v28, %v5945_v59  ;;  %v5934_v30 = vadd.f32 %v5884_v23, %v8683_v56  ;;  %v5946_v21 = vadd.f32 %v5914_v22, %v5714_v34  ;;  %v8820_v56 = vld [vmem:[#allocation13_spill] sm:$0xff] }
 0x35b   : > { %6027 = vst [vmem:[%s8702_s8 + $0x80] sm:$0xff] %v6003_v6  ;;  %v5992_v42 = vmax.f32 %v5968_v1, 0.0  ;;  %v6004_v8 = vmax.f32 %v5980_v54, 0.0  ;;  %v5888_v14 = vpop.f32.mrf.mxu0  ;;  %v5918_v36 = vpop.f32.mrf.mxu1  ;;  %v5486_v49 = vadd.f32 %v8667_v25, %v8820_v56 }
 0x35c   : > { %v5993_v58 = vmax.f32 %v5969_v37, 0.0  ;;  %v6005_v16 = vmax.f32 %v5981_v40, 0.0  ;;  %v5970_v41 = vadd.f32 %v8662_v13, %v5934_v30  ;;  %v5982_v7 = vadd.f32 %v8662_v13, %v5946_v21 }
 0x35d   : > { %6016 = vst [vmem:[%s8702_s8 + $0x28] sm:$0xff] %v5992_v42  ;;  %6028 = vst [vmem:[%s8702_s8 + $0x88] sm:$0xff] %v6004_v8  ;;  %v5935_v51 = vadd.f32 %v5888_v14, %v8686_v0  ;;  %v5947_v32 = vadd.f32 %v5918_v36, %v5715_v19  ;;  %v5890_v45 = vpop.f32.mrf.mxu0  ;;  %v5920_v46 = vpop.f32.mrf.mxu1  ;;  %v5718_v50 = vadd.f32 %v8669_v53, %v5486_v49 }
 0x35e   : > { %6017 = vst [vmem:[%s8702_s8 + $0x30] sm:$0xff] %v5993_v58  ;;  %6029 = vst [vmem:[%s8702_s8 + $0x90] sm:$0xff] %v6005_v16  ;;  %v5994_v47 = vmax.f32 %v5970_v41, 0.0  ;;  %v6006_v11 = vmax.f32 %v5982_v7, 0.0  ;;  %v5936_v10 = vadd.f32 %v5890_v45, %v8689_v12  ;;  %v5948_v34 = vadd.f32 %v5920_v46, %v5716_v24  ;;  %v8821_v12 = vld [vmem:[#allocation16_spill] sm:$0xff] }
 0x35f   : > { %v5971_v15 = vadd.f32 %v8658_v28, %v5935_v51  ;;  %v5983_v25 = vadd.f32 %v8658_v28, %v5947_v32  ;;  %v5892_v20 = vpop.f32.mrf.mxu0  ;;  %v5922_v26 = vpop.f32.mrf.mxu1  ;;  %v5706_v57 = vadd.f32 %v8821_v12, %v5474_v43 }
 0x360   : > { %6018 = vst [vmem:[%s8702_s8 + $0x38] sm:$0xff] %v5994_v47  ;;  %6030 = vst [vmem:[%s8702_s8 + $0x98] sm:$0xff] %v6006_v11  ;;  %v5972_v0 = vadd.f32 %v8662_v13, %v5936_v10  ;;  %v5984_v29 = vadd.f32 %v8662_v13, %v5948_v34  ;;  %v5937_v33 = vadd.f32 %v5892_v20, %v8713_v18 }
 0x361   : > { %v5949_v31 = vadd.f32 %v5922_v26, %v5717_v38  ;;  %v5995_v52 = vmax.f32 %v5971_v15, 0.0  ;;  %v6007_v39 = vmax.f32 %v5983_v25, 0.0  ;;  %v5894_v5 = vpop.f32.mrf.mxu0  ;;  %v5924_v55 = vpop.f32.mrf.mxu1 }
 0x362   : > { %v5996_v9 = vmax.f32 %v5972_v0, 0.0  ;;  %v6008_v61 = vmax.f32 %v5984_v29, 0.0  ;;  %v5973_v4 = vadd.f32 %v8658_v28, %v5937_v33  ;;  %v5938_v17 = vadd.f32 %v5894_v5, %v5706_v57 }
 0x363   : > { %v5985_v18 = vadd.f32 %v8658_v28, %v5949_v31  ;;  %6019 = vst [vmem:[%s8702_s8 + $0x40] sm:$0xff] %v5995_v52  ;;  %6031 = vst [vmem:[%s8702_s8 + $0xa0] sm:$0xff] %v6007_v39  ;;  %v5950_v2 = vadd.f32 %v5924_v55, %v5718_v50 }
 0x364   : > { %6020 = vst [vmem:[%s8702_s8 + $0x48] sm:$0xff] %v5996_v9  ;;  %6032 = vst [vmem:[%s8702_s8 + $0xa8] sm:$0xff] %v6008_v61  ;;  %v5997_v53 = vmax.f32 %v5973_v4, 0.0  ;;  %v5974_v60 = vadd.f32 %v8662_v13, %v5938_v17 }
 0x365   : > { %v6009_v35 = vmax.f32 %v5985_v18, 0.0  ;;  %v5986_v6 = vadd.f32 %v8662_v13, %v5950_v2 }
 0x366   : > { %6021 = vst [vmem:[%s8702_s8 + $0x50] sm:$0xff] %v5997_v53  ;;  %v5998_v27 = vmax.f32 %v5974_v60, 0.0 }
 0x367   : > { %6033 = vst [vmem:[%s8702_s8 + $0xb0] sm:$0xff] %v6009_v35  ;;  %v6010_v59 = vmax.f32 %v5986_v6, 0.0 }
 0x368   : > { %6022 = vst [vmem:[%s8702_s8 + $0x58] sm:$0xff] %v5998_v27 }
 0x369   : > { %6034 = vst [vmem:[%s8702_s8 + $0xb8] sm:$0xff] %v6010_v59 }
 0x36a PF: > { %s15_s12 = sadd.s32 1, %s7241_s12  }
 0x36b   : > { %p12_p3 = scmp.ge.s32.totalorder %s15_s12, 4  }
 0x36d   :  { %14 = sbr.rel (!%p12_p3) target bundleno = 2 (0x2), region = 95 }
 0x372   :  { %6056 = vsyncpa [#allocation3], 1 }
 0x373   :  { %6058 = vsyncpa [#allocation3 + $0x1], 1 }
 0x374   :  { %6059 = vsyncpa [#allocation5], 1 }

// kernel: flow_module_multiscale.4
= control target key start
LH: loop header
LB: loop body
LE: loop exit
PB: predicated region body
PF: predicated region fallthrough
CT: control target
= control target key end

     0   :  { %s6121_s12 = smov 0   ;;  %s8742_s0 = inlined_call_operand.vmem [shape: f32[2,328,256], index: 0, kind: input, shape index: {}]   ;;  %s8743_s1 = inlined_call_operand.vmem [shape: bf16[9,256,128], index: 1, kind: input, shape index: {}]   ;;  %s8744_s2 = inlined_call_operand.vmem [shape: f32[1,128], index: 2, kind: input, shape index: {}]   ;;  %s8745_s3 = inlined_call_operand.vmem [shape: f32[2,288,128], index: 3, kind: output, shape index: {}]  }
   0x1 LB: > { %s5489_s13 = sadd.s32 4294967295, %s6098_s12   ;;  %p5493_p0 = scmp.ge.s32.totalorder %s6098_s12, 1  ;;  %s6098_s12 = sphi %s6121_s12, %s13_s12  }
   0x2   : > { %p137_p1 = scmp.lt.s32.totalorder %s6098_s12, 3 }
   0x4   : > { %p138_p2 = pnand %p5493_p0, %p137_p1 }
   0x6   : > { %141 = sbr.rel (%p138_p2) target bundleno = 922 (0x39a), region = 32 }
   0xb   : > { %v5942_v0 = vld [vmem:[%s8743_s1 + $0xb8] sm:$0xff]   ;;  %v8746_v1 = vmov 0   ;;  %p161_p3 = scmp.lt.s32.totalorder %s5489_s13, 1  ;;  %v5943_v2 = vld [vmem:[%s8743_s1 + $0xb0] sm:$0xff]   ;;  %v5944_v3 = vld [vmem:[%s8743_s1 + $0xa8] sm:$0xff]   ;;  %vm1311_vm1 = vcmask 1046528  }
   0xc   : > { %782 = vmatprep.subr.bf16.mxu0 %v8746_v1  ;;  %5899 = vmatprep.subr.bf16.mxu1 %v8746_v1  ;;  %v5945_v4 = vld [vmem:[%s8743_s1 + $0xa0] sm:$0xff]   ;;  %v5946_v5 = vld [vmem:[%s8743_s1 + $0x98] sm:$0xff]   ;;  %v5947_v13 = vld [vmem:[%s8743_s1 + $0x90] sm:$0xff]   ;;  %vm353_vm0 = vsmask.f32 7424  ;;  %vm3105_vm3 = vcmask 1045504  }
   0xd   : > { %783 = vmatpush1.bf16.msra.mxu0 %v5942_v0  ;;  %5915 = vmatpush1.bf16.msra.mxu1 %v5942_v0  ;;  %s9036_s13 = smov (!%p161_p3, %s5489_s13), 1  ;;  %v5948_v25 = vld [vmem:[%s8743_s1 + $0x88] sm:$0xff]   ;;  %v5949_v32 = vld [vmem:[%s8743_s1 + $0x80] sm:$0xff]   ;;  %v5950_v35 = vld [vmem:[%s8743_s1 + $0xf8] sm:$0xff]   ;;  %vm2374_vm2 = vsmask.f32 6400 }
   0xe   : > { %784 = vmatprep.subr.bf16.mxu0 %v8746_v1  ;;  %5900 = vmatprep.subr.bf16.mxu1 %v8746_v1  ;;  %s5931_s20 = smul.u32 656, %s9036_s13  ;;  %v5951_v36 = vld [vmem:[%s8743_s1 + $0xf0] sm:$0xff]   ;;  %v5952_v37 = vld [vmem:[%s8743_s1 + $0xe8] sm:$0xff]   ;;  %v5953_v38 = vld [vmem:[%s8743_s1 + $0xe0] sm:$0xff]   ;;  %vm4168_vm4 = vsmask.f32 5376 }
   0xf   : > { %v5954_v46 = vld [vmem:[%s8743_s1 + $0xd8] sm:$0xff]   ;;  %v5955_v54 = vld [vmem:[%s8743_s1 + $0xd0] sm:$0xff]   ;;  %vm4899_vm5 = vcmask 1044480  }
  0x10   : > { %s6155_s25 = scalar_lea.vmem %s8742_s0, %s5931_s20 }
  0x11   : > { %785 = vmatpush1.bf16.msra.mxu0 %v5943_v2  ;;  %5916 = vmatpush1.bf16.msra.mxu1 %v5943_v2  ;;  %v175_v6 = vld [vmem:[%s6155_s25 + $0x18] sm:$0xff]  ;;  %v177_v7 = vld [vmem:[%s6155_s25 + $0x28] sm:$0xff]  ;;  %v174_v39 = vld [vmem:[%s6155_s25 + $0x10] sm:$0xff] }
  0x12   : > { %786 = vmatprep.subr.bf16.mxu0 %v8746_v1  ;;  %5901 = vmatprep.subr.bf16.mxu1 %v8746_v1  ;;  %v179_v8 = vld [vmem:[%s6155_s25 + $0x38] sm:$0xff]  ;;  %v313_v10 = vld [vmem:[%s6155_s25 + $0x8] sm:$0xfe]  ;;  %v176_v40 = vld [vmem:[%s6155_s25 + $0x20] sm:$0xff] }
  0x13   : > { %v6165_v9 = vpack.c.bf16 %v179_v8, %v177_v7  ;;  %v209_v11 = vld [vmem:[%s6155_s25 + $0x128] sm:$0xff]  ;;  %v211_v12 = vld [vmem:[%s6155_s25 + $0x138] sm:$0xff]  ;;  %v317_v14 = vpack.c.bf16 %v175_v6, %v313_v10  ;;  %v312_v41 = vld [vmem:[%s6155_s25] sm:$0xfe] }
  0x14   : > { %v213_v15 = vld [vmem:[%s6155_s25 + $0x148] sm:$0xff]  ;;  %v215_v16 = vld [vmem:[%s6155_s25 + $0x158] sm:$0xff]  ;;  %v6175_v17 = vpack.c.bf16 %v211_v12, %v209_v11  ;;  %v178_v42 = vld [vmem:[%s6155_s25 + $0x30] sm:$0xff]  ;;  %v316_v45 = vpack.c.bf16 %v174_v39, %v312_v41 }
  0x15   : > { %787 = vmatpush1.bf16.msra.mxu0 %v5944_v3  ;;  %5917 = vmatpush1.bf16.msra.mxu1 %v5944_v3  ;;  %v374_v18 = vshll.u32 %v6165_v9, 16  ;;  %v6180_v19 = vpack.c.bf16 %v215_v16, %v213_v15  ;;  %v367_v20 = vshrl.u32 %v317_v14, 16  ;;  %v369_v21 = vshll.u32 %v317_v14, 16  ;;  %v208_v43 = vld [vmem:[%s6155_s25 + $0x120] sm:$0xff]  ;;  %v210_v44 = vld [vmem:[%s6155_s25 + $0x130] sm:$0xff]  ;;  %v181_v51 = vld [vmem:[%s6155_s25 + $0x48] sm:$0xff] }
  0x16   : > { %788 = vmatprep.subr.bf16.mxu0 %v8746_v1  ;;  %5902 = vmatprep.subr.bf16.mxu1 %v8746_v1  ;;  %v502_v22 = vshll.u32 %v6175_v17, 16  ;;  %v514_v23 = vshrl.u32 %v6175_v17, 16  ;;  %v6235_v47 = vpack.c.bf16 %v178_v42, %v176_v40  ;;  %v212_v48 = vld [vmem:[%s6155_s25 + $0x140] sm:$0xff]  ;;  %v214_v49 = vld [vmem:[%s6155_s25 + $0x150] sm:$0xff]  ;;  %v6239_v50 = vpack.c.bf16 %v210_v44, %v208_v43  ;;  %v183_v52 = vld [vmem:[%s6155_s25 + $0x58] sm:$0xff] }
  0x17   : > { %v518_v24 = vshll.u32 %v6180_v19, 16  ;;  %v371_v26 = vrot.slane %v369_v21, 1  ;;  %v6188_v27 = vrot.slane %v374_v18, 1  ;;  %v217_v53 = vld [vmem:[%s6155_s25 + $0x168] sm:$0xff]  ;;  %v357_v55 = vshll.u32 %v316_v45, 16  ;;  %v219_v56 = vld [vmem:[%s6155_s25 + $0x178] sm:$0xff] }
  0x18   : > { %v6190_v28 = vrot.slane %v502_v22, 1  ;;  %v180_v57 = vld [vmem:[%s6155_s25 + $0x40] sm:$0xff]  ;;  %v182_v58 = vld [vmem:[%s6155_s25 + $0x50] sm:$0xff]  ;;  %v362_v59 = vshll.u32 %v6235_v47, 16  ;;  %v6253_v60 = vpack.c.bf16 %v214_v49, %v212_v48  ;;  %v494_v62 = vshll.u32 %v6239_v50, 16  ;;  %v185_v7 = vld [vmem:[%s6155_s25 + $0x68] sm:$0xff] }
  0x19   : > { %789 = vmatpush1.bf16.msra.mxu0 %v5945_v4  ;;  %5918 = vmatpush1.bf16.msra.mxu1 %v5945_v4  ;;  %v6194_v29 = vrot.slane %v518_v24, 1  ;;  %v372_v30 = vor.u32 %v371_v26, %v367_v20  ;;  %v216_v61 = vld [vmem:[%s6155_s25 + $0x160] sm:$0xff]  ;;  %v218_v63 = vld [vmem:[%s6155_s25 + $0x170] sm:$0xff]  ;;  %v6260_v0 = vpack.c.bf16 %v183_v52, %v181_v51  ;;  %v386_v2 = vshrl.u32 %v6165_v9, 16  ;;  %v187_v8 = vld [vmem:[%s6155_s25 + $0x78] sm:$0xff] }
  0x1a   : > { %790 = vmatprep.subr.bf16.mxu0 %v8746_v1  ;;  %5903 = vmatprep.subr.bf16.mxu1 %v8746_v1  ;;  %v516_v31 = vor.u32 %v514_v23, %v6190_v28  ;;  %v6263_v3 = vpack.c.bf16 %v219_v56, %v217_v53  ;;  %v355_v4 = vshrl.u32 %v316_v45, 16  ;;  %v6266_v6 = vpack.c.bf16 %v182_v58, %v180_v57  ;;  %v5956_v10 = vld [vmem:[%s8743_s1 + $0xc8] sm:$0xff]   ;;  %v223_v16 = vld [vmem:[%s6155_s25 + $0x198] sm:$0xff]  ;;  %v186_v26 = vld [vmem:[%s6155_s25 + $0x70] sm:$0xff] }
  0x1b   : > { %v377_v33 = vsel %vm353_vm0, %v372_v30, %v6188_v27  ;;  %v359_v11 = vrot.slane %v357_v55, 1  ;;  %v364_v12 = vrot.slane %v362_v59, 1  ;;  %v6274_v14 = vpack.c.bf16 %v218_v63, %v216_v61  ;;  %v221_v15 = vld [vmem:[%s6155_s25 + $0x188] sm:$0xff]  ;;  %v5958_v45 = vld [vmem:[%s8743_s1 + $0x38] sm:$0xff]  }
  0x1c   : > { %v521_v34 = vsel %vm353_vm0, %v516_v31, %v6194_v29  ;;  %814 = vmatprep.mubr.bf16.mxu0 %v377_v33  ;;  %v6278_v18 = vrot.slane %v494_v62, 1  ;;  %v530_v20 = vshrl.u32 %v6180_v19, 16  ;;  %v390_v21 = vshll.u32 %v6260_v0, 16  ;;  %v189_v52 = vld [vmem:[%s6155_s25 + $0x88] sm:$0xff]  ;;  %v191_v53 = vld [vmem:[%s6155_s25 + $0x98] sm:$0xff] }
  0x1d   : > { %791 = vmatpush1.bf16.msra.mxu0 %v5946_v5  ;;  %5919 = vmatpush1.bf16.msra.mxu1 %v5946_v5  ;;  %v506_v5 = vshrl.u32 %v6239_v50, 16  ;;  %v534_v22 = vshll.u32 %v6263_v3, 16  ;;  %v378_v23 = vshrl.u32 %v6235_v47, 16  ;;  %v6286_v24 = vpack.c.bf16 %v187_v8, %v185_v7  ;;  %v225_v58 = vld [vmem:[%s6155_s25 + $0x1a8] sm:$0xff]  ;;  %v227_v59 = vld [vmem:[%s6155_s25 + $0x1b8] sm:$0xff] }
  0x1e   : > { %792 = vmatprep.subr.bf16.mxu0 %v8746_v1  ;;  %5904 = vmatprep.subr.bf16.mxu1 %v8746_v1  ;;  %v382_v30 = vshll.u32 %v6266_v6, 16  ;;  %v6291_v31 = vpack.c.bf16 %v223_v16, %v221_v15  ;;  %v360_v33 = vor.u32 %v359_v11, %v355_v4  ;;  %v522_v40 = vshrl.u32 %v6253_v60, 16  ;;  %v188_v4 = vld [vmem:[%s6155_s25 + $0x80] sm:$0xff]  ;;  %v5960_v11 = vld [vmem:[%s8743_s1 + $0x30] sm:$0xff]  }
  0x1f   : > { %886 = vmatprep.mubr.bf16.mxu1 %v521_v34  ;;  %v388_v34 = vor.u32 %v386_v2, %v6188_v27  ;;  %v532_v27 = vor.u32 %v530_v20, %v6194_v29  ;;  %v380_v42 = vor.u32 %v378_v23, %v364_v12  ;;  %v402_v43 = vshrl.u32 %v6260_v0, 16 }
  0x20   : > { %v406_v44 = vshll.u32 %v6286_v24, 16  ;;  %v392_v48 = vrot.slane %v390_v21, 1  ;;  %v546_v49 = vshrl.u32 %v6263_v3, 16  ;;  %v550_v29 = vshll.u32 %v6291_v31, 16  ;;  %v224_v21 = vld [vmem:[%s6155_s25 + $0x1a0] sm:$0xff] }
  0x21   : > { %793 = vmatpush1.bf16.msra.mxu0 %v5947_v13  ;;  %5920 = vmatpush1.bf16.msra.mxu1 %v5947_v13  ;;  %v510_v13 = vshll.u32 %v6253_v60, 16  ;;  %v384_v55 = vrot.slane %v382_v30, 1  ;;  %v394_v57 = vshrl.u32 %v6266_v6, 16  ;;  %v365_v61 = vsel %vm353_vm0, %v360_v33, %v364_v12  ;;  %v193_v30 = vld [vmem:[%s6155_s25 + $0xa8] sm:$0xff] }
  0x22   : > { %794 = vmatprep.subr.bf16.mxu0 %v8746_v1  ;;  %5905 = vmatprep.subr.bf16.mxu1 %v8746_v1  ;;  %v6332_v7 = vrot.slane %v406_v44, 1  ;;  %v6334_v8 = vpack.c.bf16 %v191_v53, %v189_v52  ;;  %v393_v12 = vsel %vm353_vm0, %v388_v34, %v392_v48  ;;  %v6344_v16 = vrot.slane %v550_v29, 1  ;;  %v205_v33 = vld [vmem:[%s6155_s25 + $0x108] sm:$0xff]  ;;  %v192_v44 = vld [vmem:[%s6155_s25 + $0xa0] sm:$0xff] }
  0x23   : > { %v512_v39 = vrot.slane %v510_v13, 1  ;;  %v5961_v13 = vld [vmem:[%s8743_s1 + $0x130] sm:$0xff]   ;;  %v418_v52 = vshrl.u32 %v6286_v24, 16  ;;  %v562_v53 = vshrl.u32 %v6291_v31, 16 }
  0x25   : > { %795 = vmatpush1.bf16.msra.mxu0 %v5948_v25  ;;  %5921 = vmatpush1.bf16.msra.mxu1 %v5948_v25  ;;  %v184_v25 = vld [vmem:[%s6155_s25 + $0x60] sm:$0xff]  ;;  %v524_v63 = vor.u32 %v522_v40, %v512_v39  ;;  %v207_v40 = vld [vmem:[%s6155_s25 + $0x118] sm:$0xff] }
  0x26   : > { %796 = vmatprep.subr.bf16.mxu0 %v8746_v1  ;;  %5906 = vmatprep.subr.bf16.mxu1 %v8746_v1  ;;  %v6302_v41 = vpack.c.bf16 %v186_v26, %v184_v25  ;;  %v385_v25 = vsel %vm353_vm0, %v380_v42, %v384_v55  ;;  %v6351_v26 = vpack.c.bf16 %v227_v59, %v225_v58 }
  0x27   : > { %v6369_v42 = vor.u32 %v394_v57, %v384_v55  ;;  %v204_v55 = vld [vmem:[%s6155_s25 + $0x100] sm:$0xff]  ;;  %v206_v57 = vld [vmem:[%s6155_s25 + $0x110] sm:$0xff] }
  0x28   : > { %v398_v2 = vshll.u32 %v6302_v41, 16  ;;  %8821 = vst [vmem:[#allocation2_spill] sm:$0xff] %v6351_v26  ;;  %v566_v58 = vshll.u32 %v6351_v26, 16 }
  0x29   : > { %797 = vmatpush1.bf16.msra.mxu0 %v5949_v32  ;;  %5922 = vmatpush1.bf16.msra.mxu1 %v5949_v32  ;;  %v220_v32 = vld [vmem:[%s6155_s25 + $0x180] sm:$0xff] }
  0x2a   : > { %798 = vmatprep.subr.bf16.mxu0 %v8746_v1  ;;  %5907 = vmatprep.subr.bf16.mxu1 %v8746_v1 }
  0x2d   : > { %799 = vmatpush2.bf16.msra.mxu0 %v5950_v35  ;;  %5923 = vmatpush2.bf16.msra.mxu1 %v5950_v35  ;;  %v526_v35 = vshll.u32 %v6274_v14, 16 }
  0x2e   : > { %800 = vmatprep.subr.bf16.mxu0 %v8746_v1  ;;  %5908 = vmatprep.subr.bf16.mxu1 %v8746_v1 }
  0x2f   : > { %v6321_v56 = vrot.slane %v526_v35, 1  ;;  %v6358_v35 = vrot.slane %v398_v2, 1  ;;  %v6397_v2 = vpack.c.bf16 %v206_v57, %v204_v55  ;;  %v233_v57 = vld [vmem:[%s6155_s25 + $0x1e8] sm:$0xff] }
  0x31   : > { %801 = vmatpush2.bf16.msra.mxu0 %v5951_v36  ;;  %5924 = vmatpush2.bf16.msra.mxu1 %v5951_v36  ;;  %v222_v36 = vld [vmem:[%s6155_s25 + $0x190] sm:$0xff]  ;;  %v529_v34 = vsel %vm353_vm0, %v524_v63, %v6321_v56 }
  0x32   : > { %802 = vmatprep.subr.bf16.mxu0 %v8746_v1  ;;  %5909 = vmatprep.subr.bf16.mxu1 %v8746_v1  ;;  %v6317_v51 = vpack.c.bf16 %v222_v36, %v220_v32  ;;  %v195_v32 = vld [vmem:[%s6155_s25 + $0xb8] sm:$0xff]  ;;  %v538_v36 = vshrl.u32 %v6274_v14, 16 }
  0x34   : > { %v542_v20 = vshll.u32 %v6317_v51, 16 }
  0x35   : > { %803 = vmatpush2.bf16.msra.mxu0 %v5952_v37  ;;  %5925 = vmatpush2.bf16.msra.mxu1 %v5952_v37  ;;  %v5957_v37 = vld [vmem:[%s8743_s1 + $0xc0] sm:$0xff]  }
  0x36   : > { %804 = vmatprep.subr.bf16.mxu0 %v8746_v1  ;;  %5910 = vmatprep.subr.bf16.mxu1 %v8746_v1  ;;  %v6384_v29 = vrot.slane %v542_v20, 1 }
  0x39   : > { %805 = vmatpush2.bf16.msra.mxu0 %v5953_v38  ;;  %5926 = vmatpush2.bf16.msra.mxu1 %v5953_v38  ;;  %v508_v38 = vor.u32 %v506_v5, %v6278_v18  ;;  %v404_v5 = vor.u32 %v402_v43, %v392_v48  ;;  %v422_v43 = vshll.u32 %v6334_v8, 16  ;;  %v5963_v48 = vld [vmem:[%s8743_s1 + $0x128] sm:$0xff]  }
  0x3a   : > { %806 = vmatprep.subr.bf16.mxu0 %v8746_v1  ;;  %5911 = vmatprep.subr.bf16.mxu1 %v8746_v1 }
  0x3b   : > { %v513_v62 = vsel %vm353_vm0, %v508_v38, %v512_v39  ;;  %v229_v38 = vld [vmem:[%s6155_s25 + $0x1c8] sm:$0xff]  ;;  %v231_v39 = vld [vmem:[%s6155_s25 + $0x1d8] sm:$0xff]  ;;  %v6408_v20 = vrot.slane %v422_v43, 1 }
  0x3c   : > { %v199_v43 = vld [vmem:[%s6155_s25 + $0xd8] sm:$0xff] }
  0x3d   : > { %807 = vmatpush2.bf16.msra.mxu0 %v5954_v46  ;;  %5927 = vmatpush2.bf16.msra.mxu1 %v5954_v46  ;;  %v5959_v46 = vld [vmem:[%s8743_s1 + $0x138] sm:$0xff]  }
  0x3e   : > { %808 = vmatprep.subr.bf16.mxu0 %v8746_v1  ;;  %5912 = vmatprep.subr.bf16.mxu1 %v8746_v1 }
  0x41   : > { %809 = vmatpush2.bf16.msra.mxu0 %v5955_v54  ;;  %5928 = vmatpush2.bf16.msra.mxu1 %v5955_v54  ;;  %v536_v54 = vrot.slane %v534_v22, 1  ;;  %v226_v22 = vld [vmem:[%s6155_s25 + $0x1b0] sm:$0xff] }
  0x42   : > { %810 = vmatprep.subr.bf16.mxu0 %v8746_v1  ;;  %5913 = vmatprep.subr.bf16.mxu1 %v8746_v1  ;;  %v6392_v59 = vpack.c.bf16 %v226_v22, %v224_v21 }
  0x43   : > { %v548_v15 = vor.u32 %v546_v49, %v536_v54  ;;  %v537_v23 = vsel %vm353_vm0, %v532_v27, %v536_v54  ;;  %v409_v27 = vsel %vm353_vm0, %v404_v5, %v6332_v7  ;;  %v194_v54 = vld [vmem:[%s6155_s25 + $0xb0] sm:$0xff] }
  0x44   : > { %8822 = vst [vmem:[#allocation3_spill] sm:$0xff] %v6392_v59  ;;  %v6410_v21 = vpack.c.bf16 %v194_v54, %v192_v44  ;;  %v420_v54 = vor.u32 %v418_v52, %v6332_v7  ;;  %v401_v7 = vsel %vm353_vm0, %v6369_v42, %v6358_v35 }
  0x45   : > { %811 = vmatpush2.bf16.msra.mxu0 %v5956_v10  ;;  %5929 = vmatpush2.bf16.msra.mxu1 %v5956_v10  ;;  %v190_v10 = vld [vmem:[%s6155_s25 + $0x90] sm:$0xff]  ;;  %v553_v49 = vsel %vm353_vm0, %v548_v15, %v6344_v16  ;;  %v540_v15 = vor.u32 %v538_v36, %v6321_v56  ;;  %v5964_v56 = vld [vmem:[%s8743_s1 + $0x20] sm:$0xff]   ;;  %v558_v36 = vshll.u32 %v6392_v59, 16 }
  0x46   : > { %812 = vmatprep.subr.bf16.mxu0 %v8746_v1  ;;  %5914 = vmatprep.subr.bf16.mxu1 %v8746_v1  ;;  %v430_v55 = vshll.u32 %v6410_v21, 16 }
  0x47   : > { %v6466_v52 = vrot.slane %v558_v36, 1  ;;  %v5968_v36 = vld [vmem:[%s8743_s1 + $0x10] sm:$0xff]  }
  0x49   : > { %813 = vmatpush2.bf16.msra.mxu0 %v5957_v37  ;;  %5930 = vmatpush2.bf16.msra.mxu1 %v5957_v37  ;;  %v6361_v37 = vpack.c.bf16 %v190_v10, %v188_v4  ;;  %v410_v4 = vshrl.u32 %v6302_v41, 16  ;;  %v6401_v10 = vpack.c.bf16 %v195_v32, %v193_v30  ;;  %v5965_v32 = vld [vmem:[%s8743_s1 + $0x120] sm:$0xff]  }
  0x4a   : > { %1055 = vmatprep.subr.bf16.mxu1 %v8746_v1  ;;  %1518 = vmatprep.subr.bf16.mxu0 %v8746_v1 }
  0x4b   : > { %v414_v5 = vshll.u32 %v6361_v37, 16 }
  0x4c   : > { %815 = vmatmul.mubr.bf16.vlgmr.msra.gmra.mxu0 %v365_v61  ;;  %887 = vmatmul.mubr.bf16.vlgmr.msra.gmra.mxu1 %v513_v62  ;;  %v228_v61 = vld [vmem:[%s6155_s25 + $0x1c0] sm:$0xff]  ;;  %v230_v62 = vld [vmem:[%s6155_s25 + $0x1d0] sm:$0xff] }
  0x4d   : > { %1056 = vmatpush1.bf16.msra.mxu1 %v5958_v45  ;;  %1519 = vmatpush1.bf16.msra.mxu0 %v5959_v46  ;;  %v6373_v45 = vpack.c.bf16 %v207_v40, %v205_v33  ;;  %v5962_v46 = vld [vmem:[%s8743_s1 + $0x28] sm:$0xff]   ;;  %v6414_v22 = vpack.c.bf16 %v230_v62, %v228_v61  ;;  %v6425_v33 = vrot.slane %v566_v58, 1  ;;  %v235_v61 = vld [vmem:[%s6155_s25 + $0x1f8] sm:$0xff]  ;;  %v6464_v42 = vrot.slane %v414_v5, 1 }
  0x4e   : > { %1057 = vmatprep.subr.bf16.mxu1 %v8746_v1  ;;  %822 = vmatprep.mubr.bf16.mxu0 %v393_v12  ;;  %v6403_v12 = vpack.c.bf16 %v231_v39, %v229_v38  ;;  %v490_v39 = vshrl.u32 %v6397_v2, 16  ;;  %v197_v40 = vld [vmem:[%s6155_s25 + $0xc8] sm:$0xff] }
  0x4f   : > { %894 = vmatprep.mubr.bf16.mxu1 %v537_v23  ;;  %1520 = vmatprep.subr.bf16.mxu0 %v8746_v1  ;;  %v486_v63 = vshll.u32 %v6373_v45, 16  ;;  %v498_v30 = vshrl.u32 %v6373_v45, 16  ;;  %v574_v58 = vshll.u32 %v6414_v22, 16  ;;  %v6476_v5 = vpack.c.bf16 %v199_v43, %v197_v40 }
  0x50   : > { %8823 = vst [vmem:[#allocation4_spill] sm:$0xff] %v6403_v12  ;;  %v6490_v40 = vrot.slane %v430_v55, 1 }
  0x51   : > { %1058 = vmatpush1.bf16.msra.mxu1 %v5960_v11  ;;  %1521 = vmatpush1.bf16.msra.mxu0 %v5961_v13  ;;  %v478_v11 = vshll.u32 %v6397_v2, 16  ;;  %v6416_v23 = vrot.slane %v486_v63, 1  ;;  %v425_v63 = vsel %vm353_vm0, %v420_v54, %v6408_v20  ;;  %v6492_v43 = vrot.slane %v574_v58, 1  ;;  %v234_v58 = vld [vmem:[%s6155_s25 + $0x1f0] sm:$0xff] }
  0x52   : > { %1059 = vmatprep.subr.bf16.mxu1 %v8746_v1  ;;  %1522 = vmatprep.subr.bf16.mxu0 %v8746_v1  ;;  %v412_v13 = vor.u32 %v410_v4, %v6358_v35  ;;  %v5970_v35 = vld [vmem:[%s8743_s1 + $0x8] sm:$0xff]  }
  0x53   : > { %v6428_v38 = vrot.slane %v478_v11, 1  ;;  %v500_v44 = vor.u32 %v498_v30, %v6416_v23  ;;  %v570_v11 = vshrl.u32 %v6392_v59, 16  ;;  %v196_v30 = vld [vmem:[%s6155_s25 + $0xc0] sm:$0xff] }
  0x54   : > { %823 = vmatmul.mubr.bf16.gmra.mxu0 %v385_v25  ;;  %895 = vmatmul.mubr.bf16.gmra.mxu1 %v529_v34  ;;  %v438_v25 = vshll.u32 %v6401_v10, 16  ;;  %v582_v34 = vshll.u32 %v6403_v12, 16 }
  0x55   : > { %1060 = vmatpush1.bf16.msra.mxu1 %v5962_v46  ;;  %1523 = vmatpush1.bf16.msra.mxu0 %v5963_v48  ;;  %v492_v46 = vor.u32 %v490_v39, %v6428_v38  ;;  %v564_v48 = vor.u32 %v562_v53, %v6344_v16  ;;  %v6447_v62 = vsel %vm353_vm0, %v500_v44, %v6190_v28  ;;  %v5966_v28 = vld [vmem:[%s8743_s1 + $0x18] sm:$0xff]   ;;  %v434_v53 = vshrl.u32 %v6334_v8, 16  ;;  %v5969_v39 = vld [vmem:[%s8743_s1 + $0x110] sm:$0xff]  }
  0x56   : > { %1061 = vmatprep.subr.bf16.mxu1 %v8746_v1  ;;  %830 = vmatprep.mubr.bf16.mxu0 %v409_v27  ;;  %v545_v27 = vsel %vm353_vm0, %v540_v15, %v6384_v29  ;;  %v5967_v16 = vld [vmem:[%s8743_s1 + $0x118] sm:$0xff]   ;;  %v426_v15 = vshrl.u32 %v6361_v37, 16  ;;  %v440_v44 = vrot.slane %v438_v25, 1  ;;  %v584_v54 = vrot.slane %v582_v34, 1 }
  0x57   : > { %902 = vmatprep.mubr.bf16.mxu1 %v553_v49  ;;  %1524 = vmatprep.subr.bf16.mxu0 %v8746_v1  ;;  %v6456_v49 = vsel %vm353_vm0, %v492_v46, %v6278_v18  ;;  %v578_v18 = vshrl.u32 %v6351_v26, 16  ;;  %v6488_v46 = vpack.c.bf16 %v235_v61, %v233_v57  ;;  %v8824_v25 = vshrl.u32 %v6317_v51, 16 }
  0x58   : > { %v594_v57 = vshrl.u32 %v6403_v12, 16  ;;  %v454_v61 = vshll.u32 %v6476_v5, 16  ;;  %v436_v4 = vor.u32 %v434_v53, %v6408_v20  ;;  %v239_v53 = vld [vmem:[%s6155_s25 + $0x218] sm:$0xff]  ;;  %v572_v12 = vor.u32 %v570_v11, %v6466_v52 }
  0x59   : > { %1062 = vmatpush1.bf16.msra.mxu1 %v5964_v56  ;;  %1525 = vmatpush1.bf16.msra.mxu0 %v5965_v32  ;;  %v198_v56 = vld [vmem:[%s6155_s25 + $0xd0] sm:$0xff]  ;;  %v569_v32 = vsel %vm353_vm0, %v564_v48, %v6425_v33  ;;  %v450_v48 = vshrl.u32 %v6401_v10, 16  ;;  %v556_v34 = vor.u32 %v8824_v25, %v6384_v29  ;;  %v5971_v29 = vld [vmem:[%s8743_s1 + $0x108] sm:$0xff]   ;;  %v417_v25 = vsel %vm353_vm0, %v412_v13, %v6464_v42 }
  0x5a   : > { %1063 = vmatprep.subr.bf16.mxu1 %v8746_v1  ;;  %1526 = vmatprep.subr.bf16.mxu0 %v8746_v1  ;;  %v232_v1 = vld [vmem:[%s6155_s25 + $0x1e0] sm:$0xff]  ;;  %v6503_v55 = vpack.c.bf16 %v198_v56, %v196_v30 }
  0x5b   : > { %v6520_v30 = vpack.c.bf16 %v234_v58, %v232_v1  ;;  %v6532_v1 = vrot.slane %v454_v61, 1  ;;  %v200_v56 = vld [vmem:[%s6155_s25 + $0xe0] sm:$0xff]  ;;  %v428_v61 = vor.u32 %v426_v15, %v6464_v42  ;;  %v466_v42 = vshrl.u32 %v6476_v5, 16  ;;  %v238_v15 = vld [vmem:[%s6155_s25 + $0x210] sm:$0xff] }
  0x5c   : > { %831 = vmatmul.mubr.bf16.gmra.mxu0 %v401_v7  ;;  %903 = vmatmul.mubr.bf16.gmra.mxu1 %v545_v27  ;;  %v8825_v27 = vmov 0   ;;  %v561_v7 = vsel %vm353_vm0, %v556_v34, %v6466_v52  ;;  %v446_v20 = vshll.u32 %v6503_v55, 16  ;;  %v5974_v52 = vld [vmem:[%s8743_s1 + $0x78] sm:$0xff]  }
  0x5d   : > { %1064 = vmatpush1.bf16.msra.mxu1 %v5966_v28  ;;  %1527 = vmatpush1.bf16.msra.mxu0 %v5967_v16  ;;  %v580_v28 = vor.u32 %v578_v18, %v6425_v33  ;;  %v598_v16 = vshll.u32 %v6488_v46, 16  ;;  %v237_v33 = vld [vmem:[%s6155_s25 + $0x208] sm:$0xff]  ;;  %v441_v18 = vsel %vm353_vm0, %v436_v4, %v440_v44  ;;  %v590_v4 = vshll.u32 %v6520_v30, 16 }
  0x5e   : > { %838 = vmatprep.mubr.bf16.mxu0 %v425_v63  ;;  %910 = vmatprep.mubr.bf16.mxu1 %v569_v32  ;;  %v201_v63 = vld [vmem:[%s6155_s25 + $0xe8] sm:$0xff]  ;;  %v203_v32 = vld [vmem:[%s6155_s25 + $0xf8] sm:$0xff]  ;;  %v6550_v59 = vrot.slane %v446_v20, 1  ;;  %v6552_v26 = vpack.c.bf16 %v239_v53, %v237_v33  ;;  %v240_v33 = vld [vmem:[%s6155_s25 + $0x220] sm:$0xff] }
  0x5f   : > { %1065 = vmatprep.subr.bf16.mxu1 %v8825_v27  ;;  %1528 = vmatprep.subr.bf16.mxu0 %v8825_v27  ;;  %v585_v13 = vsel %vm353_vm0, %v580_v28, %v584_v54  ;;  %v600_v34 = vrot.slane %v598_v16, 1  ;;  %v6543_v58 = vpack.c.bf16 %v203_v32, %v201_v63  ;;  %v202_v28 = vld [vmem:[%s6155_s25 + $0xf0] sm:$0xff]  ;;  %v236_v16 = vld [vmem:[%s6155_s25 + $0x200] sm:$0xff]  ;;  %v452_v63 = vor.u32 %v450_v48, %v440_v44 }
  0x60   : > { %8826 = vst [vmem:[#allocation5_spill] sm:$0xff] %v6552_v26  ;;  %v433_v44 = vsel %vm353_vm0, %v428_v61, %v6490_v40  ;;  %v6571_v48 = vrot.slane %v590_v4, 1  ;;  %v577_v32 = vsel %vm353_vm0, %v572_v12, %v6492_v43  ;;  %v6578_v20 = vpack.c.bf16 %v238_v15, %v236_v16  ;;  %v242_v53 = vld [vmem:[%s6155_s25 + $0x230] sm:$0xff] }
  0x61   : > { %1066 = vmatpush1.bf16.msra.mxu1 %v5968_v36  ;;  %1529 = vmatpush1.bf16.msra.mxu0 %v5969_v39  ;;  %v5972_v36 = vld [vmem:[%s8743_s1] sm:$0xff]   ;;  %v470_v11 = vshll.u32 %v6543_v58, 16  ;;  %v5976_v12 = vld [vmem:[%s8743_s1 + $0x70] sm:$0xff]  }
  0x62   : > { %1067 = vmatprep.subr.bf16.mxu1 %v8825_v27  ;;  %1530 = vmatprep.subr.bf16.mxu0 %v8825_v27  ;;  %v5973_v39 = vld [vmem:[%s8743_s1 + $0x100] sm:$0xff]   ;;  %v5977_v15 = vld [vmem:[%s8743_s1 + $0x170] sm:$0xff]  }
  0x64   : > { %839 = vmatmul.mubr.bf16.gmra.mxu0 %v417_v25  ;;  %911 = vmatmul.mubr.bf16.gmra.mxu1 %v561_v7  ;;  %v596_v7 = vor.u32 %v594_v57, %v584_v54  ;;  %v5975_v54 = vld [vmem:[%s8743_s1 + $0x178] sm:$0xff]   ;;  %v610_v25 = vshrl.u32 %v6488_v46, 16 }
  0x65   : > { %1068 = vmatpush1.bf16.msra.mxu1 %v5970_v35  ;;  %1531 = vmatpush1.bf16.msra.mxu0 %v5971_v29  ;;  %v6563_v35 = vpack.c.bf16 %v202_v28, %v200_v56  ;;  %v241_v29 = vld [vmem:[%s6155_s25 + $0x228] sm:$0xff]  ;;  %v243_v57 = vld [vmem:[%s6155_s25 + $0x238] sm:$0xff]  ;;  %v614_v56 = vshll.u32 %v6552_v26, 16  ;;  %v8827_v28 = vshrl.u32 %v6410_v21, 16 }
  0x66   : > { %846 = vmatprep.mubr.bf16.mxu0 %v441_v18  ;;  %918 = vmatprep.mubr.bf16.mxu1 %v585_v13  ;;  %v457_v18 = vsel %vm353_vm0, %v452_v63, %v6532_v1  ;;  %v601_v13 = vsel %vm353_vm0, %v596_v7, %v600_v34  ;;  %v6592_v4 = vpack.c.bf16 %v243_v57, %v241_v29  ;;  %v8828_v63 = vshrl.u32 %v6414_v22, 16  ;;  %v315_v57 = vld [vmem:[%s6155_s25 + $0x248] sm:$0x1] }
  0x67   : > { %1069 = vmatprep.subr.bf16.mxu1 %v8825_v27  ;;  %1532 = vmatprep.subr.bf16.mxu0 %v8825_v27  ;;  %v462_v61 = vshll.u32 %v6563_v35, 16  ;;  %v444_v16 = vor.u32 %v8827_v28, %v6490_v40  ;;  %v606_v29 = vshll.u32 %v6578_v20, 16  ;;  %v468_v40 = vor.u32 %v466_v42, %v6532_v1  ;;  %v5979_v42 = vld [vmem:[%s8743_s1 + $0x168] sm:$0xff]  }
  0x68   : > { %v588_v7 = vor.u32 %v8828_v63, %v6492_v43  ;;  %v5978_v43 = vld [vmem:[%s8743_s1 + $0x68] sm:$0xff]   ;;  %v482_v28 = vshrl.u32 %v6543_v58, 16 }
  0x69   : > { %1070 = vmatpush1.bf16.msra.mxu1 %v5972_v36  ;;  %1533 = vmatpush1.bf16.msra.mxu0 %v5973_v39  ;;  %v472_v36 = vrot.slane %v470_v11, 1  ;;  %v458_v39 = vshrl.u32 %v6503_v55, 16  ;;  %v602_v11 = vshrl.u32 %v6520_v30, 16 }
  0x6a   : > { %1071 = vmatprep.subr.bf16.mxu1 %v8825_v27  ;;  %1534 = vmatprep.subr.bf16.mxu0 %v8825_v27  ;;  %v593_v1 = vsel %vm353_vm0, %v588_v7, %v6571_v48  ;;  %v474_v7 = vshrl.u32 %v6563_v35, 16 }
  0x6c   : > { %847 = vmatmul.mubr.bf16.gmra.mxu0 %v433_v44  ;;  %919 = vmatmul.mubr.bf16.gmra.mxu1 %v577_v32  ;;  %v6605_v44 = vpack.c.bf16 %v242_v53, %v240_v33  ;;  %v612_v32 = vor.u32 %v610_v25, %v600_v34  ;;  %v630_v33 = vshll.u32 %v6592_v4, 16  ;;  %v608_v34 = vrot.slane %v606_v29, 1 }
  0x6d   : > { %1072 = vmatpush2.bf16.msra.mxu1 %v5974_v52  ;;  %854 = vmatprep.mubr.bf16.mxu0 %v457_v18  ;;  %v616_v52 = vrot.slane %v614_v56, 1  ;;  %v464_v18 = vrot.slane %v462_v61, 1  ;;  %v626_v25 = vshrl.u32 %v6552_v26, 16  ;;  %v319_v53 = vpack.c.bf16 %v315_v57, %v315_v57 }
  0x6e   : > { %926 = vmatprep.mubr.bf16.mxu1 %v601_v13  ;;  %1535 = vmatpush2.bf16.msra.mxu0 %v5975_v54  ;;  %v449_v54 = vsel %vm353_vm0, %v444_v16, %v6550_v59  ;;  %v622_v56 = vshll.u32 %v6605_v44, 16  ;;  %v473_v13 = vsel %vm353_vm0, %v468_v40, %v472_v36  ;;  %v5981_v16 = vld [vmem:[%s8743_s1 + $0x160] sm:$0xff]   ;;  %v632_v63 = vrot.slane %v630_v33, 1  ;;  %v5984_v33 = vld [vmem:[%s8743_s1 + $0x50] sm:$0xff]  }
  0x6f   : > { %1073 = vmatprep.subr.bf16.mxu1 %v8825_v27  ;;  %1536 = vmatprep.subr.bf16.mxu0 %v8825_v27  ;;  %v617_v61 = vsel %vm353_vm0, %v612_v32, %v616_v52  ;;  %v642_v29 = vshrl.u32 %v6592_v4, 16  ;;  %v460_v57 = vor.u32 %v458_v39, %v6550_v59  ;;  %v604_v40 = vor.u32 %v602_v11, %v6571_v48  ;;  %v5983_v59 = vld [vmem:[%s8743_s1 + $0x158] sm:$0xff]   ;;  %v314_v11 = vld [vmem:[%s6155_s25 + $0x240] sm:$0x1] }
  0x70   : > { %v624_v32 = vrot.slane %v622_v56, 1  ;;  %v628_v26 = vor.u32 %v626_v25, %v616_v52  ;;  %v634_v56 = vshrl.u32 %v6605_v44, 16 }
  0x71   : > { %1074 = vmatpush2.bf16.msra.mxu1 %v5976_v12  ;;  %v5980_v12 = vld [vmem:[%s8743_s1 + $0x60] sm:$0xff]   ;;  %v465_v48 = vsel %vm353_vm0, %v460_v57, %v464_v18  ;;  %v609_v39 = vsel %vm353_vm0, %v604_v40, %v608_v34  ;;  %v173_v40 = vld [vmem:[%s6155_s25 + $0x8] sm:$0xff] }
  0x72   : > { %1537 = vmatpush2.bf16.msra.mxu0 %v5977_v15  ;;  %1075 = vmatprep.subr.bf16.mxu1 %v8825_v27  ;;  %v618_v15 = vshrl.u32 %v6578_v20, 16  ;;  %v633_v52 = vsel %vm353_vm0, %v628_v26, %v632_v63  ;;  %v5989_v57 = vld [vmem:[%s8743_s1 + $0x140] sm:$0xff]  }
  0x73   : > { %1538 = vmatprep.subr.bf16.mxu0 %v8825_v27 }
  0x74   : > { %855 = vmatmul.mubr.bf16.gmra.mxu0 %v449_v54  ;;  %927 = vmatmul.mubr.bf16.gmra.mxu1 %v593_v1  ;;  %v646_v54 = vshll.u32 %v319_v53, 16  ;;  %v484_v1 = vor.u32 %v482_v28, %v472_v36  ;;  %v476_v28 = vor.u32 %v474_v7, %v464_v18  ;;  %v620_v26 = vor.u32 %v618_v15, %v608_v34  ;;  %v1233_v53 = vld [vmem:[%s6155_s25 + $0x8] sm:$0xfc] }
  0x75   : > { %1076 = vmatpush2.bf16.msra.mxu1 %v5978_v43  ;;  %862 = vmatprep.mubr.bf16.mxu0 %v473_v13  ;;  %v5982_v43 = vld [vmem:[%s8743_s1 + $0x58] sm:$0xff]   ;;  %v644_v18 = vor.u32 %v642_v29, %v632_v63  ;;  %v5987_v34 = vld [vmem:[%s8743_s1 + $0x148] sm:$0xff]   ;;  %v1316_v15 = vrot.slane %v6165_v9, 1  ;;  %v5988_v29 = vld [vmem:[%s8743_s1 + $0x40] sm:$0xff]  }
  0x76   : > { %934 = vmatprep.mubr.bf16.mxu1 %v617_v61  ;;  %1539 = vmatpush2.bf16.msra.mxu0 %v5979_v42  ;;  %v489_v36 = vsel %vm353_vm0, %v484_v1, %v6416_v23  ;;  %v5985_v42 = vld [vmem:[%s8743_s1 + $0x150] sm:$0xff]   ;;  %v648_v25 = vrot.slane %v646_v54, 1  ;;  %v318_v23 = vpack.c.bf16 %v314_v11, %v314_v11  ;;  %v481_v13 = vsel %vm353_vm0, %v476_v28, %v6428_v38  ;;  %v5986_v61 = vld [vmem:[%s8743_s1 + $0x48] sm:$0xff]   ;;  %v6086_v63 = vld [vmem:[%s6155_s25 + $0x18] sm:$0xff] }
  0x77   : > { %1077 = vmatprep.subr.bf16.mxu1 %v8825_v27  ;;  %1540 = vmatprep.subr.bf16.mxu0 %v8825_v27  ;;  %v1237_v7 = vpack.c.bf16 %v6086_v63, %v1233_v53  ;;  %v1232_v54 = vld [vmem:[%s6155_s25] sm:$0xfc]  ;;  %v636_v1 = vor.u32 %v634_v56, %v624_v32  ;;  %v1318_v53 = vrot.slane %v6266_v6, 1 }
  0x78   : > { %v649_v38 = vsel %vm353_vm0, %v644_v18, %v648_v25  ;;  %v5990_v25 = vld [vmem:[%s8743_s1 + $0x1b8] sm:$0xff]   ;;  %v5993_v18 = vld [vmem:[%s8743_s1 + $0x230] sm:$0xff]  }
  0x79   : > { %1078 = vmatpush2.bf16.msra.mxu1 %v5980_v12  ;;  %v625_v12 = vsel %vm353_vm0, %v620_v26, %v624_v32  ;;  %v172_v32 = vld [vmem:[%s6155_s25] sm:$0xff]  ;;  %v5991_v26 = vld [vmem:[%s8743_s1 + $0x238] sm:$0xff]  }
  0x7a   : > { %1541 = vmatpush2.bf16.msra.mxu0 %v5981_v16  ;;  %1079 = vmatprep.subr.bf16.mxu1 %v8825_v27  ;;  %v638_v16 = vshll.u32 %v318_v23, 16 }
  0x7b   : > { %1542 = vmatprep.subr.bf16.mxu0 %v8825_v27 }
  0x7c   : > { %863 = vmatmul.mubr.bf16.gmra.mxu0 %v465_v48  ;;  %935 = vmatmul.mubr.bf16.gmra.mxu1 %v609_v39  ;;  %v6087_v48 = vld [vmem:[%s6155_s25 + $0x10] sm:$0xff] }
  0x7d   : > { %870 = vmatprep.mubr.bf16.mxu0 %v489_v36  ;;  %942 = vmatprep.mubr.bf16.mxu1 %v633_v52  ;;  %v1236_v39 = vpack.c.bf16 %v6087_v48, %v1232_v54  ;;  %v245_v36 = vpack.c.bf16 %v6086_v63, %v173_v40  ;;  %v1313_v52 = vrot.slane %v6235_v47, 1  ;;  %v1328_v63 = vrot.slane %v6334_v8, 1  ;;  %v6000_v54 = vld [vmem:[%s8743_s1 + $0x190] sm:$0xff]  }
  0x7e   : > { %1080 = vmatpush2.bf16.msra.mxu1 %v5982_v43  ;;  %1543 = vmatpush2.bf16.msra.mxu0 %v5983_v59  ;;  %v640_v43 = vrot.slane %v638_v16, 1  ;;  %v1315_v59 = vrot.slane %v1237_v7, 1  ;;  %v1322_v16 = vrot.slane %v6302_v41, 1  ;;  %v5996_v7 = vld [vmem:[%s8743_s1 + $0x1a0] sm:$0xff]   ;;  %v1332_v40 = vrot.slane %v6401_v10, 1 }
  0x7f   : > { %1081 = vmatprep.subr.bf16.mxu1 %v8825_v27  ;;  %1544 = vmatprep.subr.bf16.mxu0 %v8825_v27  ;;  %v1312_v28 = vrot.slane %v1236_v39, 1  ;;  %v1336_v39 = vrot.slane %v6476_v5, 1 }
  0x80   : > { %v641_v11 = vsel %vm353_vm0, %v636_v1, %v640_v43  ;;  %v6001_v1 = vld [vmem:[%s8743_s1 + $0x210] sm:$0xff]   ;;  %v6002_v43 = vld [vmem:[%s8743_s1 + $0x188] sm:$0xff]  }
  0x81   : > { %v1314_v56 = vsel %vm1311_vm1, %v1312_v28, %v1313_v52  ;;  %v1340_v28 = vrot.slane %v6543_v58, 1 }
  0x82   : > { %1082 = vmatpush2.bf16.msra.mxu1 %v5984_v33  ;;  %1545 = vmatpush2.bf16.msra.mxu0 %v5985_v42  ;;  %v1320_v33 = vrot.slane %v6260_v0, 1  ;;  %v244_v42 = vpack.c.bf16 %v6087_v48, %v172_v32  ;;  %v1330_v48 = vrot.slane %v6410_v21, 1  ;;  %v1334_v32 = vrot.slane %v6503_v55, 1 }
  0x83   : > { %1083 = vmatprep.subr.bf16.mxu1 %v8825_v27  ;;  %1546 = vmatprep.subr.bf16.mxu0 %v8825_v27 }
  0x84   : > { %871 = vmatmul.mubr.bf16.gmra.mxu0 %v481_v13  ;;  %943 = vmatmul.mubr.bf16.gmra.mxu1 %v625_v12  ;;  %v1321_v23 = vsel %vm1311_vm1, %v1316_v15, %v1320_v33  ;;  %v1324_v13 = vrot.slane %v6286_v24, 1  ;;  %v5994_v12 = vld [vmem:[%s8743_s1 + $0x1a8] sm:$0xff]  }
  0x85   : > { %878 = vmatprep.mubr.bf16.mxu0 %v6447_v62  ;;  %950 = vmatprep.mubr.bf16.mxu1 %v649_v38  ;;  %v1317_v62 = vsel %vm1311_vm1, %v1315_v59, %v1316_v15  ;;  %v5997_v15 = vld [vmem:[%s8743_s1 + $0x220] sm:$0xff]   ;;  %v5998_v38 = vld [vmem:[%s8743_s1 + $0x198] sm:$0xff]   ;;  %v6003_v59 = vld [vmem:[%s8743_s1 + $0x208] sm:$0xff]  }
  0x86   : > { %1084 = vmatpush2.bf16.msra.mxu1 %v5986_v61  ;;  %1547 = vmatpush2.bf16.msra.mxu0 %v5987_v34  ;;  %v1319_v61 = vsel %vm1311_vm1, %v1313_v52, %v1318_v53  ;;  %v1325_v34 = vsel %vm1311_vm1, %v1320_v33, %v1324_v13  ;;  %v6006_v52 = vld [vmem:[%s8743_s1 + $0x1f8] sm:$0xff]   ;;  %v6008_v33 = vld [vmem:[%s8743_s1 + $0x1f0] sm:$0xff]  }
  0x87   : > { %1085 = vmatprep.subr.bf16.mxu1 %v8825_v27  ;;  %1548 = vmatprep.subr.bf16.mxu0 %v8825_v27 }
  0x8a   : > { %1086 = vmatpush2.bf16.msra.mxu1 %v5988_v29  ;;  %1549 = vmatpush2.bf16.msra.mxu0 %v5989_v57  ;;  %v5999_v29 = vld [vmem:[%s8743_s1 + $0x218] sm:$0xff]   ;;  %v1326_v57 = vrot.slane %v6361_v37, 1 }
  0x8b   : > { %2120 = vmatprep.subr.bf16.mxu1 %v8825_v27  ;;  %2847 = vmatprep.subr.bf16.mxu0 %v8825_v27 }
  0x8c   : > { %879 = vmatmul.mubr.bf16.gmra.mxu0 %v6456_v49  ;;  %951 = vmatmul.mubr.bf16.gmra.mxu1 %v641_v11  ;;  %v5992_v49 = vld [vmem:[%s8743_s1 + $0x1b0] sm:$0xff]   ;;  %v6004_v11 = vld [vmem:[%s8743_s1 + $0x180] sm:$0xff]  }
  0x8d   : > { %1087 = vmatprep.mubr.bf16.mxu1 %v245_v36  ;;  %1550 = vmatprep.mubr.bf16.mxu0 %v1317_v62  ;;  %v6005_v36 = vld [vmem:[%s8743_s1 + $0x200] sm:$0xff]   ;;  %v6007_v62 = vld [vmem:[%s8743_s1 + $0x278] sm:$0xff]  }
  0x94   : > { %1088 = vmatmul.mubr.bf16.vlgmr.msra.gmra.mxu1 %v244_v42  ;;  %1551 = vmatmul.mubr.bf16.vlgmr.msra.gmra.mxu0 %v1314_v56  ;;  %v6009_v42 = vld [vmem:[%s8743_s1 + $0x270] sm:$0xff]   ;;  %v6011_v56 = vld [vmem:[%s8743_s1 + $0x268] sm:$0xff]  }
  0x95   : > { %2121 = vmatpush1.bf16.msra.mxu1 %v5990_v25  ;;  %2848 = vmatpush1.bf16.msra.mxu0 %v5991_v26  ;;  %v6010_v25 = vld [vmem:[%s8743_s1 + $0x1e8] sm:$0xff]   ;;  %v1338_v26 = vrot.slane %v6563_v35, 1 }
  0x96   : > { %1095 = vmatprep.mubr.bf16.mxu1 %v6165_v9  ;;  %1558 = vmatprep.mubr.bf16.mxu0 %v1321_v23  ;;  %v5995_v9 = vld [vmem:[%s8743_s1 + $0x228] sm:$0xff]   ;;  %v1344_v23 = vrot.slane %v6373_v45, 1 }
  0x97   : > { %2122 = vmatprep.subr.bf16.mxu1 %v8825_v27  ;;  %2849 = vmatprep.subr.bf16.mxu0 %v8825_v27 }
  0x99   : > { %2123 = vmatpush1.bf16.msra.mxu1 %v5992_v49  ;;  %2850 = vmatpush1.bf16.msra.mxu0 %v5993_v18  ;;  %v6012_v49 = vld [vmem:[%s8743_s1 + $0x1e0] sm:$0xff]   ;;  %v6014_v18 = vld [vmem:[%s8743_s1 + $0x1d8] sm:$0xff]  }
  0x9a   : > { %2124 = vmatprep.subr.bf16.mxu1 %v8825_v27  ;;  %2851 = vmatprep.subr.bf16.mxu0 %v8825_v27 }
  0x9c   : > { %1096 = vmatmul.mubr.bf16.gmra.mxu1 %v6235_v47  ;;  %1559 = vmatmul.mubr.bf16.gmra.mxu0 %v1319_v61  ;;  %v1323_v47 = vsel %vm1311_vm1, %v1318_v53, %v1322_v16  ;;  %v6013_v53 = vld [vmem:[%s8743_s1 + $0x260] sm:$0xff]   ;;  %v1342_v61 = vrot.slane %v6397_v2, 1 }
  0x9d   : > { %1103 = vmatprep.mubr.bf16.mxu1 %v6260_v0  ;;  %1566 = vmatprep.mubr.bf16.mxu0 %v1325_v34  ;;  %v1329_v0 = vsel %vm1311_vm1, %v1324_v13, %v1328_v63  ;;  %v6015_v13 = vld [vmem:[%s8743_s1 + $0x258] sm:$0xff]   ;;  %v1348_v34 = vrot.slane %v6175_v17, 1 }
  0x9e   : > { %2125 = vmatpush1.bf16.msra.mxu1 %v5994_v12  ;;  %2852 = vmatpush1.bf16.msra.mxu0 %v5995_v9  ;;  %v6016_v12 = vld [vmem:[%s8743_s1 + $0x1d0] sm:$0xff]  }
  0x9f   : > { %2126 = vmatprep.subr.bf16.mxu1 %v8825_v27  ;;  %2853 = vmatprep.subr.bf16.mxu0 %v8825_v27  ;;  %v6017_v9 = vld [vmem:[%s8743_s1 + $0x250] sm:$0xff]  }
  0xa2   : > { %2127 = vmatpush1.bf16.msra.mxu1 %v5996_v7  ;;  %2854 = vmatpush1.bf16.msra.mxu0 %v5997_v15  ;;  %v1346_v7 = vrot.slane %v6239_v50, 1  ;;  %v1352_v15 = vrot.slane %v6180_v19, 1 }
  0xa3   : > { %2128 = vmatprep.subr.bf16.mxu1 %v8825_v27  ;;  %2855 = vmatprep.subr.bf16.mxu0 %v8825_v27 }
  0xa4   : > { %1104 = vmatmul.mubr.bf16.gmra.mxu1 %v6266_v6  ;;  %1567 = vmatmul.mubr.bf16.gmra.mxu0 %v1323_v47  ;;  %v1327_v6 = vsel %vm1311_vm1, %v1322_v16, %v1326_v57  ;;  %v6018_v16 = vld [vmem:[%s8743_s1 + $0x1c8] sm:$0xff]   ;;  %v6020_v47 = vld [vmem:[%s8743_s1 + $0x1c0] sm:$0xff]  }
  0xa5   : > { %1111 = vmatprep.mubr.bf16.mxu1 %v6286_v24  ;;  %1574 = vmatprep.mubr.bf16.mxu0 %v1329_v0  ;;  %v1333_v24 = vsel %vm1311_vm1, %v1328_v63, %v1332_v40  ;;  %v6019_v63 = vld [vmem:[%s8743_s1 + $0x248] sm:$0xff]   ;;  %v6021_v0 = vld [vmem:[%s8743_s1 + $0x240] sm:$0xff]  }
  0xa6   : > { %2129 = vmatpush1.bf16.msra.mxu1 %v5998_v38  ;;  %2856 = vmatpush1.bf16.msra.mxu0 %v5999_v29  ;;  %v1350_v38 = vrot.slane %v6253_v60, 1  ;;  %v1356_v29 = vrot.slane %v6263_v3, 1 }
  0xa7   : > { %2130 = vmatprep.subr.bf16.mxu1 %v8825_v27  ;;  %2857 = vmatprep.subr.bf16.mxu0 %v8825_v27 }
  0xaa   : > { %2131 = vmatpush1.bf16.msra.mxu1 %v6000_v54  ;;  %2858 = vmatpush1.bf16.msra.mxu0 %v6001_v1  ;;  %v1360_v54 = vrot.slane %v6291_v31, 1 }
  0xab   : > { %2132 = vmatprep.subr.bf16.mxu1 %v8825_v27  ;;  %2859 = vmatprep.subr.bf16.mxu0 %v8825_v27 }
  0xac   : > { %1112 = vmatmul.mubr.bf16.gmra.mxu1 %v6302_v41  ;;  %1575 = vmatmul.mubr.bf16.gmra.mxu0 %v1327_v6  ;;  %v1331_v41 = vsel %vm1311_vm1, %v1326_v57, %v1330_v48  ;;  %v1351_v57 = vsel %vm1311_vm1, %v1346_v7, %v1350_v38  ;;  %v1361_v1 = vsel %vm1311_vm1, %v1356_v29, %v1360_v54  ;;  %v8829_v6 = vld [vmem:[#allocation2_spill] sm:$0xff] }
  0xad   : > { %1119 = vmatprep.mubr.bf16.mxu1 %v6334_v8  ;;  %1582 = vmatprep.mubr.bf16.mxu0 %v1333_v24  ;;  %v1337_v8 = vsel %vm1311_vm1, %v1332_v40, %v1336_v39  ;;  %v1357_v40 = vsel %vm1311_vm1, %v1352_v15, %v1356_v29  ;;  %v1364_v24 = vrot.slane %v8829_v6, 1  ;;  %v1742_v29 = vld [vmem:[%s6155_s25 + $0x78] sm:$0xff] }
  0xae   : > { %2133 = vmatpush1.bf16.msra.mxu1 %v6002_v43  ;;  %2860 = vmatpush1.bf16.msra.mxu0 %v6003_v59  ;;  %v8830_v59 = vld [vmem:[#allocation3_spill] sm:$0xff] }
  0xaf   : > { %2134 = vmatprep.subr.bf16.mxu1 %v8825_v27  ;;  %2861 = vmatprep.subr.bf16.mxu0 %v8825_v27  ;;  %v1365_v43 = vsel %vm1311_vm1, %v1360_v54, %v1364_v24 }
  0xb2   : > { %2135 = vmatpush1.bf16.msra.mxu1 %v6004_v11  ;;  %2862 = vmatpush1.bf16.msra.mxu0 %v6005_v36  ;;  %v1372_v36 = vrot.slane %v6488_v46, 1 }
  0xb3   : > { %2136 = vmatprep.subr.bf16.mxu1 %v8825_v27  ;;  %2863 = vmatprep.subr.bf16.mxu0 %v8825_v27 }
  0xb4   : > { %1120 = vmatmul.mubr.bf16.gmra.mxu1 %v6361_v37  ;;  %1583 = vmatmul.mubr.bf16.gmra.mxu0 %v1331_v41  ;;  %v1335_v37 = vsel %vm1311_vm1, %v1330_v48, %v1334_v32  ;;  %v8831_v48 = vld [vmem:[#allocation4_spill] sm:$0xff] }
  0xb5   : > { %1127 = vmatprep.mubr.bf16.mxu1 %v6401_v10  ;;  %1590 = vmatprep.mubr.bf16.mxu0 %v1337_v8  ;;  %v1341_v10 = vsel %vm1311_vm1, %v1336_v39, %v1340_v28  ;;  %v1368_v39 = vrot.slane %v8831_v48, 1  ;;  %v8832_v8 = vld [vmem:[#allocation5_spill] sm:$0xff] }
  0xb6   : > { %2137 = vmatpush2.bf16.msra.mxu1 %v6006_v52  ;;  %2864 = vmatpush2.bf16.msra.mxu0 %v6007_v62  ;;  %v1376_v52 = vrot.slane %v8832_v8, 1 }
  0xb7   : > { %2138 = vmatprep.subr.bf16.mxu1 %v8825_v27  ;;  %2865 = vmatprep.subr.bf16.mxu0 %v8825_v27  ;;  %v1369_v11 = vsel %vm1311_vm1, %v1364_v24, %v1368_v39  ;;  %v1373_v41 = vsel %vm1311_vm1, %v1368_v39, %v1372_v36 }
  0xba   : > { %2139 = vmatpush2.bf16.msra.mxu1 %v6008_v33  ;;  %2866 = vmatpush2.bf16.msra.mxu0 %v6009_v42  ;;  %v1380_v33 = vrot.slane %v6592_v4, 1  ;;  %v1235_v42 = vld [vmem:[%s6155_s25 + $0x248] sm:$0x3] }
  0xbb   : > { %2140 = vmatprep.subr.bf16.mxu1 %v8825_v27  ;;  %2867 = vmatprep.subr.bf16.mxu0 %v8825_v27 }
  0xbc   : > { %1128 = vmatmul.mubr.bf16.gmra.mxu1 %v6410_v21  ;;  %1591 = vmatmul.mubr.bf16.gmra.mxu0 %v1335_v37  ;;  %v1339_v21 = vsel %vm1311_vm1, %v1334_v32, %v1338_v26  ;;  %v1377_v32 = vsel %vm1311_vm1, %v1372_v36, %v1376_v52  ;;  %v1734_v37 = vld [vmem:[%s6155_s25 + $0x38] sm:$0xff] }
  0xbd   : > { %1135 = vmatprep.mubr.bf16.mxu1 %v6476_v5  ;;  %1598 = vmatprep.mubr.bf16.mxu0 %v1341_v10  ;;  %v1345_v5 = vsel %vm1311_vm1, %v1340_v28, %v1344_v23  ;;  %v1374_v28 = vrot.slane %v6578_v20, 1  ;;  %v1736_v10 = vld [vmem:[%s6155_s25 + $0x48] sm:$0xff] }
  0xbe   : > { %2141 = vmatpush2.bf16.msra.mxu1 %v6010_v25  ;;  %2868 = vmatpush2.bf16.msra.mxu0 %v6011_v56  ;;  %v1738_v25 = vld [vmem:[%s6155_s25 + $0x58] sm:$0xff]  ;;  %v2334_v56 = vld [vmem:[%s6155_s25 + $0x28] sm:$0xf8] }
  0xbf   : > { %2142 = vmatprep.subr.bf16.mxu1 %v8825_v27  ;;  %2869 = vmatprep.subr.bf16.mxu0 %v8825_v27 }
  0xc2   : > { %2143 = vmatpush2.bf16.msra.mxu1 %v6012_v49  ;;  %2870 = vmatpush2.bf16.msra.mxu0 %v6013_v53  ;;  %v2338_v49 = vpack.c.bf16 %v1734_v37, %v2334_v56 }
  0xc3   : > { %2144 = vmatprep.subr.bf16.mxu1 %v8825_v27  ;;  %2871 = vmatprep.subr.bf16.mxu0 %v8825_v27 }
  0xc4   : > { %1136 = vmatmul.mubr.bf16.gmra.mxu1 %v6503_v55  ;;  %1599 = vmatmul.mubr.bf16.gmra.mxu0 %v1339_v21  ;;  %v1343_v55 = vsel %vm1311_vm1, %v1338_v26, %v1342_v61 }
  0xc5   : > { %1143 = vmatprep.mubr.bf16.mxu1 %v6543_v58  ;;  %1606 = vmatprep.mubr.bf16.mxu0 %v1345_v5  ;;  %v1349_v58 = vsel %vm1311_vm1, %v1344_v23, %v1348_v34  ;;  %v6924_v23 = vpack.c.bf16 %v1738_v25, %v1736_v10  ;;  %v1234_v5 = vld [vmem:[%s6155_s25 + $0x240] sm:$0x3] }
  0xc6   : > { %2145 = vmatpush2.bf16.msra.mxu1 %v6014_v18  ;;  %2872 = vmatpush2.bf16.msra.mxu0 %v6015_v13  ;;  %v6933_v18 = vld [vmem:[%s6155_s25 + $0x30] sm:$0xff]  ;;  %v1378_v13 = vrot.slane %v6605_v44, 1 }
  0xc7   : > { %2146 = vmatprep.subr.bf16.mxu1 %v8825_v27  ;;  %2873 = vmatprep.subr.bf16.mxu0 %v8825_v27 }
  0xca   : > { %2147 = vmatpush2.bf16.msra.mxu1 %v6016_v12  ;;  %2874 = vmatpush2.bf16.msra.mxu0 %v6017_v9  ;;  %v1737_v12 = vld [vmem:[%s6155_s25 + $0x50] sm:$0xff]  ;;  %v2333_v9 = vld [vmem:[%s6155_s25 + $0x20] sm:$0xf8] }
  0xcb   : > { %2148 = vmatprep.subr.bf16.mxu1 %v8825_v27  ;;  %2875 = vmatprep.subr.bf16.mxu0 %v8825_v27 }
  0xcc   : > { %1144 = vmatmul.mubr.bf16.gmra.mxu1 %v6563_v35  ;;  %1607 = vmatmul.mubr.bf16.gmra.mxu0 %v1343_v55  ;;  %v1353_v35 = vsel %vm1311_vm1, %v1348_v34, %v1352_v15  ;;  %v1735_v34 = vld [vmem:[%s6155_s25 + $0x40] sm:$0xff]  ;;  %v2404_v15 = vshll.u32 %v6924_v23, 16 }
  0xcd   : > { %1151 = vmatprep.mubr.bf16.mxu1 %v6373_v45  ;;  %1614 = vmatprep.mubr.bf16.mxu0 %v1349_v58  ;;  %v1347_v45 = vsel %vm1311_vm1, %v1342_v61, %v1346_v7  ;;  %v2401_v7 = vshrl.u32 %v6924_v23, 16  ;;  %v6952_v54 = vpack.c.bf16 %v1737_v12, %v1735_v34 }
  0xce   : > { %2149 = vmatpush2.bf16.msra.mxu1 %v6018_v16  ;;  %2876 = vmatpush2.bf16.msra.mxu0 %v6019_v63  ;;  %v1732_v16 = vld [vmem:[%s6155_s25 + $0x28] sm:$0xfc]  ;;  %v2393_v63 = vshrl.u32 %v2338_v49, 16 }
  0xcf   : > { %2150 = vmatprep.subr.bf16.mxu1 %v8825_v27  ;;  %2877 = vmatprep.subr.bf16.mxu0 %v8825_v27  ;;  %v2403_v24 = vrot.slane %v2401_v7, 1  ;;  %v2387_v36 = vshll.u32 %v6952_v54, 16 }
  0xd2   : > { %2151 = vmatpush2.bf16.msra.mxu1 %v6020_v47  ;;  %2878 = vmatpush2.bf16.msra.mxu0 %v6021_v0 }
  0xd3   : > { %3312 = vmatprep.subr.bf16.mxu1 %v8825_v27  ;;  %3914 = vmatprep.subr.bf16.mxu0 %v8825_v27 }
  0xd4   : > { %1152 = vmatmul.mubr.bf16.gmra.mxu1 %v6397_v2  ;;  %1615 = vmatmul.mubr.bf16.gmra.mxu0 %v1347_v45  ;;  %v1354_v2 = vrot.slane %v6274_v14, 1  ;;  %v1238_v45 = vpack.c.bf16 %v1234_v5, %v1234_v5 }
  0xd5   : > { %1159 = vmatprep.mubr.bf16.mxu1 %v6175_v17  ;;  %1622 = vmatprep.mubr.bf16.mxu0 %v1353_v35  ;;  %v2337_v35 = vpack.c.bf16 %v6933_v18, %v2333_v9 }
  0xd6   : > { %v1355_v17 = vsel %vm1311_vm1, %v1350_v38, %v1354_v2  ;;  %v1740_v38 = vld [vmem:[%s6155_s25 + $0x68] sm:$0xff] }
  0xd7   : > { %v2376_v39 = vshrl.u32 %v2337_v35, 16 }
  0xdc   : > { %1160 = vmatmul.mubr.bf16.gmra.mxu1 %v6239_v50  ;;  %1623 = vmatmul.mubr.bf16.gmra.mxu0 %v1351_v57  ;;  %v1358_v50 = vrot.slane %v6317_v51, 1  ;;  %v1379_v57 = vsel %vm1311_vm1, %v1374_v28, %v1378_v13 }
  0xdd   : > { %1167 = vmatprep.mubr.bf16.mxu1 %v6180_v19  ;;  %1630 = vmatprep.mubr.bf16.mxu0 %v1357_v40 }
  0xde   : > { %v1359_v19 = vsel %vm1311_vm1, %v1354_v2, %v1358_v50  ;;  %v1806_v2 = vpack.c.bf16 %v1734_v37, %v1732_v16 }
  0xe4   : > { %1168 = vmatmul.mubr.bf16.gmra.mxu1 %v6253_v60  ;;  %1631 = vmatmul.mubr.bf16.gmra.mxu0 %v1355_v17  ;;  %v1362_v60 = vrot.slane %v8830_v59, 1 }
  0xe5   : > { %1175 = vmatprep.mubr.bf16.mxu1 %v6263_v3  ;;  %1638 = vmatprep.mubr.bf16.mxu0 %v1361_v1 }
  0xe6   : > { %v1363_v3 = vsel %vm1311_vm1, %v1358_v50, %v1362_v60  ;;  %v2395_v50 = vrot.slane %v2393_v63, 1 }
  0xec   : > { %1176 = vmatmul.mubr.bf16.gmra.mxu1 %v6274_v14  ;;  %1639 = vmatmul.mubr.bf16.gmra.mxu0 %v1359_v19  ;;  %v1366_v14 = vrot.slane %v6414_v22, 1  ;;  %v2406_v19 = vrot.slane %v2404_v15, 2 }
  0xed   : > { %1183 = vmatprep.mubr.bf16.mxu1 %v6291_v31  ;;  %1646 = vmatprep.mubr.bf16.mxu0 %v1365_v43  ;;  %v6954_v43 = vpack.c.bf16 %v1742_v29, %v1740_v38  ;;  %v1743_v38 = vld [vmem:[%s6155_s25 + $0x80] sm:$0xff]  ;;  %v1745_v29 = vld [vmem:[%s6155_s25 + $0x90] sm:$0xff] }
  0xee   : > { %v1367_v31 = vsel %vm1311_vm1, %v1362_v60, %v1366_v14 }
  0xf4   : > { %1184 = vmatmul.mubr.bf16.gmra.mxu1 %v6317_v51  ;;  %1647 = vmatmul.mubr.bf16.gmra.mxu0 %v1363_v3  ;;  %v1370_v51 = vrot.slane %v6520_v30, 1  ;;  %v1731_v3 = vld [vmem:[%s6155_s25 + $0x20] sm:$0xfc] }
  0xf5   : > { %1191 = vmatprep.mubr.bf16.mxu1 %v8829_v6  ;;  %1654 = vmatprep.mubr.bf16.mxu0 %v1369_v11  ;;  %v2379_v11 = vshll.u32 %v2337_v35, 16  ;;  %v1805_v56 = vpack.c.bf16 %v6933_v18, %v1731_v3 }
  0xf6   : > { %v1371_v62 = vsel %vm1311_vm1, %v1366_v14, %v1370_v51  ;;  %v1375_v26 = vsel %vm1311_vm1, %v1370_v51, %v1374_v28  ;;  %v2384_v14 = vshrl.u32 %v6952_v54, 16  ;;  %v1917_v51 = vrot.slane %v1806_v2, 1 }
  0xf7   : > { %v2422_v28 = vshll.u32 %v6954_v43, 16  ;;  %v1914_v63 = vrot.slane %v1805_v56, 1 }
  0xf9   : > { %v2424_v18 = vrot.slane %v2422_v28, 2 }
  0xfc   : > { %1192 = vmatmul.mubr.bf16.gmra.mxu1 %v8830_v59  ;;  %1655 = vmatmul.mubr.bf16.gmra.mxu0 %v1367_v31 }
  0xfd   : > { %1199 = vmatprep.mubr.bf16.mxu1 %v8831_v48  ;;  %1662 = vmatprep.mubr.bf16.mxu0 %v1373_v41  ;;  %v1382_v48 = vrot.slane %v1238_v45, 1 }
  0xff   : > { %v1383_v25 = vsel %vm1311_vm1, %v1378_v13, %v1382_v48  ;;  %v7005_v48 = vpack.c.bf16 %v1745_v29, %v1743_v38 }
 0x101   : > { %8833 = vst [vmem:[#allocation2_spill] sm:$0xff] %v7005_v48  ;;  %v2428_v56 = vshrl.u32 %v7005_v48, 16 }
 0x103   : > { %v2430_v29 = vrot.slane %v2428_v56, 1 }
 0x104   : > { %1200 = vmatmul.mubr.bf16.gmra.mxu1 %v6414_v22  ;;  %1663 = vmatmul.mubr.bf16.gmra.mxu0 %v1371_v62  ;;  %v1239_v22 = vpack.c.bf16 %v1235_v42, %v1235_v42  ;;  %v1739_v62 = vld [vmem:[%s6155_s25 + $0x60] sm:$0xff]  ;;  %v1746_v42 = vld [vmem:[%s6155_s25 + $0x98] sm:$0xff] }
 0x105   : > { %1207 = vmatprep.mubr.bf16.mxu1 %v6488_v46  ;;  %1670 = vmatprep.mubr.bf16.mxu0 %v1377_v32  ;;  %v1381_v46 = vsel %vm1311_vm1, %v1376_v52, %v1380_v33  ;;  %v2407_v52 = vor.u32 %v2406_v19, %v2403_v24  ;;  %v1741_v32 = vld [vmem:[%s6155_s25 + $0x70] sm:$0xff] }
 0x106   : > { %v1384_v61 = vrot.slane %v1239_v22, 1  ;;  %v2381_v22 = vrot.slane %v2379_v11, 2  ;;  %v6978_v5 = vpack.c.bf16 %v1741_v32, %v1739_v62  ;;  %v6022_v11 = vld [vmem:[%s8743_s1 + $0x2b8] sm:$0xff]  }
 0x108   : > { %v1385_v40 = vsel %vm1311_vm1, %v1380_v33, %v1384_v61  ;;  %v1744_v33 = vld [vmem:[%s6155_s25 + $0x88] sm:$0xff]  ;;  %v2410_v45 = vshrl.u32 %v6978_v5, 16  ;;  %v2413_v35 = vshll.u32 %v6978_v5, 16 }
 0x10c   : > { %v6926_v53 = vpop.f32.mrf.mxu0  ;;  %v6928_v21 = vpop.f32.mrf.mxu1  ;;  %1208 = vmatmul.mubr.bf16.gmra.mxu1 %v6520_v30  ;;  %1671 = vmatmul.mubr.bf16.gmra.mxu0 %v1375_v26  ;;  %v2396_v30 = vshll.u32 %v2338_v49, 16  ;;  %v2378_v26 = vrot.slane %v2376_v39, 1  ;;  %v2389_v49 = vrot.slane %v2387_v36, 2  ;;  %v2412_v36 = vrot.slane %v2410_v45, 1 }
 0x10d   : > { %1215 = vmatprep.mubr.bf16.mxu1 %v8832_v8  ;;  %1678 = vmatprep.mubr.bf16.mxu0 %v1381_v46  ;;  %v2386_v46 = vrot.slane %v2384_v14, 1  ;;  %v6023_v14 = vld [vmem:[%s8743_s1 + $0x338] sm:$0xff]  }
 0x10e   : > { %v818_v55 = vpop.f32.mrf.mxu0  ;;  %v890_v58 = vpop.f32.mrf.mxu1  ;;  %v2398_v6 = vrot.slane %v2396_v30, 2  ;;  %v1915_v30 = vrot.slane %v6952_v54, 1  ;;  %v2382_v7 = vor.u32 %v2381_v22, %v2378_v26  ;;  %v2431_v26 = vshll.u32 %v7005_v48, 16  ;;  %v6025_v22 = vld [vmem:[%s8743_s1 + $0x330] sm:$0xff]  }
 0x10f   : > { %v6984_v55 = vpack.c.bf16 %v1746_v42, %v1744_v33  ;;  %v2390_v15 = vor.u32 %v2389_v49, %v2386_v46 }
 0x110   : > { %v6943_v47 = vpop.f32.mrf.mxu0  ;;  %v6945_v0 = vpop.f32.mrf.mxu1  ;;  %v2399_v8 = vor.u32 %v2398_v6, %v2395_v50  ;;  %v1748_v50 = vld [vmem:[%s6155_s25 + $0xa8] sm:$0xff]  ;;  %v1750_v6 = vld [vmem:[%s6155_s25 + $0xb8] sm:$0xff]  ;;  %v1916_v39 = vsel %vm1311_vm1, %v1914_v63, %v1915_v30 }
 0x111   : > { %v2440_v2 = vshll.u32 %v6984_v55, 16  ;;  %v2391_v3 = vsel %vm2374_vm2, %v2382_v7, %v2390_v15  ;;  %v7015_v32 = vpack.c.bf16 %v1750_v6, %v1748_v50  ;;  %v1926_v46 = vrot.slane %v6984_v55, 1  ;;  %v1752_v63 = vld [vmem:[%s6155_s25 + $0xc8] sm:$0xff]  ;;  %v1754_v7 = vld [vmem:[%s6155_s25 + $0xd8] sm:$0xff] }
 0x112   : > { %v821_v17 = vpop.f32.mrf.mxu0  ;;  %v893_v1 = vpop.f32.mrf.mxu1  ;;  %v2408_v9 = vsel %vm2374_vm2, %v2399_v8, %v2407_v52 }
 0x113   : > { %v1922_v17 = vrot.slane %v6954_v43, 1  ;;  %v2442_v62 = vrot.slane %v2440_v2, 2  ;;  %8834 = vst [vmem:[#allocation3_spill] sm:$0xff] %v7015_v32 }
 0x114   : > { %v6956_v59 = vpop.f32.mrf.mxu0  ;;  %v6958_v60 = vpop.f32.mrf.mxu1  ;;  %1216 = vmatmul.mubr.bf16.gmra.mxu1 %v6578_v20  ;;  %1679 = vmatmul.mubr.bf16.gmra.mxu0 %v1379_v57  ;;  %v1918_v20 = vrot.slane %v6924_v23, 1 }
 0x115   : > { %1223 = vmatprep.mubr.bf16.mxu1 %v6592_v4  ;;  %1686 = vmatprep.mubr.bf16.mxu0 %v1385_v40  ;;  %v2419_v4 = vshrl.u32 %v6954_v43, 16 }
 0x116   : > { %v826_v31 = vpop.f32.mrf.mxu0  ;;  %v898_v41 = vpop.f32.mrf.mxu1  ;;  %v1919_v12 = vsel %vm1311_vm1, %v1917_v51, %v1918_v20 }
 0x117   : > { %v2421_v13 = vrot.slane %v2419_v4, 1  ;;  %v2415_v31 = vrot.slane %v2413_v35, 2  ;;  %v1923_v4 = vsel %vm1311_vm1, %v1918_v20, %v1922_v17 }
 0x118   : > { %v6972_v37 = vpop.f32.mrf.mxu0  ;;  %v6974_v10 = vpop.f32.mrf.mxu1 }
 0x119   : > { %v2425_v1 = vor.u32 %v2424_v18, %v2421_v13  ;;  %v7028_v20 = vor.u32 %v2415_v31, %v2412_v36  ;;  %v1747_v13 = vld [vmem:[%s6155_s25 + $0xa0] sm:$0xff]  ;;  %v1749_v18 = vld [vmem:[%s6155_s25 + $0xb0] sm:$0xff]  ;;  %v1924_v36 = vrot.slane %v7005_v48, 1 }
 0x11a   : > { %v829_v61 = vpop.f32.mrf.mxu0  ;;  %v901_v34 = vpop.f32.mrf.mxu1  ;;  %v7059_v2 = vpack.c.bf16 %v1749_v18, %v1747_v13 }
 0x11b   : > { %v2426_v28 = vsel %vm2374_vm2, %v2407_v52, %v2425_v1  ;;  %v6024_v52 = vld [vmem:[%s8743_s1 + $0x2b0] sm:$0xff]  }
 0x11c   : > { %v6986_v58 = vpop.f32.mrf.mxu0  ;;  %v6988_v16 = vpop.f32.mrf.mxu1  ;;  %1224 = vmatmul.mubr.bf16.gmra.mxu1 %v6605_v44  ;;  %1687 = vmatmul.mubr.bf16.gmra.mxu0 %v1383_v25  ;;  %v2437_v44 = vshrl.u32 %v6984_v55, 16  ;;  %v1920_v25 = vrot.slane %v6978_v5, 1  ;;  %8836 = vst [vmem:[#allocation5_spill] sm:$0xff] %v7059_v2 }
 0x11d   : > { %2152 = vmatprep.mubr.bf16.mxu1 %v1919_v12  ;;  %2879 = vmatprep.mubr.bf16.mxu0 %v2408_v9  ;;  %v2455_v12 = vshrl.u32 %v7015_v32, 16  ;;  %v2458_v9 = vshll.u32 %v7015_v32, 16 }
 0x11e   : > { %v834_v57 = vpop.f32.mrf.mxu0  ;;  %v906_v40 = vpop.f32.mrf.mxu1  ;;  %v2439_v8 = vrot.slane %v2437_v44, 1  ;;  %v1921_v38 = vsel %vm1311_vm1, %v1915_v30, %v1920_v25  ;;  %v1927_v44 = vsel %vm1311_vm1, %v1922_v17, %v1926_v46  ;;  %v6026_v30 = vld [vmem:[%s8743_s1 + $0x2a8] sm:$0xff]  }
 0x11f   : > { %v2433_v57 = vrot.slane %v2431_v26, 2  ;;  %v2417_v40 = vsel %vm2374_vm2, %v2390_v15, %v7028_v20  ;;  %v6027_v15 = vld [vmem:[%s8743_s1 + $0x328] sm:$0xff]   ;;  %v2457_v17 = vrot.slane %v2455_v12, 1  ;;  %v6028_v26 = vld [vmem:[%s8743_s1 + $0x2a0] sm:$0xff]  }
 0x120   : > { %v7001_v24 = vpop.f32.mrf.mxu0  ;;  %v7003_v19 = vpop.f32.mrf.mxu1  ;;  %v7037_v34 = vor.u32 %v2442_v62, %v2439_v8  ;;  %v2449_v8 = vshll.u32 %v7059_v2, 16  ;;  %v1751_v62 = vld [vmem:[%s6155_s25 + $0xc0] sm:$0xff]  ;;  %v1756_v12 = vld [vmem:[%s6155_s25 + $0xe8] sm:$0xff] }
 0x121   : > { %v7078_v31 = vor.u32 %v2433_v57, %v2430_v29 }
 0x122   : > { %v837_v41 = vpop.f32.mrf.mxu0  ;;  %v909_v51 = vpop.f32.mrf.mxu1  ;;  %v2451_v57 = vrot.slane %v2449_v8, 2 }
 0x123   : > { %v1930_v41 = vrot.slane %v7015_v32, 1  ;;  %v2446_v51 = vshrl.u32 %v7059_v2, 16 }
 0x124   : > { %v7021_v33 = vpop.f32.mrf.mxu0  ;;  %v7023_v42 = vpop.f32.mrf.mxu1  ;;  %2153 = vmatmul.mubr.bf16.vlgmr.msra.gmra.mxu1 %v1916_v39  ;;  %2880 = vmatmul.mubr.bf16.vlgmr.msra.gmra.mxu0 %v2391_v3  ;;  %v2444_v39 = vsel %vm2374_vm2, %v2425_v1, %v7037_v34  ;;  %v2460_v3 = vrot.slane %v2458_v9, 2  ;;  %v1758_v9 = vld [vmem:[%s6155_s25 + $0xf8] sm:$0xff] }
 0x125   : > { %3313 = vmatpush1.bf16.msra.mxu1 %v6022_v11  ;;  %3915 = vmatpush1.bf16.msra.mxu0 %v6023_v14  ;;  %v7071_v11 = vpack.c.bf16 %v1754_v7, %v1752_v63  ;;  %v1925_v63 = vsel %vm1311_vm1, %v1920_v25, %v1924_v36  ;;  %v2435_v7 = vsel %vm2374_vm2, %v7028_v20, %v7078_v31  ;;  %v2448_v29 = vrot.slane %v2446_v51, 1 }
 0x126   : > { %v842_v49 = vpop.f32.mrf.mxu0  ;;  %v914_v61 = vpop.f32.mrf.mxu1  ;;  %2160 = vmatprep.mubr.bf16.mxu1 %v1923_v4  ;;  %2887 = vmatprep.mubr.bf16.mxu0 %v2426_v28  ;;  %v7084_v56 = vor.u32 %v2460_v3, %v2457_v17  ;;  %v1928_v17 = vrot.slane %v7059_v2, 1 }
 0x127   : > { %3314 = vmatprep.subr.bf16.mxu1 %v8825_v27  ;;  %3916 = vmatprep.subr.bf16.mxu0 %v8825_v27  ;;  %8837 = vst [vmem:[#allocation6_spill] sm:$0xff] %v7071_v11  ;;  %v2476_v49 = vshll.u32 %v7071_v11, 16  ;;  %v1753_v61 = vld [vmem:[%s6155_s25 + $0xd0] sm:$0xff]  ;;  %v7136_v3 = vor.u32 %v2451_v57, %v2448_v29  ;;  %v1934_v51 = vrot.slane %v7071_v11, 1 }
 0x128   : > { %v7047_v45 = vpop.f32.mrf.mxu0  ;;  %v7049_v35 = vpop.f32.mrf.mxu1  ;;  %v2462_v25 = vsel %vm2374_vm2, %v7037_v34, %v7084_v56  ;;  %v1929_v57 = vsel %vm1311_vm1, %v1924_v36, %v1928_v17 }
 0x129   : > { %8835 = vst [vmem:[#allocation4_spill] sm:$0xff] %v7049_v35  ;;  %3315 = vmatpush1.bf16.msra.mxu1 %v6024_v52  ;;  %3917 = vmatpush1.bf16.msra.mxu0 %v6025_v22  ;;  %v6029_v52 = vld [vmem:[%s8743_s1 + $0x320] sm:$0xff]   ;;  %v2473_v22 = vshrl.u32 %v7071_v11, 16  ;;  %v2478_v20 = vrot.slane %v2476_v49, 2 }
 0x12a   : > { %v845_v50 = vpop.f32.mrf.mxu0  ;;  %v917_v6 = vpop.f32.mrf.mxu1  ;;  %3316 = vmatprep.subr.bf16.mxu1 %v8825_v27  ;;  %3918 = vmatprep.subr.bf16.mxu0 %v8825_v27 }
 0x12b   : > { %v2475_v6 = vrot.slane %v2473_v22, 1 }
 0x12c   : > { %v7073_v14 = vpop.f32.mrf.mxu0  ;;  %v7075_v1 = vpop.f32.mrf.mxu1  ;;  %2161 = vmatmul.mubr.bf16.gmra.mxu1 %v1921_v38  ;;  %2888 = vmatmul.mubr.bf16.gmra.mxu0 %v2417_v40  ;;  %v1931_v38 = vsel %vm1311_vm1, %v1926_v46, %v1930_v41  ;;  %v7116_v40 = vpack.c.bf16 %v1753_v61, %v1751_v62  ;;  %v7124_v46 = vpack.c.bf16 %v1758_v9, %v1756_v12  ;;  %v6032_v12 = vld [vmem:[%s8743_s1 + $0x290] sm:$0xff]  }
 0x12d   : > { %8838 = vst [vmem:[#allocation7_spill] sm:$0xff] %v7075_v1  ;;  %2168 = vmatprep.mubr.bf16.mxu1 %v1927_v44  ;;  %2895 = vmatprep.mubr.bf16.mxu0 %v2444_v39  ;;  %v6030_v39 = vld [vmem:[%s8743_s1 + $0x298] sm:$0xff]   ;;  %v7143_v22 = vor.u32 %v2478_v20, %v2475_v6  ;;  %v6033_v9 = vld [vmem:[%s8743_s1 + $0x310] sm:$0xff]  }
 0x12e   : > { %v850_v4 = vpop.f32.mrf.mxu0  ;;  %v922_v28 = vpop.f32.mrf.mxu1  ;;  %3317 = vmatpush1.bf16.msra.mxu1 %v6026_v30  ;;  %3919 = vmatpush1.bf16.msra.mxu0 %v6027_v15  ;;  %8840 = vst [vmem:[#allocation9_spill] sm:$0xff] %v7116_v40  ;;  %8841 = vst [vmem:[#allocation10_spill] sm:$0xff] %v7124_v46  ;;  %v6031_v30 = vld [vmem:[%s8743_s1 + $0x318] sm:$0xff]   ;;  %v2464_v8 = vshrl.u32 %v7116_v40, 16  ;;  %v2467_v62 = vshll.u32 %v7116_v40, 16  ;;  %v2491_v49 = vshrl.u32 %v7124_v46, 16 }
 0x12f   : > { %3318 = vmatprep.subr.bf16.mxu1 %v8825_v27  ;;  %3920 = vmatprep.subr.bf16.mxu0 %v8825_v27  ;;  %v1755_v4 = vld [vmem:[%s6155_s25 + $0xe0] sm:$0xff]  ;;  %v1757_v28 = vld [vmem:[%s6155_s25 + $0xf0] sm:$0xff]  ;;  %v2494_v61 = vshll.u32 %v7124_v46, 16  ;;  %v2480_v36 = vsel %vm2374_vm2, %v7084_v56, %v7143_v22 }
 0x130   : > { %v7099_v13 = vpop.f32.mrf.mxu0  ;;  %v7101_v18 = vpop.f32.mrf.mxu1  ;;  %v2466_v6 = vrot.slane %v2464_v8, 1  ;;  %v2469_v20 = vrot.slane %v2467_v62, 2 }
 0x131   : > { %8839 = vst [vmem:[#allocation8_spill] sm:$0xff] %v7101_v18 }
 0x132   : > { %v853_v44 = vpop.f32.mrf.mxu0  ;;  %v925_v50 = vpop.f32.mrf.mxu1  ;;  %3319 = vmatpush1.bf16.msra.mxu1 %v6028_v26  ;;  %3921 = vmatpush1.bf16.msra.mxu0 %v6029_v52 }
 0x133   : > { %3320 = vmatprep.subr.bf16.mxu1 %v8825_v27  ;;  %3922 = vmatprep.subr.bf16.mxu0 %v8825_v27  ;;  %v7166_v44 = vpack.c.bf16 %v1757_v28, %v1755_v4  ;;  %v2453_v50 = vsel %vm2374_vm2, %v7078_v31, %v7136_v3  ;;  %v2493_v4 = vrot.slane %v2491_v49, 1  ;;  %v2496_v28 = vrot.slane %v2494_v61, 2  ;;  %v6034_v31 = vld [vmem:[%s8743_s1 + $0x288] sm:$0xff]  }
 0x134   : > { %v7131_v34 = vpop.f32.mrf.mxu0  ;;  %v7133_v15 = vpop.f32.mrf.mxu1  ;;  %2169 = vmatmul.mubr.bf16.gmra.mxu1 %v1925_v63  ;;  %2896 = vmatmul.mubr.bf16.gmra.mxu0 %v2435_v7  ;;  %v1760_v63 = vld [vmem:[%s6155_s25 + $0x108] sm:$0xff]  ;;  %v1762_v7 = vld [vmem:[%s6155_s25 + $0x118] sm:$0xff]  ;;  %v8758_v49 = vrot.slane %v7116_v40, 1  ;;  %v7196_v61 = vor.u32 %v2469_v20, %v2466_v6  ;;  %v6037_v6 = vld [vmem:[%s8743_s1 + $0x300] sm:$0xff]  }
 0x135   : > { %8842 = vst [vmem:[#allocation11_spill] sm:$0xff] %v7133_v15  ;;  %2176 = vmatprep.mubr.bf16.mxu1 %v1931_v38  ;;  %2903 = vmatprep.mubr.bf16.mxu0 %v2462_v25  ;;  %8844 = vst [vmem:[#allocation13_spill] sm:$0xff] %v7166_v44  ;;  %v1935_v25 = vsel %vm1311_vm1, %v1930_v41, %v1934_v51  ;;  %v6035_v41 = vld [vmem:[%s8743_s1 + $0x308] sm:$0xff]   ;;  %v2482_v62 = vshrl.u32 %v7166_v44, 16 }
 0x136   : > { %v858_v26 = vpop.f32.mrf.mxu0  ;;  %v930_v52 = vpop.f32.mrf.mxu1  ;;  %3321 = vmatpush1.bf16.msra.mxu1 %v6030_v39  ;;  %3923 = vmatpush1.bf16.msra.mxu0 %v6031_v30  ;;  %v1764_v20 = vld [vmem:[%s6155_s25 + $0x128] sm:$0xff] }
 0x137   : > { %3322 = vmatprep.subr.bf16.mxu1 %v8825_v27  ;;  %3924 = vmatprep.subr.bf16.mxu0 %v8825_v27  ;;  %v7179_v26 = vpack.c.bf16 %v1762_v7, %v1760_v63  ;;  %v2485_v52 = vshll.u32 %v7166_v44, 16 }
 0x138   : > { %v7157_v38 = vpop.f32.mrf.mxu0  ;;  %v7159_v29 = vpop.f32.mrf.mxu1 }
 0x139   : > { %8843 = vst [vmem:[#allocation12_spill] sm:$0xff] %v7159_v29  ;;  %8845 = vst [vmem:[#allocation14_spill] sm:$0xff] %v7179_v26 }
 0x13a   : > { %v861_v39 = vpop.f32.mrf.mxu0  ;;  %v933_v30 = vpop.f32.mrf.mxu1  ;;  %3323 = vmatpush1.bf16.msra.mxu1 %v6032_v12  ;;  %3925 = vmatpush1.bf16.msra.mxu0 %v6033_v9  ;;  %v1938_v12 = vrot.slane %v7124_v46, 1  ;;  %v1759_v9 = vld [vmem:[%s6155_s25 + $0x100] sm:$0xff] }
 0x13b   : > { %3324 = vmatprep.subr.bf16.mxu1 %v8825_v27  ;;  %3926 = vmatprep.subr.bf16.mxu0 %v8825_v27  ;;  %v7200_v39 = vor.u32 %v2496_v28, %v2493_v4  ;;  %v1761_v30 = vld [vmem:[%s6155_s25 + $0x110] sm:$0xff] }
 0x13c   : > { %v7189_v56 = vpop.f32.mrf.mxu0  ;;  %v7191_v8 = vpop.f32.mrf.mxu1  ;;  %2177 = vmatmul.mubr.bf16.gmra.mxu1 %v1929_v57  ;;  %2904 = vmatmul.mubr.bf16.gmra.mxu0 %v2453_v50  ;;  %v2509_v57 = vshrl.u32 %v7179_v26, 16  ;;  %v2512_v50 = vshll.u32 %v7179_v26, 16  ;;  %v7232_v29 = vpack.c.bf16 %v1761_v30, %v1759_v9  ;;  %v1942_v30 = vrot.slane %v7179_v26, 1 }
 0x13d   : > { %8846 = vst [vmem:[#allocation15_spill] sm:$0xff] %v7191_v8  ;;  %2184 = vmatprep.mubr.bf16.mxu1 %v1935_v25  ;;  %2911 = vmatprep.mubr.bf16.mxu0 %v2480_v36  ;;  %v6036_v25 = vld [vmem:[%s8743_s1 + $0x280] sm:$0xff]   ;;  %v1766_v36 = vld [vmem:[%s6155_s25 + $0x138] sm:$0xff]  ;;  %v1939_v8 = vsel %vm1311_vm1, %v1934_v51, %v1938_v12 }
 0x13e   : > { %v866_v63 = vpop.f32.mrf.mxu0  ;;  %v938_v7 = vpop.f32.mrf.mxu1  ;;  %3325 = vmatpush1.bf16.msra.mxu1 %v6034_v31  ;;  %3927 = vmatpush1.bf16.msra.mxu0 %v6035_v41  ;;  %v2484_v31 = vrot.slane %v2482_v62, 1  ;;  %v2487_v41 = vrot.slane %v2485_v52, 2  ;;  %8848 = vst [vmem:[#allocation17_spill] sm:$0xff] %v7232_v29  ;;  %v2511_v2 = vrot.slane %v2509_v57, 1  ;;  %v6039_v51 = vld [vmem:[%s8743_s1 + $0x378] sm:$0xff]   ;;  %v8762_v57 = vrot.slane %v7166_v44, 1 }
 0x13f   : > { %3326 = vmatprep.subr.bf16.mxu1 %v8825_v27  ;;  %3928 = vmatprep.subr.bf16.mxu0 %v8825_v27  ;;  %v1933_v63 = vsel %vm1311_vm1, %v1928_v17, %v8758_v49  ;;  %v2471_v7 = vsel %vm2374_vm2, %v7136_v3, %v7196_v61  ;;  %v2514_v17 = vrot.slane %v2512_v50, 2  ;;  %v7237_v49 = vpack.c.bf16 %v1766_v36, %v1764_v20  ;;  %v6038_v3 = vld [vmem:[%s8743_s1 + $0x2f8] sm:$0xff]   ;;  %v1763_v20 = vld [vmem:[%s6155_s25 + $0x120] sm:$0xff] }
 0x140   : > { %v7215_v4 = vpop.f32.mrf.mxu0  ;;  %v7217_v28 = vpop.f32.mrf.mxu1  ;;  %v7252_v50 = vor.u32 %v2487_v41, %v2484_v31  ;;  %v1765_v41 = vld [vmem:[%s6155_s25 + $0x130] sm:$0xff] }
 0x141   : > { %8847 = vst [vmem:[#allocation16_spill] sm:$0xff] %v7217_v28  ;;  %v2498_v28 = vsel %vm2374_vm2, %v7143_v22, %v7200_v39  ;;  %v2530_v31 = vshll.u32 %v7237_v49, 16  ;;  %v7290_v18 = vpack.c.bf16 %v1765_v41, %v1763_v20  ;;  %v8770_v20 = vrot.slane %v7237_v49, 1  ;;  %v1767_v41 = vld [vmem:[%s6155_s25 + $0x140] sm:$0xff] }
 0x142   : > { %v869_v62 = vpop.f32.mrf.mxu0  ;;  %v941_v52 = vpop.f32.mrf.mxu1  ;;  %3327 = vmatpush1.bf16.msra.mxu1 %v6036_v25  ;;  %3929 = vmatpush1.bf16.msra.mxu0 %v6037_v6  ;;  %v2500_v25 = vshrl.u32 %v7232_v29, 16  ;;  %v2503_v6 = vshll.u32 %v7232_v29, 16 }
 0x143   : > { %3328 = vmatprep.subr.bf16.mxu1 %v8825_v27  ;;  %3930 = vmatprep.subr.bf16.mxu0 %v8825_v27  ;;  %v7258_v52 = vor.u32 %v2514_v17, %v2511_v2 }
 0x144   : > { %v7247_v22 = vpop.f32.mrf.mxu0  ;;  %v7249_v9 = vpop.f32.mrf.mxu1  ;;  %2185 = vmatmul.mubr.bf16.gmra.mxu1 %v1933_v63  ;;  %2912 = vmatmul.mubr.bf16.gmra.mxu0 %v2471_v7  ;;  %v2527_v63 = vshrl.u32 %v7237_v49, 16  ;;  %v1768_v7 = vld [vmem:[%s6155_s25 + $0x148] sm:$0xff]  ;;  %v2502_v11 = vrot.slane %v2500_v25, 1  ;;  %v2505_v15 = vrot.slane %v2503_v6, 2  ;;  %v8769_v25 = vrot.slane %v7232_v29, 1 }
 0x145   : > { %8849 = vst [vmem:[#allocation18_spill] sm:$0xff] %v7249_v9  ;;  %2192 = vmatprep.mubr.bf16.mxu1 %v1939_v8  ;;  %2919 = vmatprep.mubr.bf16.mxu0 %v2498_v28  ;;  %v6040_v8 = vld [vmem:[%s8743_s1 + $0x2f0] sm:$0xff]   ;;  %v1943_v9 = vsel %vm1311_vm1, %v1938_v12, %v1942_v30 }
 0x146   : > { %v874_v36 = vpop.f32.mrf.mxu0  ;;  %v946_v62 = vpop.f32.mrf.mxu1  ;;  %3329 = vmatpush2.bf16.msra.mxu1 %v6038_v3  ;;  %3931 = vmatpush2.bf16.msra.mxu0 %v6039_v51  ;;  %v6041_v28 = vld [vmem:[%s8743_s1 + $0x370] sm:$0xff]   ;;  %v8851_v3 = vrot.slane %v7116_v40, 1  ;;  %v2532_v40 = vrot.slane %v2530_v31, 2  ;;  %v7310_v6 = vor.u32 %v2505_v15, %v2502_v11  ;;  %v2521_v31 = vshll.u32 %v7290_v18, 16  ;;  %v6044_v11 = vld [vmem:[%s8743_s1 + $0x2e0] sm:$0xff]  }
 0x147   : > { %v1770_v36 = vld [vmem:[%s6155_s25 + $0x158] sm:$0xff]  ;;  %3330 = vmatprep.subr.bf16.mxu1 %v8825_v27  ;;  %3932 = vmatprep.subr.bf16.mxu0 %v8825_v27  ;;  %v2489_v62 = vsel %vm2374_vm2, %v7196_v61, %v7252_v50  ;;  %v6042_v61 = vld [vmem:[%s8743_s1 + $0x2e8] sm:$0xff]   ;;  %v6045_v15 = vld [vmem:[%s8743_s1 + $0x360] sm:$0xff]  }
 0x148   : > { %v7273_v2 = vpop.f32.mrf.mxu0  ;;  %v7275_v17 = vpop.f32.mrf.mxu1  ;;  %v1937_v51 = vsel %vm1311_vm1, %v8851_v3, %v8762_v57  ;;  %v2516_v3 = vsel %vm2374_vm2, %v7200_v39, %v7258_v52  ;;  %v2529_v57 = vrot.slane %v2527_v63, 1  ;;  %v7295_v48 = vpack.c.bf16 %v1770_v36, %v1768_v7 }
 0x149   : > { %8850 = vst [vmem:[#allocation19_spill] sm:$0xff] %v7275_v17  ;;  %v2518_v63 = vshrl.u32 %v7290_v18, 16 }
 0x14a   : > { %v877_v17 = vpop.f32.mrf.mxu0  ;;  %v949_v32 = vpop.f32.mrf.mxu1  ;;  %3331 = vmatpush2.bf16.msra.mxu1 %v6040_v8  ;;  %3933 = vmatpush2.bf16.msra.mxu0 %v6041_v28  ;;  %v1769_v8 = vld [vmem:[%s6155_s25 + $0x150] sm:$0xff]  ;;  %v7317_v36 = vor.u32 %v2532_v40, %v2529_v57 }
 0x14b   : > { %v6043_v32 = vld [vmem:[%s8743_s1 + $0x368] sm:$0xff]   ;;  %3332 = vmatprep.subr.bf16.mxu1 %v8825_v27  ;;  %3934 = vmatprep.subr.bf16.mxu0 %v8825_v27  ;;  %v2545_v17 = vshrl.u32 %v7295_v48, 16 }
 0x14c   : > { %v7305_v12 = vpop.f32.mrf.mxu0  ;;  %v7307_v39 = vpop.f32.mrf.mxu1  ;;  %2193 = vmatmul.mubr.bf16.gmra.mxu1 %v1937_v51  ;;  %2920 = vmatmul.mubr.bf16.gmra.mxu0 %v2489_v62  ;;  %v1772_v51 = vld [vmem:[%s6155_s25 + $0x168] sm:$0xff]  ;;  %v1774_v62 = vld [vmem:[%s6155_s25 + $0x178] sm:$0xff] }
 0x14d   : > { %8852 = vst [vmem:[#allocation20_spill] sm:$0xff] %v7307_v39  ;;  %2200 = vmatprep.mubr.bf16.mxu1 %v1943_v9  ;;  %2927 = vmatprep.mubr.bf16.mxu0 %v2516_v3  ;;  %v2548_v9 = vshll.u32 %v7295_v48, 16  ;;  %v8854_v3 = vrot.slane %v7166_v44, 1  ;;  %v2520_v39 = vrot.slane %v2518_v63, 1 }
 0x14e   : > { %v882_v28 = vpop.f32.mrf.mxu0  ;;  %v954_v7 = vpop.f32.mrf.mxu1  ;;  %3333 = vmatpush2.bf16.msra.mxu1 %v6042_v61  ;;  %3935 = vmatpush2.bf16.msra.mxu0 %v6043_v32  ;;  %v7340_v32 = vpack.c.bf16 %v1769_v8, %v1767_v41  ;;  %v2547_v41 = vrot.slane %v2545_v17, 1 }
 0x14f   : > { %3334 = vmatprep.subr.bf16.mxu1 %v8825_v27  ;;  %3936 = vmatprep.subr.bf16.mxu0 %v8825_v27  ;;  %v1941_v61 = vsel %vm1311_vm1, %v8854_v3, %v8769_v25  ;;  %v2507_v28 = vsel %vm2374_vm2, %v7252_v50, %v7310_v6  ;;  %v1947_v7 = vsel %vm1311_vm1, %v1942_v30, %v8770_v20  ;;  %v2550_v8 = vrot.slane %v2548_v9, 2  ;;  %v6046_v50 = vld [vmem:[%s8743_s1 + $0x2d8] sm:$0xff]  }
 0x150   : > { %v7331_v40 = vpop.f32.mrf.mxu0  ;;  %v7333_v57 = vpop.f32.mrf.mxu1  ;;  %v2534_v3 = vsel %vm2374_vm2, %v7258_v52, %v7317_v36  ;;  %v7353_v25 = vpack.c.bf16 %v1774_v62, %v1772_v51  ;;  %v2536_v63 = vshrl.u32 %v7340_v32, 16  ;;  %v1773_v52 = vld [vmem:[%s6155_s25 + $0x170] sm:$0xff] }
 0x151   : > { %8853 = vst [vmem:[#allocation21_spill] sm:$0xff] %v7333_v57  ;;  %v2523_v57 = vrot.slane %v2521_v31, 2  ;;  %v2539_v31 = vshll.u32 %v7340_v32, 16 }
 0x152   : > { %v885_v46 = vpop.f32.mrf.mxu0  ;;  %v957_v1 = vpop.f32.mrf.mxu1  ;;  %3335 = vmatpush2.bf16.msra.mxu1 %v6044_v11  ;;  %3937 = vmatpush2.bf16.msra.mxu0 %v6045_v15  ;;  %v1771_v15 = vld [vmem:[%s6155_s25 + $0x160] sm:$0xff]  ;;  %v2566_v20 = vshll.u32 %v7353_v25, 16 }
 0x153   : > { %v6047_v46 = vld [vmem:[%s8743_s1 + $0x358] sm:$0xff]   ;;  %3336 = vmatprep.subr.bf16.mxu1 %v8825_v27  ;;  %3938 = vmatprep.subr.bf16.mxu0 %v8825_v27  ;;  %v7367_v9 = vor.u32 %v2523_v57, %v2520_v39  ;;  %v6049_v39 = vld [vmem:[%s8743_s1 + $0x350] sm:$0xff]   ;;  %v7402_v44 = vpack.c.bf16 %v1773_v52, %v1771_v15  ;;  %v6051_v52 = vld [vmem:[%s8743_s1 + $0x348] sm:$0xff]  }
 0x154   : > { %v1089_v1 = vpop.f32.mrf.mxu1  ;;  %v1552_v30 = vpop.f32.mrf.mxu0  ;;  %2201 = vmatmul.mubr.bf16.gmra.mxu1 %v1941_v61  ;;  %2928 = vmatmul.mubr.bf16.gmra.mxu0 %v2507_v28  ;;  %v7371_v61 = vor.u32 %v2550_v8, %v2547_v41  ;;  %v2563_v28 = vshrl.u32 %v7353_v25, 16 }
 0x155   : > { %v1090_v17 = vadd.f32 %v1089_v1, %v6926_v53  ;;  %2208 = vmatprep.mubr.bf16.mxu1 %v1947_v7  ;;  %2935 = vmatprep.mubr.bf16.mxu0 %v2534_v3  ;;  %v6048_v53 = vld [vmem:[%s8743_s1 + $0x2d0] sm:$0xff]   ;;  %v1776_v7 = vld [vmem:[%s6155_s25 + $0x188] sm:$0xff]  ;;  %v1778_v3 = vld [vmem:[%s6155_s25 + $0x198] sm:$0xff]  ;;  %8860 = vst [vmem:[#allocation23_spill] sm:$0xff] %v7402_v44 }
 0x156   : > { %v1091_v51 = vpop.f32.mrf.mxu1  ;;  %v1554_v62 = vpop.f32.mrf.mxu0  ;;  %3337 = vmatpush2.bf16.msra.mxu1 %v6046_v50  ;;  %3939 = vmatpush2.bf16.msra.mxu0 %v6047_v46  ;;  %v8856_v50 = vrot.slane %v7290_v18, 1  ;;  %v8857_v46 = vrot.slane %v7232_v29, 1 }
 0x157   : > { %v7382_v57 = vadd.f32 %v1552_v30, %v1090_v17  ;;  %3338 = vmatprep.subr.bf16.mxu1 %v8825_v27  ;;  %3940 = vmatprep.subr.bf16.mxu0 %v8825_v27  ;;  %v2538_v51 = vrot.slane %v2536_v63, 1  ;;  %v2541_v62 = vrot.slane %v2539_v31, 2  ;;  %v2525_v30 = vsel %vm2374_vm2, %v7310_v6, %v7367_v9  ;;  %v6050_v6 = vld [vmem:[%s8743_s1 + $0x2c8] sm:$0xff]  }
 0x158   : > { %v1092_v41 = vpop.f32.mrf.mxu1  ;;  %v1555_v8 = vpop.f32.mrf.mxu0  ;;  %v1945_v1 = vsel %vm1311_vm1, %v8857_v46, %v8856_v50  ;;  %v8858_v17 = vrot.slane %v7295_v48, 1  ;;  %v2552_v63 = vsel %vm2374_vm2, %v7317_v36, %v7371_v61  ;;  %v2565_v31 = vrot.slane %v2563_v28, 1 }
 0x159   : > { %8855 = vst [vmem:[#allocation22_spill] sm:$0xff] %v7382_v57  ;;  %v1093_v11 = vadd.f32 %v1092_v41, %v6943_v47  ;;  %v8859_v57 = vrot.slane %v7237_v49, 1  ;;  %v2568_v47 = vrot.slane %v2566_v20, 2  ;;  %v7407_v41 = vpack.c.bf16 %v1778_v3, %v1776_v7  ;;  %v1777_v7 = vld [vmem:[%s6155_s25 + $0x190] sm:$0xff] }
 0x15a   : > { %v1094_v35 = vpop.f32.mrf.mxu1  ;;  %v1557_v29 = vpop.f32.mrf.mxu0  ;;  %3339 = vmatpush2.bf16.msra.mxu1 %v6048_v53  ;;  %3941 = vmatpush2.bf16.msra.mxu0 %v6049_v39  ;;  %v8777_v36 = vrot.slane %v7340_v32, 1  ;;  %v7420_v15 = vor.u32 %v2541_v62, %v2538_v51  ;;  %v2554_v53 = vshrl.u32 %v7402_v44, 16  ;;  %v2557_v39 = vshll.u32 %v7402_v44, 16  ;;  %v1780_v62 = vld [vmem:[%s6155_s25 + $0x1a8] sm:$0xff] }
 0x15b   : > { %v1951_v26 = vsel %vm1311_vm1, %v8859_v57, %v8858_v17  ;;  %8861 = vst [vmem:[#allocation24_spill] sm:$0xff] %v7407_v41  ;;  %v7415_v35 = vadd.f32 %v1555_v8, %v1093_v11  ;;  %3340 = vmatprep.subr.bf16.mxu1 %v8825_v27  ;;  %3942 = vmatprep.subr.bf16.mxu0 %v8825_v27  ;;  %v8778_v11 = vrot.slane %v7353_v25, 1  ;;  %v1775_v57 = vld [vmem:[%s6155_s25 + $0x180] sm:$0xff]  ;;  %v2581_v46 = vshrl.u32 %v7407_v41, 16 }
 0x15c   : > { %v1097_v29 = vpop.f32.mrf.mxu1  ;;  %v1560_v20 = vpop.f32.mrf.mxu0  ;;  %2209 = vmatmul.mubr.bf16.gmra.mxu1 %v1945_v1  ;;  %2936 = vmatmul.mubr.bf16.gmra.mxu0 %v2525_v30  ;;  %v7428_v50 = vor.u32 %v2568_v47, %v2565_v31  ;;  %v6053_v1 = vld [vmem:[%s8743_s1 + $0x340] sm:$0xff]   ;;  %v1782_v30 = vld [vmem:[%s6155_s25 + $0x1b8] sm:$0xff]  ;;  %v8864_v31 = vrot.slane %v7290_v18, 1 }
 0x15d   : > { %8862 = vst [vmem:[#allocation25_spill] sm:$0xff] %v7415_v35  ;;  %v1098_v28 = vadd.f32 %v1097_v29, %v6956_v59  ;;  %2216 = vmatprep.mubr.bf16.mxu1 %v1951_v26  ;;  %2943 = vmatprep.mubr.bf16.mxu0 %v2552_v63  ;;  %v2584_v59 = vshll.u32 %v7407_v41, 16  ;;  %v6052_v26 = vld [vmem:[%s8743_s1 + $0x2c0] sm:$0xff]  }
 0x15e   : > { %v1099_v3 = vpop.f32.mrf.mxu1  ;;  %v1562_v8 = vpop.f32.mrf.mxu0  ;;  %3341 = vmatpush2.bf16.msra.mxu1 %v6050_v6  ;;  %3943 = vmatpush2.bf16.msra.mxu0 %v6051_v52  ;;  %v1949_v47 = vsel %vm1311_vm1, %v8864_v31, %v8777_v36  ;;  %v2543_v6 = vsel %vm2374_vm2, %v7367_v9, %v7420_v15  ;;  %v7452_v52 = vpack.c.bf16 %v1777_v7, %v1775_v57  ;;  %v2583_v36 = vrot.slane %v2581_v46, 1 }
 0x15f   : > { %v7438_v51 = vadd.f32 %v1560_v20, %v1098_v28  ;;  %3342 = vmatprep.subr.bf16.mxu1 %v8825_v27  ;;  %3944 = vmatprep.subr.bf16.mxu0 %v8825_v27  ;;  %v8866_v20 = vrot.slane %v7295_v48, 1  ;;  %v2556_v3 = vrot.slane %v2554_v53, 1  ;;  %v2559_v8 = vrot.slane %v2557_v39, 2 }
 0x160   : > { %v1100_v17 = vpop.f32.mrf.mxu1  ;;  %v1563_v63 = vpop.f32.mrf.mxu0  ;;  %8865 = vst [vmem:[#allocation27_spill] sm:$0xff] %v7452_v52  ;;  %v2570_v31 = vsel %vm2374_vm2, %v7371_v61, %v7428_v50  ;;  %v2586_v9 = vrot.slane %v2584_v59, 2  ;;  %v7463_v57 = vpack.c.bf16 %v1782_v30, %v1780_v62  ;;  %v1952_v61 = vrot.slane %v7402_v44, 1 }
 0x161   : > { %8863 = vst [vmem:[#allocation26_spill] sm:$0xff] %v7438_v51  ;;  %v1101_v29 = vadd.f32 %v1100_v17, %v6972_v37  ;;  %v1955_v28 = vsel %vm1311_vm1, %v8866_v20, %v8778_v11  ;;  %v2575_v7 = vshll.u32 %v7452_v52, 16  ;;  %v2560_v59 = vor.u32 %v2559_v8, %v2556_v3  ;;  %v1786_v20 = vld [vmem:[%s6155_s25 + $0x1d8] sm:$0xff] }
 0x162   : > { %v1102_v51 = vpop.f32.mrf.mxu1  ;;  %v1565_v35 = vpop.f32.mrf.mxu0  ;;  %8867 = vst [vmem:[#allocation28_spill] sm:$0xff] %v7463_v57  ;;  %3343 = vmatpush2.bf16.msra.mxu1 %v6052_v26  ;;  %3945 = vmatpush2.bf16.msra.mxu0 %v6053_v1  ;;  %v1958_v26 = vrot.slane %v7407_v41, 1  ;;  %v2587_v62 = vor.u32 %v2586_v9, %v2583_v36  ;;  %v2599_v30 = vshrl.u32 %v7463_v57, 16  ;;  %v2602_v17 = vshll.u32 %v7463_v57, 16 }
 0x163   : > { %v7465_v37 = vadd.f32 %v1563_v63, %v1101_v29  ;;  %4641 = vmatprep.subr.bf16.mxu1 %v8825_v27  ;;  %5106 = vmatprep.subr.bf16.mxu0 %v8825_v27  ;;  %v2572_v35 = vshrl.u32 %v7452_v52, 16  ;;  %v1779_v63 = vld [vmem:[%s6155_s25 + $0x1a0] sm:$0xff]  ;;  %v1784_v29 = vld [vmem:[%s6155_s25 + $0x1c8] sm:$0xff]  ;;  %v2561_v9 = vsel %vm2374_vm2, %v7420_v15, %v2560_v59 }
 0x164   : > { %v1105_v53 = vpop.f32.mrf.mxu1  ;;  %v1568_v39 = vpop.f32.mrf.mxu0  ;;  %2217 = vmatmul.mubr.bf16.gmra.mxu1 %v1949_v47  ;;  %2944 = vmatmul.mubr.bf16.gmra.mxu0 %v2543_v6  ;;  %v1781_v47 = vld [vmem:[%s6155_s25 + $0x1b0] sm:$0xff]  ;;  %v2588_v41 = vsel %vm2374_vm2, %v7428_v50, %v2587_v62  ;;  %v2601_v44 = vrot.slane %v2599_v30, 1  ;;  %v1962_v50 = vrot.slane %v7463_v57, 1 }
 0x165   : > { %v1106_v46 = vadd.f32 %v1105_v53, %v6986_v58  ;;  %2224 = vmatprep.mubr.bf16.mxu1 %v1955_v28  ;;  %2951 = vmatprep.mubr.bf16.mxu0 %v2570_v31  ;;  %v8869_v28 = vrot.slane %v7340_v32, 1  ;;  %v2574_v8 = vrot.slane %v2572_v35, 1  ;;  %v2577_v31 = vrot.slane %v2575_v7, 2 }
 0x166   : > { %v1107_v1 = vpop.f32.mrf.mxu1  ;;  %v1570_v51 = vpop.f32.mrf.mxu0  ;;  %v8870_v53 = vrot.slane %v7353_v25, 1  ;;  %v2604_v35 = vrot.slane %v2602_v17, 2  ;;  %v7495_v7 = vpack.c.bf16 %v1786_v20, %v1784_v29  ;;  %v1783_v29 = vld [vmem:[%s6155_s25 + $0x1c0] sm:$0xff]  ;;  %v1785_v20 = vld [vmem:[%s6155_s25 + $0x1d0] sm:$0xff] }
 0x167   : > { %v7478_v6 = vadd.f32 %v1568_v39, %v1106_v46  ;;  %v1953_v3 = vsel %vm1311_vm1, %v8869_v28, %v1952_v61  ;;  %v7491_v46 = vpack.c.bf16 %v1781_v47, %v1779_v63  ;;  %v1956_v63 = vrot.slane %v7452_v52, 1 }
 0x168   : > { %v1108_v11 = vpop.f32.mrf.mxu1  ;;  %v1571_v58 = vpop.f32.mrf.mxu0  ;;  %v1959_v39 = vsel %vm1311_vm1, %v8870_v53, %v1958_v26  ;;  %8871 = vst [vmem:[#allocation30_spill] sm:$0xff] %v7495_v7  ;;  %v2578_v47 = vor.u32 %v2577_v31, %v2574_v8  ;;  %v2620_v8 = vshll.u32 %v7495_v7, 16  ;;  %v1790_v53 = vld [vmem:[%s6155_s25 + $0x1f8] sm:$0xff] }
 0x169   : > { %8868 = vst [vmem:[#allocation29_spill] sm:$0xff] %v7478_v6  ;;  %v1109_v36 = vadd.f32 %v1108_v11, %v7001_v24  ;;  %v2590_v30 = vshrl.u32 %v7491_v46, 16  ;;  %v2593_v17 = vshll.u32 %v7491_v46, 16 }
 0x16a   : > { %v1110_v1 = vpop.f32.mrf.mxu1  ;;  %v1573_v51 = vpop.f32.mrf.mxu0 }
 0x16b   : > { %v7497_v24 = vadd.f32 %v1571_v58, %v1109_v36  ;;  %v2605_v36 = vor.u32 %v2604_v35, %v2601_v44  ;;  %v1957_v1 = vsel %vm1311_vm1, %v1952_v61, %v1956_v63  ;;  %v2579_v51 = vsel %vm2374_vm2, %v2560_v59, %v2578_v47 }
 0x16c   : > { %v1113_v15 = vpop.f32.mrf.mxu1  ;;  %v1576_v11 = vpop.f32.mrf.mxu0  ;;  %2225 = vmatmul.mubr.bf16.gmra.mxu1 %v1953_v3  ;;  %2952 = vmatmul.mubr.bf16.gmra.mxu0 %v2561_v9  ;;  %v2617_v9 = vshrl.u32 %v7495_v7, 16  ;;  %v1963_v44 = vsel %vm1311_vm1, %v1958_v26, %v1962_v50  ;;  %v2592_v35 = vrot.slane %v2590_v30, 1  ;;  %v1966_v30 = vrot.slane %v7495_v7, 1 }
 0x16d   : > { %8872 = vst [vmem:[#allocation31_spill] sm:$0xff] %v7497_v24  ;;  %v1114_v28 = vadd.f32 %v1113_v15, %v7021_v33  ;;  %2232 = vmatprep.mubr.bf16.mxu1 %v1959_v39  ;;  %2959 = vmatprep.mubr.bf16.mxu0 %v2588_v41  ;;  %v1788_v33 = vld [vmem:[%s6155_s25 + $0x1e8] sm:$0xff]  ;;  %v7514_v15 = vpack.c.bf16 %v1785_v20, %v1783_v29 }
 0x16e   : > { %v1115_v58 = vpop.f32.mrf.mxu1  ;;  %v1578_v3 = vpop.f32.mrf.mxu0  ;;  %v7519_v24 = vpack.c.bf16 %v1790_v53, %v1788_v33  ;;  %v1787_v33 = vld [vmem:[%s6155_s25 + $0x1e0] sm:$0xff]  ;;  %v1789_v53 = vld [vmem:[%s6155_s25 + $0x1f0] sm:$0xff] }
 0x16f   : > { %v7508_v31 = vadd.f32 %v1576_v11, %v1114_v28  ;;  %8874 = vst [vmem:[#allocation33_spill] sm:$0xff] %v7514_v15  ;;  %v2595_v3 = vrot.slane %v2593_v17, 2  ;;  %v2606_v11 = vsel %vm2374_vm2, %v2587_v62, %v2605_v36  ;;  %v2619_v28 = vrot.slane %v2617_v9, 1 }
 0x170   : > { %v1116_v41 = vpop.f32.mrf.mxu1  ;;  %v1579_v39 = vpop.f32.mrf.mxu0  ;;  %8875 = vst [vmem:[#allocation34_spill] sm:$0xff] %v7519_v24  ;;  %v2635_v9 = vshrl.u32 %v7519_v24, 16 }
 0x171   : > { %8873 = vst [vmem:[#allocation32_spill] sm:$0xff] %v7508_v31  ;;  %v1117_v58 = vadd.f32 %v1116_v41, %v7047_v45  ;;  %v2622_v31 = vrot.slane %v2620_v8, 2  ;;  %v1960_v45 = vrot.slane %v7491_v46, 1  ;;  %v2596_v62 = vor.u32 %v2595_v3, %v2592_v35 }
 0x172   : > { %v1118_v57 = vpop.f32.mrf.mxu1  ;;  %v1581_v52 = vpop.f32.mrf.mxu0  ;;  %v2638_v8 = vshll.u32 %v7519_v24, 16 }
 0x173   : > { %v7521_v6 = vadd.f32 %v1579_v39, %v1117_v58  ;;  %v2608_v57 = vshrl.u32 %v7514_v15, 16  ;;  %v2611_v52 = vshll.u32 %v7514_v15, 16  ;;  %v2623_v20 = vor.u32 %v2622_v31, %v2619_v28  ;;  %v1792_v39 = vld [vmem:[%s6155_s25 + $0x208] sm:$0xff] }
 0x174   : > { %v1121_v61 = vpop.f32.mrf.mxu1  ;;  %v1584_v59 = vpop.f32.mrf.mxu0  ;;  %2233 = vmatmul.mubr.bf16.gmra.mxu1 %v1957_v1  ;;  %2960 = vmatmul.mubr.bf16.gmra.mxu0 %v2579_v51  ;;  %v1794_v1 = vld [vmem:[%s6155_s25 + $0x218] sm:$0xff]  ;;  %v1961_v58 = vsel %vm1311_vm1, %v1956_v63, %v1960_v45  ;;  %v2597_v31 = vsel %vm2374_vm2, %v2578_v47, %v2596_v62  ;;  %v7540_v28 = vpack.c.bf16 %v1789_v53, %v1787_v33  ;;  %v1964_v47 = vrot.slane %v7514_v15, 1  ;;  %v1791_v33 = vld [vmem:[%s6155_s25 + $0x200] sm:$0xff]  ;;  %v1793_v53 = vld [vmem:[%s6155_s25 + $0x210] sm:$0xff] }
 0x175   : > { %v1122_v26 = vadd.f32 %v1121_v61, %v7073_v14  ;;  %2240 = vmatprep.mubr.bf16.mxu1 %v1963_v44  ;;  %2967 = vmatprep.mubr.bf16.mxu0 %v2606_v11  ;;  %v2610_v44 = vrot.slane %v2608_v57, 1  ;;  %v2613_v35 = vrot.slane %v2611_v52, 2  ;;  %v1967_v11 = vsel %vm1311_vm1, %v1962_v50, %v1966_v30 }
 0x176   : > { %v1123_v17 = vpop.f32.mrf.mxu1  ;;  %v1586_v29 = vpop.f32.mrf.mxu0  ;;  %v7543_v7 = vpack.c.bf16 %v1794_v1, %v1792_v39 }
 0x177   : > { %v7532_v41 = vadd.f32 %v1584_v59, %v1122_v26  ;;  %v2624_v59 = vsel %vm2374_vm2, %v2605_v36, %v2623_v20  ;;  %v2637_v26 = vrot.slane %v2635_v9, 1  ;;  %v2640_v29 = vrot.slane %v2638_v8, 2 }
 0x178   : > { %v1124_v51 = vpop.f32.mrf.mxu1  ;;  %v1587_v14 = vpop.f32.mrf.mxu0  ;;  %8876 = vst [vmem:[#allocation35_spill] sm:$0xff] %v7543_v7  ;;  %v2614_v50 = vor.u32 %v2613_v35, %v2610_v44  ;;  %v1970_v36 = vrot.slane %v7519_v24, 1  ;;  %v2626_v9 = vshrl.u32 %v7540_v28, 16  ;;  %v2629_v8 = vshll.u32 %v7540_v28, 16  ;;  %v1798_v35 = vld [vmem:[%s6155_s25 + $0x238] sm:$0xff] }
 0x179   : > { %v1125_v3 = vadd.f32 %v1124_v51, %v7099_v13  ;;  %v2641_v51 = vor.u32 %v2640_v29, %v2637_v26 }
 0x17a   : > { %v1126_v61 = vpop.f32.mrf.mxu1  ;;  %v1589_v17 = vpop.f32.mrf.mxu0  ;;  %v1971_v26 = vsel %vm1311_vm1, %v1966_v30, %v1970_v36  ;;  %v2628_v29 = vrot.slane %v2626_v9, 1 }
 0x17b   : > { %v7545_v63 = vadd.f32 %v1587_v14, %v1125_v3  ;;  %v2653_v14 = vshrl.u32 %v7543_v7, 16  ;;  %v2615_v61 = vsel %vm2374_vm2, %v2596_v62, %v2614_v50  ;;  %v7562_v17 = vpack.c.bf16 %v1793_v53, %v1791_v33 }
 0x17c   : > { %v1129_v57 = vpop.f32.mrf.mxu1  ;;  %v1592_v13 = vpop.f32.mrf.mxu0  ;;  %2241 = vmatmul.mubr.bf16.gmra.mxu1 %v1961_v58  ;;  %2968 = vmatmul.mubr.bf16.gmra.mxu0 %v2597_v31  ;;  %v2656_v58 = vshll.u32 %v7543_v7, 16  ;;  %v1974_v33 = vrot.slane %v7543_v7, 1 }
 0x17d   : > { %v1130_v52 = vadd.f32 %v1129_v57, %v7131_v34  ;;  %2248 = vmatprep.mubr.bf16.mxu1 %v1967_v11  ;;  %2975 = vmatprep.mubr.bf16.mxu0 %v2624_v59  ;;  %v1796_v34 = vld [vmem:[%s6155_s25 + $0x228] sm:$0xff]  ;;  %v1965_v11 = vsel %vm1311_vm1, %v1960_v45, %v1964_v47  ;;  %8878 = vst [vmem:[#allocation37_spill] sm:$0xff] %v7562_v17  ;;  %v2631_v57 = vrot.slane %v2629_v8, 2  ;;  %v2644_v30 = vshrl.u32 %v7562_v17, 16 }
 0x17e   : > { %v1131_v39 = vpop.f32.mrf.mxu1  ;;  %v1594_v1 = vpop.f32.mrf.mxu0  ;;  %v2658_v24 = vrot.slane %v2656_v58, 2  ;;  %v7567_v15 = vpack.c.bf16 %v1798_v35, %v1796_v34 }
 0x17f   : > { %v7556_v44 = vadd.f32 %v1592_v13, %v1130_v52  ;;  %v2642_v13 = vsel %vm2374_vm2, %v2623_v20, %v2641_v51  ;;  %v2655_v52 = vrot.slane %v2653_v14, 1  ;;  %v2647_v20 = vshll.u32 %v7562_v17, 16 }
 0x180   : > { %v1132_v3 = vpop.f32.mrf.mxu1  ;;  %v1595_v31 = vpop.f32.mrf.mxu0  ;;  %8879 = vst [vmem:[#allocation38_spill] sm:$0xff] %v7567_v15  ;;  %v2632_v8 = vor.u32 %v2631_v57, %v2628_v29  ;;  %v2671_v34 = vshrl.u32 %v7567_v15, 16  ;;  %v2674_v35 = vshll.u32 %v7567_v15, 16  ;;  %v2646_v29 = vrot.slane %v2644_v30, 1 }
 0x181   : > { %8877 = vst [vmem:[#allocation36_spill] sm:$0xff] %v7556_v44  ;;  %v1133_v59 = vadd.f32 %v1132_v3, %v7157_v38  ;;  %v1968_v38 = vrot.slane %v7540_v28, 1  ;;  %v2659_v58 = vor.u32 %v2658_v24, %v2655_v52  ;;  %v1795_v3 = vld [vmem:[%s6155_s25 + $0x220] sm:$0xff]  ;;  %v2649_v57 = vrot.slane %v2647_v20, 2 }
 0x182   : > { %v1134_v39 = vpop.f32.mrf.mxu1  ;;  %v1597_v1 = vpop.f32.mrf.mxu0  ;;  %v2633_v24 = vsel %vm2374_vm2, %v2614_v50, %v2632_v8  ;;  %v1972_v50 = vrot.slane %v7562_v17, 1 }
 0x183   : > { %v7569_v44 = vadd.f32 %v1595_v31, %v1133_v59  ;;  %v1797_v31 = vld [vmem:[%s6155_s25 + $0x230] sm:$0xff]  ;;  %v1802_v59 = vld [vmem:[%s6155_s25 + $0x258] sm:$0xff] }
 0x184   : > { %v1137_v45 = vpop.f32.mrf.mxu1  ;;  %v1600_v62 = vpop.f32.mrf.mxu0  ;;  %2249 = vmatmul.mubr.bf16.gmra.mxu1 %v1965_v11  ;;  %2976 = vmatmul.mubr.bf16.gmra.mxu0 %v2615_v61  ;;  %v1800_v61 = vld [vmem:[%s6155_s25 + $0x248] sm:$0xff]  ;;  %v7588_v52 = vpack.c.bf16 %v1797_v31, %v1795_v3  ;;  %v1799_v3 = vld [vmem:[%s6155_s25 + $0x240] sm:$0xff]  ;;  %v1801_v31 = vld [vmem:[%s6155_s25 + $0x250] sm:$0xff] }
 0x185   : > { %v1138_v9 = vadd.f32 %v1137_v45, %v7189_v56  ;;  %2256 = vmatprep.mubr.bf16.mxu1 %v1971_v26  ;;  %2983 = vmatprep.mubr.bf16.mxu0 %v2642_v13  ;;  %v1969_v26 = vsel %vm1311_vm1, %v1964_v47, %v1968_v38  ;;  %v1975_v13 = vsel %vm1311_vm1, %v1970_v36, %v1974_v33 }
 0x186   : > { %v1139_v53 = vpop.f32.mrf.mxu1  ;;  %v1602_v14 = vpop.f32.mrf.mxu0  ;;  %v7591_v7 = vpack.c.bf16 %v1802_v59, %v1800_v61  ;;  %v2650_v36 = vor.u32 %v2649_v57, %v2646_v29 }
 0x187   : > { %v7580_v11 = vadd.f32 %v1600_v62, %v1138_v9  ;;  %v2660_v62 = vsel %vm2374_vm2, %v2641_v51, %v2659_v58  ;;  %v2673_v9 = vrot.slane %v2671_v34, 1  ;;  %v2676_v14 = vrot.slane %v2674_v35, 2 }
 0x188   : > { %v1140_v39 = vpop.f32.mrf.mxu1  ;;  %v1603_v56 = vpop.f32.mrf.mxu0  ;;  %v1978_v51 = vrot.slane %v7567_v15, 1  ;;  %v2662_v34 = vshrl.u32 %v7588_v52, 16  ;;  %v2665_v35 = vshll.u32 %v7588_v52, 16 }
 0x189   : > { %v1141_v1 = vadd.f32 %v1140_v39, %v7215_v4  ;;  %v2677_v39 = vor.u32 %v2676_v14, %v2673_v9 }
 0x18a   : > { %v1142_v45 = vpop.f32.mrf.mxu1  ;;  %v1605_v53 = vpop.f32.mrf.mxu0  ;;  %v2664_v9 = vrot.slane %v2662_v34, 1  ;;  %v2667_v14 = vrot.slane %v2665_v35, 2  ;;  %v1982_v35 = vrot.slane %v7591_v7, 1 }
 0x18b   : > { %v7593_v47 = vadd.f32 %v1603_v56, %v1141_v1  ;;  %v2689_v56 = vshrl.u32 %v7591_v7, 16  ;;  %v7609_v45 = vpack.c.bf16 %v1801_v31, %v1799_v3 }
 0x18c   : > { %v1145_v30 = vpop.f32.mrf.mxu1  ;;  %v1608_v4 = vpop.f32.mrf.mxu0  ;;  %2257 = vmatmul.mubr.bf16.gmra.mxu1 %v1969_v26  ;;  %2984 = vmatmul.mubr.bf16.gmra.mxu0 %v2633_v24  ;;  %v2692_v26 = vshll.u32 %v7591_v7, 16  ;;  %v1973_v24 = vsel %vm1311_vm1, %v1968_v38, %v1972_v50 }
 0x18d   : > { %v1146_v20 = vadd.f32 %v1145_v30, %v7247_v22  ;;  %2264 = vmatprep.mubr.bf16.mxu1 %v1975_v13  ;;  %2991 = vmatprep.mubr.bf16.mxu0 %v2660_v62  ;;  %v2336_v22 = vld [vmem:[%s6155_s25 + $0x268] sm:$0x7]  ;;  %v2651_v13 = vsel %vm2374_vm2, %v2632_v8, %v2650_v36  ;;  %v1979_v62 = vsel %vm1311_vm1, %v1974_v33, %v1978_v51  ;;  %v2680_v8 = vshrl.u32 %v7609_v45, 16 }
 0x18e   : > { %v1147_v61 = vpop.f32.mrf.mxu1  ;;  %v1610_v59 = vpop.f32.mrf.mxu0  ;;  %v2340_v15 = vpack.c.bf16 %v2336_v22, %v2336_v22  ;;  %v2683_v33 = vshll.u32 %v7609_v45, 16 }
 0x18f   : > { %v7604_v29 = vadd.f32 %v1608_v4, %v1146_v20  ;;  %v2678_v4 = vsel %vm2374_vm2, %v2659_v58, %v2677_v39  ;;  %v2691_v20 = vrot.slane %v2689_v56, 1  ;;  %v2694_v59 = vrot.slane %v2692_v26, 2 }
 0x190   : > { %v1148_v57 = vpop.f32.mrf.mxu1  ;;  %v1611_v1 = vpop.f32.mrf.mxu0  ;;  %v2668_v58 = vor.u32 %v2667_v14, %v2664_v9  ;;  %v2707_v26 = vshrl.u32 %v2340_v15, 16  ;;  %v2710_v22 = vshll.u32 %v2340_v15, 16  ;;  %v1983_v14 = vsel %vm1311_vm1, %v1978_v51, %v1982_v35 }
 0x191   : > { %8880 = vst [vmem:[#allocation39_spill] sm:$0xff] %v7604_v29  ;;  %v1149_v53 = vadd.f32 %v1148_v57, %v7273_v2  ;;  %v1976_v2 = vrot.slane %v7588_v52, 1  ;;  %v2695_v56 = vor.u32 %v2694_v59, %v2691_v20  ;;  %v2335_v57 = vld [vmem:[%s6155_s25 + $0x260] sm:$0x7] }
 0x192   : > { %v1150_v30 = vpop.f32.mrf.mxu1  ;;  %v1613_v61 = vpop.f32.mrf.mxu0  ;;  %v2669_v9 = vsel %vm2374_vm2, %v2650_v36, %v2668_v58 }
 0x193   : > { %v7614_v17 = vadd.f32 %v1611_v1, %v1149_v53  ;;  %v1977_v30 = vsel %vm1311_vm1, %v1972_v50, %v1976_v2  ;;  %v2682_v61 = vrot.slane %v2680_v8, 1 }
 0x194   : > { %v1153_v38 = vpop.f32.mrf.mxu1  ;;  %v1616_v29 = vpop.f32.mrf.mxu0  ;;  %2265 = vmatmul.mubr.bf16.gmra.mxu1 %v1973_v24  ;;  %2992 = vmatmul.mubr.bf16.gmra.mxu0 %v2651_v13  ;;  %v1804_v24 = vld [vmem:[%s6155_s25 + $0x268] sm:$0x3] }
 0x195   : > { %v1154_v34 = vadd.f32 %v1153_v38, %v7305_v12  ;;  %2272 = vmatprep.mubr.bf16.mxu1 %v1979_v62  ;;  %2999 = vmatprep.mubr.bf16.mxu0 %v2678_v4  ;;  %v2685_v12 = vrot.slane %v2683_v33, 2  ;;  %v2339_v4 = vpack.c.bf16 %v2335_v57, %v2335_v57  ;;  %v1842_v59 = vpack.c.bf16 %v1804_v24, %v1804_v24 }
 0x196   : > { %v1155_v3 = vpop.f32.mrf.mxu1  ;;  %v1618_v31 = vpop.f32.mrf.mxu0  ;;  %v2709_v38 = vrot.slane %v2707_v26, 1 }
 0x197   : > { %v7622_v1 = vadd.f32 %v1616_v29, %v1154_v34  ;;  %v2696_v29 = vsel %vm2374_vm2, %v2677_v39, %v2695_v56  ;;  %v2712_v34 = vrot.slane %v2710_v22, 2  ;;  %v7633_v36 = vor.u32 %v2685_v12, %v2682_v61  ;;  %v1803_v39 = vld [vmem:[%s6155_s25 + $0x260] sm:$0x3]  ;;  %v3530_v61 = vld [vmem:[%s6155_s25 + $0x68] sm:$0xff]  ;;  %v3532_v12 = vld [vmem:[%s6155_s25 + $0x78] sm:$0xff] }
 0x198   : > { %v1156_v13 = vpop.f32.mrf.mxu1  ;;  %v1619_v53 = vpop.f32.mrf.mxu0  ;;  %v2698_v33 = vshrl.u32 %v2339_v4, 16  ;;  %v2701_v31 = vshll.u32 %v2339_v4, 16  ;;  %v1986_v57 = vrot.slane %v1842_v59, 1  ;;  %v1841_v4 = vpack.c.bf16 %v1803_v39, %v1803_v39 }
 0x199   : > { %v1157_v62 = vadd.f32 %v1156_v13, %v7331_v40  ;;  %v1980_v40 = vrot.slane %v7609_v45, 1  ;;  %v2713_v24 = vor.u32 %v2712_v34, %v2709_v38  ;;  %v3061_v13 = vld [vmem:[%s6155_s25 + $0x28] sm:$0xf0]  ;;  %v6088_v38 = vld [vmem:[%s6155_s25 + $0x38] sm:$0xff] }
 0x19a   : > { %v1158_v20 = vpop.f32.mrf.mxu1  ;;  %v1621_v15 = vpop.f32.mrf.mxu0  ;;  %v2703_v59 = vrot.slane %v2701_v31, 2  ;;  %v3065_v34 = vpack.c.bf16 %v6088_v38, %v3061_v13  ;;  %v3536_v38 = vld [vmem:[%s6155_s25 + $0x98] sm:$0xff] }
 0x19b   : > { %v7630_v3 = vadd.f32 %v1619_v53, %v1157_v62  ;;  %v3526_v53 = vld [vmem:[%s6155_s25 + $0x48] sm:$0xf0]  ;;  %v3528_v62 = vld [vmem:[%s6155_s25 + $0x58] sm:$0xff] }
 0x19c   : > { %v1161_v50 = vpop.f32.mrf.mxu1  ;;  %v1624_v8 = vpop.f32.mrf.mxu0  ;;  %2273 = vmatmul.mubr.bf16.gmra.mxu1 %v1977_v30  ;;  %3000 = vmatmul.mubr.bf16.gmra.mxu0 %v2669_v9  ;;  %v3109_v31 = vrot.slane %v3065_v34, 2 }
 0x19d   : > { %v1162_v51 = vadd.f32 %v1161_v50, %v6928_v21  ;;  %2280 = vmatprep.mubr.bf16.mxu1 %v1983_v14  ;;  %3007 = vmatprep.mubr.bf16.mxu0 %v2696_v29  ;;  %v1981_v21 = vsel %vm1311_vm1, %v1976_v2, %v1980_v40  ;;  %v2687_v14 = vsel %vm2374_vm2, %v2668_v58, %v7633_v36  ;;  %v2700_v29 = vrot.slane %v2698_v33, 1 }
 0x19e   : > { %v1163_v26 = vpop.f32.mrf.mxu1  ;;  %v1626_v22 = vpop.f32.mrf.mxu0  ;;  %v7651_v2 = vpack.c.bf16 %v3532_v12, %v3530_v61  ;;  %v3527_v12 = vld [vmem:[%s6155_s25 + $0x50] sm:$0xff] }
 0x19f   : > { %v7639_v30 = vadd.f32 %v1624_v8, %v1162_v51  ;;  %v1987_v51 = vsel %vm1311_vm1, %v1982_v35, %v1986_v57  ;;  %v2714_v26 = vsel %vm2374_vm2, %v2695_v56, %v2713_v24  ;;  %v3600_v22 = vpack.c.bf16 %v3528_v62, %v3526_v53  ;;  %v3060_v56 = vld [vmem:[%s6155_s25 + $0x20] sm:$0xf0] }
 0x1a0   : > { %v1164_v9 = vpop.f32.mrf.mxu1  ;;  %v1627_v20 = vpop.f32.mrf.mxu0  ;;  %v2704_v35 = vor.u32 %v2703_v59, %v2700_v29  ;;  %v3525_v57 = vld [vmem:[%s6155_s25 + $0x40] sm:$0xf0]  ;;  %v3110_v53 = vrot.slane %v6924_v23, 2  ;;  %v3712_v61 = vrot.slane %v7651_v2, 2  ;;  %v3534_v59 = vld [vmem:[%s6155_s25 + $0x88] sm:$0xff] }
 0x1a1   : > { %8881 = vst [vmem:[#allocation40_spill] sm:$0xff] %v7639_v30  ;;  %v1165_v15 = vadd.f32 %v1164_v9, %v6945_v0  ;;  %v1984_v0 = vrot.slane %v1841_v4, 1  ;;  %v3711_v62 = vrot.slane %v3600_v22, 2  ;;  %v3529_v9 = vld [vmem:[%s6155_s25 + $0x60] sm:$0xff] }
 0x1a2   : > { %v1166_v50 = vpop.f32.mrf.mxu1  ;;  %v1629_v8 = vpop.f32.mrf.mxu0  ;;  %v2705_v23 = vsel %vm2374_vm2, %v7633_v36, %v2704_v35  ;;  %v3111_v22 = vsel %vm3105_vm3, %v3109_v31, %v3110_v53  ;;  %v3107_v35 = vrot.slane %v6952_v54, 2 }
 0x1a3   : > { %v7653_v30 = vadd.f32 %v1627_v20, %v1165_v15  ;;  %v3531_v20 = vld [vmem:[%s6155_s25 + $0x70] sm:$0xff]  ;;  %v1985_v4 = vsel %vm1311_vm1, %v1980_v40, %v1984_v0  ;;  %v3599_v50 = vpack.c.bf16 %v3527_v12, %v3525_v57 }
 0x1a4   : > { %v1169_v58 = vpop.f32.mrf.mxu1  ;;  %v1632_v39 = vpop.f32.mrf.mxu0  ;;  %2281 = vmatmul.mubr.bf16.gmra.mxu1 %v1981_v21  ;;  %3008 = vmatmul.mubr.bf16.gmra.mxu0 %v2687_v14  ;;  %v6089_v15 = vld [vmem:[%s6155_s25 + $0x30] sm:$0xff]  ;;  %v7672_v8 = vpack.c.bf16 %v3531_v20, %v3529_v9  ;;  %v3114_v9 = vrot.slane %v6954_v43, 2  ;;  %v6055_v43 = vld [vmem:[%s8743_s1 + $0x438] sm:$0xff]  }
 0x1a5   : > { %v1170_v33 = vadd.f32 %v1169_v58, %v6958_v60  ;;  %2288 = vmatprep.mubr.bf16.mxu1 %v1987_v51  ;;  %3015 = vmatprep.mubr.bf16.mxu0 %v2714_v26  ;;  %v3064_v29 = vpack.c.bf16 %v6089_v15, %v3060_v56  ;;  %v3713_v58 = vsel %vm3105_vm3, %v3711_v62, %v3712_v61  ;;  %v3708_v31 = vrot.slane %v3599_v50, 2  ;;  %v3535_v62 = vld [vmem:[%s6155_s25 + $0x90] sm:$0xff] }
 0x1a6   : > { %v1171_v24 = vpop.f32.mrf.mxu1  ;;  %v1634_v13 = vpop.f32.mrf.mxu0  ;;  %v3709_v56 = vrot.slane %v7672_v8, 2 }
 0x1a7   : > { %v7663_v60 = vadd.f32 %v1632_v39, %v1170_v33  ;;  %v7678_v39 = vpack.c.bf16 %v3536_v38, %v3534_v59  ;;  %v3106_v36 = vrot.slane %v3064_v29, 2  ;;  %v3533_v13 = vld [vmem:[%s6155_s25 + $0x80] sm:$0xff]  ;;  %v6054_v59 = vld [vmem:[%s8743_s1 + $0x3b8] sm:$0xff]  }
 0x1a8   : > { %v1172_v21 = vpop.f32.mrf.mxu1  ;;  %v1635_v14 = vpop.f32.mrf.mxu0  ;;  %v3710_v29 = vsel %vm3105_vm3, %v3708_v31, %v3709_v56  ;;  %v7700_v38 = vpack.c.bf16 %v3535_v62, %v3533_v13  ;;  %v3539_v13 = vld [vmem:[%s6155_s25 + $0xb0] sm:$0xff] }
 0x1a9   : > { %v1173_v34 = vadd.f32 %v1172_v21, %v6974_v10  ;;  %v3716_v20 = vrot.slane %v7678_v39, 2  ;;  %v3538_v21 = vld [vmem:[%s6155_s25 + $0xa8] sm:$0xff]  ;;  %v3108_v54 = vsel %vm3105_vm3, %v3106_v36, %v3107_v35 }
 0x1aa   : > { %v1174_v51 = vpop.f32.mrf.mxu1  ;;  %v1637_v26 = vpop.f32.mrf.mxu0  ;;  %v3714_v36 = vrot.slane %v7700_v38, 2 }
 0x1ab   : > { %v7676_v40 = vadd.f32 %v1635_v14, %v1173_v34  ;;  %v3540_v14 = vld [vmem:[%s6155_s25 + $0xb8] sm:$0xff]  ;;  %v3717_v26 = vsel %vm3105_vm3, %v3712_v61, %v3716_v20  ;;  %v6057_v61 = vld [vmem:[%s8743_s1 + $0x430] sm:$0xff]  }
 0x1ac   : > { %v1177_v0 = vpop.f32.mrf.mxu1  ;;  %v1640_v10 = vpop.f32.mrf.mxu0  ;;  %2289 = vmatmul.mubr.bf16.gmra.mxu1 %v1985_v4  ;;  %3016 = vmatmul.mubr.bf16.gmra.mxu0 %v2705_v23  ;;  %v7702_v50 = vpack.c.bf16 %v3540_v14, %v3538_v21  ;;  %v3542_v21 = vld [vmem:[%s6155_s25 + $0xc8] sm:$0xff]  ;;  %v3544_v14 = vld [vmem:[%s6155_s25 + $0xd8] sm:$0xff] }
 0x1ad   : > { %v1178_v33 = vadd.f32 %v1177_v0, %v6988_v16  ;;  %3344 = vmatprep.mubr.bf16.mxu1 %v3111_v22  ;;  %3946 = vmatprep.mubr.bf16.mxu0 %v3713_v58  ;;  %v3112_v0 = vrot.slane %v6978_v5, 2 }
 0x1ae   : > { %v1179_v57 = vpop.f32.mrf.mxu1  ;;  %v1642_v24 = vpop.f32.mrf.mxu0 }
 0x1af   : > { %v7685_v12 = vadd.f32 %v1640_v10, %v1178_v33  ;;  %v3720_v57 = vrot.slane %v7702_v50, 2  ;;  %v3537_v24 = vld [vmem:[%s6155_s25 + $0xa0] sm:$0xff] }
 0x1b0   : > { %v1180_v16 = vpop.f32.mrf.mxu1  ;;  %v1643_v4 = vpop.f32.mrf.mxu0 }
 0x1b1   : > { %v1181_v15 = vadd.f32 %v1180_v16, %v7003_v19  ;;  %v3115_v19 = vsel %vm3105_vm3, %v3110_v53, %v3114_v9  ;;  %v6056_v53 = vld [vmem:[%s8743_s1 + $0x3b0] sm:$0xff]  }
 0x1b2   : > { %v1182_v34 = vpop.f32.mrf.mxu1  ;;  %v1645_v23 = vpop.f32.mrf.mxu0 }
 0x1b3   : > { %v7704_v51 = vadd.f32 %v1643_v4, %v1181_v15  ;;  %v3113_v15 = vsel %vm3105_vm3, %v3107_v35, %v3112_v0  ;;  %v6058_v35 = vld [vmem:[%s8743_s1 + $0x3a8] sm:$0xff]  }
 0x1b4   : > { %v1185_v22 = vpop.f32.mrf.mxu1  ;;  %v1648_v58 = vpop.f32.mrf.mxu0  ;;  %3345 = vmatmul.mubr.bf16.vlgmr.msra.gmra.mxu1 %v3108_v54  ;;  %3947 = vmatmul.mubr.bf16.vlgmr.msra.gmra.mxu0 %v3710_v29  ;;  %v8882_v54 = vld [vmem:[#allocation4_spill] sm:$0xff]  ;;  %v3715_v29 = vsel %vm3105_vm3, %v3709_v56, %v3714_v36  ;;  %v6059_v56 = vld [vmem:[%s8743_s1 + $0x428] sm:$0xff]  }
 0x1b5   : > { %v1186_v10 = vadd.f32 %v1185_v22, %v7023_v42  ;;  %4642 = vmatpush1.bf16.msra.mxu1 %v6054_v59  ;;  %5107 = vmatpush1.bf16.msra.mxu0 %v6055_v43  ;;  %v3118_v42 = vrot.slane %v6984_v55, 2  ;;  %v7734_v59 = vpack.c.bf16 %v3539_v13, %v3537_v24 }
 0x1b6   : > { %v1187_v33 = vpop.f32.mrf.mxu1  ;;  %v1650_v31 = vpop.f32.mrf.mxu0  ;;  %3352 = vmatprep.mubr.bf16.mxu1 %v3115_v19  ;;  %3954 = vmatprep.mubr.bf16.mxu0 %v3717_v26  ;;  %v3721_v19 = vsel %vm3105_vm3, %v3716_v20, %v3720_v57  ;;  %v7746_v26 = vpack.c.bf16 %v3544_v14, %v3542_v21  ;;  %v8885_v21 = vld [vmem:[#allocation3_spill] sm:$0xff] }
 0x1b7   : > { %v7721_v62 = vadd.f32 %v1648_v58, %v1186_v10  ;;  %4643 = vmatprep.subr.bf16.mxu1 %v8825_v27  ;;  %5108 = vmatprep.subr.bf16.mxu0 %v8825_v27  ;;  %v3119_v23 = vsel %vm3105_vm3, %v3114_v9, %v3118_v42  ;;  %v8883_v58 = vld [vmem:[#allocation7_spill] sm:$0xff]  ;;  %v3718_v33 = vrot.slane %v7734_v59, 2  ;;  %v3541_v31 = vld [vmem:[%s6155_s25 + $0xc0] sm:$0xff]  ;;  %v3122_v14 = vrot.slane %v8885_v21, 2 }
 0x1b8   : > { %v1188_v16 = vpop.f32.mrf.mxu1  ;;  %v1651_v4 = vpop.f32.mrf.mxu0  ;;  %v8891_v21 = vld [vmem:[#allocation11_spill] sm:$0xff] }
 0x1b9   : > { %v1189_v55 = vadd.f32 %v1188_v16, %v8882_v54  ;;  %4644 = vmatpush1.bf16.msra.mxu1 %v6056_v53  ;;  %5109 = vmatpush1.bf16.msra.mxu0 %v6057_v61  ;;  %v8884_v53 = vld [vmem:[#allocation2_spill] sm:$0xff]  ;;  %v3724_v16 = vrot.slane %v7746_v26, 2 }
 0x1ba   : > { %v1190_v43 = vpop.f32.mrf.mxu1  ;;  %v1653_v34 = vpop.f32.mrf.mxu0  ;;  %4645 = vmatprep.subr.bf16.mxu1 %v8825_v27  ;;  %5110 = vmatprep.subr.bf16.mxu0 %v8825_v27  ;;  %v3116_v61 = vrot.slane %v8884_v53, 2  ;;  %v6061_v54 = vld [vmem:[%s8743_s1 + $0x420] sm:$0xff]  }
 0x1bb   : > { %v7748_v22 = vadd.f32 %v1651_v4, %v1189_v55  ;;  %v3543_v4 = vld [vmem:[%s6155_s25 + $0xd0] sm:$0xff]  ;;  %v3548_v43 = vld [vmem:[%s6155_s25 + $0xf8] sm:$0xff] }
 0x1bc   : > { %v1193_v9 = vpop.f32.mrf.mxu1  ;;  %v1656_v20 = vpop.f32.mrf.mxu0  ;;  %3353 = vmatmul.mubr.bf16.gmra.mxu1 %v3113_v15  ;;  %3955 = vmatmul.mubr.bf16.gmra.mxu0 %v3715_v29  ;;  %v6060_v15 = vld [vmem:[%s8743_s1 + $0x3a0] sm:$0xff]   ;;  %v3546_v29 = vld [vmem:[%s6155_s25 + $0xe8] sm:$0xff] }
 0x1bd   : > { %v1194_v10 = vadd.f32 %v1193_v9, %v8883_v58  ;;  %3360 = vmatprep.mubr.bf16.mxu1 %v3119_v23  ;;  %3962 = vmatprep.mubr.bf16.mxu0 %v3721_v19  ;;  %v8887_v19 = vld [vmem:[#allocation8_spill] sm:$0xff]  ;;  %v3719_v9 = vsel %vm3105_vm3, %v3714_v36, %v3718_v33  ;;  %v7784_v5 = vpack.c.bf16 %v3548_v43, %v3546_v29  ;;  %v6063_v36 = vld [vmem:[%s8743_s1 + $0x418] sm:$0xff]   ;;  %v3545_v43 = vld [vmem:[%s6155_s25 + $0xe0] sm:$0xff] }
 0x1be   : > { %v1195_v24 = vpop.f32.mrf.mxu1  ;;  %v1658_v13 = vpop.f32.mrf.mxu0  ;;  %4646 = vmatpush1.bf16.msra.mxu1 %v6058_v35  ;;  %5111 = vmatpush1.bf16.msra.mxu0 %v6059_v56  ;;  %v3117_v56 = vsel %vm3105_vm3, %v3112_v0, %v3116_v61  ;;  %v6062_v0 = vld [vmem:[%s8743_s1 + $0x398] sm:$0xff]  }
 0x1bf   : > { %v7763_v55 = vadd.f32 %v1656_v20, %v1194_v10  ;;  %4647 = vmatprep.subr.bf16.mxu1 %v8825_v27  ;;  %5112 = vmatprep.subr.bf16.mxu0 %v8825_v27  ;;  %v7780_v20 = vpack.c.bf16 %v3543_v4, %v3541_v31  ;;  %v3123_v24 = vsel %vm3105_vm3, %v3118_v42, %v3122_v14 }
 0x1c0   : > { %v1196_v34 = vpop.f32.mrf.mxu1  ;;  %v1659_v23 = vpop.f32.mrf.mxu0  ;;  %v3725_v13 = vsel %vm3105_vm3, %v3720_v57, %v3724_v16  ;;  %8889 = vst [vmem:[#allocation2_spill] sm:$0xff] %v7784_v5 }
 0x1c1   : > { %8886 = vst [vmem:[#allocation4_spill] sm:$0xff] %v7763_v55  ;;  %v1197_v35 = vadd.f32 %v1196_v34, %v8887_v19  ;;  %8888 = vst [vmem:[#allocation7_spill] sm:$0xff] %v7780_v20  ;;  %v8789_v29 = vrot.slane %v7780_v20, 2  ;;  %v8893_v19 = vld [vmem:[#allocation6_spill] sm:$0xff] }
 0x1c2   : > { %v1198_v58 = vpop.f32.mrf.mxu1  ;;  %v1661_v10 = vpop.f32.mrf.mxu0  ;;  %4648 = vmatpush1.bf16.msra.mxu1 %v6060_v15  ;;  %5113 = vmatpush1.bf16.msra.mxu0 %v6061_v54  ;;  %v8892_v15 = vld [vmem:[#allocation5_spill] sm:$0xff] }
 0x1c3   : > { %v7792_v31 = vadd.f32 %v1659_v23, %v1197_v35  ;;  %4649 = vmatprep.subr.bf16.mxu1 %v8825_v27  ;;  %5114 = vmatprep.subr.bf16.mxu0 %v8825_v27  ;;  %v3120_v54 = vrot.slane %v8892_v15, 2  ;;  %v3547_v10 = vld [vmem:[%s6155_s25 + $0xf0] sm:$0xff] }
 0x1c4   : > { %v1201_v42 = vpop.f32.mrf.mxu1  ;;  %v1664_v57 = vpop.f32.mrf.mxu0  ;;  %3361 = vmatmul.mubr.bf16.gmra.mxu1 %v3117_v56  ;;  %3963 = vmatmul.mubr.bf16.gmra.mxu0 %v3719_v9  ;;  %v6064_v56 = vld [vmem:[%s8743_s1 + $0x390] sm:$0xff]  }
 0x1c5   : > { %8890 = vst [vmem:[#allocation3_spill] sm:$0xff] %v7792_v31  ;;  %v1202_v4 = vadd.f32 %v1201_v42, %v8891_v21  ;;  %3368 = vmatprep.mubr.bf16.mxu1 %v3123_v24  ;;  %3970 = vmatprep.mubr.bf16.mxu0 %v3725_v13  ;;  %v6065_v9 = vld [vmem:[%s8743_s1 + $0x410] sm:$0xff]   ;;  %v3550_v13 = vld [vmem:[%s6155_s25 + $0x108] sm:$0xff]  ;;  %v3552_v42 = vld [vmem:[%s6155_s25 + $0x118] sm:$0xff] }
 0x1c6   : > { %v1203_v34 = vpop.f32.mrf.mxu1  ;;  %v1666_v23 = vpop.f32.mrf.mxu0  ;;  %4650 = vmatpush1.bf16.msra.mxu1 %v6062_v0  ;;  %5115 = vmatpush1.bf16.msra.mxu0 %v6063_v36  ;;  %v8895_v0 = vld [vmem:[#allocation12_spill] sm:$0xff]  ;;  %v7834_v31 = vpack.c.bf16 %v3552_v42, %v3550_v13 }
 0x1c7   : > { %v7809_v24 = vadd.f32 %v1664_v57, %v1202_v4  ;;  %4651 = vmatprep.subr.bf16.mxu1 %v8825_v27  ;;  %5116 = vmatprep.subr.bf16.mxu0 %v8825_v27  ;;  %v3121_v23 = vsel %vm3105_vm3, %v3116_v61, %v3120_v54  ;;  %v3723_v57 = vsel %vm3105_vm3, %v3718_v33, %v8789_v29  ;;  %v6066_v61 = vld [vmem:[%s8743_s1 + $0x388] sm:$0xff]   ;;  %v3551_v29 = vld [vmem:[%s6155_s25 + $0x110] sm:$0xff] }
 0x1c8   : > { %v1204_v21 = vpop.f32.mrf.mxu1  ;;  %v1667_v34 = vpop.f32.mrf.mxu0  ;;  %v7826_v4 = vpack.c.bf16 %v3547_v10, %v3545_v43  ;;  %8898 = vst [vmem:[#allocation11_spill] sm:$0xff] %v7834_v31  ;;  %v6067_v33 = vld [vmem:[%s8743_s1 + $0x408] sm:$0xff]   ;;  %v8901_v10 = vld [vmem:[#allocation9_spill] sm:$0xff]  ;;  %v8908_v15 = vrot.slane %v7834_v31, 2 }
 0x1c9   : > { %8894 = vst [vmem:[#allocation8_spill] sm:$0xff] %v7809_v24  ;;  %v1205_v36 = vadd.f32 %v1204_v21, %v8895_v0  ;;  %v8896_v24 = vrot.slane %v8893_v19, 2  ;;  %v8897_v0 = vrot.slane %v7784_v5, 2 }
 0x1ca   : > { %v1206_v58 = vpop.f32.mrf.mxu1  ;;  %v1669_v35 = vpop.f32.mrf.mxu0  ;;  %4652 = vmatpush1.bf16.msra.mxu1 %v6064_v56  ;;  %5117 = vmatpush1.bf16.msra.mxu0 %v6065_v9  ;;  %v8790_v56 = vrot.slane %v8901_v10, 2  ;;  %v8791_v9 = vrot.slane %v7826_v4, 2 }
 0x1cb   : > { %v3127_v21 = vsel %vm3105_vm3, %v3122_v14, %v8896_v24  ;;  %v3729_v53 = vsel %vm3105_vm3, %v3724_v16, %v8897_v0  ;;  %v7842_v43 = vadd.f32 %v1667_v34, %v1205_v36  ;;  %4653 = vmatprep.subr.bf16.mxu1 %v8825_v27  ;;  %5118 = vmatprep.subr.bf16.mxu0 %v8825_v27  ;;  %v8900_v35 = vld [vmem:[#allocation15_spill] sm:$0xff]  ;;  %v3549_v24 = vld [vmem:[%s6155_s25 + $0x100] sm:$0xff] }
 0x1cc   : > { %v1209_v14 = vpop.f32.mrf.mxu1  ;;  %v1672_v16 = vpop.f32.mrf.mxu0  ;;  %3369 = vmatmul.mubr.bf16.gmra.mxu1 %v3121_v23  ;;  %3971 = vmatmul.mubr.bf16.gmra.mxu0 %v3723_v57  ;;  %v8902_v34 = vld [vmem:[#allocation10_spill] sm:$0xff]  ;;  %v7876_v0 = vpack.c.bf16 %v3551_v29, %v3549_v24  ;;  %v6070_v29 = vld [vmem:[%s8743_s1 + $0x3f8] sm:$0xff]  }
 0x1cd   : > { %8899 = vst [vmem:[#allocation5_spill] sm:$0xff] %v7842_v43  ;;  %v1210_v58 = vadd.f32 %v1209_v14, %v8900_v35  ;;  %3376 = vmatprep.mubr.bf16.mxu1 %v3127_v21  ;;  %3978 = vmatprep.mubr.bf16.mxu0 %v3729_v53  ;;  %v6068_v23 = vld [vmem:[%s8743_s1 + $0x380] sm:$0xff]   ;;  %v3554_v53 = vld [vmem:[%s6155_s25 + $0x128] sm:$0xff]  ;;  %v3556_v14 = vld [vmem:[%s6155_s25 + $0x138] sm:$0xff]  ;;  %v8906_v43 = vrot.slane %v8902_v34, 2 }
 0x1ce   : > { %v1211_v13 = vpop.f32.mrf.mxu1  ;;  %v1674_v42 = vpop.f32.mrf.mxu0  ;;  %4654 = vmatpush1.bf16.msra.mxu1 %v6066_v61  ;;  %5119 = vmatpush1.bf16.msra.mxu0 %v6067_v33  ;;  %v6069_v57 = vld [vmem:[%s8743_s1 + $0x400] sm:$0xff]   ;;  %v8904_v61 = vld [vmem:[#allocation16_spill] sm:$0xff]  ;;  %v7888_v55 = vpack.c.bf16 %v3556_v14, %v3554_v53  ;;  %v3730_v14 = vrot.slane %v7876_v0, 2 }
 0x1cf   : > { %v7859_v21 = vadd.f32 %v1672_v16, %v1210_v58  ;;  %4655 = vmatprep.subr.bf16.mxu1 %v8825_v27  ;;  %5120 = vmatprep.subr.bf16.mxu0 %v8825_v27  ;;  %v3125_v42 = vsel %vm3105_vm3, %v3120_v54, %v8790_v56  ;;  %v8905_v16 = vrot.slane %v7780_v20, 2  ;;  %v8909_v54 = vrot.slane %v7784_v5, 2 }
 0x1d0   : > { %v1212_v35 = vpop.f32.mrf.mxu1  ;;  %v1675_v13 = vpop.f32.mrf.mxu0 }
 0x1d1   : > { %8903 = vst [vmem:[#allocation6_spill] sm:$0xff] %v7859_v21  ;;  %v1213_v33 = vadd.f32 %v1212_v35, %v8904_v61  ;;  %v3727_v58 = vsel %vm3105_vm3, %v8905_v16, %v8791_v9  ;;  %v8907_v35 = vrot.slane %v8893_v19, 2  ;;  %v3733_v56 = vsel %vm3105_vm3, %v8909_v54, %v8908_v15  ;;  %v6071_v19 = vld [vmem:[%s8743_s1 + $0x478] sm:$0xff]   ;;  %v3555_v9 = vld [vmem:[%s6155_s25 + $0x130] sm:$0xff] }
 0x1d2   : > { %v1214_v36 = vpop.f32.mrf.mxu1  ;;  %v1677_v21 = vpop.f32.mrf.mxu0  ;;  %4656 = vmatpush1.bf16.msra.mxu1 %v6068_v23  ;;  %5121 = vmatpush1.bf16.msra.mxu0 %v6069_v57  ;;  %v8911_v23 = vld [vmem:[#allocation18_spill] sm:$0xff] }
 0x1d3   : > { %v3131_v61 = vsel %vm3105_vm3, %v8907_v35, %v8906_v43  ;;  %v7896_v43 = vadd.f32 %v1675_v13, %v1213_v33  ;;  %4657 = vmatprep.subr.bf16.mxu1 %v8825_v27  ;;  %5122 = vmatprep.subr.bf16.mxu0 %v8825_v27  ;;  %v8912_v21 = vld [vmem:[#allocation13_spill] sm:$0xff]  ;;  %v3553_v13 = vld [vmem:[%s6155_s25 + $0x120] sm:$0xff] }
 0x1d4   : > { %v1217_v24 = vpop.f32.mrf.mxu1  ;;  %v1680_v36 = vpop.f32.mrf.mxu0  ;;  %3377 = vmatmul.mubr.bf16.gmra.mxu1 %v3125_v42  ;;  %3979 = vmatmul.mubr.bf16.gmra.mxu0 %v3727_v58  ;;  %v8794_v53 = vrot.slane %v8912_v21, 2  ;;  %v8913_v35 = vld [vmem:[#allocation14_spill] sm:$0xff]  ;;  %v6072_v42 = vld [vmem:[%s8743_s1 + $0x3f0] sm:$0xff]   ;;  %v7930_v15 = vpack.c.bf16 %v3555_v9, %v3553_v13  ;;  %v6074_v9 = vld [vmem:[%s8743_s1 + $0x3e8] sm:$0xff]  }
 0x1d5   : > { %8910 = vst [vmem:[#allocation12_spill] sm:$0xff] %v7896_v43  ;;  %v1218_v57 = vadd.f32 %v1217_v24, %v8911_v23  ;;  %3384 = vmatprep.mubr.bf16.mxu1 %v3131_v61  ;;  %3986 = vmatprep.mubr.bf16.mxu0 %v3733_v56  ;;  %v6073_v56 = vld [vmem:[%s8743_s1 + $0x470] sm:$0xff]   ;;  %v3558_v61 = vld [vmem:[%s6155_s25 + $0x148] sm:$0xff]  ;;  %v3560_v24 = vld [vmem:[%s6155_s25 + $0x158] sm:$0xff]  ;;  %v8918_v5 = vrot.slane %v8913_v35, 2 }
 0x1d6   : > { %v1219_v33 = vpop.f32.mrf.mxu1  ;;  %v1682_v16 = vpop.f32.mrf.mxu0  ;;  %4658 = vmatpush2.bf16.msra.mxu1 %v6070_v29  ;;  %5123 = vmatpush2.bf16.msra.mxu0 %v6071_v19  ;;  %v8915_v29 = vld [vmem:[#allocation19_spill] sm:$0xff]  ;;  %v7942_v20 = vpack.c.bf16 %v3560_v24, %v3558_v61  ;;  %v3734_v24 = vrot.slane %v7930_v15, 2 }
 0x1d7   : > { %v7913_v58 = vadd.f32 %v1680_v36, %v1218_v57  ;;  %4659 = vmatprep.subr.bf16.mxu1 %v8825_v27  ;;  %5124 = vmatprep.subr.bf16.mxu0 %v8825_v27  ;;  %v8916_v16 = vrot.slane %v8901_v10, 2  ;;  %v8917_v36 = vrot.slane %v7826_v4, 2  ;;  %v8920_v10 = vrot.slane %v7888_v55, 2 }
 0x1d8   : > { %v1220_v23 = vpop.f32.mrf.mxu1  ;;  %v1683_v33 = vpop.f32.mrf.mxu0 }
 0x1d9   : > { %8914 = vst [vmem:[#allocation15_spill] sm:$0xff] %v7913_v58  ;;  %v1221_v19 = vadd.f32 %v1220_v23, %v8915_v29  ;;  %v3129_v54 = vsel %vm3105_vm3, %v8916_v16, %v8794_v53  ;;  %v3731_v57 = vsel %vm3105_vm3, %v8917_v36, %v3730_v14  ;;  %v8919_v23 = vrot.slane %v8902_v34, 2  ;;  %v6075_v34 = vld [vmem:[%s8743_s1 + $0x468] sm:$0xff]  }
 0x1da   : > { %v1222_v58 = vpop.f32.mrf.mxu1  ;;  %v1685_v43 = vpop.f32.mrf.mxu0  ;;  %v8921_v16 = vrot.slane %v7834_v31, 2  ;;  %4660 = vmatpush2.bf16.msra.mxu1 %v6072_v42  ;;  %5125 = vmatpush2.bf16.msra.mxu0 %v6073_v56  ;;  %v8923_v42 = vld [vmem:[#allocation20_spill] sm:$0xff] }
 0x1db   : > { %v3135_v29 = vsel %vm3105_vm3, %v8919_v23, %v8918_v5  ;;  %v7950_v5 = vadd.f32 %v1683_v33, %v1221_v19  ;;  %4661 = vmatprep.subr.bf16.mxu1 %v8825_v27  ;;  %5126 = vmatprep.subr.bf16.mxu0 %v8825_v27  ;;  %v8924_v58 = vld [vmem:[#allocation17_spill] sm:$0xff]  ;;  %v3557_v33 = vld [vmem:[%s6155_s25 + $0x140] sm:$0xff] }
 0x1dc   : > { %v3737_v53 = vsel %vm3105_vm3, %v8921_v16, %v8920_v10  ;;  %v1225_v43 = vpop.f32.mrf.mxu1  ;;  %v1688_v13 = vpop.f32.mrf.mxu0  ;;  %3385 = vmatmul.mubr.bf16.gmra.mxu1 %v3129_v54  ;;  %3987 = vmatmul.mubr.bf16.gmra.mxu0 %v3731_v57  ;;  %v8797_v61 = vrot.slane %v8924_v58, 2  ;;  %v3559_v16 = vld [vmem:[%s6155_s25 + $0x150] sm:$0xff]  ;;  %v6076_v54 = vld [vmem:[%s8743_s1 + $0x3e0] sm:$0xff]  }
 0x1dd   : > { %8922 = vst [vmem:[#allocation9_spill] sm:$0xff] %v7950_v5  ;;  %v1226_v56 = vadd.f32 %v1225_v43, %v8923_v42  ;;  %3392 = vmatprep.mubr.bf16.mxu1 %v3135_v29  ;;  %3994 = vmatprep.mubr.bf16.mxu0 %v3737_v53  ;;  %v6077_v53 = vld [vmem:[%s8743_s1 + $0x460] sm:$0xff]   ;;  %v3562_v29 = vld [vmem:[%s6155_s25 + $0x168] sm:$0xff]  ;;  %v3564_v43 = vld [vmem:[%s6155_s25 + $0x178] sm:$0xff]  ;;  %v8928_v5 = vrot.slane %v7237_v49, 2 }
 0x1de   : > { %v1227_v19 = vpop.f32.mrf.mxu1  ;;  %v1690_v36 = vpop.f32.mrf.mxu0  ;;  %4662 = vmatpush2.bf16.msra.mxu1 %v6074_v9  ;;  %5127 = vmatpush2.bf16.msra.mxu0 %v6075_v34  ;;  %v8926_v9 = vld [vmem:[#allocation21_spill] sm:$0xff]  ;;  %v7996_v31 = vpack.c.bf16 %v3564_v43, %v3562_v29  ;;  %v3561_v29 = vld [vmem:[%s6155_s25 + $0x160] sm:$0xff] }
 0x1df   : > { %v7967_v57 = vadd.f32 %v1688_v13, %v1226_v56  ;;  %4663 = vmatprep.subr.bf16.mxu1 %v8825_v27  ;;  %5128 = vmatprep.subr.bf16.mxu0 %v8825_v27  ;;  %v8927_v36 = vrot.slane %v8912_v21, 2  ;;  %v3735_v13 = vsel %vm3105_vm3, %v3730_v14, %v3734_v24  ;;  %v7984_v56 = vpack.c.bf16 %v3559_v16, %v3557_v33  ;;  %v6078_v14 = vld [vmem:[%s8743_s1 + $0x3d8] sm:$0xff]   ;;  %v8933_v16 = vld [vmem:[#allocation22_spill] sm:$0xff] }
 0x1e0   : > { %v1228_v42 = vpop.f32.mrf.mxu1  ;;  %v1691_v19 = vpop.f32.mrf.mxu0  ;;  %v8930_v21 = vrot.slane %v7942_v20, 2 }
 0x1e1   : > { %8925 = vst [vmem:[#allocation10_spill] sm:$0xff] %v7967_v57  ;;  %v1229_v34 = vadd.f32 %v1228_v42, %v8926_v9  ;;  %v3133_v10 = vsel %vm3105_vm3, %v8927_v36, %v8797_v61  ;;  %v8929_v42 = vrot.slane %v8913_v35, 2  ;;  %v8931_v36 = vrot.slane %v7888_v55, 2  ;;  %v6079_v35 = vld [vmem:[%s8743_s1 + $0x458] sm:$0xff]  }
 0x1e2   : > { %v1230_v23 = vpop.f32.mrf.mxu1  ;;  %v1693_v57 = vpop.f32.mrf.mxu0  ;;  %4664 = vmatpush2.bf16.msra.mxu1 %v6076_v54  ;;  %5129 = vmatpush2.bf16.msra.mxu0 %v6077_v53  ;;  %v8800_v53 = vrot.slane %v7290_v18, 2 }
 0x1e3   : > { %v3139_v9 = vsel %vm3105_vm3, %v8929_v42, %v8928_v5  ;;  %v3741_v61 = vsel %vm3105_vm3, %v8931_v36, %v8930_v21  ;;  %v8004_v5 = vadd.f32 %v1691_v19, %v1229_v34  ;;  %4665 = vmatprep.subr.bf16.mxu1 %v8825_v27  ;;  %5130 = vmatprep.subr.bf16.mxu0 %v8825_v27  ;;  %v3738_v57 = vrot.slane %v7984_v56, 2  ;;  %v3563_v21 = vld [vmem:[%s6155_s25 + $0x170] sm:$0xff]  ;;  %v3568_v36 = vld [vmem:[%s6155_s25 + $0x198] sm:$0xff] }
 0x1e4   : > { %v2154_v33 = vpop.f32.mrf.mxu1  ;;  %v2881_v23 = vpop.f32.mrf.mxu0  ;;  %3393 = vmatmul.mubr.bf16.gmra.mxu1 %v3133_v10  ;;  %3995 = vmatmul.mubr.bf16.gmra.mxu0 %v3735_v13  ;;  %v6080_v10 = vld [vmem:[%s8743_s1 + $0x3d0] sm:$0xff]  }
 0x1e5   : > { %8932 = vst [vmem:[#allocation16_spill] sm:$0xff] %v8004_v5  ;;  %v2297_v54 = vadd.f32 %v2154_v33, %v8933_v16  ;;  %3400 = vmatprep.mubr.bf16.mxu1 %v3139_v9  ;;  %4002 = vmatprep.mubr.bf16.mxu0 %v3741_v61  ;;  %v6081_v61 = vld [vmem:[%s8743_s1 + $0x450] sm:$0xff]   ;;  %v3566_v9 = vld [vmem:[%s6155_s25 + $0x188] sm:$0xff] }
 0x1e6   : > { %v2156_v43 = vpop.f32.mrf.mxu1  ;;  %v2883_v19 = vpop.f32.mrf.mxu0  ;;  %4666 = vmatpush2.bf16.msra.mxu1 %v6078_v14  ;;  %5131 = vmatpush2.bf16.msra.mxu0 %v6079_v35  ;;  %v8935_v14 = vld [vmem:[#allocation25_spill] sm:$0xff]  ;;  %v8050_v5 = vpack.c.bf16 %v3568_v36, %v3566_v9  ;;  %v3565_v9 = vld [vmem:[%s6155_s25 + $0x180] sm:$0xff] }
 0x1e7   : > { %v8021_v13 = vadd.f32 %v2881_v23, %v2297_v54  ;;  %4667 = vmatprep.subr.bf16.mxu1 %v8825_v27  ;;  %5132 = vmatprep.subr.bf16.mxu0 %v8825_v27  ;;  %v8936_v43 = vrot.slane %v8924_v58, 2  ;;  %v3739_v23 = vsel %vm3105_vm3, %v3734_v24, %v3738_v57  ;;  %v8038_v54 = vpack.c.bf16 %v3563_v21, %v3561_v29  ;;  %v6082_v24 = vld [vmem:[%s8743_s1 + $0x3c8] sm:$0xff]   ;;  %v8941_v21 = vld [vmem:[#allocation26_spill] sm:$0xff] }
 0x1e8   : > { %v2157_v33 = vpop.f32.mrf.mxu1  ;;  %v2884_v16 = vpop.f32.mrf.mxu0  ;;  %v8939_v58 = vrot.slane %v7996_v31, 2 }
 0x1e9   : > { %8934 = vst [vmem:[#allocation18_spill] sm:$0xff] %v8021_v13  ;;  %v2298_v35 = vadd.f32 %v2157_v33, %v8935_v14  ;;  %v3137_v19 = vsel %vm3105_vm3, %v8936_v43, %v8800_v53  ;;  %v8937_v13 = vrot.slane %v7295_v48, 2  ;;  %v8938_v33 = vrot.slane %v7237_v49, 2  ;;  %v6083_v49 = vld [vmem:[%s8743_s1 + $0x448] sm:$0xff]  }
 0x1ea   : > { %v2159_v42 = vpop.f32.mrf.mxu1  ;;  %v2886_v34 = vpop.f32.mrf.mxu0  ;;  %v8940_v43 = vrot.slane %v7942_v20, 2  ;;  %4668 = vmatpush2.bf16.msra.mxu1 %v6080_v10  ;;  %5133 = vmatpush2.bf16.msra.mxu0 %v6081_v61  ;;  %v3140_v61 = vrot.slane %v7340_v32, 2  ;;  %v6085_v32 = vld [vmem:[%s8743_s1 + $0x440] sm:$0xff]  }
 0x1eb   : > { %v3143_v14 = vsel %vm3105_vm3, %v8938_v33, %v8937_v13  ;;  %v8058_v29 = vadd.f32 %v2884_v16, %v2298_v35  ;;  %4669 = vmatprep.subr.bf16.mxu1 %v8825_v27  ;;  %5134 = vmatprep.subr.bf16.mxu0 %v8825_v27  ;;  %v3742_v13 = vrot.slane %v8038_v54, 2  ;;  %v3146_v35 = vrot.slane %v7353_v25, 2 }
 0x1ec   : > { %v3745_v53 = vsel %vm3105_vm3, %v8940_v43, %v8939_v58  ;;  %v2162_v34 = vpop.f32.mrf.mxu1  ;;  %v2889_v42 = vpop.f32.mrf.mxu0  ;;  %3401 = vmatmul.mubr.bf16.gmra.mxu1 %v3137_v19  ;;  %4003 = vmatmul.mubr.bf16.gmra.mxu0 %v3739_v23  ;;  %v3748_v33 = vrot.slane %v8050_v5, 2  ;;  %v3567_v58 = vld [vmem:[%s6155_s25 + $0x190] sm:$0xff]  ;;  %v6084_v19 = vld [vmem:[%s8743_s1 + $0x3c0] sm:$0xff]   ;;  %v3570_v23 = vld [vmem:[%s6155_s25 + $0x1a8] sm:$0xff] }
 0x1ed   : > { %v2299_v10 = vadd.f32 %v2162_v34, %v8941_v21  ;;  %3408 = vmatprep.mubr.bf16.mxu1 %v3143_v14  ;;  %4010 = vmatprep.mubr.bf16.mxu0 %v3745_v53  ;;  %v3572_v14 = vld [vmem:[%s6155_s25 + $0x1b8] sm:$0xff]  ;;  %v3743_v21 = vsel %vm3105_vm3, %v3738_v57, %v3742_v13 }
 0x1ee   : > { %v2164_v36 = vpop.f32.mrf.mxu1  ;;  %v2891_v16 = vpop.f32.mrf.mxu0  ;;  %4670 = vmatpush2.bf16.msra.mxu1 %v6082_v24  ;;  %5135 = vmatpush2.bf16.msra.mxu0 %v6083_v49  ;;  %v8943_v49 = vrot.slane %v7290_v18, 2 }
 0x1ef   : > { %v8075_v53 = vadd.f32 %v2889_v42, %v2299_v10  ;;  %4671 = vmatprep.subr.bf16.mxu1 %v8825_v27  ;;  %5136 = vmatprep.subr.bf16.mxu0 %v8825_v27  ;;  %v8088_v42 = vpack.c.bf16 %v3567_v58, %v3565_v9  ;;  %v8945_v16 = vrot.slane %v7295_v48, 2  ;;  %v8949_v48 = vld [vmem:[#allocation29_spill] sm:$0xff] }
 0x1f0   : > { %v2165_v25 = vpop.f32.mrf.mxu1  ;;  %v2892_v43 = vpop.f32.mrf.mxu0  ;;  %v3141_v34 = vsel %vm3105_vm3, %v8943_v49, %v3140_v61  ;;  %v8950_v49 = vld [vmem:[#allocation23_spill] sm:$0xff] }
 0x1f1   : > { %8942 = vst [vmem:[#allocation13_spill] sm:$0xff] %v8075_v53  ;;  %v2300_v24 = vadd.f32 %v2165_v25, %v7465_v37  ;;  %8944 = vst [vmem:[#allocation14_spill] sm:$0xff] %v8088_v42  ;;  %v3147_v27 = vsel %vm3105_vm3, %v8945_v16, %v3146_v35  ;;  %v8946_v53 = vrot.slane %v7996_v31, 2  ;;  %v8096_v25 = vpack.c.bf16 %v3572_v14, %v3570_v23 }
 0x1f2   : > { %v2167_v10 = vpop.f32.mrf.mxu1  ;;  %v2894_v36 = vpop.f32.mrf.mxu0  ;;  %4672 = vmatpush2.bf16.msra.mxu1 %v6084_v19  ;;  %5137 = vmatpush2.bf16.msra.mxu0 %v6085_v32  ;;  %v3746_v23 = vrot.slane %v8088_v42, 2  ;;  %v8951_v32 = vld [vmem:[#allocation24_spill] sm:$0xff] }
 0x1f3   : > { %v3749_v37 = vsel %vm3105_vm3, %v8946_v53, %v3748_v33  ;;  %8947 = vst [vmem:[#allocation19_spill] sm:$0xff] %v8096_v25  ;;  %v8098_v18 = vadd.f32 %v2892_v43, %v2300_v24  ;;  %v3144_v53 = vrot.slane %v8950_v49, 2  ;;  %v3150_v10 = vrot.slane %v8951_v32, 2  ;;  %v3569_v24 = vld [vmem:[%s6155_s25 + $0x1a0] sm:$0xff]  ;;  %v3571_v36 = vld [vmem:[%s6155_s25 + $0x1b0] sm:$0xff] }
 0x1f4   : > { %v2170_v57 = vpop.f32.mrf.mxu1  ;;  %v2897_v9 = vpop.f32.mrf.mxu0  ;;  %3409 = vmatmul.mubr.bf16.gmra.mxu1 %v3141_v34  ;;  %4011 = vmatmul.mubr.bf16.gmra.mxu0 %v3743_v21  ;;  %v3752_v43 = vrot.slane %v8096_v25, 2  ;;  %v3574_v34 = vld [vmem:[%s6155_s25 + $0x1c8] sm:$0xff]  ;;  %v3576_v21 = vld [vmem:[%s6155_s25 + $0x1d8] sm:$0xff]  ;;  %v3747_v49 = vsel %vm3105_vm3, %v3742_v13, %v3746_v23 }
 0x1f5   : > { %8948 = vst [vmem:[#allocation20_spill] sm:$0xff] %v8098_v18  ;;  %v2301_v58 = vadd.f32 %v2170_v57, %v8949_v48  ;;  %3416 = vmatprep.mubr.bf16.mxu1 %v3147_v27  ;;  %4018 = vmatprep.mubr.bf16.mxu0 %v3749_v37  ;;  %v8953_v27 = vld [vmem:[#allocation31_spill] sm:$0xff]  ;;  %v3145_v48 = vsel %vm3105_vm3, %v3140_v61, %v3144_v53  ;;  %v8956_v61 = vld [vmem:[#allocation32_spill] sm:$0xff] }
 0x1f6   : > { %v2172_v19 = vpop.f32.mrf.mxu1  ;;  %v2899_v14 = vpop.f32.mrf.mxu0  ;;  %v3151_v25 = vsel %vm3105_vm3, %v3146_v35, %v3150_v10  ;;  %v3753_v42 = vsel %vm3105_vm3, %v3748_v33, %v3752_v43 }
 0x1f7   : > { %v8107_v16 = vadd.f32 %v2897_v9, %v2301_v58  ;;  %v8114_v19 = vpack.c.bf16 %v3571_v36, %v3569_v24  ;;  %v8118_v9 = vpack.c.bf16 %v3576_v21, %v3574_v34  ;;  %v8957_v24 = vld [vmem:[#allocation27_spill] sm:$0xff]  ;;  %v8958_v21 = vld [vmem:[#allocation28_spill] sm:$0xff] }
 0x1f8   : > { %v2173_v18 = vpop.f32.mrf.mxu1  ;;  %v2900_v57 = vpop.f32.mrf.mxu0  ;;  %v3148_v35 = vrot.slane %v8957_v24, 2 }
 0x1f9   : > { %8952 = vst [vmem:[#allocation17_spill] sm:$0xff] %v8107_v16  ;;  %v2302_v37 = vadd.f32 %v2173_v18, %v8953_v27  ;;  %8954 = vst [vmem:[#allocation21_spill] sm:$0xff] %v8118_v9  ;;  %v3750_v33 = vrot.slane %v8114_v19, 2  ;;  %v3154_v27 = vrot.slane %v8958_v21, 2 }
 0x1fa   : > { %v2175_v14 = vpop.f32.mrf.mxu1  ;;  %v2902_v32 = vpop.f32.mrf.mxu0 }
 0x1fb   : > { %v8120_v58 = vadd.f32 %v2900_v57, %v2302_v37  ;;  %v3756_v57 = vrot.slane %v8118_v9, 2  ;;  %v3573_v37 = vld [vmem:[%s6155_s25 + $0x1c0] sm:$0xff]  ;;  %v3575_v14 = vld [vmem:[%s6155_s25 + $0x1d0] sm:$0xff]  ;;  %v3155_v21 = vsel %vm3105_vm3, %v3150_v10, %v3154_v27 }
 0x1fc   : > { %v2178_v16 = vpop.f32.mrf.mxu1  ;;  %v2905_v18 = vpop.f32.mrf.mxu0  ;;  %3417 = vmatmul.mubr.bf16.gmra.mxu1 %v3145_v48  ;;  %4019 = vmatmul.mubr.bf16.gmra.mxu0 %v3747_v49  ;;  %v3578_v48 = vld [vmem:[%s6155_s25 + $0x1e8] sm:$0xff]  ;;  %v3580_v49 = vld [vmem:[%s6155_s25 + $0x1f8] sm:$0xff]  ;;  %v8136_v24 = vpack.c.bf16 %v3575_v14, %v3573_v37  ;;  %v8960_v37 = vld [vmem:[#allocation30_spill] sm:$0xff] }
 0x1fd   : > { %8955 = vst [vmem:[#allocation22_spill] sm:$0xff] %v8120_v58  ;;  %v2303_v13 = vadd.f32 %v2178_v16, %v8956_v61  ;;  %3424 = vmatprep.mubr.bf16.mxu1 %v3151_v25  ;;  %4026 = vmatprep.mubr.bf16.mxu0 %v3753_v42  ;;  %v3149_v25 = vsel %vm3105_vm3, %v3144_v53, %v3148_v35  ;;  %v3158_v14 = vrot.slane %v8960_v37, 2 }
 0x1fe   : > { %v2180_v36 = vpop.f32.mrf.mxu1  ;;  %v2907_v34 = vpop.f32.mrf.mxu0  ;;  %v3751_v61 = vsel %vm3105_vm3, %v3746_v23, %v3750_v33  ;;  %v3757_v9 = vsel %vm3105_vm3, %v3752_v43, %v3756_v57  ;;  %v3152_v23 = vrot.slane %v7491_v46, 2  ;;  %v3754_v10 = vrot.slane %v8136_v24, 2 }
 0x1ff   : > { %v8129_v32 = vadd.f32 %v2905_v18, %v2303_v13  ;;  %v8140_v18 = vpack.c.bf16 %v3580_v49, %v3578_v48  ;;  %v3577_v49 = vld [vmem:[%s6155_s25 + $0x1e0] sm:$0xff] }
 0x200   : > { %v2181_v58 = vpop.f32.mrf.mxu1  ;;  %v2908_v16 = vpop.f32.mrf.mxu0  ;;  %v3153_v46 = vsel %vm3105_vm3, %v3148_v35, %v3152_v23  ;;  %v8964_v35 = vld [vmem:[#allocation36_spill] sm:$0xff] }
 0x201   : > { %8959 = vst [vmem:[#allocation25_spill] sm:$0xff] %v8129_v32  ;;  %v2304_v42 = vadd.f32 %v2181_v58, %v7521_v6  ;;  %v3760_v48 = vrot.slane %v8140_v18, 2 }
 0x202   : > { %v2183_v36 = vpop.f32.mrf.mxu1  ;;  %v2910_v34 = vpop.f32.mrf.mxu0 }
 0x203   : > { %v8142_v13 = vadd.f32 %v2908_v16, %v2304_v42  ;;  %v3579_v16 = vld [vmem:[%s6155_s25 + $0x1f0] sm:$0xff]  ;;  %v3761_v37 = vsel %vm3105_vm3, %v3756_v57, %v3760_v48 }
 0x204   : > { %v2186_v32 = vpop.f32.mrf.mxu1  ;;  %v2913_v6 = vpop.f32.mrf.mxu0  ;;  %3425 = vmatmul.mubr.bf16.gmra.mxu1 %v3149_v25  ;;  %4027 = vmatmul.mubr.bf16.gmra.mxu0 %v3751_v61  ;;  %v3582_v25 = vld [vmem:[%s6155_s25 + $0x208] sm:$0xff]  ;;  %v3584_v61 = vld [vmem:[%s6155_s25 + $0x218] sm:$0xff]  ;;  %v8158_v34 = vpack.c.bf16 %v3579_v16, %v3577_v49 }
 0x205   : > { %v2305_v53 = vadd.f32 %v2186_v32, %v7532_v41  ;;  %3432 = vmatprep.mubr.bf16.mxu1 %v3155_v21  ;;  %4034 = vmatprep.mubr.bf16.mxu0 %v3757_v9  ;;  %v3755_v32 = vsel %vm3105_vm3, %v3750_v33, %v3754_v10  ;;  %v8965_v49 = vld [vmem:[#allocation33_spill] sm:$0xff] }
 0x206   : > { %v2188_v43 = vpop.f32.mrf.mxu1  ;;  %v2915_v58 = vpop.f32.mrf.mxu0  ;;  %v3758_v57 = vrot.slane %v8158_v34, 2 }
 0x207   : > { %v8151_v42 = vadd.f32 %v2913_v6, %v2305_v53  ;;  %v3159_v58 = vsel %vm3105_vm3, %v3154_v27, %v3158_v14  ;;  %v8162_v6 = vpack.c.bf16 %v3584_v61, %v3582_v25  ;;  %v3156_v27 = vrot.slane %v8965_v49, 2  ;;  %v8966_v61 = vld [vmem:[#allocation34_spill] sm:$0xff] }
 0x208   : > { %v2189_v36 = vpop.f32.mrf.mxu1  ;;  %v2916_v41 = vpop.f32.mrf.mxu0 }
 0x209   : > { %8961 = vst [vmem:[#allocation26_spill] sm:$0xff] %v8151_v42  ;;  %v2306_v9 = vadd.f32 %v2189_v36, %v7545_v63  ;;  %8962 = vst [vmem:[#allocation29_spill] sm:$0xff] %v8162_v6  ;;  %v3162_v36 = vrot.slane %v8966_v61, 2 }
 0x20a   : > { %v2191_v21 = vpop.f32.mrf.mxu1  ;;  %v2918_v43 = vpop.f32.mrf.mxu0 }
 0x20b   : > { %v8164_v53 = vadd.f32 %v2916_v41, %v2306_v9  ;;  %v3764_v41 = vrot.slane %v8162_v6, 2  ;;  %v3581_v9 = vld [vmem:[%s6155_s25 + $0x200] sm:$0xff]  ;;  %v3583_v21 = vld [vmem:[%s6155_s25 + $0x210] sm:$0xff]  ;;  %v3163_v61 = vsel %vm3105_vm3, %v3158_v14, %v3162_v36 }
 0x20c   : > { %v2194_v42 = vpop.f32.mrf.mxu1  ;;  %v2921_v63 = vpop.f32.mrf.mxu0  ;;  %3433 = vmatmul.mubr.bf16.gmra.mxu1 %v3153_v46  ;;  %4035 = vmatmul.mubr.bf16.gmra.mxu0 %v3755_v32  ;;  %v3586_v46 = vld [vmem:[%s6155_s25 + $0x228] sm:$0xff]  ;;  %v3588_v32 = vld [vmem:[%s6155_s25 + $0x238] sm:$0xff]  ;;  %v8180_v49 = vpack.c.bf16 %v3583_v21, %v3581_v9 }
 0x20d   : > { %8963 = vst [vmem:[#allocation23_spill] sm:$0xff] %v8164_v53  ;;  %v2307_v33 = vadd.f32 %v2194_v42, %v8964_v35  ;;  %3440 = vmatprep.mubr.bf16.mxu1 %v3159_v58  ;;  %4042 = vmatprep.mubr.bf16.mxu0 %v3761_v37  ;;  %v3157_v37 = vsel %vm3105_vm3, %v3152_v23, %v3156_v27  ;;  %v8971_v9 = vld [vmem:[#allocation35_spill] sm:$0xff] }
 0x20e   : > { %v2196_v16 = vpop.f32.mrf.mxu1  ;;  %v2923_v25 = vpop.f32.mrf.mxu0  ;;  %v3759_v35 = vsel %vm3105_vm3, %v3754_v10, %v3758_v57  ;;  %8968 = vst [vmem:[#allocation31_spill] sm:$0xff] %v8180_v49  ;;  %v3765_v6 = vsel %vm3105_vm3, %v3760_v48, %v3764_v41  ;;  %v3160_v10 = vrot.slane %v7540_v28, 2  ;;  %v3762_v14 = vrot.slane %v8180_v49, 2 }
 0x20f   : > { %v8173_v43 = vadd.f32 %v2921_v63, %v2307_v33  ;;  %v8184_v63 = vpack.c.bf16 %v3588_v32, %v3586_v46  ;;  %v3166_v21 = vrot.slane %v8971_v9, 2  ;;  %v3585_v32 = vld [vmem:[%s6155_s25 + $0x220] sm:$0xff] }
 0x210   : > { %v2197_v53 = vpop.f32.mrf.mxu1  ;;  %v2924_v42 = vpop.f32.mrf.mxu0  ;;  %v3161_v28 = vsel %vm3105_vm3, %v3156_v27, %v3160_v10  ;;  %v8976_v27 = vld [vmem:[#allocation39_spill] sm:$0xff] }
 0x211   : > { %8967 = vst [vmem:[#allocation24_spill] sm:$0xff] %v8173_v43  ;;  %v2308_v58 = vadd.f32 %v2197_v53, %v7569_v44  ;;  %8969 = vst [vmem:[#allocation32_spill] sm:$0xff] %v8184_v63  ;;  %v3768_v46 = vrot.slane %v8184_v63, 2 }
 0x212   : > { %v2199_v16 = vpop.f32.mrf.mxu1  ;;  %v2926_v25 = vpop.f32.mrf.mxu0 }
 0x213   : > { %v8186_v33 = vadd.f32 %v2924_v42, %v2308_v58  ;;  %v3587_v42 = vld [vmem:[%s6155_s25 + $0x230] sm:$0xff]  ;;  %v3769_v9 = vsel %vm3105_vm3, %v3764_v41, %v3768_v46 }
 0x214   : > { %v2202_v43 = vpop.f32.mrf.mxu1  ;;  %v2929_v44 = vpop.f32.mrf.mxu0  ;;  %3441 = vmatmul.mubr.bf16.gmra.mxu1 %v3157_v37  ;;  %4043 = vmatmul.mubr.bf16.gmra.mxu0 %v3759_v35  ;;  %v3590_v37 = vld [vmem:[%s6155_s25 + $0x248] sm:$0xff]  ;;  %v3592_v35 = vld [vmem:[%s6155_s25 + $0x258] sm:$0xff]  ;;  %v8202_v25 = vpack.c.bf16 %v3587_v42, %v3585_v32 }
 0x215   : > { %8970 = vst [vmem:[#allocation27_spill] sm:$0xff] %v8186_v33  ;;  %v2309_v23 = vadd.f32 %v2202_v43, %v7580_v11  ;;  %3448 = vmatprep.mubr.bf16.mxu1 %v3163_v61  ;;  %4050 = vmatprep.mubr.bf16.mxu0 %v3765_v6  ;;  %v3763_v43 = vsel %vm3105_vm3, %v3758_v57, %v3762_v14  ;;  %v8977_v32 = vld [vmem:[#allocation37_spill] sm:$0xff] }
 0x216   : > { %v2204_v48 = vpop.f32.mrf.mxu1  ;;  %v2931_v53 = vpop.f32.mrf.mxu0  ;;  %8973 = vst [vmem:[#allocation30_spill] sm:$0xff] %v8202_v25  ;;  %v3766_v41 = vrot.slane %v8202_v25, 2 }
 0x217   : > { %v8195_v58 = vadd.f32 %v2929_v44, %v2309_v23  ;;  %v3167_v53 = vsel %vm3105_vm3, %v3162_v36, %v3166_v21  ;;  %v8206_v44 = vpack.c.bf16 %v3592_v35, %v3590_v37  ;;  %v3164_v36 = vrot.slane %v8977_v32, 2  ;;  %v8978_v35 = vld [vmem:[#allocation38_spill] sm:$0xff] }
 0x218   : > { %v2205_v16 = vpop.f32.mrf.mxu1  ;;  %v2932_v11 = vpop.f32.mrf.mxu0 }
 0x219   : > { %8972 = vst [vmem:[#allocation28_spill] sm:$0xff] %v8195_v58  ;;  %v2310_v6 = vadd.f32 %v2205_v16, %v7593_v47  ;;  %8974 = vst [vmem:[#allocation36_spill] sm:$0xff] %v8206_v44  ;;  %v3170_v16 = vrot.slane %v8978_v35, 2 }
 0x21a   : > { %v2207_v61 = vpop.f32.mrf.mxu1  ;;  %v2934_v48 = vpop.f32.mrf.mxu0 }
 0x21b   : > { %v8208_v23 = vadd.f32 %v2932_v11, %v2310_v6  ;;  %v3772_v11 = vrot.slane %v8206_v44, 2  ;;  %v3589_v6 = vld [vmem:[%s6155_s25 + $0x240] sm:$0xff]  ;;  %v3591_v61 = vld [vmem:[%s6155_s25 + $0x250] sm:$0xff] }
 0x21c   : > { %v2210_v58 = vpop.f32.mrf.mxu1  ;;  %v2937_v47 = vpop.f32.mrf.mxu0  ;;  %3449 = vmatmul.mubr.bf16.gmra.mxu1 %v3161_v28  ;;  %4051 = vmatmul.mubr.bf16.gmra.mxu0 %v3763_v43  ;;  %v3594_v28 = vld [vmem:[%s6155_s25 + $0x268] sm:$0xff]  ;;  %v3596_v43 = vld [vmem:[%s6155_s25 + $0x278] sm:$0xff]  ;;  %v8224_v32 = vpack.c.bf16 %v3591_v61, %v3589_v6  ;;  %v3595_v6 = vld [vmem:[%s6155_s25 + $0x270] sm:$0xff] }
 0x21d   : > { %8975 = vst [vmem:[#allocation33_spill] sm:$0xff] %v8208_v23  ;;  %v2311_v57 = vadd.f32 %v2210_v58, %v8976_v27  ;;  %3456 = vmatprep.mubr.bf16.mxu1 %v3167_v53  ;;  %4058 = vmatprep.mubr.bf16.mxu0 %v3769_v9  ;;  %v3165_v9 = vsel %vm3105_vm3, %v3160_v10, %v3164_v36  ;;  %v4128_v61 = vld [vmem:[%s6155_s25 + $0x48] sm:$0xe0] }
 0x21e   : > { %v2212_v42 = vpop.f32.mrf.mxu1  ;;  %v2939_v37 = vpop.f32.mrf.mxu0  ;;  %v3767_v27 = vsel %vm3105_vm3, %v3762_v14, %v3766_v41  ;;  %8980 = vst [vmem:[#allocation35_spill] sm:$0xff] %v8224_v32  ;;  %v8228_v35 = vpack.c.bf16 %v3596_v43, %v3594_v28  ;;  %v3168_v14 = vrot.slane %v7588_v52, 2  ;;  %v8247_v52 = vld [vmem:[%s6155_s25 + $0x58] sm:$0xff] }
 0x21f   : > { %v8217_v48 = vadd.f32 %v2937_v47, %v2311_v57  ;;  %v3171_v47 = vsel %vm3105_vm3, %v3166_v21, %v3170_v16  ;;  %v3773_v57 = vsel %vm3105_vm3, %v3768_v46, %v3772_v11  ;;  %v3770_v21 = vrot.slane %v8224_v32, 2  ;;  %v3593_v46 = vld [vmem:[%s6155_s25 + $0x260] sm:$0xff] }
 0x220   : > { %v2213_v23 = vpop.f32.mrf.mxu1  ;;  %v2940_v58 = vpop.f32.mrf.mxu0  ;;  %8981 = vst [vmem:[#allocation39_spill] sm:$0xff] %v8228_v35 }
 0x221   : > { %8979 = vst [vmem:[#allocation34_spill] sm:$0xff] %v8217_v48  ;;  %v2312_v53 = vadd.f32 %v2213_v23, %v7614_v17 }
 0x222   : > { %v2215_v42 = vpop.f32.mrf.mxu1  ;;  %v2942_v37 = vpop.f32.mrf.mxu0 }
 0x223   : > { %v8230_v48 = vadd.f32 %v2940_v58, %v2312_v53  ;;  %v3174_v58 = vrot.slane %v7591_v7, 2  ;;  %v3776_v53 = vrot.slane %v8228_v35, 2  ;;  %v3771_v7 = vsel %vm3105_vm3, %v3766_v41, %v3770_v21  ;;  %v3062_v41 = vld [vmem:[%s6155_s25 + $0x260] sm:$0xf] }
 0x224   : > { %v2218_v17 = vpop.f32.mrf.mxu1  ;;  %v2945_v23 = vpop.f32.mrf.mxu0  ;;  %3457 = vmatmul.mubr.bf16.gmra.mxu1 %v3165_v9  ;;  %4059 = vmatmul.mubr.bf16.gmra.mxu0 %v3767_v27  ;;  %v3063_v27 = vld [vmem:[%s6155_s25 + $0x268] sm:$0xf] }
 0x225   : > { %8982 = vst [vmem:[#allocation37_spill] sm:$0xff] %v8230_v48  ;;  %v2313_v10 = vadd.f32 %v2218_v17, %v7622_v1  ;;  %3464 = vmatprep.mubr.bf16.mxu1 %v3171_v47  ;;  %4066 = vmatprep.mubr.bf16.mxu0 %v3773_v57  ;;  %v3598_v1 = vld [vmem:[%s6155_s25 + $0x288] sm:$0xf]  ;;  %v8244_v47 = vpack.c.bf16 %v3595_v6, %v3593_v46 }
 0x226   : > { %v2220_v28 = vpop.f32.mrf.mxu1  ;;  %v2947_v43 = vpop.f32.mrf.mxu0  ;;  %v4132_v57 = vpack.c.bf16 %v8247_v52, %v4128_v61  ;;  %v3067_v46 = vpack.c.bf16 %v3063_v27, %v3063_v27  ;;  %v3636_v6 = vpack.c.bf16 %v3598_v1, %v3598_v1  ;;  %v4195_v27 = vshrl.u32 %v7651_v2, 16 }
 0x227   : > { %v8240_v9 = vadd.f32 %v2945_v23, %v2313_v10  ;;  %v3169_v28 = vsel %vm3105_vm3, %v3164_v36, %v3168_v14  ;;  %v3175_v43 = vsel %vm3105_vm3, %v3170_v16, %v3174_v58  ;;  %v8985_v16 = vld [vmem:[#allocation40_spill] sm:$0xff]  ;;  %v4198_v1 = vshll.u32 %v7651_v2, 16 }
 0x228   : > { %v2221_v42 = vpop.f32.mrf.mxu1  ;;  %v2948_v37 = vpop.f32.mrf.mxu0  ;;  %v3780_v61 = vrot.slane %v3636_v6, 2  ;;  %v4197_v6 = vrot.slane %v4195_v27, 2 }
 0x229   : > { %8983 = vst [vmem:[#allocation38_spill] sm:$0xff] %v8240_v9  ;;  %v2314_v17 = vadd.f32 %v2221_v42, %v7630_v3  ;;  %v3777_v9 = vsel %vm3105_vm3, %v3772_v11, %v3776_v53  ;;  %v4190_v11 = vshll.u32 %v4132_v57, 16 }
 0x22a   : > { %v2223_v23 = vpop.f32.mrf.mxu1  ;;  %v2950_v10 = vpop.f32.mrf.mxu0 }
 0x22b   : > { %v8255_v48 = vadd.f32 %v2948_v37, %v2314_v17  ;;  %v3597_v23 = vld [vmem:[%s6155_s25 + $0x280] sm:$0xf]  ;;  %v4187_v10 = vshrl.u32 %v4132_v57, 16  ;;  %v4127_v37 = vld [vmem:[%s6155_s25 + $0x40] sm:$0xe0] }
 0x22c   : > { %v2226_v3 = vpop.f32.mrf.mxu1  ;;  %v2953_v42 = vpop.f32.mrf.mxu0  ;;  %3465 = vmatmul.mubr.bf16.gmra.mxu1 %v3169_v28  ;;  %4067 = vmatmul.mubr.bf16.gmra.mxu0 %v3771_v7  ;;  %v3178_v7 = vrot.slane %v3067_v46, 2  ;;  %v3635_v25 = vpack.c.bf16 %v3597_v23, %v3597_v23 }
 0x22d   : > { %8984 = vst [vmem:[#allocation41_spill] sm:$0xff] %v8255_v48  ;;  %v2315_v35 = vadd.f32 %v2226_v3, %v8985_v16  ;;  %3472 = vmatprep.mubr.bf16.mxu1 %v3175_v43  ;;  %4074 = vmatprep.mubr.bf16.mxu0 %v3777_v9  ;;  %v8987_v48 = vrot.slane %v7609_v45, 2  ;;  %v3066_v3 = vpack.c.bf16 %v3062_v41, %v3062_v41  ;;  %v4855_v43 = vld [vmem:[%s6155_s25 + $0x48] sm:$0xc0]  ;;  %v8988_v16 = vrot.slane %v8244_v47, 2 }
 0x22e   : > { %v2228_v17 = vpop.f32.mrf.mxu1  ;;  %v2955_v28 = vpop.f32.mrf.mxu0  ;;  %v4189_v33 = vrot.slane %v4187_v10, 2  ;;  %v4859_v41 = vpack.c.bf16 %v8247_v52, %v4855_v43  ;;  %v4181_v52 = vshll.u32 %v7672_v8, 16 }
 0x22f   : > { %v8265_v36 = vadd.f32 %v2953_v42, %v2315_v35  ;;  %v3173_v32 = vsel %vm3105_vm3, %v3168_v14, %v8987_v48  ;;  %v3775_v44 = vsel %vm3105_vm3, %v3770_v21, %v8988_v16  ;;  %v6091_v17 = vld [vmem:[%s6155_s25 + $0x50] sm:$0xff]  ;;  %v4192_v35 = vrot.slane %v4190_v11, 3 }
 0x230   : > { %v2229_v9 = vpop.f32.mrf.mxu1  ;;  %v2956_v57 = vpop.f32.mrf.mxu0  ;;  %v4131_v28 = vpack.c.bf16 %v6091_v17, %v4127_v37  ;;  %v4200_v42 = vrot.slane %v4198_v1, 3  ;;  %v3179_v48 = vsel %vm3105_vm3, %v3174_v58, %v3178_v7  ;;  %v3781_v14 = vsel %vm3105_vm3, %v3776_v53, %v3780_v61  ;;  %v4854_v61 = vld [vmem:[%s6155_s25 + $0x40] sm:$0xc0] }
 0x231   : > { %8986 = vst [vmem:[#allocation40_spill] sm:$0xff] %v8265_v36  ;;  %v2316_v46 = vadd.f32 %v2229_v9, %v7653_v30  ;;  %v3176_v21 = vrot.slane %v3066_v3, 2  ;;  %v3778_v30 = vrot.slane %v3635_v25, 2  ;;  %v4193_v58 = vor.u32 %v4192_v35, %v4189_v33 }
 0x232   : > { %v2231_v36 = vpop.f32.mrf.mxu1  ;;  %v2958_v63 = vpop.f32.mrf.mxu0  ;;  %v4170_v11 = vshrl.u32 %v4131_v28, 16  ;;  %v4173_v27 = vshll.u32 %v4131_v28, 16  ;;  %v4201_v53 = vor.u32 %v4200_v42, %v4197_v6  ;;  %v4903_v7 = vrot.slane %v4859_v41, 3 }
 0x233   : > { %v8279_v49 = vadd.f32 %v2956_v57, %v2316_v46  ;;  %v4178_v36 = vshrl.u32 %v7672_v8, 16  ;;  %v4213_v25 = vshrl.u32 %v7678_v39, 16  ;;  %v8989_v33 = vrot.slane %v7609_v45, 2 }
 0x234   : > { %v2234_v23 = vpop.f32.mrf.mxu1  ;;  %v2961_v10 = vpop.f32.mrf.mxu0  ;;  %3473 = vmatmul.mubr.bf16.gmra.mxu1 %v3173_v32  ;;  %4075 = vmatmul.mubr.bf16.gmra.mxu0 %v3775_v44  ;;  %v4904_v32 = vrot.slane %v7651_v2, 3  ;;  %v4216_v44 = vshll.u32 %v7678_v39, 16  ;;  %v4172_v57 = vrot.slane %v4170_v11, 2  ;;  %v4175_v16 = vrot.slane %v4173_v27, 3 }
 0x235   : > { %v2317_v63 = vadd.f32 %v2234_v23, %v7663_v60  ;;  %3480 = vmatprep.mubr.bf16.mxu1 %v3179_v48  ;;  %4082 = vmatprep.mubr.bf16.mxu0 %v3781_v14  ;;  %v3177_v9 = vsel %vm3105_vm3, %v8989_v33, %v3176_v21  ;;  %v4858_v28 = vpack.c.bf16 %v6091_v17, %v4854_v61  ;;  %v8990_v2 = vrot.slane %v8244_v47, 2 }
 0x236   : > { %v2236_v1 = vpop.f32.mrf.mxu1  ;;  %v2963_v37 = vpop.f32.mrf.mxu0  ;;  %v4180_v6 = vrot.slane %v4178_v36, 2  ;;  %v4183_v42 = vrot.slane %v4181_v52, 3  ;;  %v4202_v41 = vsel %vm4168_vm4, %v4193_v58, %v4201_v53  ;;  %v4905_v23 = vsel %vm4899_vm5, %v4903_v7, %v4904_v32 }
 0x237   : > { %v8288_v3 = vadd.f32 %v2961_v10, %v2317_v63  ;;  %v3779_v35 = vsel %vm3105_vm3, %v8990_v2, %v3778_v30  ;;  %v4215_v45 = vrot.slane %v4213_v25, 2  ;;  %v4218_v10 = vrot.slane %v4216_v44, 3 }
 0x238   : > { %v2237_v60 = vpop.f32.mrf.mxu1  ;;  %v2964_v43 = vpop.f32.mrf.mxu0  ;;  %v4900_v27 = vrot.slane %v4858_v28, 3  ;;  %v4901_v30 = vrot.slane %v7672_v8, 3  ;;  %v4184_v63 = vor.u32 %v4183_v42, %v4180_v6  ;;  %v4204_v58 = vshrl.u32 %v7700_v38, 16 }
 0x239   : > { %v2318_v46 = vadd.f32 %v2237_v60, %v7676_v40  ;;  %v4176_v40 = vor.u32 %v4175_v16, %v4172_v57  ;;  %v4207_v52 = vshll.u32 %v7700_v38, 16  ;;  %v4219_v37 = vor.u32 %v4218_v10, %v4215_v45 }
 0x23a   : > { %v2239_v48 = vpop.f32.mrf.mxu1  ;;  %v2966_v14 = vpop.f32.mrf.mxu0  ;;  %v4908_v7 = vrot.slane %v7678_v39, 3  ;;  %v4231_v25 = vshrl.u32 %v7702_v50, 16  ;;  %v4234_v44 = vshll.u32 %v7702_v50, 16  ;;  %v4206_v57 = vrot.slane %v4204_v58, 2 }
 0x23b   : > { %v8299_v21 = vadd.f32 %v2964_v43, %v2318_v46  ;;  %v4902_v43 = vsel %vm4899_vm5, %v4900_v27, %v4901_v30  ;;  %v4209_v16 = vrot.slane %v4207_v52, 3  ;;  %v4220_v39 = vsel %vm4168_vm4, %v4201_v53, %v4219_v37 }
 0x23c   : > { %v2242_v11 = vpop.f32.mrf.mxu1  ;;  %v2969_v17 = vpop.f32.mrf.mxu0  ;;  %3481 = vmatmul.mubr.bf16.gmra.mxu1 %v3177_v9  ;;  %4083 = vmatmul.mubr.bf16.gmra.mxu0 %v3779_v35  ;;  %v4185_v9 = vsel %vm4168_vm4, %v4176_v40, %v4184_v63  ;;  %v4909_v2 = vsel %vm4899_vm5, %v4904_v32, %v4908_v7  ;;  %v4233_v35 = vrot.slane %v4231_v25, 2  ;;  %v4236_v6 = vrot.slane %v4234_v44, 3 }
 0x23d   : > { %v2319_v36 = vadd.f32 %v2242_v11, %v7685_v12  ;;  %4673 = vmatprep.mubr.bf16.mxu1 %v4202_v41  ;;  %5138 = vmatprep.mubr.bf16.mxu0 %v4905_v23  ;;  %v4225_v41 = vshll.u32 %v7734_v59, 16  ;;  %v4210_v45 = vor.u32 %v4209_v16, %v4206_v57  ;;  %v4906_v53 = vrot.slane %v7700_v38, 3 }
 0x23e   : > { %v2244_v61 = vpop.f32.mrf.mxu1  ;;  %v2971_v1 = vpop.f32.mrf.mxu0  ;;  %v4237_v11 = vor.u32 %v4236_v6, %v4233_v35  ;;  %v4249_v40 = vshrl.u32 %v7746_v26, 16  ;;  %v4252_v27 = vshll.u32 %v7746_v26, 16  ;;  %v4916_v6 = vrot.slane %v7746_v26, 3 }
 0x23f   : > { %v8308_v60 = vadd.f32 %v2969_v17, %v2319_v36  ;;  %v4912_v17 = vrot.slane %v7702_v50, 3  ;;  %v4211_v25 = vsel %vm4168_vm4, %v4184_v63, %v4210_v45  ;;  %v4907_v38 = vsel %vm4899_vm5, %v4901_v30, %v4906_v53  ;;  %v8992_v63 = vld [vmem:[#allocation7_spill] sm:$0xff] }
 0x240   : > { %v2245_v8 = vpop.f32.mrf.mxu1  ;;  %v2972_v12 = vpop.f32.mrf.mxu0  ;;  %v4238_v50 = vsel %vm4168_vm4, %v4219_v37, %v4237_v11  ;;  %v4910_v30 = vrot.slane %v7734_v59, 3  ;;  %v4243_v37 = vshll.u32 %v8992_v63, 16 }
 0x241   : > { %v2320_v33 = vadd.f32 %v2245_v8, %v7704_v51  ;;  %v4222_v51 = vshrl.u32 %v7734_v59, 16  ;;  %v8994_v59 = vld [vmem:[#allocation3_spill] sm:$0xff] }
 0x242   : > { %v2247_v28 = vpop.f32.mrf.mxu1  ;;  %v2974_v46 = vpop.f32.mrf.mxu0 }
 0x243   : > { %v8315_v42 = vadd.f32 %v2972_v12, %v2320_v33  ;;  %v4224_v61 = vrot.slane %v4222_v51, 2  ;;  %v4913_v12 = vsel %vm4899_vm5, %v4908_v7, %v4912_v17  ;;  %v4254_v33 = vrot.slane %v4252_v27, 3 }
 0x244   : > { %v2250_v48 = vpop.f32.mrf.mxu1  ;;  %v2977_v14 = vpop.f32.mrf.mxu0  ;;  %4674 = vmatmul.mubr.bf16.vlgmr.msra.gmra.mxu1 %v4185_v9  ;;  %5139 = vmatmul.mubr.bf16.vlgmr.msra.gmra.mxu0 %v4902_v43  ;;  %v4251_v43 = vrot.slane %v4249_v40, 2  ;;  %v4911_v27 = vsel %vm4899_vm5, %v4906_v53, %v4910_v30  ;;  %v4261_v53 = vshll.u32 %v7826_v4, 16 }
 0x245   : > { %v2321_v23 = vadd.f32 %v2250_v48, %v7721_v62  ;;  %4681 = vmatprep.mubr.bf16.mxu1 %v4220_v39  ;;  %5146 = vmatprep.mubr.bf16.mxu0 %v4909_v2  ;;  %v4227_v62 = vrot.slane %v4225_v41, 3  ;;  %v4240_v39 = vshrl.u32 %v8992_v63, 16  ;;  %v8993_v48 = vld [vmem:[#allocation2_spill] sm:$0xff] }
 0x246   : > { %v2252_v32 = vpop.f32.mrf.mxu1  ;;  %v2979_v10 = vpop.f32.mrf.mxu0  ;;  %v4255_v35 = vor.u32 %v4254_v33, %v4251_v43  ;;  %v4270_v51 = vshll.u32 %v8993_v48, 16 }
 0x247   : > { %v8324_v36 = vadd.f32 %v2977_v14, %v2321_v23  ;;  %v4228_v28 = vor.u32 %v4227_v62, %v4224_v61  ;;  %v4267_v14 = vshrl.u32 %v8993_v48, 16 }
 0x248   : > { %v2253_v58 = vpop.f32.mrf.mxu1  ;;  %v2980_v52 = vpop.f32.mrf.mxu0  ;;  %v4256_v26 = vsel %vm4168_vm4, %v4237_v11, %v4255_v35  ;;  %v4914_v11 = vrot.slane %v8992_v63, 3 }
 0x249   : > { %v2322_v1 = vadd.f32 %v2253_v58, %v7748_v22  ;;  %v8991_v22 = vld [vmem:[#allocation4_spill] sm:$0xff]  ;;  %v4229_v10 = vsel %vm4168_vm4, %v4210_v45, %v4228_v28  ;;  %v4242_v58 = vrot.slane %v4240_v39, 2  ;;  %v4258_v45 = vshrl.u32 %v7826_v4, 16 }
 0x24a   : > { %v2255_v44 = vpop.f32.mrf.mxu1  ;;  %v2982_v8 = vpop.f32.mrf.mxu0  ;;  %v4915_v63 = vsel %vm4899_vm5, %v4910_v30, %v4914_v11  ;;  %v4276_v30 = vshrl.u32 %v7876_v0, 16 }
 0x24b   : > { %v8331_v9 = vadd.f32 %v2980_v52, %v2322_v1  ;;  %v4245_v52 = vrot.slane %v4243_v37, 3  ;;  %v4917_v1 = vsel %vm4899_vm5, %v4912_v17, %v4916_v6 }
 0x24c   : > { %v2258_v57 = vpop.f32.mrf.mxu1  ;;  %v2985_v16 = vpop.f32.mrf.mxu0  ;;  %4682 = vmatmul.mubr.bf16.gmra.mxu1 %v4211_v25  ;;  %5147 = vmatmul.mubr.bf16.gmra.mxu0 %v4907_v38  ;;  %v4269_v25 = vrot.slane %v4267_v14, 2  ;;  %v4272_v38 = vrot.slane %v4270_v51, 3  ;;  %v4260_v51 = vrot.slane %v4258_v45, 2 }
 0x24d   : > { %v2323_v46 = vadd.f32 %v2258_v57, %v8991_v22  ;;  %4689 = vmatprep.mubr.bf16.mxu1 %v4238_v50  ;;  %5154 = vmatprep.mubr.bf16.mxu0 %v4913_v12  ;;  %v8995_v12 = vld [vmem:[#allocation8_spill] sm:$0xff]  ;;  %v4246_v33 = vor.u32 %v4245_v52, %v4242_v58  ;;  %v4920_v22 = vrot.slane %v8993_v48, 3 }
 0x24e   : > { %v2260_v7 = vpop.f32.mrf.mxu1  ;;  %v2987_v2 = vpop.f32.mrf.mxu0 }
 0x24f   : > { %v8340_v41 = vadd.f32 %v2985_v16, %v2323_v46  ;;  %v4273_v16 = vor.u32 %v4272_v38, %v4269_v25  ;;  %v8996_v46 = vld [vmem:[#allocation11_spill] sm:$0xff]  ;;  %v4921_v58 = vsel %vm4899_vm5, %v4916_v6, %v4920_v22  ;;  %v8998_v38 = vld [vmem:[#allocation6_spill] sm:$0xff] }
 0x250   : > { %v2261_v23 = vpop.f32.mrf.mxu1  ;;  %v2988_v32 = vpop.f32.mrf.mxu0  ;;  %v4285_v39 = vshrl.u32 %v8996_v46, 16  ;;  %v4288_v37 = vshll.u32 %v8996_v46, 16 }
 0x251   : > { %v2324_v40 = vadd.f32 %v2261_v23, %v8994_v59  ;;  %v4263_v23 = vrot.slane %v4261_v53, 3  ;;  %v4247_v59 = vsel %vm4168_vm4, %v4228_v28, %v4246_v33  ;;  %v4274_v48 = vsel %vm4168_vm4, %v4255_v35, %v4273_v16 }
 0x252   : > { %v2263_v61 = vpop.f32.mrf.mxu1  ;;  %v2990_v62 = vpop.f32.mrf.mxu0  ;;  %v4287_v52 = vrot.slane %v4285_v39, 2  ;;  %v4918_v28 = vrot.slane %v7826_v4, 3  ;;  %v4279_v35 = vshll.u32 %v7876_v0, 16  ;;  %v4924_v53 = vrot.slane %v8996_v46, 3  ;;  %v8999_v4 = vld [vmem:[#allocation12_spill] sm:$0xff] }
 0x253   : > { %v8347_v44 = vadd.f32 %v2988_v32, %v2324_v40  ;;  %v8997_v32 = vld [vmem:[#allocation5_spill] sm:$0xff]  ;;  %v4290_v61 = vrot.slane %v4288_v37, 3  ;;  %v4264_v25 = vor.u32 %v4263_v23, %v4260_v51  ;;  %v4278_v51 = vrot.slane %v4276_v30, 2 }
 0x254   : > { %v2266_v8 = vpop.f32.mrf.mxu1  ;;  %v2993_v50 = vpop.f32.mrf.mxu0  ;;  %4690 = vmatmul.mubr.bf16.gmra.mxu1 %v4229_v10  ;;  %5155 = vmatmul.mubr.bf16.gmra.mxu0 %v4911_v27  ;;  %v4281_v23 = vrot.slane %v4279_v35, 3  ;;  %v4321_v30 = vshrl.u32 %v7942_v20, 16  ;;  %v4324_v35 = vshll.u32 %v7942_v20, 16 }
 0x255   : > { %v2325_v43 = vadd.f32 %v2266_v8, %v8995_v12  ;;  %4697 = vmatprep.mubr.bf16.mxu1 %v4256_v26  ;;  %5162 = vmatprep.mubr.bf16.mxu0 %v4917_v1  ;;  %v4291_v45 = vor.u32 %v4290_v61, %v4287_v52  ;;  %v4303_v12 = vshrl.u32 %v7888_v55, 16  ;;  %v4265_v37 = vsel %vm4168_vm4, %v4246_v33, %v4264_v25  ;;  %v9000_v52 = vld [vmem:[#allocation15_spill] sm:$0xff] }
 0x256   : > { %v2268_v17 = vpop.f32.mrf.mxu1  ;;  %v2995_v57 = vpop.f32.mrf.mxu0  ;;  %v4294_v33 = vshrl.u32 %v7930_v15, 16 }
 0x257   : > { %v8356_v7 = vadd.f32 %v2993_v50, %v2325_v43  ;;  %v4306_v43 = vshll.u32 %v7888_v55, 16  ;;  %v4292_v46 = vsel %vm4168_vm4, %v4273_v16, %v4291_v45  ;;  %v4922_v16 = vrot.slane %v7876_v0, 3 }
 0x258   : > { %v2269_v2 = vpop.f32.mrf.mxu1  ;;  %v2996_v14 = vpop.f32.mrf.mxu0 }
 0x259   : > { %v2326_v10 = vadd.f32 %v2269_v2, %v8997_v32  ;;  %v4923_v0 = vsel %vm4899_vm5, %v4918_v28, %v4922_v16 }
 0x25a   : > { %v2271_v40 = vpop.f32.mrf.mxu1  ;;  %v2998_v27 = vpop.f32.mrf.mxu0 }
 0x25b   : > { %v8363_v62 = vadd.f32 %v2996_v14, %v2326_v10  ;;  %v4919_v14 = vsel %vm4899_vm5, %v4914_v11, %v4918_v28  ;;  %v4308_v40 = vrot.slane %v4306_v43, 3  ;;  %v4297_v11 = vshll.u32 %v7930_v15, 16 }
 0x25c   : > { %v2274_v26 = vpop.f32.mrf.mxu1  ;;  %v3001_v1 = vpop.f32.mrf.mxu0  ;;  %4698 = vmatmul.mubr.bf16.gmra.mxu1 %v4247_v59  ;;  %5163 = vmatmul.mubr.bf16.gmra.mxu0 %v4915_v63  ;;  %v4925_v59 = vsel %vm4899_vm5, %v4920_v22, %v4924_v53  ;;  %v4305_v63 = vrot.slane %v4303_v12, 2  ;;  %v4296_v43 = vrot.slane %v4294_v33, 2  ;;  %v4312_v28 = vshrl.u32 %v7984_v56, 16 }
 0x25d   : > { %v2327_v8 = vadd.f32 %v2274_v26, %v8998_v38  ;;  %4705 = vmatprep.mubr.bf16.mxu1 %v4274_v48  ;;  %5170 = vmatprep.mubr.bf16.mxu0 %v4921_v58  ;;  %v4282_v26 = vor.u32 %v4281_v23, %v4278_v51  ;;  %v4323_v23 = vrot.slane %v4321_v30, 2 }
 0x25e   : > { %v2276_v6 = vpop.f32.mrf.mxu1  ;;  %v3003_v50 = vpop.f32.mrf.mxu0  ;;  %v4309_v38 = vor.u32 %v4308_v40, %v4305_v63  ;;  %v9002_v40 = vld [vmem:[#allocation10_spill] sm:$0xff] }
 0x25f   : > { %v8372_v17 = vadd.f32 %v3001_v1, %v2327_v8  ;;  %v4928_v8 = vrot.slane %v7888_v55, 3 }
 0x260   : > { %v2277_v57 = vpop.f32.mrf.mxu1  ;;  %v3004_v39 = vpop.f32.mrf.mxu0  ;;  %v4310_v55 = vsel %vm4168_vm4, %v4291_v45, %v4309_v38  ;;  %v4315_v45 = vshll.u32 %v7984_v56, 16 }
 0x261   : > { %v2328_v2 = vadd.f32 %v2277_v57, %v8999_v4  ;;  %v4299_v57 = vrot.slane %v4297_v11, 3  ;;  %v4283_v4 = vsel %vm4168_vm4, %v4264_v25, %v4282_v26  ;;  %v4929_v51 = vsel %vm4899_vm5, %v4924_v53, %v4928_v8 }
 0x262   : > { %v2279_v32 = vpop.f32.mrf.mxu1  ;;  %v3006_v10 = vpop.f32.mrf.mxu0  ;;  %v4926_v25 = vrot.slane %v7930_v15, 3  ;;  %v4932_v11 = vrot.slane %v7942_v20, 3  ;;  %v9003_v15 = vld [vmem:[#allocation16_spill] sm:$0xff] }
 0x263   : > { %v8379_v27 = vadd.f32 %v3004_v39, %v2328_v2  ;;  %v9001_v39 = vld [vmem:[#allocation9_spill] sm:$0xff]  ;;  %v4326_v32 = vrot.slane %v4324_v35, 3  ;;  %v4300_v63 = vor.u32 %v4299_v57, %v4296_v43  ;;  %v4314_v43 = vrot.slane %v4312_v28, 2 }
 0x264   : > { %v2282_v48 = vpop.f32.mrf.mxu1  ;;  %v3009_v58 = vpop.f32.mrf.mxu0  ;;  %4706 = vmatmul.mubr.bf16.gmra.mxu1 %v4265_v37  ;;  %5171 = vmatmul.mubr.bf16.gmra.mxu0 %v4919_v14  ;;  %v4317_v57 = vrot.slane %v4315_v45, 3  ;;  %v4357_v28 = vshrl.u32 %v8050_v5, 16  ;;  %v4360_v45 = vshll.u32 %v8050_v5, 16 }
 0x265   : > { %v2329_v61 = vadd.f32 %v2282_v48, %v9000_v52  ;;  %4713 = vmatprep.mubr.bf16.mxu1 %v4292_v46  ;;  %5178 = vmatprep.mubr.bf16.mxu0 %v4925_v59  ;;  %v4327_v33 = vor.u32 %v4326_v32, %v4323_v23  ;;  %v4339_v52 = vshrl.u32 %v7996_v31, 16  ;;  %v4301_v35 = vsel %vm4168_vm4, %v4282_v26, %v4300_v63  ;;  %v9004_v23 = vld [vmem:[#allocation18_spill] sm:$0xff] }
 0x266   : > { %v2284_v22 = vpop.f32.mrf.mxu1  ;;  %v3011_v1 = vpop.f32.mrf.mxu0  ;;  %v4330_v26 = vshrl.u32 %v8038_v54, 16 }
 0x267   : > { %v8388_v6 = vadd.f32 %v3009_v58, %v2329_v61  ;;  %v4342_v61 = vshll.u32 %v7996_v31, 16  ;;  %v4328_v20 = vsel %vm4168_vm4, %v4309_v38, %v4327_v33  ;;  %v4930_v38 = vrot.slane %v7984_v56, 3 }
 0x268   : > { %v2285_v50 = vpop.f32.mrf.mxu1  ;;  %v3012_v12 = vpop.f32.mrf.mxu0 }
 0x269   : > { %v2330_v37 = vadd.f32 %v2285_v50, %v9001_v39  ;;  %v4931_v56 = vsel %vm4899_vm5, %v4926_v25, %v4930_v38 }
 0x26a   : > { %v2287_v2 = vpop.f32.mrf.mxu1  ;;  %v3014_v14 = vpop.f32.mrf.mxu0 }
 0x26b   : > { %v8395_v10 = vadd.f32 %v3012_v12, %v2330_v37  ;;  %v4927_v12 = vsel %vm4899_vm5, %v4922_v16, %v4926_v25  ;;  %v4344_v2 = vrot.slane %v4342_v61, 3  ;;  %v4333_v16 = vshll.u32 %v8038_v54, 16  ;;  %v9006_v25 = vld [vmem:[#allocation14_spill] sm:$0xff] }
 0x26c   : > { %v2290_v46 = vpop.f32.mrf.mxu1  ;;  %v3017_v59 = vpop.f32.mrf.mxu0  ;;  %4714 = vmatmul.mubr.bf16.gmra.mxu1 %v4283_v4  ;;  %5179 = vmatmul.mubr.bf16.gmra.mxu0 %v4923_v0  ;;  %v4933_v4 = vsel %vm4899_vm5, %v4928_v8, %v4932_v11  ;;  %v4341_v0 = vrot.slane %v4339_v52, 2  ;;  %v4332_v61 = vrot.slane %v4330_v26, 2  ;;  %v4940_v26 = vrot.slane %v8050_v5, 3 }
 0x26d   : > { %v2331_v48 = vadd.f32 %v2290_v46, %v9002_v40  ;;  %4721 = vmatprep.mubr.bf16.mxu1 %v4310_v55  ;;  %5186 = vmatprep.mubr.bf16.mxu0 %v4929_v51  ;;  %v4318_v46 = vor.u32 %v4317_v57, %v4314_v43  ;;  %v4359_v43 = vrot.slane %v4357_v28, 2  ;;  %v4362_v57 = vrot.slane %v4360_v45, 3 }
 0x26e   : > { %v2292_v53 = vpop.f32.mrf.mxu1  ;;  %v3019_v58 = vpop.f32.mrf.mxu0  ;;  %v4345_v40 = vor.u32 %v4344_v2, %v4341_v0  ;;  %v4348_v2 = vshrl.u32 %v9006_v25, 16 }
 0x26f   : > { %v8404_v22 = vadd.f32 %v3017_v59, %v2331_v48  ;;  %v4936_v48 = vrot.slane %v7996_v31, 3 }
 0x270   : > { %v2293_v1 = vpop.f32.mrf.mxu1  ;;  %v3020_v30 = vpop.f32.mrf.mxu0  ;;  %v4346_v31 = vsel %vm4168_vm4, %v4327_v33, %v4345_v40  ;;  %v4351_v33 = vshll.u32 %v9006_v25, 16 }
 0x271   : > { %v2332_v50 = vadd.f32 %v2293_v1, %v9003_v15  ;;  %v4335_v1 = vrot.slane %v4333_v16, 3  ;;  %v9007_v16 = vld [vmem:[#allocation19_spill] sm:$0xff] }
 0x272   : > { %v2295_v39 = vpop.f32.mrf.mxu1  ;;  %v3022_v37 = vpop.f32.mrf.mxu0 }
 0x273   : > { %v8411_v14 = vadd.f32 %v3020_v30, %v2332_v50 }
 0x274   : > { %v3346_v55 = vpop.f32.mrf.mxu1  ;;  %v3948_v51 = vpop.f32.mrf.mxu0  ;;  %4722 = vmatmul.mubr.bf16.gmra.mxu1 %v4301_v35  ;;  %5187 = vmatmul.mubr.bf16.gmra.mxu0 %v4927_v12  ;;  %v4319_v35 = vsel %vm4168_vm4, %v4300_v63, %v4318_v46  ;;  %v4937_v12 = vsel %vm4899_vm5, %v4932_v11, %v4936_v48  ;;  %v4934_v63 = vrot.slane %v8038_v54, 3  ;;  %v9008_v54 = vld [vmem:[#allocation20_spill] sm:$0xff] }
 0x275   : > { %v3489_v32 = vadd.f32 %v3346_v55, %v9004_v23  ;;  %4729 = vmatprep.mubr.bf16.mxu1 %v4328_v20  ;;  %5194 = vmatprep.mubr.bf16.mxu0 %v4933_v4  ;;  %v4336_v4 = vor.u32 %v4335_v1, %v4332_v61  ;;  %v4375_v23 = vshrl.u32 %v9007_v16, 16  ;;  %v4350_v61 = vrot.slane %v4348_v2, 2 }
 0x276   : > { %v3348_v8 = vpop.f32.mrf.mxu1  ;;  %v3950_v59 = vpop.f32.mrf.mxu0  ;;  %v4353_v1 = vrot.slane %v4351_v33, 3  ;;  %v4944_v2 = vrot.slane %v9007_v16, 3  ;;  %v9010_v33 = vld [vmem:[#allocation21_spill] sm:$0xff] }
 0x277   : > { %v8420_v53 = vadd.f32 %v3948_v51, %v3489_v32  ;;  %v4363_v51 = vor.u32 %v4362_v57, %v4359_v43  ;;  %v4378_v32 = vshll.u32 %v9007_v16, 16  ;;  %v4337_v45 = vsel %vm4168_vm4, %v4318_v46, %v4336_v4  ;;  %v9009_v57 = vld [vmem:[#allocation17_spill] sm:$0xff] }
 0x278   : > { %v3349_v58 = vpop.f32.mrf.mxu1  ;;  %v3951_v52 = vpop.f32.mrf.mxu0  ;;  %v4366_v46 = vshrl.u32 %v8114_v19, 16 }
 0x279   : > { %v3490_v30 = vadd.f32 %v3349_v58, %v8058_v29  ;;  %v9005_v29 = vld [vmem:[#allocation13_spill] sm:$0xff]  ;;  %v4364_v5 = vsel %vm4168_vm4, %v4345_v40, %v4363_v51  ;;  %v4938_v40 = vrot.slane %v9006_v25, 3 }
 0x27a   : > { %v3351_v15 = vpop.f32.mrf.mxu1  ;;  %v3953_v50 = vpop.f32.mrf.mxu0 }
 0x27b   : > { %v8427_v39 = vadd.f32 %v3951_v52, %v3490_v30  ;;  %v4935_v52 = vsel %vm4899_vm5, %v4930_v38, %v4934_v63  ;;  %v4377_v15 = vrot.slane %v4375_v23, 2  ;;  %v4380_v50 = vrot.slane %v4378_v32, 3 }
 0x27c   : > { %v3354_v37 = vpop.f32.mrf.mxu1  ;;  %v3956_v20 = vpop.f32.mrf.mxu0  ;;  %4730 = vmatmul.mubr.bf16.gmra.mxu1 %v4319_v35  ;;  %5195 = vmatmul.mubr.bf16.gmra.mxu0 %v4931_v56  ;;  %v4941_v56 = vsel %vm4899_vm5, %v4936_v48, %v4940_v26  ;;  %v4369_v38 = vshll.u32 %v8114_v19, 16  ;;  %v4939_v25 = vsel %vm4899_vm5, %v4934_v63, %v4938_v40  ;;  %v4384_v63 = vshrl.u32 %v8136_v24, 16 }
 0x27d   : > { %v3491_v0 = vadd.f32 %v3354_v37, %v9005_v29  ;;  %4737 = vmatprep.mubr.bf16.mxu1 %v4346_v31  ;;  %5202 = vmatprep.mubr.bf16.mxu0 %v4937_v12 }
 0x27e   : > { %v3356_v11 = vpop.f32.mrf.mxu1  ;;  %v3958_v55 = vpop.f32.mrf.mxu0 }
 0x27f   : > { %v8436_v8 = vadd.f32 %v3956_v20, %v3491_v0  ;;  %v4354_v20 = vor.u32 %v4353_v1, %v4350_v61  ;;  %v4381_v0 = vor.u32 %v4380_v50, %v4377_v15  ;;  %v4393_v11 = vshrl.u32 %v9010_v33, 16 }
 0x280   : > { %v3357_v59 = vpop.f32.mrf.mxu1  ;;  %v3959_v28 = vpop.f32.mrf.mxu0  ;;  %v4396_v55 = vshll.u32 %v9010_v33, 16 }
 0x281   : > { %v3492_v58 = vadd.f32 %v3357_v59, %v9008_v54  ;;  %v9011_v54 = vld [vmem:[#allocation22_spill] sm:$0xff]  ;;  %v4382_v16 = vsel %vm4168_vm4, %v4363_v51, %v4381_v0  ;;  %v4387_v51 = vshll.u32 %v8136_v24, 16 }
 0x282   : > { %v3359_v30 = vpop.f32.mrf.mxu1  ;;  %v3961_v35 = vpop.f32.mrf.mxu0 }
 0x283   : > { %v8443_v31 = vadd.f32 %v3959_v28, %v3492_v58  ;;  %v4368_v28 = vrot.slane %v4366_v46, 2  ;;  %v4945_v30 = vsel %vm4899_vm5, %v4940_v26, %v4944_v2  ;;  %v4395_v35 = vrot.slane %v4393_v11, 2 }
 0x284   : > { %v3362_v12 = vpop.f32.mrf.mxu1  ;;  %v3964_v43 = vpop.f32.mrf.mxu0  ;;  %4738 = vmatmul.mubr.bf16.gmra.mxu1 %v4337_v45  ;;  %5203 = vmatmul.mubr.bf16.gmra.mxu0 %v4935_v52  ;;  %v4371_v45 = vrot.slane %v4369_v38, 3  ;;  %v4355_v52 = vsel %vm4168_vm4, %v4336_v4, %v4354_v20  ;;  %v4942_v4 = vrot.slane %v8114_v19, 3 }
 0x285   : > { %v3493_v37 = vadd.f32 %v3362_v12, %v9009_v57  ;;  %4745 = vmatprep.mubr.bf16.mxu1 %v4364_v5  ;;  %5210 = vmatprep.mubr.bf16.mxu0 %v4941_v56  ;;  %v4398_v5 = vrot.slane %v4396_v55, 3 }
 0x286   : > { %v3364_v48 = vpop.f32.mrf.mxu1  ;;  %v3966_v29 = vpop.f32.mrf.mxu0  ;;  %v4372_v12 = vor.u32 %v4371_v45, %v4368_v28  ;;  %v4943_v28 = vsel %vm4899_vm5, %v4938_v40, %v4942_v4  ;;  %v4386_v45 = vrot.slane %v4384_v63, 2  ;;  %v9013_v40 = vld [vmem:[#allocation26_spill] sm:$0xff]  ;;  %v9014_v63 = vld [vmem:[#allocation29_spill] sm:$0xff] }
 0x287   : > { %v8452_v23 = vadd.f32 %v3964_v43, %v3493_v37  ;;  %v9012_v43 = vld [vmem:[#allocation25_spill] sm:$0xff]  ;;  %v4399_v57 = vor.u32 %v4398_v5, %v4395_v35  ;;  %v4948_v37 = vrot.slane %v9010_v33, 3  ;;  %v4411_v48 = vshrl.u32 %v8140_v18, 16 }
 0x288   : > { %v3365_v32 = vpop.f32.mrf.mxu1  ;;  %v3967_v59 = vpop.f32.mrf.mxu0  ;;  %v4414_v29 = vshll.u32 %v8140_v18, 16 }
 0x289   : > { %v3494_v58 = vadd.f32 %v3365_v32, %v9011_v54  ;;  %v4389_v54 = vrot.slane %v4387_v51, 3  ;;  %v4400_v33 = vsel %vm4168_vm4, %v4381_v0, %v4399_v57  ;;  %v4946_v0 = vrot.slane %v8136_v24, 3 }
 0x28a   : > { %v3367_v61 = vpop.f32.mrf.mxu1  ;;  %v3969_v1 = vpop.f32.mrf.mxu0  ;;  %v4429_v51 = vshrl.u32 %v9014_v63, 16 }
 0x28b   : > { %v8459_v56 = vadd.f32 %v3967_v59, %v3494_v58  ;;  %v4373_v59 = vsel %vm4168_vm4, %v4354_v20, %v4372_v12  ;;  %v4413_v61 = vrot.slane %v4411_v48, 2  ;;  %v4416_v1 = vrot.slane %v4414_v29, 3 }
 0x28c   : > { %v3370_v15 = vpop.f32.mrf.mxu1  ;;  %v3972_v50 = vpop.f32.mrf.mxu0  ;;  %4746 = vmatmul.mubr.bf16.gmra.mxu1 %v4355_v52  ;;  %5211 = vmatmul.mubr.bf16.gmra.mxu0 %v4939_v25  ;;  %v4949_v25 = vsel %vm4899_vm5, %v4944_v2, %v4948_v37  ;;  %v4405_v20 = vshll.u32 %v8158_v34, 16  ;;  %v4947_v24 = vsel %vm4899_vm5, %v4942_v4, %v4946_v0  ;;  %v9017_v4 = vld [vmem:[#allocation31_spill] sm:$0xff] }
 0x28d   : > { %v3495_v46 = vadd.f32 %v3370_v15, %v9012_v43  ;;  %4753 = vmatprep.mubr.bf16.mxu1 %v4382_v16  ;;  %5218 = vmatprep.mubr.bf16.mxu0 %v4945_v30  ;;  %v4390_v15 = vor.u32 %v4389_v54, %v4386_v45  ;;  %v4417_v43 = vor.u32 %v4416_v1, %v4413_v61 }
 0x28e   : > { %v3372_v26 = vpop.f32.mrf.mxu1  ;;  %v3974_v38 = vpop.f32.mrf.mxu0 }
 0x28f   : > { %v8468_v11 = vadd.f32 %v3972_v50, %v3495_v46  ;;  %v4952_v46 = vrot.slane %v8140_v18, 3  ;;  %v4432_v26 = vshll.u32 %v9014_v63, 16  ;;  %v4418_v18 = vsel %vm4168_vm4, %v4399_v57, %v4417_v43 }
 0x290   : > { %v3373_v55 = vpop.f32.mrf.mxu1  ;;  %v3975_v32 = vpop.f32.mrf.mxu0  ;;  %v4423_v57 = vshll.u32 %v9017_v4, 16 }
 0x291   : > { %v3496_v19 = vadd.f32 %v3373_v55, %v8142_v13  ;;  %v4402_v13 = vshrl.u32 %v8158_v34, 16 }
 0x292   : > { %v3375_v58 = vpop.f32.mrf.mxu1  ;;  %v3977_v52 = vpop.f32.mrf.mxu0 }
 0x293   : > { %v8475_v16 = vadd.f32 %v3975_v32, %v3496_v19  ;;  %v4404_v55 = vrot.slane %v4402_v13, 2  ;;  %v4407_v32 = vrot.slane %v4405_v20, 3  ;;  %v4953_v58 = vsel %vm4899_vm5, %v4948_v37, %v4952_v46 }
 0x294   : > { %v3378_v30 = vpop.f32.mrf.mxu1  ;;  %v3980_v35 = vpop.f32.mrf.mxu0  ;;  %4754 = vmatmul.mubr.bf16.gmra.mxu1 %v4373_v59  ;;  %5219 = vmatmul.mubr.bf16.gmra.mxu0 %v4943_v28  ;;  %v9015_v59 = vld [vmem:[#allocation23_spill] sm:$0xff]  ;;  %v4391_v28 = vsel %vm4168_vm4, %v4372_v12, %v4390_v15  ;;  %v4431_v52 = vrot.slane %v4429_v51, 2  ;;  %v4950_v12 = vrot.slane %v8158_v34, 3  ;;  %v4420_v20 = vshrl.u32 %v9017_v4, 16 }
 0x295   : > { %v3497_v5 = vadd.f32 %v3378_v30, %v9013_v40  ;;  %4761 = vmatprep.mubr.bf16.mxu1 %v4400_v33  ;;  %5226 = vmatprep.mubr.bf16.mxu0 %v4949_v25  ;;  %v4434_v33 = vrot.slane %v4432_v26, 3  ;;  %v4408_v30 = vor.u32 %v4407_v32, %v4404_v55  ;;  %v9019_v34 = vld [vmem:[#allocation27_spill] sm:$0xff] }
 0x296   : > { %v3380_v2 = vpop.f32.mrf.mxu1  ;;  %v3982_v50 = vpop.f32.mrf.mxu0 }
 0x297   : > { %v8484_v38 = vadd.f32 %v3980_v35, %v3497_v5  ;;  %v9016_v35 = vld [vmem:[#allocation24_spill] sm:$0xff]  ;;  %v4435_v5 = vor.u32 %v4434_v33, %v4431_v52  ;;  %v4956_v2 = vrot.slane %v9014_v63, 3  ;;  %v4409_v32 = vsel %vm4168_vm4, %v4390_v15, %v4408_v30  ;;  %v9020_v15 = vld [vmem:[#allocation30_spill] sm:$0xff] }
 0x298   : > { %v3381_v48 = vpop.f32.mrf.mxu1  ;;  %v3983_v29 = vpop.f32.mrf.mxu0  ;;  %v9018_v50 = vld [vmem:[#allocation32_spill] sm:$0xff] }
 0x299   : > { %v3498_v19 = vadd.f32 %v3381_v48, %v9015_v59  ;;  %v4447_v51 = vshrl.u32 %v9018_v50, 16  ;;  %v4450_v26 = vshll.u32 %v9018_v50, 16  ;;  %v4436_v63 = vsel %vm4168_vm4, %v4417_v43, %v4435_v5 }
 0x29a   : > { %v3383_v45 = vpop.f32.mrf.mxu1  ;;  %v3985_v54 = vpop.f32.mrf.mxu0  ;;  %v4954_v43 = vrot.slane %v9017_v4, 3 }
 0x29b   : > { %v8491_v25 = vadd.f32 %v3983_v29, %v3498_v19  ;;  %v4951_v19 = vsel %vm4899_vm5, %v4946_v0, %v4950_v12  ;;  %v4452_v52 = vrot.slane %v4450_v26, 3  ;;  %v4441_v0 = vshll.u32 %v9020_v15, 16  ;;  %v9022_v26 = vld [vmem:[#allocation36_spill] sm:$0xff] }
 0x29c   : > { %v3386_v61 = vpop.f32.mrf.mxu1  ;;  %v3988_v1 = vpop.f32.mrf.mxu0  ;;  %4762 = vmatmul.mubr.bf16.gmra.mxu1 %v4391_v28  ;;  %5227 = vmatmul.mubr.bf16.gmra.mxu0 %v4947_v24  ;;  %v4422_v28 = vrot.slane %v4420_v20, 2  ;;  %v4425_v24 = vrot.slane %v4423_v57, 3  ;;  %v4955_v4 = vsel %vm4899_vm5, %v4950_v12, %v4954_v43 }
 0x29d   : > { %v3499_v13 = vadd.f32 %v3386_v61, %v9016_v35  ;;  %4769 = vmatprep.mubr.bf16.mxu1 %v4418_v18  ;;  %5234 = vmatprep.mubr.bf16.mxu0 %v4953_v58  ;;  %v4957_v18 = vsel %vm4899_vm5, %v4952_v46, %v4956_v2  ;;  %v4449_v58 = vrot.slane %v4447_v51, 2  ;;  %v4438_v35 = vshrl.u32 %v9020_v15, 16 }
 0x29e   : > { %v3388_v37 = vpop.f32.mrf.mxu1  ;;  %v3990_v40 = vpop.f32.mrf.mxu0  ;;  %v4426_v57 = vor.u32 %v4425_v24, %v4422_v28  ;;  %v4960_v51 = vrot.slane %v9018_v50, 3 }
 0x29f   : > { %v8500_v48 = vadd.f32 %v3988_v1, %v3499_v13  ;;  %v9021_v13 = vld [vmem:[#allocation28_spill] sm:$0xff]  ;;  %v4453_v40 = vor.u32 %v4452_v52, %v4449_v58 }
 0x2a0   : > { %v3389_v29 = vpop.f32.mrf.mxu1  ;;  %v3991_v55 = vpop.f32.mrf.mxu0  ;;  %v4427_v28 = vsel %vm4168_vm4, %v4408_v30, %v4426_v57  ;;  %v4961_v58 = vsel %vm4899_vm5, %v4956_v2, %v4960_v51  ;;  %v9027_v2 = vld [vmem:[#allocation39_spill] sm:$0xff] }
 0x2a1   : > { %v3500_v59 = vadd.f32 %v3389_v29, %v9019_v34  ;;  %v4465_v29 = vshrl.u32 %v9022_v26, 16  ;;  %v4454_v50 = vsel %vm4168_vm4, %v4435_v5, %v4453_v40  ;;  %v4958_v5 = vrot.slane %v9020_v15, 3 }
 0x2a2   : > { %v3391_v45 = vpop.f32.mrf.mxu1  ;;  %v3993_v54 = vpop.f32.mrf.mxu0 }
 0x2a3   : > { %v8507_v33 = vadd.f32 %v3991_v55, %v3500_v59  ;;  %v4468_v55 = vshll.u32 %v9022_v26, 16  ;;  %v4443_v45 = vrot.slane %v4441_v0, 3  ;;  %v9023_v54 = vld [vmem:[#allocation33_spill] sm:$0xff]  ;;  %v4467_v52 = vrot.slane %v4465_v29, 2  ;;  %v9025_v0 = vld [vmem:[#allocation35_spill] sm:$0xff] }
 0x2a4   : > { %v3394_v61 = vpop.f32.mrf.mxu1  ;;  %v3996_v1 = vpop.f32.mrf.mxu0  ;;  %4770 = vmatmul.mubr.bf16.gmra.mxu1 %v4409_v32  ;;  %5235 = vmatmul.mubr.bf16.gmra.mxu0 %v4951_v19  ;;  %v4440_v19 = vrot.slane %v4438_v35, 2  ;;  %v4456_v30 = vshrl.u32 %v9025_v0, 16  ;;  %v4459_v12 = vshll.u32 %v9025_v0, 16  ;;  %v4483_v29 = vshrl.u32 %v9027_v2, 16 }
 0x2a5   : > { %v3501_v20 = vadd.f32 %v3394_v61, %v9021_v13  ;;  %4777 = vmatprep.mubr.bf16.mxu1 %v4436_v63  ;;  %5242 = vmatprep.mubr.bf16.mxu0 %v4957_v18  ;;  %v4470_v61 = vrot.slane %v4468_v55, 3  ;;  %v4486_v55 = vshll.u32 %v9027_v2, 16 }
 0x2a6   : > { %v3396_v46 = vpop.f32.mrf.mxu1  ;;  %v3998_v37 = vpop.f32.mrf.mxu0  ;;  %v4444_v35 = vor.u32 %v4443_v45, %v4440_v19  ;;  %v4130_v45 = vld [vmem:[%s6155_s25 + $0x288] sm:$0x1f] }
 0x2a7   : > { %v8516_v32 = vadd.f32 %v3996_v1, %v3501_v20  ;;  %v9026_v46 = vld [vmem:[#allocation34_spill] sm:$0xff] }
 0x2a8   : > { %v3397_v34 = vpop.f32.mrf.mxu1  ;;  %v3999_v59 = vpop.f32.mrf.mxu0 }
 0x2a9   : > { %v3502_v63 = vadd.f32 %v3397_v34, %v9023_v54  ;;  %v4471_v54 = vor.u32 %v4470_v61, %v4467_v52  ;;  %v4134_v61 = vpack.c.bf16 %v4130_v45, %v4130_v45 }
 0x2aa   : > { %v3399_v24 = vpop.f32.mrf.mxu1  ;;  %v4001_v18 = vpop.f32.mrf.mxu0 }
 0x2ab   : > { %v8523_v1 = vadd.f32 %v3999_v59, %v3502_v63  ;;  %v4964_v63 = vrot.slane %v9022_v26, 3  ;;  %v4445_v24 = vsel %vm4168_vm4, %v4426_v57, %v4444_v35  ;;  %v4458_v18 = vrot.slane %v4456_v30, 2 }
 0x2ac   : > { %v3402_v13 = vpop.f32.mrf.mxu1  ;;  %v4004_v20 = vpop.f32.mrf.mxu0  ;;  %4778 = vmatmul.mubr.bf16.gmra.mxu1 %v4427_v28  ;;  %5243 = vmatmul.mubr.bf16.gmra.mxu0 %v4955_v4  ;;  %v4472_v52 = vsel %vm4168_vm4, %v4453_v40, %v4471_v54  ;;  %v4477_v30 = vshll.u32 %v8244_v47, 16  ;;  %v4962_v40 = vrot.slane %v9025_v0, 3 }
 0x2ad   : > { %9024 = vst [vmem:[#allocation4_spill] sm:$0xff] %v8523_v1  ;;  %v3503_v37 = vadd.f32 %v3402_v13, %v9026_v46  ;;  %4785 = vmatprep.mubr.bf16.mxu1 %v4454_v50  ;;  %5250 = vmatprep.mubr.bf16.mxu0 %v4961_v58  ;;  %v4461_v50 = vrot.slane %v4459_v12, 3  ;;  %v9029_v58 = vld [vmem:[#allocation37_spill] sm:$0xff]  ;;  %v4959_v13 = vsel %vm4899_vm5, %v4954_v43, %v4958_v5  ;;  %v4485_v46 = vrot.slane %v4483_v29, 2  ;;  %v9030_v12 = vld [vmem:[#allocation38_spill] sm:$0xff] }
 0x2ae   : > { %v3404_v34 = vpop.f32.mrf.mxu1  ;;  %v4006_v59 = vpop.f32.mrf.mxu0  ;;  %v4488_v1 = vrot.slane %v4486_v55, 3  ;;  %v4965_v26 = vsel %vm4899_vm5, %v4960_v51, %v4964_v63  ;;  %v4474_v43 = vshrl.u32 %v8244_v47, 16 }
 0x2af   : > { %v8532_v19 = vadd.f32 %v4004_v20, %v3503_v37  ;;  %v4462_v57 = vor.u32 %v4461_v50, %v4458_v18  ;;  %v4857_v18 = vld [vmem:[%s6155_s25 + $0x288] sm:$0x3f] }
 0x2b0   : > { %v3405_v28 = vpop.f32.mrf.mxu1  ;;  %v4007_v4 = vpop.f32.mrf.mxu0  ;;  %v4489_v51 = vor.u32 %v4488_v1, %v4485_v46  ;;  %v4963_v1 = vsel %vm4899_vm5, %v4958_v5, %v4962_v40  ;;  %v4966_v5 = vrot.slane %v8244_v47, 3 }
 0x2b1   : > { %9028 = vst [vmem:[#allocation7_spill] sm:$0xff] %v8532_v19  ;;  %v3504_v15 = vadd.f32 %v3405_v28, %v9029_v58  ;;  %v4968_v28 = vrot.slane %v9027_v2, 3  ;;  %v4129_v58 = vld [vmem:[%s6155_s25 + $0x280] sm:$0x1f] }
 0x2b2   : > { %v3407_v34 = vpop.f32.mrf.mxu1  ;;  %v4009_v59 = vpop.f32.mrf.mxu0  ;;  %v4490_v0 = vsel %vm4168_vm4, %v4471_v54, %v4489_v51  ;;  %v4133_v46 = vpack.c.bf16 %v4129_v58, %v4129_v58 }
 0x2b3   : > { %v8540_v20 = vadd.f32 %v4007_v4, %v3504_v15  ;;  %v4501_v4 = vshrl.u32 %v4134_v61, 16  ;;  %v4463_v34 = vsel %vm4168_vm4, %v4444_v35, %v4462_v57  ;;  %v4476_v59 = vrot.slane %v4474_v43, 2 }
 0x2b4   : > { %v3410_v37 = vpop.f32.mrf.mxu1  ;;  %v4012_v19 = vpop.f32.mrf.mxu0  ;;  %4786 = vmatmul.mubr.bf16.gmra.mxu1 %v4445_v24  ;;  %5251 = vmatmul.mubr.bf16.gmra.mxu0 %v4959_v13  ;;  %v4504_v24 = vshll.u32 %v4134_v61, 16  ;;  %v4969_v61 = vsel %vm4899_vm5, %v4964_v63, %v4968_v28  ;;  %v4492_v58 = vshrl.u32 %v4133_v46, 16 }
 0x2b5   : > { %v3505_v29 = vadd.f32 %v3410_v37, %v9030_v12  ;;  %4793 = vmatprep.mubr.bf16.mxu1 %v4472_v52  ;;  %5258 = vmatprep.mubr.bf16.mxu0 %v4965_v26  ;;  %v4479_v52 = vrot.slane %v4477_v30, 3  ;;  %v9031_v26 = vld [vmem:[#allocation41_spill] sm:$0xff] }
 0x2b6   : > { %v3412_v55 = vpop.f32.mrf.mxu1  ;;  %v4014_v45 = vpop.f32.mrf.mxu0 }
 0x2b7   : > { %v8548_v15 = vadd.f32 %v4012_v19, %v3505_v29  ;;  %v4503_v19 = vrot.slane %v4501_v4, 2  ;;  %v4506_v29 = vrot.slane %v4504_v24, 3  ;;  %v4861_v55 = vpack.c.bf16 %v4857_v18, %v4857_v18 }
 0x2b8   : > { %v3413_v50 = vpop.f32.mrf.mxu1  ;;  %v4015_v13 = vpop.f32.mrf.mxu0  ;;  %v4480_v30 = vor.u32 %v4479_v52, %v4476_v59  ;;  %v4967_v59 = vsel %vm4899_vm5, %v4962_v40, %v4966_v5  ;;  %v4494_v52 = vrot.slane %v4492_v58, 2 }
 0x2b9   : > { %v3506_v37 = vadd.f32 %v3413_v50, %v9031_v26  ;;  %v9032_v50 = vld [vmem:[#allocation40_spill] sm:$0xff]  ;;  %v4495_v26 = vshll.u32 %v4133_v46, 16  ;;  %v4507_v24 = vor.u32 %v4506_v29, %v4503_v19  ;;  %v4972_v18 = vrot.slane %v4861_v55, 3 }
 0x2ba   : > { %v3415_v2 = vpop.f32.mrf.mxu1  ;;  %v4017_v12 = vpop.f32.mrf.mxu0 }
 0x2bb   : > { %v8556_v45 = vadd.f32 %v4015_v13, %v3506_v37  ;;  %v4856_v13 = vld [vmem:[%s6155_s25 + $0x280] sm:$0x3f]  ;;  %v4973_v19 = vsel %vm4899_vm5, %v4968_v28, %v4972_v18  ;;  %s5932_s25 = smul.u32 288, %s9036_s13 }
 0x2bc   : > { %v3418_v35 = vpop.f32.mrf.mxu1  ;;  %v4020_v43 = vpop.f32.mrf.mxu0  ;;  %4794 = vmatmul.mubr.bf16.gmra.mxu1 %v4463_v34  ;;  %5259 = vmatmul.mubr.bf16.gmra.mxu0 %v4963_v1  ;;  %v4481_v34 = vsel %vm4168_vm4, %v4462_v57, %v4480_v30  ;;  %v4497_v1 = vrot.slane %v4495_v26, 3 }
 0x2bd   : > { %v3507_v54 = vadd.f32 %v3418_v35, %v9032_v50  ;;  %4801 = vmatprep.mubr.bf16.mxu1 %v4490_v0  ;;  %5266 = vmatprep.mubr.bf16.mxu0 %v4969_v61  ;;  %v4860_v0 = vpack.c.bf16 %v4856_v13, %v4856_v13  ;;  %v4508_v35 = vsel %vm4168_vm4, %v4489_v51, %v4507_v24  ;;  %s8632_s21 = scalar_lea.vmem %s8745_s3, %s5932_s25 }
 0x2be   : > { %v3420_v63 = vpop.f32.mrf.mxu1  ;;  %v4022_v4 = vpop.f32.mrf.mxu0 }
 0x2bf   : > { %v8561_v37 = vadd.f32 %v4020_v43, %v3507_v54  ;;  %v4970_v40 = vrot.slane %v4860_v0, 3 }
 0x2c0   : > { %v3421_v2 = vpop.f32.mrf.mxu1  ;;  %v4023_v12 = vpop.f32.mrf.mxu0 }
 0x2c1   : > { %v3508_v47 = vadd.f32 %v3421_v2, %v8279_v49  ;;  %v4498_v49 = vor.u32 %v4497_v1, %v4494_v52  ;;  %v4971_v4 = vsel %vm4899_vm5, %v4966_v5, %v4970_v40 }
 0x2c2   : > { %v3423_v61 = vpop.f32.mrf.mxu1  ;;  %v4025_v46 = vpop.f32.mrf.mxu0 }
 0x2c3   : > { %v8568_v29 = vadd.f32 %v4023_v12, %v3508_v47  ;;  %v4499_v63 = vsel %vm4168_vm4, %v4480_v30, %v4498_v49 }
 0x2c4   : > { %v3426_v55 = vpop.f32.mrf.mxu1  ;;  %v4028_v43 = vpop.f32.mrf.mxu0  ;;  %4802 = vmatmul.mubr.bf16.gmra.mxu1 %v4481_v34  ;;  %5267 = vmatmul.mubr.bf16.gmra.mxu0 %v4967_v59 }
 0x2c5   : > { %v3509_v57 = vadd.f32 %v3426_v55, %v8288_v3  ;;  %4809 = vmatprep.mubr.bf16.mxu1 %v4508_v35  ;;  %5274 = vmatprep.mubr.bf16.mxu0 %v4973_v19 }
 0x2c6   : > { %v3428_v50 = vpop.f32.mrf.mxu1  ;;  %v4030_v54 = vpop.f32.mrf.mxu0 }
 0x2c7   : > { %v8571_v58 = vadd.f32 %v4028_v43, %v3509_v57 }
 0x2c8   : > { %v3429_v26 = vpop.f32.mrf.mxu1  ;;  %v4031_v51 = vpop.f32.mrf.mxu0 }
 0x2c9   : > { %v3510_v28 = vadd.f32 %v3429_v26, %v8299_v21 }
 0x2ca   : > { %v3431_v24 = vpop.f32.mrf.mxu1  ;;  %v4033_v18 = vpop.f32.mrf.mxu0 }
 0x2cb   : > { %v8576_v13 = vadd.f32 %v4031_v51, %v3510_v28 }
 0x2cc   : > { %v3434_v3 = vpop.f32.mrf.mxu1  ;;  %v4036_v2 = vpop.f32.mrf.mxu0  ;;  %4810 = vmatmul.mubr.bf16.gmra.mxu1 %v4499_v63  ;;  %5275 = vmatmul.mubr.bf16.gmra.mxu0 %v4971_v4 }
 0x2cd   : > { %v3511_v12 = vadd.f32 %v3434_v3, %v8308_v60 }
 0x2ce   : > { %v3436_v34 = vpop.f32.mrf.mxu1  ;;  %v4038_v59 = vpop.f32.mrf.mxu0 }
 0x2cf   : > { %v8579_v47 = vadd.f32 %v4036_v2, %v3511_v12 }
 0x2d0   : > { %v3437_v52 = vpop.f32.mrf.mxu1  ;;  %v4039_v21 = vpop.f32.mrf.mxu0 }
 0x2d1   : > { %v3512_v30 = vadd.f32 %v3437_v52, %v8315_v42 }
 0x2d2   : > { %v3439_v1 = vpop.f32.mrf.mxu1  ;;  %v4041_v5 = vpop.f32.mrf.mxu0 }
 0x2d3   : > { %v8582_v0 = vadd.f32 %v4039_v21, %v3512_v30 }
 0x2d4   : > { %v3442_v61 = vpop.f32.mrf.mxu1  ;;  %v4044_v46 = vpop.f32.mrf.mxu0 }
 0x2d5   : > { %v3513_v35 = vadd.f32 %v3442_v61, %v8324_v36 }
 0x2d6   : > { %v3444_v19 = vpop.f32.mrf.mxu1  ;;  %v4046_v55 = vpop.f32.mrf.mxu0 }
 0x2d7   : > { %v8585_v43 = vadd.f32 %v4044_v46, %v3513_v35 }
 0x2d8   : > { %v3445_v60 = vpop.f32.mrf.mxu1  ;;  %v4047_v57 = vpop.f32.mrf.mxu0 }
 0x2d9   : > { %v3514_v49 = vadd.f32 %v3445_v60, %v8331_v9 }
 0x2da   : > { %v3447_v40 = vpop.f32.mrf.mxu1  ;;  %v4049_v50 = vpop.f32.mrf.mxu0 }
 0x2db   : > { %v8588_v54 = vadd.f32 %v4047_v57, %v3514_v49 }
 0x2dc   : > { %v3450_v42 = vpop.f32.mrf.mxu1  ;;  %v4052_v26 = vpop.f32.mrf.mxu0 }
 0x2dd   : > { %v3515_v51 = vadd.f32 %v3450_v42, %v8340_v41 }
 0x2de   : > { %v3452_v28 = vpop.f32.mrf.mxu1  ;;  %v4054_v63 = vpop.f32.mrf.mxu0 }
 0x2df   : > { %v8591_v4 = vadd.f32 %v4052_v26, %v3515_v51 }
 0x2e0   : > { %v3453_v36 = vpop.f32.mrf.mxu1  ;;  %v4055_v24 = vpop.f32.mrf.mxu0 }
 0x2e1   : > { %v3516_v18 = vadd.f32 %v3453_v36, %v8347_v44 }
 0x2e2   : > { %v3455_v3 = vpop.f32.mrf.mxu1  ;;  %v4057_v2 = vpop.f32.mrf.mxu0 }
 0x2e3   : > { %v8594_v12 = vadd.f32 %v4055_v24, %v3516_v18 }
 0x2e4   : > { %v3458_v9 = vpop.f32.mrf.mxu1  ;;  %v4060_v34 = vpop.f32.mrf.mxu0 }
 0x2e5   : > { %v3517_v59 = vadd.f32 %v3458_v9, %v8356_v7 }
 0x2e6   : > { %v3460_v52 = vpop.f32.mrf.mxu1  ;;  %v4062_v21 = vpop.f32.mrf.mxu0 }
 0x2e7   : > { %v8597_v30 = vadd.f32 %v4060_v34, %v3517_v59 }
 0x2e8   : > { %v3461_v41 = vpop.f32.mrf.mxu1  ;;  %v4063_v1 = vpop.f32.mrf.mxu0 }
 0x2e9   : > { %v3518_v5 = vadd.f32 %v3461_v41, %v8363_v62 }
 0x2ea   : > { %v3463_v61 = vpop.f32.mrf.mxu1  ;;  %v4065_v46 = vpop.f32.mrf.mxu0 }
 0x2eb   : > { %v8600_v35 = vadd.f32 %v4063_v1, %v3518_v5 }
 0x2ec   : > { %v3466_v44 = vpop.f32.mrf.mxu1  ;;  %v4068_v19 = vpop.f32.mrf.mxu0 }
 0x2ed   : > { %v3519_v55 = vadd.f32 %v3466_v44, %v8372_v17 }
 0x2ee   : > { %v3468_v60 = vpop.f32.mrf.mxu1  ;;  %v4070_v57 = vpop.f32.mrf.mxu0 }
 0x2ef   : > { %v8603_v49 = vadd.f32 %v4068_v19, %v3519_v55 }
 0x2f0   : > { %v3469_v7 = vpop.f32.mrf.mxu1  ;;  %v4071_v40 = vpop.f32.mrf.mxu0 }
 0x2f1   : > { %v3520_v50 = vadd.f32 %v3469_v7, %v8379_v27 }
 0x2f2   : > { %v3471_v42 = vpop.f32.mrf.mxu1  ;;  %v4073_v26 = vpop.f32.mrf.mxu0 }
 0x2f3   : > { %v8606_v51 = vadd.f32 %v4071_v40, %v3520_v50 }
 0x2f4   : > { %v3474_v62 = vpop.f32.mrf.mxu1  ;;  %v4076_v28 = vpop.f32.mrf.mxu0 }
 0x2f5   : > { %v3521_v63 = vadd.f32 %v3474_v62, %v8388_v6 }
 0x2f6   : > { %v3476_v36 = vpop.f32.mrf.mxu1  ;;  %v4078_v24 = vpop.f32.mrf.mxu0 }
 0x2f7   : > { %v8609_v18 = vadd.f32 %v4076_v28, %v3521_v63 }
 0x2f8   : > { %v3477_v17 = vpop.f32.mrf.mxu1  ;;  %v4079_v3 = vpop.f32.mrf.mxu0 }
 0x2f9   : > { %v3522_v2 = vadd.f32 %v3477_v17, %v8395_v10 }
 0x2fa   : > { %v3479_v9 = vpop.f32.mrf.mxu1  ;;  %v4081_v34 = vpop.f32.mrf.mxu0 }
 0x2fb   : > { %v8612_v59 = vadd.f32 %v4079_v3, %v3522_v2 }
 0x2fc   : > { %v3482_v27 = vpop.f32.mrf.mxu1  ;;  %v4084_v52 = vpop.f32.mrf.mxu0 }
 0x2fd   : > { %v3523_v21 = vadd.f32 %v3482_v27, %v8404_v22  ;;  %v8625_v22 = vld [vmem:[%s8744_s2] ss:$0 sm:$0xff] }
 0x2fe   : > { %v3484_v41 = vpop.f32.mrf.mxu1  ;;  %v4086_v1 = vpop.f32.mrf.mxu0 }
 0x2ff   : > { %v8615_v6 = vadd.f32 %v4084_v52, %v3523_v21 }
 0x300   : > { %v3485_v5 = vpop.f32.mrf.mxu1  ;;  %v4087_v61 = vpop.f32.mrf.mxu0 }
 0x301   : > { %v3524_v46 = vadd.f32 %v3485_v5, %v8411_v14 }
 0x302   : > { %v3487_v44 = vpop.f32.mrf.mxu1  ;;  %v4089_v19 = vpop.f32.mrf.mxu0 }
 0x303   : > { %v8618_v10 = vadd.f32 %v4087_v61, %v3524_v46 }
 0x304   : > { %v4675_v55 = vpop.f32.mrf.mxu1  ;;  %v5140_v60 = vpop.f32.mrf.mxu0 }
 0x305   : > { %v4818_v57 = vadd.f32 %v4675_v55, %v8420_v53 }
 0x306   : > { %v4677_v7 = vpop.f32.mrf.mxu1  ;;  %v5142_v40 = vpop.f32.mrf.mxu0 }
 0x307   : > { %v5283_v50 = vadd.f32 %v5140_v60, %v4818_v57 }
 0x308   : > { %v4678_v42 = vpop.f32.mrf.mxu1  ;;  %v5143_v26 = vpop.f32.mrf.mxu0 }
 0x309   : > { %v5326_v14 = vadd.f32 %v8625_v22, %v5283_v50  ;;  %v4819_v62 = vadd.f32 %v4678_v42, %v8427_v39 }
 0x30a   : > { %v4680_v53 = vpop.f32.mrf.mxu1  ;;  %v5145_v28 = vpop.f32.mrf.mxu0 }
 0x30b   : > { %v5362_v63 = vmax.f32 %v5326_v14, 0.0  ;;  %v5284_v36 = vadd.f32 %v5143_v26, %v4819_v62 }
 0x30c   : > { %v4683_v24 = vpop.f32.mrf.mxu1  ;;  %v5148_v17 = vpop.f32.mrf.mxu0 }
 0x30d   : > { %5398 = vst [vmem:[%s8632_s21] sm:$0xff] %v5362_v63  ;;  %v5327_v3 = vadd.f32 %v8625_v22, %v5284_v36  ;;  %v4820_v2 = vadd.f32 %v4683_v24, %v8436_v8 }
 0x30e   : > { %v4685_v39 = vpop.f32.mrf.mxu1  ;;  %v5150_v9 = vpop.f32.mrf.mxu0 }
 0x30f   : > { %v5363_v34 = vmax.f32 %v5327_v3, 0.0  ;;  %v5285_v27 = vadd.f32 %v5148_v17, %v4820_v2 }
 0x310   : > { %v4686_v52 = vpop.f32.mrf.mxu1  ;;  %v5151_v21 = vpop.f32.mrf.mxu0 }
 0x311   : > { %5399 = vst [vmem:[%s8632_s21 + $0x8] sm:$0xff] %v5363_v34  ;;  %v5328_v41 = vadd.f32 %v8625_v22, %v5285_v27  ;;  %v4821_v1 = vadd.f32 %v4686_v52, %v8443_v31 }
 0x312   : > { %v4688_v5 = vpop.f32.mrf.mxu1  ;;  %v5153_v61 = vpop.f32.mrf.mxu0 }
 0x313   : > { %v5364_v46 = vmax.f32 %v5328_v41, 0.0  ;;  %v5286_v44 = vadd.f32 %v5151_v21, %v4821_v1 }
 0x314   : > { %v4691_v19 = vpop.f32.mrf.mxu1  ;;  %v5156_v55 = vpop.f32.mrf.mxu0 }
 0x315   : > { %5400 = vst [vmem:[%s8632_s21 + $0x10] sm:$0xff] %v5364_v46  ;;  %v5329_v8 = vadd.f32 %v8625_v22, %v5286_v44  ;;  %v4822_v60 = vadd.f32 %v4691_v19, %v8452_v23 }
 0x316   : > { %v4693_v57 = vpop.f32.mrf.mxu1  ;;  %v5158_v7 = vpop.f32.mrf.mxu0 }
 0x317   : > { %v5365_v40 = vmax.f32 %v5329_v8, 0.0  ;;  %v5287_v50 = vadd.f32 %v5156_v55, %v4822_v60 }
 0x318   : > { %v4694_v42 = vpop.f32.mrf.mxu1  ;;  %v5159_v26 = vpop.f32.mrf.mxu0 }
 0x319   : > { %5401 = vst [vmem:[%s8632_s21 + $0x18] sm:$0xff] %v5365_v40  ;;  %v5330_v31 = vadd.f32 %v8625_v22, %v5287_v50  ;;  %v4823_v14 = vadd.f32 %v4694_v42, %v8459_v56 }
 0x31a   : > { %v4696_v62 = vpop.f32.mrf.mxu1  ;;  %v5161_v53 = vpop.f32.mrf.mxu0 }
 0x31b   : > { %v5366_v28 = vmax.f32 %v5330_v31, 0.0  ;;  %v5288_v63 = vadd.f32 %v5159_v26, %v4823_v14 }
 0x31c   : > { %v4699_v36 = vpop.f32.mrf.mxu1  ;;  %v5164_v24 = vpop.f32.mrf.mxu0 }
 0x31d   : > { %5402 = vst [vmem:[%s8632_s21 + $0x20] sm:$0xff] %v5366_v28  ;;  %v5331_v23 = vadd.f32 %v8625_v22, %v5288_v63  ;;  %v4824_v17 = vadd.f32 %v4699_v36, %v8468_v11 }
 0x31e   : > { %v4701_v3 = vpop.f32.mrf.mxu1  ;;  %v5166_v2 = vpop.f32.mrf.mxu0 }
 0x31f   : > { %v5367_v39 = vmax.f32 %v5331_v23, 0.0  ;;  %v5289_v9 = vadd.f32 %v5164_v24, %v4824_v17 }
 0x320   : > { %v4702_v34 = vpop.f32.mrf.mxu1  ;;  %v5167_v27 = vpop.f32.mrf.mxu0 }
 0x321   : > { %5403 = vst [vmem:[%s8632_s21 + $0x28] sm:$0xff] %v5367_v39  ;;  %v5332_v56 = vadd.f32 %v8625_v22, %v5289_v9  ;;  %v4825_v52 = vadd.f32 %v4702_v34, %v8475_v16 }
 0x322   : > { %v4704_v21 = vpop.f32.mrf.mxu1  ;;  %v5169_v41 = vpop.f32.mrf.mxu0 }
 0x323   : > { %v5368_v1 = vmax.f32 %v5332_v56, 0.0  ;;  %v5290_v5 = vadd.f32 %v5167_v27, %v4825_v52 }
 0x324   : > { %v4707_v61 = vpop.f32.mrf.mxu1  ;;  %v5172_v46 = vpop.f32.mrf.mxu0 }
 0x325   : > { %5404 = vst [vmem:[%s8632_s21 + $0x30] sm:$0xff] %v5368_v1  ;;  %v5333_v11 = vadd.f32 %v8625_v22, %v5290_v5  ;;  %v4826_v44 = vadd.f32 %v4707_v61, %v8484_v38 }
 0x326   : > { %v4709_v19 = vpop.f32.mrf.mxu1  ;;  %v5174_v55 = vpop.f32.mrf.mxu0 }
 0x327   : > { %v5369_v8 = vmax.f32 %v5333_v11, 0.0  ;;  %v5291_v60 = vadd.f32 %v5172_v46, %v4826_v44  ;;  %v9033_v11 = vld [vmem:[#allocation4_spill] sm:$0xff] }
 0x328   : > { %v4710_v57 = vpop.f32.mrf.mxu1  ;;  %v5175_v7 = vpop.f32.mrf.mxu0 }
 0x329   : > { %5405 = vst [vmem:[%s8632_s21 + $0x38] sm:$0xff] %v5369_v8  ;;  %v5334_v16 = vadd.f32 %v8625_v22, %v5291_v60  ;;  %v4827_v40 = vadd.f32 %v4710_v57, %v8491_v25 }
 0x32a   : > { %v4712_v50 = vpop.f32.mrf.mxu1  ;;  %v5177_v42 = vpop.f32.mrf.mxu0 }
 0x32b   : > { %v5370_v26 = vmax.f32 %v5334_v16, 0.0  ;;  %v5292_v31 = vadd.f32 %v5175_v7, %v4827_v40  ;;  %v9034_v16 = vld [vmem:[#allocation7_spill] sm:$0xff] }
 0x32c   : > { %v4715_v14 = vpop.f32.mrf.mxu1  ;;  %v5180_v62 = vpop.f32.mrf.mxu0 }
 0x32d   : > { %5406 = vst [vmem:[%s8632_s21 + $0x40] sm:$0xff] %v5370_v26  ;;  %v5335_v38 = vadd.f32 %v8625_v22, %v5292_v31  ;;  %v4828_v53 = vadd.f32 %v4715_v14, %v8500_v48 }
 0x32e   : > { %v4717_v28 = vpop.f32.mrf.mxu1  ;;  %v5182_v63 = vpop.f32.mrf.mxu0 }
 0x32f   : > { %v5371_v36 = vmax.f32 %v5335_v38, 0.0  ;;  %v5293_v24 = vadd.f32 %v5180_v62, %v4828_v53 }
 0x330   : > { %v4718_v23 = vpop.f32.mrf.mxu1  ;;  %v5183_v17 = vpop.f32.mrf.mxu0 }
 0x331   : > { %5407 = vst [vmem:[%s8632_s21 + $0x48] sm:$0xff] %v5371_v36  ;;  %v5336_v25 = vadd.f32 %v8625_v22, %v5293_v24  ;;  %v4829_v3 = vadd.f32 %v4718_v23, %v8507_v33 }
 0x332   : > { %v4720_v2 = vpop.f32.mrf.mxu1  ;;  %v5185_v39 = vpop.f32.mrf.mxu0 }
 0x333   : > { %v5372_v9 = vmax.f32 %v5336_v25, 0.0  ;;  %v5294_v34 = vadd.f32 %v5183_v17, %v4829_v3 }
 0x334   : > { %v4723_v27 = vpop.f32.mrf.mxu1  ;;  %v5188_v56 = vpop.f32.mrf.mxu0 }
 0x335   : > { %5408 = vst [vmem:[%s8632_s21 + $0x50] sm:$0xff] %v5372_v9  ;;  %v5337_v48 = vadd.f32 %v8625_v22, %v5294_v34  ;;  %v4830_v52 = vadd.f32 %v4723_v27, %v8516_v32 }
 0x336   : > { %v4725_v21 = vpop.f32.mrf.mxu1  ;;  %v5190_v41 = vpop.f32.mrf.mxu0 }
 0x337   : > { %v5373_v1 = vmax.f32 %v5337_v48, 0.0  ;;  %v5295_v5 = vadd.f32 %v5188_v56, %v4830_v52 }
 0x338   : > { %v4726_v61 = vpop.f32.mrf.mxu1  ;;  %v5191_v46 = vpop.f32.mrf.mxu0 }
 0x339   : > { %5409 = vst [vmem:[%s8632_s21 + $0x58] sm:$0xff] %v5373_v1  ;;  %v5338_v33 = vadd.f32 %v8625_v22, %v5295_v5  ;;  %v4831_v44 = vadd.f32 %v4726_v61, %v9033_v11 }
 0x33a   : > { %v4728_v19 = vpop.f32.mrf.mxu1  ;;  %v5193_v55 = vpop.f32.mrf.mxu0 }
 0x33b   : > { %v5374_v8 = vmax.f32 %v5338_v33, 0.0  ;;  %v5296_v60 = vadd.f32 %v5191_v46, %v4831_v44 }
 0x33c   : > { %v4731_v57 = vpop.f32.mrf.mxu1  ;;  %v5196_v7 = vpop.f32.mrf.mxu0 }
 0x33d   : > { %5410 = vst [vmem:[%s8632_s21 + $0x60] sm:$0xff] %v5374_v8  ;;  %v5339_v32 = vadd.f32 %v8625_v22, %v5296_v60  ;;  %v4832_v40 = vadd.f32 %v4731_v57, %v9034_v16 }
 0x33e   : > { %v4733_v50 = vpop.f32.mrf.mxu1  ;;  %v5198_v42 = vpop.f32.mrf.mxu0 }
 0x33f   : > { %v5375_v26 = vmax.f32 %v5339_v32, 0.0  ;;  %v5297_v31 = vadd.f32 %v5196_v7, %v4832_v40 }
 0x340   : > { %v4734_v14 = vpop.f32.mrf.mxu1  ;;  %v5199_v62 = vpop.f32.mrf.mxu0 }
 0x341   : > { %5411 = vst [vmem:[%s8632_s21 + $0x68] sm:$0xff] %v5375_v26  ;;  %v5340_v38 = vadd.f32 %v8625_v22, %v5297_v31  ;;  %v4833_v53 = vadd.f32 %v4734_v14, %v8540_v20 }
 0x342   : > { %v4736_v28 = vpop.f32.mrf.mxu1  ;;  %v5201_v63 = vpop.f32.mrf.mxu0 }
 0x343   : > { %v5376_v36 = vmax.f32 %v5340_v38, 0.0  ;;  %v5298_v24 = vadd.f32 %v5199_v62, %v4833_v53 }
 0x344   : > { %v4739_v23 = vpop.f32.mrf.mxu1  ;;  %v5204_v17 = vpop.f32.mrf.mxu0 }
 0x345   : > { %5412 = vst [vmem:[%s8632_s21 + $0x70] sm:$0xff] %v5376_v36  ;;  %v5341_v25 = vadd.f32 %v8625_v22, %v5298_v24  ;;  %v4834_v3 = vadd.f32 %v4739_v23, %v8548_v15 }
 0x346   : > { %v4741_v2 = vpop.f32.mrf.mxu1  ;;  %v5206_v39 = vpop.f32.mrf.mxu0 }
 0x347   : > { %v5377_v9 = vmax.f32 %v5341_v25, 0.0  ;;  %v5299_v34 = vadd.f32 %v5204_v17, %v4834_v3 }
 0x348   : > { %v4742_v27 = vpop.f32.mrf.mxu1  ;;  %v5207_v56 = vpop.f32.mrf.mxu0 }
 0x349   : > { %5413 = vst [vmem:[%s8632_s21 + $0x78] sm:$0xff] %v5377_v9  ;;  %v5342_v20 = vadd.f32 %v8625_v22, %v5299_v34  ;;  %v4835_v48 = vadd.f32 %v4742_v27, %v8556_v45 }
 0x34a   : > { %v4744_v52 = vpop.f32.mrf.mxu1  ;;  %v5209_v21 = vpop.f32.mrf.mxu0 }
 0x34b   : > { %v5378_v41 = vmax.f32 %v5342_v20, 0.0  ;;  %v5300_v1 = vadd.f32 %v5207_v56, %v4835_v48 }
 0x34c   : > { %v4747_v5 = vpop.f32.mrf.mxu1  ;;  %v5212_v61 = vpop.f32.mrf.mxu0 }
 0x34d   : > { %5414 = vst [vmem:[%s8632_s21 + $0x80] sm:$0xff] %v5378_v41  ;;  %v5343_v15 = vadd.f32 %v8625_v22, %v5300_v1  ;;  %v4836_v46 = vadd.f32 %v4747_v5, %v8561_v37 }
 0x34e   : > { %v4749_v33 = vpop.f32.mrf.mxu1  ;;  %v5214_v11 = vpop.f32.mrf.mxu0 }
 0x34f   : > { %v5379_v44 = vmax.f32 %v5343_v15, 0.0  ;;  %v5301_v19 = vadd.f32 %v5212_v61, %v4836_v46 }
 0x350   : > { %v4750_v55 = vpop.f32.mrf.mxu1  ;;  %v5215_v8 = vpop.f32.mrf.mxu0 }
 0x351   : > { %5415 = vst [vmem:[%s8632_s21 + $0x88] sm:$0xff] %v5379_v44  ;;  %v5344_v45 = vadd.f32 %v8625_v22, %v5301_v19  ;;  %v4837_v60 = vadd.f32 %v4750_v55, %v8568_v29 }
 0x352   : > { %v4752_v57 = vpop.f32.mrf.mxu1  ;;  %v5217_v7 = vpop.f32.mrf.mxu0 }
 0x353   : > { %v5380_v32 = vmax.f32 %v5344_v45, 0.0  ;;  %v5302_v16 = vadd.f32 %v5215_v8, %v4837_v60 }
 0x354   : > { %v4755_v40 = vpop.f32.mrf.mxu1  ;;  %v5220_v50 = vpop.f32.mrf.mxu0 }
 0x355   : > { %5416 = vst [vmem:[%s8632_s21 + $0x90] sm:$0xff] %v5380_v32  ;;  %v5345_v37 = vadd.f32 %v8625_v22, %v5302_v16  ;;  %v4838_v42 = vadd.f32 %v4755_v40, %v8571_v58 }
 0x356   : > { %v4757_v26 = vpop.f32.mrf.mxu1  ;;  %v5222_v31 = vpop.f32.mrf.mxu0 }
 0x357   : > { %v5381_v14 = vmax.f32 %v5345_v37, 0.0  ;;  %v5303_v62 = vadd.f32 %v5220_v50, %v4838_v42 }
 0x358   : > { %v4758_v38 = vpop.f32.mrf.mxu1  ;;  %v5223_v53 = vpop.f32.mrf.mxu0 }
 0x359   : > { %5417 = vst [vmem:[%s8632_s21 + $0x98] sm:$0xff] %v5381_v14  ;;  %v5346_v29 = vadd.f32 %v8625_v22, %v5303_v62  ;;  %v4839_v28 = vadd.f32 %v4758_v38, %v8576_v13 }
 0x35a   : > { %v4760_v63 = vpop.f32.mrf.mxu1  ;;  %v5225_v36 = vpop.f32.mrf.mxu0 }
 0x35b   : > { %v5382_v24 = vmax.f32 %v5346_v29, 0.0  ;;  %v5304_v23 = vadd.f32 %v5223_v53, %v4839_v28 }
 0x35c   : > { %v4763_v17 = vpop.f32.mrf.mxu1  ;;  %v5228_v25 = vpop.f32.mrf.mxu0 }
 0x35d   : > { %5418 = vst [vmem:[%s8632_s21 + $0xa0] sm:$0xff] %v5382_v24  ;;  %v5347_v58 = vadd.f32 %v8625_v22, %v5304_v23  ;;  %v4840_v3 = vadd.f32 %v4763_v17, %v8579_v47 }
 0x35e   : > { %v4765_v2 = vpop.f32.mrf.mxu1  ;;  %v5230_v39 = vpop.f32.mrf.mxu0 }
 0x35f   : > { %v5383_v9 = vmax.f32 %v5347_v58, 0.0  ;;  %v5305_v34 = vadd.f32 %v5228_v25, %v4840_v3 }
 0x360   : > { %v4766_v27 = vpop.f32.mrf.mxu1  ;;  %v5231_v56 = vpop.f32.mrf.mxu0 }
 0x361   : > { %5419 = vst [vmem:[%s8632_s21 + $0xa8] sm:$0xff] %v5383_v9  ;;  %v5348_v13 = vadd.f32 %v8625_v22, %v5305_v34  ;;  %v4841_v20 = vadd.f32 %v4766_v27, %v8582_v0 }
 0x362   : > { %v4768_v48 = vpop.f32.mrf.mxu1  ;;  %v5233_v52 = vpop.f32.mrf.mxu0 }
 0x363   : > { %v5384_v21 = vmax.f32 %v5348_v13, 0.0  ;;  %v5306_v41 = vadd.f32 %v5231_v56, %v4841_v20 }
 0x364   : > { %v4771_v1 = vpop.f32.mrf.mxu1  ;;  %v5236_v5 = vpop.f32.mrf.mxu0 }
 0x365   : > { %5420 = vst [vmem:[%s8632_s21 + $0xb0] sm:$0xff] %v5384_v21  ;;  %v5349_v47 = vadd.f32 %v8625_v22, %v5306_v41  ;;  %v4842_v61 = vadd.f32 %v4771_v1, %v8585_v43 }
 0x366   : > { %v4773_v15 = vpop.f32.mrf.mxu1  ;;  %v5238_v46 = vpop.f32.mrf.mxu0 }
 0x367   : > { %v5385_v33 = vmax.f32 %v5349_v47, 0.0  ;;  %v5307_v11 = vadd.f32 %v5236_v5, %v4842_v61 }
 0x368   : > { %v4774_v44 = vpop.f32.mrf.mxu1  ;;  %v5239_v19 = vpop.f32.mrf.mxu0 }
 0x369   : > { %5421 = vst [vmem:[%s8632_s21 + $0xb8] sm:$0xff] %v5385_v33  ;;  %v5350_v0 = vadd.f32 %v8625_v22, %v5307_v11  ;;  %v4843_v55 = vadd.f32 %v4774_v44, %v8588_v54 }
 0x36a   : > { %v4776_v8 = vpop.f32.mrf.mxu1  ;;  %v5241_v45 = vpop.f32.mrf.mxu0 }
 0x36b   : > { %v5386_v60 = vmax.f32 %v5350_v0, 0.0  ;;  %v5308_v57 = vadd.f32 %v5239_v19, %v4843_v55 }
 0x36c   : > { %v4779_v7 = vpop.f32.mrf.mxu1  ;;  %v5244_v32 = vpop.f32.mrf.mxu0 }
 0x36d   : > { %5422 = vst [vmem:[%s8632_s21 + $0xc0] sm:$0xff] %v5386_v60  ;;  %v5351_v43 = vadd.f32 %v8625_v22, %v5308_v57  ;;  %v4844_v16 = vadd.f32 %v4779_v7, %v8591_v4 }
 0x36e   : > { %v4781_v40 = vpop.f32.mrf.mxu1  ;;  %v5246_v50 = vpop.f32.mrf.mxu0 }
 0x36f   : > { %v5387_v37 = vmax.f32 %v5351_v43, 0.0  ;;  %v5309_v42 = vadd.f32 %v5244_v32, %v4844_v16 }
 0x370   : > { %v4782_v26 = vpop.f32.mrf.mxu1  ;;  %v5247_v31 = vpop.f32.mrf.mxu0 }
 0x371   : > { %5423 = vst [vmem:[%s8632_s21 + $0xc8] sm:$0xff] %v5387_v37  ;;  %v5352_v54 = vadd.f32 %v8625_v22, %v5309_v42  ;;  %v4845_v14 = vadd.f32 %v4782_v26, %v8594_v12 }
 0x372   : > { %v4784_v62 = vpop.f32.mrf.mxu1  ;;  %v5249_v38 = vpop.f32.mrf.mxu0 }
 0x373   : > { %v5388_v53 = vmax.f32 %v5352_v54, 0.0  ;;  %v5310_v29 = vadd.f32 %v5247_v31, %v4845_v14 }
 0x374   : > { %v4787_v28 = vpop.f32.mrf.mxu1  ;;  %v5252_v63 = vpop.f32.mrf.mxu0 }
 0x375   : > { %5424 = vst [vmem:[%s8632_s21 + $0xd0] sm:$0xff] %v5388_v53  ;;  %v5353_v4 = vadd.f32 %v8625_v22, %v5310_v29  ;;  %v4846_v36 = vadd.f32 %v4787_v28, %v8597_v30 }
 0x376   : > { %v4789_v24 = vpop.f32.mrf.mxu1  ;;  %v5254_v23 = vpop.f32.mrf.mxu0 }
 0x377   : > { %v5389_v17 = vmax.f32 %v5353_v4, 0.0  ;;  %v5311_v25 = vadd.f32 %v5252_v63, %v4846_v36 }
 0x378   : > { %v4790_v58 = vpop.f32.mrf.mxu1  ;;  %v5255_v3 = vpop.f32.mrf.mxu0 }
 0x379   : > { %5425 = vst [vmem:[%s8632_s21 + $0xd8] sm:$0xff] %v5389_v17  ;;  %v5354_v12 = vadd.f32 %v8625_v22, %v5311_v25  ;;  %v4847_v2 = vadd.f32 %v4790_v58, %v8600_v35 }
 0x37a   : > { %v4792_v39 = vpop.f32.mrf.mxu1  ;;  %v5257_v9 = vpop.f32.mrf.mxu0 }
 0x37b   : > { %v5390_v34 = vmax.f32 %v5354_v12, 0.0  ;;  %v5312_v27 = vadd.f32 %v5255_v3, %v4847_v2 }
 0x37c   : > { %v4795_v56 = vpop.f32.mrf.mxu1  ;;  %v5260_v13 = vpop.f32.mrf.mxu0 }
 0x37d   : > { %5426 = vst [vmem:[%s8632_s21 + $0xe0] sm:$0xff] %v5390_v34  ;;  %v5355_v30 = vadd.f32 %v8625_v22, %v5312_v27  ;;  %v4848_v20 = vadd.f32 %v4795_v56, %v8603_v49 }
 0x37e   : > { %v4797_v48 = vpop.f32.mrf.mxu1  ;;  %v5262_v52 = vpop.f32.mrf.mxu0 }
 0x37f   : > { %v5391_v21 = vmax.f32 %v5355_v30, 0.0  ;;  %v5313_v41 = vadd.f32 %v5260_v13, %v4848_v20 }
 0x380   : > { %v4798_v1 = vpop.f32.mrf.mxu1  ;;  %v5263_v5 = vpop.f32.mrf.mxu0 }
 0x381   : > { %5427 = vst [vmem:[%s8632_s21 + $0xe8] sm:$0xff] %v5391_v21  ;;  %v5356_v35 = vadd.f32 %v8625_v22, %v5313_v41  ;;  %v4849_v47 = vadd.f32 %v4798_v1, %v8606_v51 }
 0x382   : > { %v4800_v61 = vpop.f32.mrf.mxu1  ;;  %v5265_v15 = vpop.f32.mrf.mxu0 }
 0x383   : > { %v5392_v46 = vmax.f32 %v5356_v35, 0.0  ;;  %v5314_v33 = vadd.f32 %v5263_v5, %v4849_v47 }
 0x384   : > { %v4803_v11 = vpop.f32.mrf.mxu1  ;;  %v5268_v44 = vpop.f32.mrf.mxu0 }
 0x385   : > { %5428 = vst [vmem:[%s8632_s21 + $0xf0] sm:$0xff] %v5392_v46  ;;  %v5357_v49 = vadd.f32 %v8625_v22, %v5314_v33  ;;  %v4850_v19 = vadd.f32 %v4803_v11, %v8609_v18 }
 0x386   : > { %v4805_v0 = vpop.f32.mrf.mxu1  ;;  %v5270_v55 = vpop.f32.mrf.mxu0 }
 0x387   : > { %v5393_v8 = vmax.f32 %v5357_v49, 0.0  ;;  %v5315_v45 = vadd.f32 %v5268_v44, %v4850_v19 }
 0x388   : > { %v4806_v60 = vpop.f32.mrf.mxu1  ;;  %v5271_v57 = vpop.f32.mrf.mxu0 }
 0x389   : > { %5429 = vst [vmem:[%s8632_s21 + $0xf8] sm:$0xff] %v5393_v8  ;;  %v5358_v51 = vadd.f32 %v8625_v22, %v5315_v45  ;;  %v4851_v7 = vadd.f32 %v4806_v60, %v8612_v59 }
 0x38a   : > { %v4808_v32 = vpop.f32.mrf.mxu1  ;;  %v5273_v43 = vpop.f32.mrf.mxu0 }
 0x38b   : > { %v5394_v16 = vmax.f32 %v5358_v51, 0.0  ;;  %v5316_v40 = vadd.f32 %v5271_v57, %v4851_v7 }
 0x38c   : > { %v4811_v50 = vpop.f32.mrf.mxu1  ;;  %v5276_v37 = vpop.f32.mrf.mxu0 }
 0x38d   : > { %5430 = vst [vmem:[%s8632_s21 + $0x100] sm:$0xff] %v5394_v16  ;;  %v5359_v18 = vadd.f32 %v8625_v22, %v5316_v40  ;;  %v4852_v42 = vadd.f32 %v4811_v50, %v8615_v6 }
 0x38e   : > { %v4813_v26 = vpop.f32.mrf.mxu1  ;;  %v5278_v31 = vpop.f32.mrf.mxu0 }
 0x38f   : > { %v5395_v54 = vmax.f32 %v5359_v18, 0.0  ;;  %v5317_v14 = vadd.f32 %v5276_v37, %v4852_v42 }
 0x390   : > { %v4814_v62 = vpop.f32.mrf.mxu1  ;;  %v5279_v59 = vpop.f32.mrf.mxu0 }
 0x391   : > { %5431 = vst [vmem:[%s8632_s21 + $0x108] sm:$0xff] %v5395_v54  ;;  %v5360_v38 = vadd.f32 %v8625_v22, %v5317_v14  ;;  %v4853_v53 = vadd.f32 %v4814_v62, %v8618_v10 }
 0x392   : > { %v4816_v29 = vpop.f32.mrf.mxu1  ;;  %v5281_v28 = vpop.f32.mrf.mxu0 }
 0x393   : > { %v5396_v63 = vmax.f32 %v5360_v38, 0.0  ;;  %v5318_v4 = vadd.f32 %v5279_v59, %v4853_v53 }
 0x395   : > { %5432 = vst [vmem:[%s8632_s21 + $0x110] sm:$0xff] %v5396_v63  ;;  %v5361_v36 = vadd.f32 %v8625_v22, %v5318_v4 }
 0x397   : > { %v5397_v6 = vmax.f32 %v5361_v36, 0.0 }
 0x399   : > { %5433 = vst [vmem:[%s8632_s21 + $0x118] sm:$0xff] %v5397_v6 }
 0x39a PF: > { %s13_s12 = sadd.s32 1, %s6098_s12  }
 0x39b   : > { %p10_p4 = scmp.ge.s32.totalorder %s13_s12, 4  }
 0x39d   :  { %12 = sbr.rel (!%p10_p4) target bundleno = 1 (0x1), region = 70 }

</bundles_post_ra>
